<compile_context>
chip_gen: v7x
topology: tpu7x:2x2x1
jax: 0.10.0
libtpu: 0.0.40
codegen_flags: <defaults>
</compile_context>

<pallas_src>
import jax
import jax.numpy as jnp
import numpy as np
from jax import lax
from jax.experimental import pallas as pl
from jax.experimental.pallas import tpu as pltpu


# ------------------------------ Pallas kernel --------------------------------

def _fused_kernel(xe_ref, xo_ref, w1b_ref, b1v_ref, w2b_ref, b2v_ref,
                  fw1_ref, fb1_ref, fw2_ref, fb2_ref, o_ref):
    f32 = jnp.float32
    bf16 = jnp.bfloat16
    tb = xe_ref.shape[0]

    xe = xe_ref[...]                       # (tb, 14, 28) bf16, even image rows
    xo = xo_ref[...]                       # (tb, 14, 28) bf16, odd image rows

    def x_rows(c):
        # rows x[b, 2*ph + c, :] for ph = 0..11, as a (tb*12, 28) bf16 matrix
        src = xe if (c % 2 == 0) else xo
        t = c // 2
        return src[:, t:t + 12, :].reshape(tb * 12, 28)

    # Build the 6 shifted row slabs once; both parities reuse them.
    xr = [x_rows(c) for c in range(6)]

    # ---- conv1 + ReLU (even/odd output rows) + 2x1 row pool ------------------
    # 5 width-band matmuls per parity: (tb*12, 28) @ (28, 384) -> lanes =
    # ow1*16 + c1 (lane-dense 384).
    y1e = None                              # pre-act for output rows 2*ph
    y1o = None                              # pre-act for output rows 2*ph + 1
    for di in range(5):
        w = w1b_ref[di]                     # (28, 384) bf16
        pe = jnp.dot(xr[di], w, preferred_element_type=f32)
        po = jnp.dot(xr[di + 1], w, preferred_element_type=f32)
        y1e = pe if y1e is None else y1e + pe
        y1o = po if y1o is None else y1o + po
    b1 = b1v_ref[...]                       # (1, 384)
    # Row-pool is a plain SUM here; the full 1/4 average factor of pool1 is
    # folded into the conv2 band weights.
    rp = jnp.maximum(y1e + b1, 0.0) + jnp.maximum(y1o + b1, 0.0)
    rp3 = rp.reshape(tb, 12, 384)           # (tb, ph, ow1*16 + c1)

    # ---- 1x2 column pool + conv2 + ReLU (pool folded into band weights) ------
    # 5 row-tap matmuls: (tb*8, 384) @ (384, 256) -> lanes = ow2*32 + c2.
    y2 = None
    for di in range(5):
        slab = rp3[:, di:di + 8, :].reshape(tb * 8, 384).astype(bf16)
        p = jnp.dot(slab, w2b_ref[di], preferred_element_type=f32)
        y2 = p if y2 is None else y2 + p
    y2 = jnp.maximum(y2 + b2v_ref[...], 0.0)
    y23 = y2.reshape(tb, 8, 256)            # (tb, oh2, ow2*32 + c2)

    # ---- 2x2 pool + NCHW flatten + fc1 + ReLU (all folded into fw1_ref) ------
    h = None
    for j in range(8):
        p = jnp.dot(y23[:, j, :].astype(bf16), fw1_ref[j],
                    preferred_element_type=f32)
        h = p if h is None else h + p
    h = jnp.maximum(h + fb1_ref[...], 0.0)

    # ---- fc2 (output padded to 128 lanes -> unmasked lane-dense store) -------
    out = jnp.dot(h.astype(bf16), fw2_ref[...], preferred_element_type=f32)
    o_ref[...] = out + fb2_ref[...]


# ------------------------------ Host wrapper ---------------------------------

def _round_up(n, m):
    return ((n + m - 1) // m) * m


def simple_convnet_forward(x_nchw, params, *, tile_b=128):
    assert x_nchw.shape[1:] == (1, 28, 28), x_nchw.shape
    B = x_nchw.shape[0]
    tb = min(tile_b, _round_up(B, 8))
    Bp = _round_up(B, tb)

    x = x_nchw.reshape(B, 28, 28).astype(jnp.bfloat16)
    if Bp != B:
        x = jnp.pad(x, ((0, Bp - B), (0, 0), (0, 0)))
    xe = x[:, 0::2, :]                      # (Bp, 14, 28) even image rows, bf16
    xo = x[:, 1::2, :]                      # (Bp, 14, 28) odd image rows,  bf16

    def w_spec(shape):                      # VMEM-resident weight / bias
        return pl.BlockSpec(shape, lambda i, _s=shape: (0,) * len(_s))

    out = pl.pallas_call(
        _fused_kernel,
        out_shape=jax.ShapeDtypeStruct((Bp, 128), jnp.float32),
        grid=(Bp // tb,),
        in_specs=[
            pl.BlockSpec((tb, 14, 28), lambda i: (i, 0, 0)),   # xe (batch tile)
            pl.BlockSpec((tb, 14, 28), lambda i: (i, 0, 0)),   # xo (batch tile)
            w_spec((5, 28, 384)),     # conv1 width-band weights (bf16)
            w_spec((1, 384)),         # conv1 bias tiled over ow1
            w_spec((5, 384, 256)),    # pool1+conv2 band weights (bf16)
            w_spec((1, 256)),         # conv2 bias tiled over ow2
            w_spec((8, 256, 512)),    # pool2+flatten+fc1 folded weights (bf16)
            w_spec((1, 512)),         # fc1 bias
            w_spec((512, 128)),       # fc2 weights, zero-padded to 128 lanes
            w_spec((1, 128)),         # fc2 bias, zero-padded
        ],
        out_specs=pl.BlockSpec((tb, 128), lambda i: (i, 0)),
        compiler_params=pltpu.CompilerParams(
            dimension_semantics=("parallel",),
            vmem_limit_bytes=48 * 1024 * 1024),
    )(xe, xo, params["w1b"], params["b1v"], params["w2b"], params["b2v"],
      params["fw1e"], params["fb1v"], params["fw2p"], params["fb2p"])
    return out[:B, :10]


# -------------------- Kernel-layout parameter construction -------------------

def build_kernel_params(w1, b1, w2, b2, fc1_w, fc1_b, fc2_w, fc2_b):
    w1 = np.asarray(w1); b1 = np.asarray(b1)
    w2 = np.asarray(w2); b2 = np.asarray(b2)
    fc1_w = np.asarray(fc1_w); fc1_b = np.asarray(fc1_b)
    fc2_w = np.asarray(fc2_w); fc2_b = np.asarray(fc2_b)

    # conv1 width-band: w1b[di][iw, ow*16 + c] = w1[c, 0, di, iw - ow]
    w1b = np.zeros((5, 28, 24 * 16), np.float32)
    for di in range(5):
        for dj in range(5):
            for ow in range(24):
                w1b[di, ow + dj, ow * 16:(ow + 1) * 16] = w1[:, 0, di, dj]
    b1v = np.tile(b1, 24).reshape(1, 24 * 16)

    # 2x2 pool1 (full 1/4 average) + conv2 band:
    # w2b[di][ow1*16 + c1, ow2*32 + c2] = 0.25 * w2[c2, c1, di, (ow1-2*ow2)//2]
    # (the kernel's row-pool is a plain sum, so both pool factors live here).
    w2b = np.zeros((5, 24 * 16, 8 * 32), np.float32)
    for di in range(5):
        for ow2 in range(8):
            for s in range(10):
                ow1 = 2 * ow2 + s
                w2b[di, ow1 * 16:(ow1 + 1) * 16, ow2 * 32:(ow2 + 1) * 32] = (
                    0.25 * w2[:, :, di, s // 2].T)
    b2v = np.tile(b2, 8).reshape(1, 8 * 32)

    # 2x2 pool2 + NCHW flatten + fc1 folded into one (8, 256, 512) tensor:
    # fw1e[2*ph+a, (2*pw+e)*32 + c2, n] = 0.25 * fc1_w[n, c2*16 + ph*4 + pw]
    fc1_w4 = fc1_w.reshape(512, 32, 4, 4)
    fw1e = np.zeros((8, 8 * 32, 512), np.float32)
    for ph in range(4):
        for pw in range(4):
            blk = 0.25 * fc1_w4[:, :, ph, pw].T          # (c2=32, n=512)
            for a in range(2):
                for e in range(2):
                    ow2 = 2 * pw + e
                    fw1e[2 * ph + a, ow2 * 32:(ow2 + 1) * 32, :] = blk
    fb1v = fc1_b.reshape(1, 512)

    # fc2 zero-padded to 128 output lanes.
    fw2p = np.zeros((512, 128), np.float32)
    fw2p[:, :10] = fc2_w.T
    fb2p = np.zeros((1, 128), np.float32)
    fb2p[0, :10] = fc2_b

    return dict(
        w1b=jnp.asarray(w1b, jnp.bfloat16),
        b1v=jnp.asarray(b1v, jnp.float32),
        w2b=jnp.asarray(w2b, jnp.bfloat16),
        b2v=jnp.asarray(b2v, jnp.float32),
        fw1e=jnp.asarray(fw1e, jnp.bfloat16),
        fb1v=jnp.asarray(fb1v, jnp.float32),
        fw2p=jnp.asarray(fw2p, jnp.bfloat16),
        fb2p=jnp.asarray(fb2p, jnp.float32),
    )


def make_params(key):
    ks = jax.random.split(key, 8)
    w1 = jax.random.normal(ks[0], (16, 1, 5, 5), jnp.float32) * 0.10   # OIHW
    b1 = jax.random.normal(ks[1], (16,), jnp.float32) * 0.10
    w2 = jax.random.normal(ks[2], (32, 16, 5, 5), jnp.float32) * 0.05  # OIHW
    b2 = jax.random.normal(ks[3], (32,), jnp.float32) * 0.05
    fc1_w = jax.random.normal(ks[4], (512, 512), jnp.float32) * 0.02   # (out,in) CHW
    fc1_b = jax.random.normal(ks[5], (512,), jnp.float32) * 0.02
    fc2_w = jax.random.normal(ks[6], (10, 512), jnp.float32) * 0.05
    fc2_b = jax.random.normal(ks[7], (10,), jnp.float32) * 0.05
    torch_params = (w1, b1, w2, b2, fc1_w, fc1_b, fc2_w, fc2_b)
    return build_kernel_params(*torch_params), torch_params


# ------------------------ Pure-JAX reference (NCHW) ---------------------------

def _avgpool2_nchw(x):
    b, c, h, w = x.shape
    return x.reshape(b, c, h // 2, 2, w // 2, 2).mean(axis=(3, 5))


def reference_forward(x_nchw, torch_params):
    w1, b1, w2, b2, fc1_w, fc1_b, fc2_w, fc2_b = torch_params
    dn = ("NCHW", "OIHW", "NCHW")
    y = lax.conv_general_dilated(x_nchw, w1, (1, 1), "VALID", dimension_numbers=dn)
    y = jnp.maximum(y + b1[None, :, None, None], 0.0)
    y = _avgpool2_nchw(y)
    y = lax.conv_general_dilated(y, w2, (1, 1), "VALID", dimension_numbers=dn)
    y = jnp.maximum(y + b2[None, :, None, None], 0.0)
    y = _avgpool2_nchw(y)
    y = y.reshape(y.shape[0], -1)                     # (B, 512) CHW order
    y = jnp.maximum(y @ fc1_w.T + fc1_b, 0.0)
    return y @ fc2_w.T + fc2_b


# ----------------------------------- Main -------------------------------------

if __name__ == "__main__":
    key = jax.random.PRNGKey(0)
    k_x, k_p = jax.random.split(key)
    x = jax.random.normal(k_x, (2, 1, 28, 28), jnp.float32)   # NCHW, batch=2

    params, torch_params = make_params(k_p)

    fwd = jax.jit(simple_convnet_forward)
    out = jax.block_until_ready(fwd(x, params))
    assert out.shape == (2, 10), out.shape

    ref = jax.block_until_ready(reference_forward(x, torch_params))
    err = float(jnp.max(jnp.abs(out - ref)))
    # bf16 MXU operands with f32 accumulation -> loosen tolerance accordingly.
    assert jnp.allclose(out, ref, atol=3e-2, rtol=3e-2), ("mismatch vs reference", err)

    print("KERNEL_OK")
</pallas_src>

<mosaic_0001>
module attributes {stable_mosaic.version = 11 : i64} {
  func.func @_fused_kernel(%arg0: i32, %arg1: memref<8x14x28xbf16, #tpu.memory_space<vmem>>, %arg2: memref<8x14x28xbf16, #tpu.memory_space<vmem>>, %arg3: memref<5x28x384xbf16, #tpu.memory_space<vmem>>, %arg4: memref<1x384xf32, #tpu.memory_space<vmem>>, %arg5: memref<5x384x256xbf16, #tpu.memory_space<vmem>>, %arg6: memref<1x256xf32, #tpu.memory_space<vmem>>, %arg7: memref<8x256x512xbf16, #tpu.memory_space<vmem>>, %arg8: memref<1x512xf32, #tpu.memory_space<vmem>>, %arg9: memref<512x128xbf16, #tpu.memory_space<vmem>>, %arg10: memref<1x128xf32, #tpu.memory_space<vmem>>, %arg11: memref<8x128xf32, #tpu.memory_space<vmem>>) attributes {dimension_semantics = [#tpu.dimension_semantics<parallel>], iteration_bounds = array<i64: 1>, scalar_prefetch = 0 : i64, scratch_operands = 0 : i64, tpu.core_type = #tpu.core_type<tc>, window_params = [{transform_indices = @transform_0, window_bounds = array<i64: 8, 14, 28>}, {transform_indices = @transform_1, window_bounds = array<i64: 8, 14, 28>}, {pipeline_mode = #tpu.pipeline_mode<synchronous>, transform_indices = @transform_2, window_bounds = array<i64: 5, 28, 384>}, {pipeline_mode = #tpu.pipeline_mode<synchronous>, transform_indices = @transform_3, window_bounds = array<i64: 1, 384>}, {pipeline_mode = #tpu.pipeline_mode<synchronous>, transform_indices = @transform_4, window_bounds = array<i64: 5, 384, 256>}, {pipeline_mode = #tpu.pipeline_mode<synchronous>, transform_indices = @transform_5, window_bounds = array<i64: 1, 256>}, {pipeline_mode = #tpu.pipeline_mode<synchronous>, transform_indices = @transform_6, window_bounds = array<i64: 8, 256, 512>}, {pipeline_mode = #tpu.pipeline_mode<synchronous>, transform_indices = @transform_7, window_bounds = array<i64: 1, 512>}, {pipeline_mode = #tpu.pipeline_mode<synchronous>, transform_indices = @transform_8, window_bounds = array<i64: 512, 128>}, {pipeline_mode = #tpu.pipeline_mode<synchronous>, transform_indices = @transform_9, window_bounds = array<i64: 1, 128>}, {transform_indices = @transform_10, window_bounds = array<i64: 8, 128>}]} {
    %c0 = arith.constant 0 : index
    %c0_0 = arith.constant 0 : index
    %c0_1 = arith.constant 0 : index
    %0 = vector.load %arg1[%c0, %c0_0, %c0_1] : memref<8x14x28xbf16, #tpu.memory_space<vmem>>, vector<8x14x28xbf16>
    %c0_2 = arith.constant 0 : index
    %c0_3 = arith.constant 0 : index
    %c0_4 = arith.constant 0 : index
    %1 = vector.load %arg2[%c0_2, %c0_3, %c0_4] : memref<8x14x28xbf16, #tpu.memory_space<vmem>>, vector<8x14x28xbf16>
    %2 = vector.extract_strided_slice %0 {offsets = [0, 0, 0], sizes = [8, 12, 28], strides = [1, 1, 1]} : vector<8x14x28xbf16> to vector<8x12x28xbf16>
    %3 = vector.shape_cast %2 : vector<8x12x28xbf16> to vector<96x28xbf16>
    %4 = vector.extract_strided_slice %1 {offsets = [0, 0, 0], sizes = [8, 12, 28], strides = [1, 1, 1]} : vector<8x14x28xbf16> to vector<8x12x28xbf16>
    %5 = vector.shape_cast %4 : vector<8x12x28xbf16> to vector<96x28xbf16>
    %6 = vector.extract_strided_slice %0 {offsets = [0, 1, 0], sizes = [8, 12, 28], strides = [1, 1, 1]} : vector<8x14x28xbf16> to vector<8x12x28xbf16>
    %7 = vector.shape_cast %6 : vector<8x12x28xbf16> to vector<96x28xbf16>
    %8 = vector.extract_strided_slice %1 {offsets = [0, 1, 0], sizes = [8, 12, 28], strides = [1, 1, 1]} : vector<8x14x28xbf16> to vector<8x12x28xbf16>
    %9 = vector.shape_cast %8 : vector<8x12x28xbf16> to vector<96x28xbf16>
    %10 = vector.extract_strided_slice %0 {offsets = [0, 2, 0], sizes = [8, 12, 28], strides = [1, 1, 1]} : vector<8x14x28xbf16> to vector<8x12x28xbf16>
    %11 = vector.shape_cast %10 : vector<8x12x28xbf16> to vector<96x28xbf16>
    %12 = vector.extract_strided_slice %1 {offsets = [0, 2, 0], sizes = [8, 12, 28], strides = [1, 1, 1]} : vector<8x14x28xbf16> to vector<8x12x28xbf16>
    %13 = vector.shape_cast %12 : vector<8x12x28xbf16> to vector<96x28xbf16>
    %c0_5 = arith.constant 0 : index
    %c0_6 = arith.constant 0 : index
    %c0_7 = arith.constant 0 : index
    %14 = vector.load %arg3[%c0_5, %c0_6, %c0_7] : memref<5x28x384xbf16, #tpu.memory_space<vmem>>, vector<1x28x384xbf16>
    %15 = vector.shape_cast %14 : vector<1x28x384xbf16> to vector<28x384xbf16>
    %cst = arith.constant dense<0.000000e+00> : vector<96x384xf32>
    %16 = tpu.matmul %3, %15, %cst {dimension_numbers = #tpu.dot_dimension_numbers<[1], [0], [0], [1], [0, 0, 1, 1], [], []>} : vector<96x28xbf16>, vector<28x384xbf16>, vector<96x384xf32> -> vector<96x384xf32>
    %cst_8 = arith.constant dense<0.000000e+00> : vector<96x384xf32>
    %17 = tpu.matmul %5, %15, %cst_8 {dimension_numbers = #tpu.dot_dimension_numbers<[1], [0], [0], [1], [0, 0, 1, 1], [], []>} : vector<96x28xbf16>, vector<28x384xbf16>, vector<96x384xf32> -> vector<96x384xf32>
    %c1 = arith.constant 1 : index
    %c0_9 = arith.constant 0 : index
    %c0_10 = arith.constant 0 : index
    %18 = vector.load %arg3[%c1, %c0_9, %c0_10] : memref<5x28x384xbf16, #tpu.memory_space<vmem>>, vector<1x28x384xbf16>
    %19 = vector.shape_cast %18 : vector<1x28x384xbf16> to vector<28x384xbf16>
    %cst_11 = arith.constant dense<0.000000e+00> : vector<96x384xf32>
    %20 = tpu.matmul %5, %19, %cst_11 {dimension_numbers = #tpu.dot_dimension_numbers<[1], [0], [0], [1], [0, 0, 1, 1], [], []>} : vector<96x28xbf16>, vector<28x384xbf16>, vector<96x384xf32> -> vector<96x384xf32>
    %cst_12 = arith.constant dense<0.000000e+00> : vector<96x384xf32>
    %21 = tpu.matmul %7, %19, %cst_12 {dimension_numbers = #tpu.dot_dimension_numbers<[1], [0], [0], [1], [0, 0, 1, 1], [], []>} : vector<96x28xbf16>, vector<28x384xbf16>, vector<96x384xf32> -> vector<96x384xf32>
    %22 = arith.addf %16, %20 : vector<96x384xf32>
    %23 = arith.addf %17, %21 : vector<96x384xf32>
    %c2 = arith.constant 2 : index
    %c0_13 = arith.constant 0 : index
    %c0_14 = arith.constant 0 : index
    %24 = vector.load %arg3[%c2, %c0_13, %c0_14] : memref<5x28x384xbf16, #tpu.memory_space<vmem>>, vector<1x28x384xbf16>
    %25 = vector.shape_cast %24 : vector<1x28x384xbf16> to vector<28x384xbf16>
    %cst_15 = arith.constant dense<0.000000e+00> : vector<96x384xf32>
    %26 = tpu.matmul %7, %25, %cst_15 {dimension_numbers = #tpu.dot_dimension_numbers<[1], [0], [0], [1], [0, 0, 1, 1], [], []>} : vector<96x28xbf16>, vector<28x384xbf16>, vector<96x384xf32> -> vector<96x384xf32>
    %cst_16 = arith.constant dense<0.000000e+00> : vector<96x384xf32>
    %27 = tpu.matmul %9, %25, %cst_16 {dimension_numbers = #tpu.dot_dimension_numbers<[1], [0], [0], [1], [0, 0, 1, 1], [], []>} : vector<96x28xbf16>, vector<28x384xbf16>, vector<96x384xf32> -> vector<96x384xf32>
    %28 = arith.addf %22, %26 : vector<96x384xf32>
    %29 = arith.addf %23, %27 : vector<96x384xf32>
    %c3 = arith.constant 3 : index
    %c0_17 = arith.constant 0 : index
    %c0_18 = arith.constant 0 : index
    %30 = vector.load %arg3[%c3, %c0_17, %c0_18] : memref<5x28x384xbf16, #tpu.memory_space<vmem>>, vector<1x28x384xbf16>
    %31 = vector.shape_cast %30 : vector<1x28x384xbf16> to vector<28x384xbf16>
    %cst_19 = arith.constant dense<0.000000e+00> : vector<96x384xf32>
    %32 = tpu.matmul %9, %31, %cst_19 {dimension_numbers = #tpu.dot_dimension_numbers<[1], [0], [0], [1], [0, 0, 1, 1], [], []>} : vector<96x28xbf16>, vector<28x384xbf16>, vector<96x384xf32> -> vector<96x384xf32>
    %cst_20 = arith.constant dense<0.000000e+00> : vector<96x384xf32>
    %33 = tpu.matmul %11, %31, %cst_20 {dimension_numbers = #tpu.dot_dimension_numbers<[1], [0], [0], [1], [0, 0, 1, 1], [], []>} : vector<96x28xbf16>, vector<28x384xbf16>, vector<96x384xf32> -> vector<96x384xf32>
    %34 = arith.addf %28, %32 : vector<96x384xf32>
    %35 = arith.addf %29, %33 : vector<96x384xf32>
    %c4 = arith.constant 4 : index
    %c0_21 = arith.constant 0 : index
    %c0_22 = arith.constant 0 : index
    %36 = vector.load %arg3[%c4, %c0_21, %c0_22] : memref<5x28x384xbf16, #tpu.memory_space<vmem>>, vector<1x28x384xbf16>
    %37 = vector.shape_cast %36 : vector<1x28x384xbf16> to vector<28x384xbf16>
    %cst_23 = arith.constant dense<0.000000e+00> : vector<96x384xf32>
    %38 = tpu.matmul %11, %37, %cst_23 {dimension_numbers = #tpu.dot_dimension_numbers<[1], [0], [0], [1], [0, 0, 1, 1], [], []>} : vector<96x28xbf16>, vector<28x384xbf16>, vector<96x384xf32> -> vector<96x384xf32>
    %cst_24 = arith.constant dense<0.000000e+00> : vector<96x384xf32>
    %39 = tpu.matmul %13, %37, %cst_24 {dimension_numbers = #tpu.dot_dimension_numbers<[1], [0], [0], [1], [0, 0, 1, 1], [], []>} : vector<96x28xbf16>, vector<28x384xbf16>, vector<96x384xf32> -> vector<96x384xf32>
    %40 = arith.addf %34, %38 : vector<96x384xf32>
    %41 = arith.addf %35, %39 : vector<96x384xf32>
    %c0_25 = arith.constant 0 : index
    %c0_26 = arith.constant 0 : index
    %42 = vector.load %arg4[%c0_25, %c0_26] : memref<1x384xf32, #tpu.memory_space<vmem>>, vector<1x384xf32>
    %43 = vector.broadcast %42 : vector<1x384xf32> to vector<96x384xf32>
    %44 = arith.addf %40, %43 : vector<96x384xf32>
    %cst_27 = arith.constant 0.000000e+00 : f32
    %45 = vector.broadcast %cst_27 : f32 to vector<96x384xf32>
    %46 = arith.maximumf %44, %45 : vector<96x384xf32>
    %47 = vector.broadcast %42 : vector<1x384xf32> to vector<96x384xf32>
    %48 = arith.addf %41, %47 : vector<96x384xf32>
    %cst_28 = arith.constant 0.000000e+00 : f32
    %49 = vector.broadcast %cst_28 : f32 to vector<96x384xf32>
    %50 = arith.maximumf %48, %49 : vector<96x384xf32>
    %51 = arith.addf %46, %50 : vector<96x384xf32>
    %52 = vector.shape_cast %51 : vector<96x384xf32> to vector<8x12x384xf32>
    %53 = vector.extract_strided_slice %52 {offsets = [0, 0, 0], sizes = [8, 8, 384], strides = [1, 1, 1]} : vector<8x12x384xf32> to vector<8x8x384xf32>
    %54 = vector.shape_cast %53 : vector<8x8x384xf32> to vector<64x384xf32>
    %55 = arith.truncf %54 : vector<64x384xf32> to vector<64x384xbf16>
    %c0_29 = arith.constant 0 : index
    %c0_30 = arith.constant 0 : index
    %c0_31 = arith.constant 0 : index
    %56 = vector.load %arg5[%c0_29, %c0_30, %c0_31] : memref<5x384x256xbf16, #tpu.memory_space<vmem>>, vector<1x384x256xbf16>
    %57 = vector.shape_cast %56 : vector<1x384x256xbf16> to vector<384x256xbf16>
    %cst_32 = arith.constant dense<0.000000e+00> : vector<64x256xf32>
    %58 = tpu.matmul %55, %57, %cst_32 {dimension_numbers = #tpu.dot_dimension_numbers<[1], [0], [0], [1], [0, 0, 1, 1], [], []>} : vector<64x384xbf16>, vector<384x256xbf16>, vector<64x256xf32> -> vector<64x256xf32>
    %59 = vector.extract_strided_slice %52 {offsets = [0, 1, 0], sizes = [8, 8, 384], strides = [1, 1, 1]} : vector<8x12x384xf32> to vector<8x8x384xf32>
    %60 = vector.shape_cast %59 : vector<8x8x384xf32> to vector<64x384xf32>
    %61 = arith.truncf %60 : vector<64x384xf32> to vector<64x384xbf16>
    %c1_33 = arith.constant 1 : index
    %c0_34 = arith.constant 0 : index
    %c0_35 = arith.constant 0 : index
    %62 = vector.load %arg5[%c1_33, %c0_34, %c0_35] : memref<5x384x256xbf16, #tpu.memory_space<vmem>>, vector<1x384x256xbf16>
    %63 = vector.shape_cast %62 : vector<1x384x256xbf16> to vector<384x256xbf16>
    %cst_36 = arith.constant dense<0.000000e+00> : vector<64x256xf32>
    %64 = tpu.matmul %61, %63, %cst_36 {dimension_numbers = #tpu.dot_dimension_numbers<[1], [0], [0], [1], [0, 0, 1, 1], [], []>} : vector<64x384xbf16>, vector<384x256xbf16>, vector<64x256xf32> -> vector<64x256xf32>
    %65 = arith.addf %58, %64 : vector<64x256xf32>
    %66 = vector.extract_strided_slice %52 {offsets = [0, 2, 0], sizes = [8, 8, 384], strides = [1, 1, 1]} : vector<8x12x384xf32> to vector<8x8x384xf32>
    %67 = vector.shape_cast %66 : vector<8x8x384xf32> to vector<64x384xf32>
    %68 = arith.truncf %67 : vector<64x384xf32> to vector<64x384xbf16>
    %c2_37 = arith.constant 2 : index
    %c0_38 = arith.constant 0 : index
    %c0_39 = arith.constant 0 : index
    %69 = vector.load %arg5[%c2_37, %c0_38, %c0_39] : memref<5x384x256xbf16, #tpu.memory_space<vmem>>, vector<1x384x256xbf16>
    %70 = vector.shape_cast %69 : vector<1x384x256xbf16> to vector<384x256xbf16>
    %cst_40 = arith.constant dense<0.000000e+00> : vector<64x256xf32>
    %71 = tpu.matmul %68, %70, %cst_40 {dimension_numbers = #tpu.dot_dimension_numbers<[1], [0], [0], [1], [0, 0, 1, 1], [], []>} : vector<64x384xbf16>, vector<384x256xbf16>, vector<64x256xf32> -> vector<64x256xf32>
    %72 = arith.addf %65, %71 : vector<64x256xf32>
    %73 = vector.extract_strided_slice %52 {offsets = [0, 3, 0], sizes = [8, 8, 384], strides = [1, 1, 1]} : vector<8x12x384xf32> to vector<8x8x384xf32>
    %74 = vector.shape_cast %73 : vector<8x8x384xf32> to vector<64x384xf32>
    %75 = arith.truncf %74 : vector<64x384xf32> to vector<64x384xbf16>
    %c3_41 = arith.constant 3 : index
    %c0_42 = arith.constant 0 : index
    %c0_43 = arith.constant 0 : index
    %76 = vector.load %arg5[%c3_41, %c0_42, %c0_43] : memref<5x384x256xbf16, #tpu.memory_space<vmem>>, vector<1x384x256xbf16>
    %77 = vector.shape_cast %76 : vector<1x384x256xbf16> to vector<384x256xbf16>
    %cst_44 = arith.constant dense<0.000000e+00> : vector<64x256xf32>
    %78 = tpu.matmul %75, %77, %cst_44 {dimension_numbers = #tpu.dot_dimension_numbers<[1], [0], [0], [1], [0, 0, 1, 1], [], []>} : vector<64x384xbf16>, vector<384x256xbf16>, vector<64x256xf32> -> vector<64x256xf32>
    %79 = arith.addf %72, %78 : vector<64x256xf32>
    %80 = vector.extract_strided_slice %52 {offsets = [0, 4, 0], sizes = [8, 8, 384], strides = [1, 1, 1]} : vector<8x12x384xf32> to vector<8x8x384xf32>
    %81 = vector.shape_cast %80 : vector<8x8x384xf32> to vector<64x384xf32>
    %82 = arith.truncf %81 : vector<64x384xf32> to vector<64x384xbf16>
    %c4_45 = arith.constant 4 : index
    %c0_46 = arith.constant 0 : index
    %c0_47 = arith.constant 0 : index
    %83 = vector.load %arg5[%c4_45, %c0_46, %c0_47] : memref<5x384x256xbf16, #tpu.memory_space<vmem>>, vector<1x384x256xbf16>
    %84 = vector.shape_cast %83 : vector<1x384x256xbf16> to vector<384x256xbf16>
    %cst_48 = arith.constant dense<0.000000e+00> : vector<64x256xf32>
    %85 = tpu.matmul %82, %84, %cst_48 {dimension_numbers = #tpu.dot_dimension_numbers<[1], [0], [0], [1], [0, 0, 1, 1], [], []>} : vector<64x384xbf16>, vector<384x256xbf16>, vector<64x256xf32> -> vector<64x256xf32>
    %86 = arith.addf %79, %85 : vector<64x256xf32>
    %c0_49 = arith.constant 0 : index
    %c0_50 = arith.constant 0 : index
    %87 = vector.load %arg6[%c0_49, %c0_50] : memref<1x256xf32, #tpu.memory_space<vmem>>, vector<1x256xf32>
    %88 = vector.broadcast %87 : vector<1x256xf32> to vector<64x256xf32>
    %89 = arith.addf %86, %88 : vector<64x256xf32>
    %cst_51 = arith.constant 0.000000e+00 : f32
    %90 = vector.broadcast %cst_51 : f32 to vector<64x256xf32>
    %91 = arith.maximumf %89, %90 : vector<64x256xf32>
    %92 = vector.shape_cast %91 : vector<64x256xf32> to vector<8x8x256xf32>
    %93 = vector.extract_strided_slice %92 {offsets = [0, 0, 0], sizes = [8, 1, 256], strides = [1, 1, 1]} : vector<8x8x256xf32> to vector<8x1x256xf32>
    %94 = vector.shape_cast %93 : vector<8x1x256xf32> to vector<8x256xf32>
    %95 = arith.truncf %94 : vector<8x256xf32> to vector<8x256xbf16>
    %c0_52 = arith.constant 0 : index
    %c0_53 = arith.constant 0 : index
    %c0_54 = arith.constant 0 : index
    %96 = vector.load %arg7[%c0_52, %c0_53, %c0_54] : memref<8x256x512xbf16, #tpu.memory_space<vmem>>, vector<1x256x512xbf16>
    %97 = vector.shape_cast %96 : vector<1x256x512xbf16> to vector<256x512xbf16>
    %cst_55 = arith.constant dense<0.000000e+00> : vector<8x512xf32>
    %98 = tpu.matmul %95, %97, %cst_55 {dimension_numbers = #tpu.dot_dimension_numbers<[1], [0], [0], [1], [0, 0, 1, 1], [], []>} : vector<8x256xbf16>, vector<256x512xbf16>, vector<8x512xf32> -> vector<8x512xf32>
    %99 = vector.extract_strided_slice %92 {offsets = [0, 1, 0], sizes = [8, 1, 256], strides = [1, 1, 1]} : vector<8x8x256xf32> to vector<8x1x256xf32>
    %100 = vector.shape_cast %99 : vector<8x1x256xf32> to vector<8x256xf32>
    %101 = arith.truncf %100 : vector<8x256xf32> to vector<8x256xbf16>
    %c1_56 = arith.constant 1 : index
    %c0_57 = arith.constant 0 : index
    %c0_58 = arith.constant 0 : index
    %102 = vector.load %arg7[%c1_56, %c0_57, %c0_58] : memref<8x256x512xbf16, #tpu.memory_space<vmem>>, vector<1x256x512xbf16>
    %103 = vector.shape_cast %102 : vector<1x256x512xbf16> to vector<256x512xbf16>
    %cst_59 = arith.constant dense<0.000000e+00> : vector<8x512xf32>
    %104 = tpu.matmul %101, %103, %cst_59 {dimension_numbers = #tpu.dot_dimension_numbers<[1], [0], [0], [1], [0, 0, 1, 1], [], []>} : vector<8x256xbf16>, vector<256x512xbf16>, vector<8x512xf32> -> vector<8x512xf32>
    %105 = arith.addf %98, %104 : vector<8x512xf32>
    %106 = vector.extract_strided_slice %92 {offsets = [0, 2, 0], sizes = [8, 1, 256], strides = [1, 1, 1]} : vector<8x8x256xf32> to vector<8x1x256xf32>
    %107 = vector.shape_cast %106 : vector<8x1x256xf32> to vector<8x256xf32>
    %108 = arith.truncf %107 : vector<8x256xf32> to vector<8x256xbf16>
    %c2_60 = arith.constant 2 : index
    %c0_61 = arith.constant 0 : index
    %c0_62 = arith.constant 0 : index
    %109 = vector.load %arg7[%c2_60, %c0_61, %c0_62] : memref<8x256x512xbf16, #tpu.memory_space<vmem>>, vector<1x256x512xbf16>
    %110 = vector.shape_cast %109 : vector<1x256x512xbf16> to vector<256x512xbf16>
    %cst_63 = arith.constant dense<0.000000e+00> : vector<8x512xf32>
    %111 = tpu.matmul %108, %110, %cst_63 {dimension_numbers = #tpu.dot_dimension_numbers<[1], [0], [0], [1], [0, 0, 1, 1], [], []>} : vector<8x256xbf16>, vector<256x512xbf16>, vector<8x512xf32> -> vector<8x512xf32>
    %112 = arith.addf %105, %111 : vector<8x512xf32>
    %113 = vector.extract_strided_slice %92 {offsets = [0, 3, 0], sizes = [8, 1, 256], strides = [1, 1, 1]} : vector<8x8x256xf32> to vector<8x1x256xf32>
    %114 = vector.shape_cast %113 : vector<8x1x256xf32> to vector<8x256xf32>
    %115 = arith.truncf %114 : vector<8x256xf32> to vector<8x256xbf16>
    %c3_64 = arith.constant 3 : index
    %c0_65 = arith.constant 0 : index
    %c0_66 = arith.constant 0 : index
    %116 = vector.load %arg7[%c3_64, %c0_65, %c0_66] : memref<8x256x512xbf16, #tpu.memory_space<vmem>>, vector<1x256x512xbf16>
    %117 = vector.shape_cast %116 : vector<1x256x512xbf16> to vector<256x512xbf16>
    %cst_67 = arith.constant dense<0.000000e+00> : vector<8x512xf32>
    %118 = tpu.matmul %115, %117, %cst_67 {dimension_numbers = #tpu.dot_dimension_numbers<[1], [0], [0], [1], [0, 0, 1, 1], [], []>} : vector<8x256xbf16>, vector<256x512xbf16>, vector<8x512xf32> -> vector<8x512xf32>
    %119 = arith.addf %112, %118 : vector<8x512xf32>
    %120 = vector.extract_strided_slice %92 {offsets = [0, 4, 0], sizes = [8, 1, 256], strides = [1, 1, 1]} : vector<8x8x256xf32> to vector<8x1x256xf32>
    %121 = vector.shape_cast %120 : vector<8x1x256xf32> to vector<8x256xf32>
    %122 = arith.truncf %121 : vector<8x256xf32> to vector<8x256xbf16>
    %c4_68 = arith.constant 4 : index
    %c0_69 = arith.constant 0 : index
    %c0_70 = arith.constant 0 : index
    %123 = vector.load %arg7[%c4_68, %c0_69, %c0_70] : memref<8x256x512xbf16, #tpu.memory_space<vmem>>, vector<1x256x512xbf16>
    %124 = vector.shape_cast %123 : vector<1x256x512xbf16> to vector<256x512xbf16>
    %cst_71 = arith.constant dense<0.000000e+00> : vector<8x512xf32>
    %125 = tpu.matmul %122, %124, %cst_71 {dimension_numbers = #tpu.dot_dimension_numbers<[1], [0], [0], [1], [0, 0, 1, 1], [], []>} : vector<8x256xbf16>, vector<256x512xbf16>, vector<8x512xf32> -> vector<8x512xf32>
    %126 = arith.addf %119, %125 : vector<8x512xf32>
    %127 = vector.extract_strided_slice %92 {offsets = [0, 5, 0], sizes = [8, 1, 256], strides = [1, 1, 1]} : vector<8x8x256xf32> to vector<8x1x256xf32>
    %128 = vector.shape_cast %127 : vector<8x1x256xf32> to vector<8x256xf32>
    %129 = arith.truncf %128 : vector<8x256xf32> to vector<8x256xbf16>
    %c5 = arith.constant 5 : index
    %c0_72 = arith.constant 0 : index
    %c0_73 = arith.constant 0 : index
    %130 = vector.load %arg7[%c5, %c0_72, %c0_73] : memref<8x256x512xbf16, #tpu.memory_space<vmem>>, vector<1x256x512xbf16>
    %131 = vector.shape_cast %130 : vector<1x256x512xbf16> to vector<256x512xbf16>
    %cst_74 = arith.constant dense<0.000000e+00> : vector<8x512xf32>
    %132 = tpu.matmul %129, %131, %cst_74 {dimension_numbers = #tpu.dot_dimension_numbers<[1], [0], [0], [1], [0, 0, 1, 1], [], []>} : vector<8x256xbf16>, vector<256x512xbf16>, vector<8x512xf32> -> vector<8x512xf32>
    %133 = arith.addf %126, %132 : vector<8x512xf32>
    %134 = vector.extract_strided_slice %92 {offsets = [0, 6, 0], sizes = [8, 1, 256], strides = [1, 1, 1]} : vector<8x8x256xf32> to vector<8x1x256xf32>
    %135 = vector.shape_cast %134 : vector<8x1x256xf32> to vector<8x256xf32>
    %136 = arith.truncf %135 : vector<8x256xf32> to vector<8x256xbf16>
    %c6 = arith.constant 6 : index
    %c0_75 = arith.constant 0 : index
    %c0_76 = arith.constant 0 : index
    %137 = vector.load %arg7[%c6, %c0_75, %c0_76] : memref<8x256x512xbf16, #tpu.memory_space<vmem>>, vector<1x256x512xbf16>
    %138 = vector.shape_cast %137 : vector<1x256x512xbf16> to vector<256x512xbf16>
    %cst_77 = arith.constant dense<0.000000e+00> : vector<8x512xf32>
    %139 = tpu.matmul %136, %138, %cst_77 {dimension_numbers = #tpu.dot_dimension_numbers<[1], [0], [0], [1], [0, 0, 1, 1], [], []>} : vector<8x256xbf16>, vector<256x512xbf16>, vector<8x512xf32> -> vector<8x512xf32>
    %140 = arith.addf %133, %139 : vector<8x512xf32>
    %141 = vector.extract_strided_slice %92 {offsets = [0, 7, 0], sizes = [8, 1, 256], strides = [1, 1, 1]} : vector<8x8x256xf32> to vector<8x1x256xf32>
    %142 = vector.shape_cast %141 : vector<8x1x256xf32> to vector<8x256xf32>
    %143 = arith.truncf %142 : vector<8x256xf32> to vector<8x256xbf16>
    %c7 = arith.constant 7 : index
    %c0_78 = arith.constant 0 : index
    %c0_79 = arith.constant 0 : index
    %144 = vector.load %arg7[%c7, %c0_78, %c0_79] : memref<8x256x512xbf16, #tpu.memory_space<vmem>>, vector<1x256x512xbf16>
    %145 = vector.shape_cast %144 : vector<1x256x512xbf16> to vector<256x512xbf16>
    %cst_80 = arith.constant dense<0.000000e+00> : vector<8x512xf32>
    %146 = tpu.matmul %143, %145, %cst_80 {dimension_numbers = #tpu.dot_dimension_numbers<[1], [0], [0], [1], [0, 0, 1, 1], [], []>} : vector<8x256xbf16>, vector<256x512xbf16>, vector<8x512xf32> -> vector<8x512xf32>
    %147 = arith.addf %140, %146 : vector<8x512xf32>
    %c0_81 = arith.constant 0 : index
    %c0_82 = arith.constant 0 : index
    %148 = vector.load %arg8[%c0_81, %c0_82] : memref<1x512xf32, #tpu.memory_space<vmem>>, vector<1x512xf32>
    %149 = vector.broadcast %148 : vector<1x512xf32> to vector<8x512xf32>
    %150 = arith.addf %147, %149 : vector<8x512xf32>
    %cst_83 = arith.constant 0.000000e+00 : f32
    %151 = vector.broadcast %cst_83 : f32 to vector<8x512xf32>
    %152 = arith.maximumf %150, %151 : vector<8x512xf32>
    %153 = arith.truncf %152 : vector<8x512xf32> to vector<8x512xbf16>
    %c0_84 = arith.constant 0 : index
    %c0_85 = arith.constant 0 : index
    %154 = vector.load %arg9[%c0_84, %c0_85] : memref<512x128xbf16, #tpu.memory_space<vmem>>, vector<512x128xbf16>
    %cst_86 = arith.constant dense<0.000000e+00> : vector<8x128xf32>
    %155 = tpu.matmul %153, %154, %cst_86 {dimension_numbers = #tpu.dot_dimension_numbers<[1], [0], [0], [1], [0, 0, 1, 1], [], []>} : vector<8x512xbf16>, vector<512x128xbf16>, vector<8x128xf32> -> vector<8x128xf32>
    %c0_87 = arith.constant 0 : index
    %c0_88 = arith.constant 0 : index
    %156 = vector.load %arg10[%c0_87, %c0_88] : memref<1x128xf32, #tpu.memory_space<vmem>>, vector<1x128xf32>
    %157 = vector.broadcast %156 : vector<1x128xf32> to vector<8x128xf32>
    %158 = arith.addf %155, %157 : vector<8x128xf32>
    %c0_89 = arith.constant 0 : index
    %c0_90 = arith.constant 0 : index
    %159 = vector.load %arg11[%c0_89, %c0_90] : memref<8x128xf32, #tpu.memory_space<vmem>>, vector<8x128xf32>
    tpu.vector_store %arg11[%c0_89, %c0_90], %158 {strides = array<i32>} : memref<8x128xf32, #tpu.memory_space<vmem>>, vector<8x128xf32>,
    return
  }
  func.func @transform_0(%arg0: i32) -> (i32, i32, i32) {
    %c0_i32 = arith.constant 0 : i32
    %c0_i32_0 = arith.constant 0 : i32
    %c0_i32_1 = arith.constant 0 : i32
    return %arg0, %c0_i32, %c0_i32_0 : i32, i32, i32
  }
  func.func @transform_1(%arg0: i32) -> (i32, i32, i32) {
    %c0_i32 = arith.constant 0 : i32
    %c0_i32_0 = arith.constant 0 : i32
    %c0_i32_1 = arith.constant 0 : i32
    return %arg0, %c0_i32, %c0_i32_0 : i32, i32, i32
  }
  func.func @transform_2(%arg0: i32) -> (i32, i32, i32) {
    %c0_i32 = arith.constant 0 : i32
    %c0_i32_0 = arith.constant 0 : i32
    %c0_i32_1 = arith.constant 0 : i32
    %c0_i32_2 = arith.constant 0 : i32
    return %c0_i32, %c0_i32_0, %c0_i32_1 : i32, i32, i32
  }
  func.func @transform_3(%arg0: i32) -> (i32, i32) {
    %c0_i32 = arith.constant 0 : i32
    %c0_i32_0 = arith.constant 0 : i32
    %c0_i32_1 = arith.constant 0 : i32
    return %c0_i32, %c0_i32_0 : i32, i32
  }
  func.func @transform_4(%arg0: i32) -> (i32, i32, i32) {
    %c0_i32 = arith.constant 0 : i32
    %c0_i32_0 = arith.constant 0 : i32
    %c0_i32_1 = arith.constant 0 : i32
    %c0_i32_2 = arith.constant 0 : i32
    return %c0_i32, %c0_i32_0, %c0_i32_1 : i32, i32, i32
  }
  func.func @transform_5(%arg0: i32) -> (i32, i32) {
    %c0_i32 = arith.constant 0 : i32
    %c0_i32_0 = arith.constant 0 : i32
    %c0_i32_1 = arith.constant 0 : i32
    return %c0_i32, %c0_i32_0 : i32, i32
  }
  func.func @transform_6(%arg0: i32) -> (i32, i32, i32) {
    %c0_i32 = arith.constant 0 : i32
    %c0_i32_0 = arith.constant 0 : i32
    %c0_i32_1 = arith.constant 0 : i32
    %c0_i32_2 = arith.constant 0 : i32
    return %c0_i32, %c0_i32_0, %c0_i32_1 : i32, i32, i32
  }
  func.func @transform_7(%arg0: i32) -> (i32, i32) {
    %c0_i32 = arith.constant 0 : i32
    %c0_i32_0 = arith.constant 0 : i32
    %c0_i32_1 = arith.constant 0 : i32
    return %c0_i32, %c0_i32_0 : i32, i32
  }
  func.func @transform_8(%arg0: i32) -> (i32, i32) {
    %c0_i32 = arith.constant 0 : i32
    %c0_i32_0 = arith.constant 0 : i32
    %c0_i32_1 = arith.constant 0 : i32
    return %c0_i32, %c0_i32_0 : i32, i32
  }
  func.func @transform_9(%arg0: i32) -> (i32, i32) {
    %c0_i32 = arith.constant 0 : i32
    %c0_i32_0 = arith.constant 0 : i32
    %c0_i32_1 = arith.constant 0 : i32
    return %c0_i32, %c0_i32_0 : i32, i32
  }
  func.func @transform_10(%arg0: i32) -> (i32, i32) {
    %c0_i32 = arith.constant 0 : i32
    %c0_i32_0 = arith.constant 0 : i32
    return %arg0, %c0_i32 : i32, i32
  }
}

</mosaic_0001>

<bundles_post_ra>
// kernel: simple_convnet_forward.1
= control target key start
LH: loop header
LB: loop body
LE: loop exit
PB: predicated region body
PF: predicated region fallthrough
CT: control target
= control target key end

     0   :  { %15 = vsyncpa [#allocation3], 0  ;;  %s18003_s0 = inlined_call_operand.vmem [shape: bf16[8,14,28], index: 0, kind: input, shape index: {}]   ;;  %s18004_s1 = inlined_call_operand.vmem [shape: bf16[8,14,28], index: 1, kind: input, shape index: {}]   ;;  %s18005_s2 = inlined_call_operand.hbm [shape: bf16[5,28,384], index: 2, kind: input, shape index: {}]   ;;  %s18006_s3 = inlined_call_operand.hbm [shape: f32[1,384], index: 3, kind: input, shape index: {}]   ;;  %s18007_s4 = inlined_call_operand.hbm [shape: bf16[5,384,256], index: 4, kind: input, shape index: {}]   ;;  %s18008_s5 = inlined_call_operand.hbm [shape: f32[1,256], index: 5, kind: input, shape index: {}]   ;;  %s18009_s6 = inlined_call_operand.hbm [shape: bf16[8,256,512], index: 6, kind: input, shape index: {}]   ;;  %s18010_s7 = inlined_call_operand.hbm [shape: f32[1,512], index: 7, kind: input, shape index: {}]   ;;  %s18011_s8 = inlined_call_operand.hbm [shape: bf16[512,128], index: 8, kind: input, shape index: {}]   ;;  %s18012_s9 = inlined_call_operand.hbm [shape: f32[1,128], index: 9, kind: input, shape index: {}]   ;;  %s18013_s10 = inlined_call_operand.vmem [shape: f32[8,128], index: 10, kind: output, shape index: {}]  }
   0x1   :  { %16 = vsyncpa [#allocation5], 0 }
   0x2   :  { %17 = vsyncpa [#allocation8], 0 }
   0x3   :  { %18 = vsyncpa [#allocation11], 0 }
   0x4   :  { %19 = vsyncpa [#allocation14], 0  ;;  %s14956_s13 = smov [#allocation4]   ;;  %s14957_s15 = smov [#allocation7]  }
   0x5   :  { %s42_s14 = sshll.u32 %s14956_s13, 4  ;;  %s64_s16 = sshll.u32 %s14957_s15, 4  ;;  %s43_s14 = int_to_ptr.vmem [resolvable:$true] %s42_s14  ;;  %s65_s16 = int_to_ptr.vmem [resolvable:$true] %s64_s16 }
   0x6   :  { %s14770_s19 = scalar_lea.hbm %s18006_s3, 48 }
   0x7   :  { %p14771_p0 = scmp.ne.s32.totalorder %s18006_s3, %s14770_s19  ;;  %p14774_p1 = scmp.lt.u32.totalorder %s14770_s19, %s18006_s3 }
   0x9   :  { %p14776_p2 = pnand %p14774_p1, %p14771_p0 }
   0xb   :  { %14779 = shalt.err (!%p14776_p2)
}
   0xc   :  { %s14780_s24 = scalar_lea.vmem %s43_s14, 48  ;;  %s14784_s25 = scalar_lea.vmem %s43_s14, 64 }
   0xd   :  { %p14781_p3 = scmp.ne.s32.totalorder %s43_s14, %s14780_s24  ;;  %p14785_p4 = scmp.lt.s32.totalorder %s43_s14, %s43_s14 }
   0xe   :  { %p14786_p5 = scmp.lt.s32.totalorder %s14784_s25, %s14780_s24 }
  0x10   :  { %p14787_p6 = por %p14786_p5, %p14785_p4 }
  0x12   :  { %p14788_p7 = pnand %p14787_p6, %p14781_p3 }
  0x14   :  { %14791 = shalt.err (!%p14788_p7)
}
  0x15   :  { %45 = dma.hbm_to_vmem [thread:$0]  %s18006_s3, 48, %s43_s14, [#allocation5]  }
  0x16   :  { %s14792_s30 = scalar_lea.hbm %s18008_s5, 32 }
  0x17   :  { %p14793_p8 = scmp.ne.s32.totalorder %s18008_s5, %s14792_s30  ;;  %p14796_p9 = scmp.lt.u32.totalorder %s14792_s30, %s18008_s5 }
  0x19   :  { %p14798_p10 = pnand %p14796_p9, %p14793_p8 }
  0x1b   :  { %14801 = shalt.err (!%p14798_p10)
}
  0x1c   :  { %s14802_s17 = scalar_lea.vmem %s65_s16, 32  ;;  %p14807_p12 = scmp.lt.s32.totalorder %s65_s16, %s65_s16 }
  0x1d   :  { %p14803_p11 = scmp.ne.s32.totalorder %s65_s16, %s14802_s17  ;;  %p14808_p13 = scmp.lt.s32.totalorder %s14802_s17, %s14802_s17 }
  0x1f   :  { %p14809_p0 = por %p14808_p13, %p14807_p12 }
  0x21   :  { %p14810_p1 = pnand %p14809_p0, %p14803_p11 }
  0x23   :  { %14813 = shalt.err (!%p14810_p1)
}
  0x24   :  { %67 = dma.hbm_to_vmem [thread:$0]  %s18008_s5, 32, %s65_s16, [#allocation8]  }
  0x25   :  { %s14958_s18 = smov [#allocation10]   ;;  %s14959_s20 = smov [#allocation2]  }
  0x26   :  { %s86_s19 = sshll.u32 %s14958_s18, 4  ;;  %s29_s21 = sshll.u32 %s14959_s20, 4  ;;  %s87_s19 = int_to_ptr.vmem [resolvable:$true] %s86_s19  ;;  %s15053_s21 = int_to_ptr.vmem [resolvable:$true] %s29_s21 }
  0x27   :  { %s14814_s24 = scalar_lea.hbm %s18010_s7, 64 }
  0x28   :  { %p14815_p2 = scmp.ne.s32.totalorder %s18010_s7, %s14814_s24  ;;  %p14818_p3 = scmp.lt.u32.totalorder %s14814_s24, %s18010_s7 }
  0x2a   :  { %p14820_p4 = pnand %p14818_p3, %p14815_p2 }
  0x2c   :  { %14823 = shalt.err (!%p14820_p4)
}
  0x2d   :  { %s14824_s5 = scalar_lea.vmem %s87_s19, 64  ;;  %p14829_p6 = scmp.lt.s32.totalorder %s87_s19, %s87_s19 }
  0x2e   :  { %p14825_p5 = scmp.ne.s32.totalorder %s87_s19, %s14824_s5  ;;  %p14830_p7 = scmp.lt.s32.totalorder %s14824_s5, %s14824_s5 }
  0x30   :  { %p14831_p8 = por %p14830_p7, %p14829_p6 }
  0x32   :  { %p14832_p9 = pnand %p14831_p8, %p14825_p5 }
  0x34   :  { %14835 = shalt.err (!%p14832_p9)
}
  0x35   :  { %89 = dma.hbm_to_vmem [thread:$0]  %s18010_s7, 64, %s87_s19, [#allocation11]  }
  0x36   :  { %s14836_s12 = scalar_lea.hbm %s18005_s2, 3840 }
  0x37   :  { %p14837_p10 = scmp.ne.s32.totalorder %s18005_s2, %s14836_s12  ;;  %p14840_p11 = scmp.lt.u32.totalorder %s14836_s12, %s18005_s2 }
  0x39   :  { %p14842_p12 = pnand %p14840_p11, %p14837_p10 }
  0x3b   :  { %14845 = shalt.err (!%p14842_p12)
}
  0x3c   :  { %s14846_s14 = scalar_lea.vmem %s15053_s21, 3840  ;;  %p14851_p0 = scmp.lt.s32.totalorder %s15053_s21, %s15053_s21 }
  0x3d   :  { %p14847_p13 = scmp.ne.s32.totalorder %s15053_s21, %s14846_s14  ;;  %p14852_p1 = scmp.lt.s32.totalorder %s14846_s14, %s14846_s14 }
  0x3f   :  { %p14853_p2 = por %p14852_p1, %p14851_p0 }
  0x41   :  { %p14854_p3 = pnand %p14853_p2, %p14847_p13 }
  0x43   :  { %14857 = shalt.err (!%p14854_p3)
}
  0x44   :  { %s14960_s7 = smov 192   ;;  %s14961_s18 = smov 12  }
  0x45   :  { %35 = dma.hbm_to_vmem [thread:$0]  %s18005_s2, 3840, %s15053_s21, [#allocation3], %s14960_s7, %s14960_s7, %s14961_s18  }
  0x46   :  { %s14962_s22 = smov [#allocation6]   ;;  %s14858_s26 = scalar_lea.hbm %s18007_s4, 30720 }
  0x47   :  { %s51_s23 = sshll.u32 %s14962_s22, 4  ;;  %p14859_p4 = scmp.ne.s32.totalorder %s18007_s4, %s14858_s26  ;;  %s52_s23 = int_to_ptr.vmem [resolvable:$true] %s51_s23 }
  0x48   :  { %p14862_p5 = scmp.lt.u32.totalorder %s14858_s26, %s18007_s4 }
  0x4a   :  { %p14864_p6 = pnand %p14862_p5, %p14859_p4 }
  0x4c   :  { %14867 = shalt.err (!%p14864_p6)
}
  0x4d   :  { %s14868_s29 = scalar_lea.vmem %s52_s23, 30720  ;;  %p14873_p8 = scmp.lt.s32.totalorder %s52_s23, %s52_s23 }
  0x4e   :  { %p14869_p7 = scmp.ne.s32.totalorder %s52_s23, %s14868_s29  ;;  %p14874_p9 = scmp.lt.s32.totalorder %s14868_s29, %s14868_s29 }
  0x50   :  { %p14875_p10 = por %p14874_p9, %p14873_p8 }
  0x52   :  { %p14876_p11 = pnand %p14875_p10, %p14869_p7 }
  0x54   :  { %14879 = shalt.err (!%p14876_p11)
}
  0x55   :  { %s14963_s2 = smov 128   ;;  %s14964_s21 = smov 8  }
  0x56   :  { %57 = dma.hbm_to_vmem [thread:$0]  %s18007_s4, 30720, %s52_s23, [#allocation5], %s14963_s2, %s14963_s2, %s14964_s21  }
  0x57   :  { %s14965_s12 = smov [#allocation9]   ;;  %s14880_s3 = scalar_lea.hbm %s18009_s6, 65536 }
  0x58   :  { %s73_s13 = sshll.u32 %s14965_s12, 4  ;;  %p14881_p12 = scmp.ne.s32.totalorder %s18009_s6, %s14880_s3  ;;  %s74_s13 = int_to_ptr.vmem [resolvable:$true] %s73_s13 }
  0x59   :  { %p14884_p13 = scmp.lt.u32.totalorder %s14880_s3, %s18009_s6 }
  0x5b   :  { %p14886_p0 = pnand %p14884_p13, %p14881_p12 }
  0x5d   :  { %14889 = shalt.err (!%p14886_p0)
}
  0x5e   :  { %s14890_s20 = scalar_lea.vmem %s74_s13, 65536  ;;  %p14895_p2 = scmp.lt.s32.totalorder %s74_s13, %s74_s13 }
  0x5f   :  { %p14891_p1 = scmp.ne.s32.totalorder %s74_s13, %s14890_s20  ;;  %p14896_p3 = scmp.lt.s32.totalorder %s14890_s20, %s14890_s20 }
  0x61   :  { %p14897_p4 = por %p14896_p3, %p14895_p2 }
  0x63   :  { %p14898_p5 = pnand %p14897_p4, %p14891_p1 }
  0x65   :  { %14901 = shalt.err (!%p14898_p5)
}
  0x66   :  { %s14966_s4 = smov 256   ;;  %s14967_s22 = smov 16  }
  0x67   :  { %79 = dma.hbm_to_vmem [thread:$0]  %s18009_s6, 65536, %s74_s13, [#allocation8], %s14966_s4, %s14966_s4, %s14967_s22  }
  0x68   :  { %s14968_s25 = smov [#allocation12]   ;;  %s14902_s5 = scalar_lea.hbm %s18011_s8, 4096 }
  0x69   :  { %s95_s26 = sshll.u32 %s14968_s25, 4  ;;  %p14903_p6 = scmp.ne.s32.totalorder %s18011_s8, %s14902_s5  ;;  %s96_s26 = int_to_ptr.vmem [resolvable:$true] %s95_s26 }
  0x6a   :  { %p14906_p7 = scmp.lt.u32.totalorder %s14902_s5, %s18011_s8 }
  0x6c   :  { %p14908_p8 = pnand %p14906_p7, %p14903_p6 }
  0x6e   :  { %14911 = shalt.err (!%p14908_p8)
}
  0x6f   :  { %s14912_s30 = scalar_lea.vmem %s96_s26, 4096  ;;  %p14917_p10 = scmp.lt.s32.totalorder %s96_s26, %s96_s26 }
  0x70   :  { %p14913_p9 = scmp.ne.s32.totalorder %s96_s26, %s14912_s30  ;;  %p14918_p11 = scmp.lt.s32.totalorder %s14912_s30, %s14912_s30 }
  0x72   :  { %p14919_p12 = por %p14918_p11, %p14917_p10 }
  0x74   :  { %p14920_p13 = pnand %p14919_p12, %p14913_p9 }
  0x76   :  { %14923 = shalt.err (!%p14920_p13)
}
  0x77   :  { %s14969_s6 = smov 64   ;;  %s14970_s11 = smov 4  }
  0x78   :  { %101 = dma.hbm_to_vmem [thread:$0]  %s18011_s8, 4096, %s96_s26, [#allocation11], %s14969_s6, %s14969_s6, %s14970_s11  }
  0x79   :  { %s14971_s15 = smov [#allocation13]   ;;  %s14924_s7 = scalar_lea.hbm %s18012_s9, 16 }
  0x7a   :  { %s108_s17 = sshll.u32 %s14971_s15, 4  ;;  %p14925_p0 = scmp.ne.s32.totalorder %s18012_s9, %s14924_s7  ;;  %s109_s17 = int_to_ptr.vmem [resolvable:$true] %s108_s17 }
  0x7b   :  { %p14928_p1 = scmp.lt.u32.totalorder %s14924_s7, %s18012_s9 }
  0x7d   :  { %p14930_p2 = pnand %p14928_p1, %p14925_p0 }
  0x7f   :  { %14933 = shalt.err (!%p14930_p2)
}
  0x80   :  { %s14934_s22 = scalar_lea.vmem %s109_s17, 16  ;;  %s14938_s8 = scalar_lea.vmem %s109_s17, 32 }
  0x81   :  { %p14935_p3 = scmp.ne.s32.totalorder %s109_s17, %s14934_s22  ;;  %p14939_p4 = scmp.lt.s32.totalorder %s109_s17, %s109_s17 }
  0x82   :  { %p14940_p5 = scmp.lt.s32.totalorder %s14938_s8, %s14934_s22 }
  0x84   :  { %p14941_p6 = por %p14940_p5, %p14939_p4 }
  0x86   :  { %p14942_p7 = pnand %p14941_p6, %p14935_p3 }
  0x88   :  { %14945 = shalt.err (!%p14942_p7)
}
  0x89   :  { %111 = dma.hbm_to_vmem [thread:$0]  %s18012_s9, 16, %s109_s17, [#allocation14]  }
  0x8a   :  { %14946 = dma.done.wait [#allocation3], 3840  }
  0x8b   :  { %14947 = vsyncadd [#allocation3], 4294963456 }
  0x8c   :  { %14948 = dma.done.wait [#allocation5], 30768  }
  0x8d   :  { %14949 = vsyncadd [#allocation5], 4294936528 }
  0x8e   :  { %14950 = dma.done.wait [#allocation8], 65568  }
  0x8f   :  { %14951 = vsyncadd [#allocation8], 4294901728 }
  0x90   :  { %14952 = dma.done.wait [#allocation11], 4160  }
  0x91   :  { %14953 = vsyncadd [#allocation11], 4294963136 }
  0x92   :  { %14954 = dma.done.wait [#allocation14], 16  }
  0x93   :  { %14955 = vsyncadd [#allocation14], 4294967280  ;;  %v18014_v0 = vmov 0   ;;  %v13524_v1 = vld [vmem:[#allocation2 + $0x34] ss:$12 sps:$4 sm:$0xff]   ;;  %vm1342_vm0 = vcmask 1045504   ;;  %v1197_v7 = vlaneseq }
  0x94   :  { %1384 = vmatprep.mubr.bf16.mxu0 %v18014_v0  ;;  %v15133_v2 = vld [vmem:[#allocation2 + $0x38] ss:$12 sps:$4 sm:$0xff]   ;;  %1352 = vmatprep.subr.bf16.mxu0 %v13524_v1  ;;  %v15135_v3 = vld [vmem:[#allocation2 + $0x30] ss:$12 sps:$4 sm:$0xff]   ;;  %v14973_v5 = vmov 1983009808  }
  0x95   :  { %12904 = vmatprep.subr.bf16.mxu1 %v15133_v2  ;;  %v15138_v4 = vld [vmem:[#allocation2 + $0x4c] ss:$12 sps:$4 sm:$0x3f]   ;;  %v1195_v6 = vunpack.c.l.s4 %v14973_v5  ;;  %1353 = vmatpush1.bf16.msra.mxu0 %v15135_v3  ;;  %v15142_v8 = vld [vmem:[#allocation2 + $0x50] ss:$12 sps:$4 sm:$0x3f]  }
  0x96   :  { %12905 = vmatpush3.bf16.msra.mxu1 %v15133_v2  ;;  %11777 = vmatprep.subr.msk.bf16.mxu0 %vm1342_vm0, %v15138_v4  ;;  %v13531_v9 = vld [vmem:[#allocation2 + $0x48] ss:$12 sps:$4 sm:$0x3f]   ;;  %v15150_v10 = vsel %vm1342_vm0, %v15142_v8, 0  ;;  %v15160_v14 = vshrl.u32 %v1197_v7, 7  ;;  %vm1323_vm1 = vcmask 228352  }
  0x97   :  { %13496 = vmatprep.subr.msk.bf16.mxu1 %vm1342_vm0, %v15142_v8  ;;  %v15155_v11 = vld.sshfl [vmem:[%s18004_s1] sm:$0x33 pattern:$0x76325410]  ;;  %v15158_v12 = vsel %vm1342_vm0, %v13531_v9, 0  ;;  %v1196_v13 = vunpack.c.0.s8 %v1195_v6  ;;  %vm1008_vm9 = vcmask 1040384  }
  0x98   :  { %18128 = vst [vmem:[#allocation20_spill] sm:$0xff] %v15160_v14  ;;  %v15166_v15 = vcombine.high %v15155_v11, %v15155_v11  ;;  %v15172_v16 = vld.sshfl [vmem:[%s18004_s1 + $0x4] sm:$0x13 pattern:$0x76325410]  ;;  %vm1009_vm10 = vcmask 1042434  }
  0x99   :  { %1355 = vmatpush1.bf16.msra.mxu0 %v15158_v12  ;;  %v15177_v17 = vld.sshfl [vmem:[%s18004_s1 + $0x8] sm:$0x33 pattern:$0x76325410]  ;;  %v15180_v18 = vsub.s32 %v1196_v13, %v15160_v14  ;;  %vm449_vm2 = vsmask.f32 1280  ;;  %vm15922_vm11 = vmor %vm1008_vm9, %vm1009_vm10 }
  0x9a   :  { %12907 = vmatpush3.bf16.msra.mxu1 %v15150_v10  ;;  %12920 = vmatprep.subr.bf16.mxu0 %v15133_v2  ;;  %v1192_v19 = vcombine.low %v15155_v11, %v15166_v15  ;;  %v11742_v20 = vld.sshfl [vmem:[%s18004_s1 + $0xc] sm:$0x13 pattern:$0x76325410]  ;;  %v1193_v21 = vcombine.low %v15172_v16, %v15177_v17  ;;  %v15194_v23 = vcombine.high %v15177_v17, %v15177_v17  ;;  %vm450_vm3 = vsmask.f32 3336 }
  0x9b   :  { %1646 = vmatprep.subr.bf16.mxu1 %v13524_v1  ;;  %v11743_v22 = vld.sshfl [vmem:[%s18004_s1 + $0x10] sm:$0x33 pattern:$0x76325410]  ;;  %vm452_vm4 = vsmask.f32 5392  ;;  %vm15307_vm6 = vmor %vm449_vm2, %vm450_vm3 }
  0x9c   :  { %v1200_v25 = vrot.slane %v1192_v19, %v15180_v18  ;;  %v15198_v26 = vcombine.high %v11743_v22, %v11743_v22  ;;  %v11744_v27 = vld.sshfl [vmem:[%s18004_s1 + $0x14] sm:$0x13 pattern:$0x76325410]  ;;  %v1207_v30 = vrot.slane %v1193_v21, %v15180_v18  ;;  %v1209_v31 = vcombine.low %v15194_v23, %v11742_v20  ;;  %v15247_v53 = vld [vmem:[#allocation2 + $0x4] ss:$12 sps:$4 sm:$0xff]   ;;  %vm15340_vm7 = vmor %vm15307_vm6, %vm452_vm4 }
  0x9d   :  { %v11745_v32 = vld.sshfl [vmem:[%s18004_s1 + $0x18] sm:$0x33 pattern:$0x76325410]  ;;  %vm454_vm5 = vsmask.f32 7448 }
  0x9e   :  { %18129 = vst [vmem:[#allocation21_spill] sm:$0xff] %v15198_v26  ;;  %v1210_v33 = vcombine.low %v11743_v22, %v15198_v26  ;;  %v11746_v34 = vld.sshfl [vmem:[%s18004_s1 + $0x1c] sm:$0x13 pattern:$0x76325410]  ;;  %v15214_v35 = vcombine.high %v11745_v32, %v11745_v32  ;;  %v1226_v36 = vcombine.low %v11744_v27, %v11745_v32  ;;  %v15216_v37 = vcombine.low %v1200_v25, %v1207_v30  ;;  %vm15364_vm8 = vmor %vm15340_vm7, %vm454_vm5 }
  0x9f   :  { %v1217_v38 = vrot.slane %v1209_v31, %v15180_v18  ;;  %v11747_v39 = vld.sshfl [vmem:[%s18004_s1 + $0x20] sm:$0x33 pattern:$0x76325410]  ;;  %v15266_v61 = vld [vmem:[#allocation2 + $0x8] ss:$12 sps:$4 sm:$0xff]  }
  0xa0   :  { %18130 = vst [vmem:[#allocation22_spill] sm:$0xff] %v15214_v35  ;;  %v1224_v40 = vrot.slane %v1210_v33, %v15180_v18  ;;  %v1227_v41 = vcombine.low %v15214_v35, %v11746_v34  ;;  %v1234_v42 = vrot.slane %v1226_v36, %v15180_v18  ;;  %v11748_v43 = vld.sshfl [vmem:[%s18004_s1 + $0x24] sm:$0x13 pattern:$0x76325410]  ;;  %v15228_v44 = vcombine.high %v11747_v39, %v11747_v39 }
  0xa1   :  { %12908 = vmatprep.mubr.msk.bf16.mxu1 %vm1323_vm1, %v15216_v37  ;;  %11778 = vmatmul.mubr.msk.bf16.vlgmr.msra.gmra.mrb[0].mxu0 %vm1323_vm1, %v15216_v37  ;;  %v11749_v47 = vld.sshfl [vmem:[%s18004_s1 + $0x28] sm:$0x33 pattern:$0x76325410]  ;;  %vm1011_vm12 = vcmask 1044484   ;;  %vm1013_vm14 = vcmask 1046534  }
  0xa2   :  { %18131 = vst [vmem:[#allocation23_spill] sm:$0xff] %v15228_v44  ;;  %v15239_v48 = vcombine.low %v1217_v38, %v1224_v40  ;;  %1394 = vmatprep.mubr.bf16.mxu0 %v18014_v0  ;;  %v1241_v49 = vrot.slane %v1227_v41, %v15180_v18  ;;  %v1243_v50 = vcombine.low %v11747_v39, %v15228_v44  ;;  %v11750_v52 = vld.sshfl [vmem:[%s18004_s1 + $0x2c] sm:$0x13 pattern:$0x76325410]  ;;  %vm15954_vm13 = vmor %vm15922_vm11, %vm1011_vm12  ;;  %vm5460_vm3 = vcmask 1041408  }
  0xa3   :  { %v1244_v51 = vcombine.low %v11748_v43, %v11749_v47  ;;  %v11751_v54 = vld.sshfl [vmem:[%s18004_s1 + $0x30] sm:$0x33 pattern:$0x76325410]  ;;  %v15252_v55 = vcombine.high %v11749_v47, %v11749_v47  ;;  %12921 = vmatpush3.bf16.msra.mxu0 %v15133_v2  ;;  %vm16023_vm15 = vmor %vm15954_vm13, %vm1013_vm14  ;;  %vm5461_vm4 = vcmask 1045508   ;;  %vm7445_vm7 = vcmask 1041409  }
  0xa4   :  { %18132 = vst [vmem:[#allocation24_spill] sm:$0xff] %v15239_v48  ;;  %12909 = vmatmul.mubr.msk.bf16.vlgmr.msra.gmra.mrb[0].mxu1 %vm1323_vm1, %v15239_v48  ;;  %v15257_v56 = vcombine.low %v1234_v42, %v1241_v49  ;;  %v1251_v57 = vrot.slane %v1243_v50, %v15180_v18  ;;  %v15261_v59 = vcombine.high %v11751_v54, %v11751_v54  ;;  %v11752_v60 = vld.sshfl [vmem:[%s18004_s1 + $0x34] sm:$0x13 pattern:$0x76325410]  ;;  %vm17163_vm5 = vmor %vm5460_vm3, %vm5461_vm4  ;;  %vm7462_vm11 = vcmask 1047559  }
  0xa5   :  { %18133 = vst [vmem:[#allocation25_spill] sm:$0xff] %v15252_v55  ;;  %v1258_v58 = vrot.slane %v1244_v51, %v15180_v18  ;;  %1647 = vmatpush1.bf16.msra.mxu1 %v15135_v3  ;;  %v1260_v62 = vcombine.low %v15252_v55, %v11750_v52  ;;  %v11753_v63 = vld.sshfl [vmem:[%s18004_s1 + $0x38] sm:$0x33 pattern:$0x76325410]  ;;  %13497 = vmatprep.subr.msk.bf16.mxu0 %vm1342_vm0, %v15142_v8  ;;  %vm17184_vm6 = vmor %vm1008_vm9, %vm1011_vm12  ;;  %vm7456_vm9 = vcmask 1045509  }
  0xa6   :  { %18134 = vst [vmem:[#allocation26_spill] sm:$0xff] %v15257_v56  ;;  %18135 = vst [vmem:[#allocation27_spill] sm:$0xff] %v15261_v59  ;;  %12912 = vmatprep.mubr.msk.bf16.mxu1 %vm1323_vm1, %v15257_v56  ;;  %11790 = vmatprep.subr.msk.bf16.mxu1 %vm1342_vm0, %v15138_v4  ;;  %v1261_v1 = vcombine.low %v11751_v54, %v15261_v59  ;;  %v11754_v2 = vld.sshfl [vmem:[%s18004_s1 + $0x3c] sm:$0x13 pattern:$0x76325410]  ;;  %v15283_v3 = vcombine.high %v11753_v63, %v11753_v63 }
  0xa7   :  { %v15285_v5 = vcombine.low %v1251_v57, %v1258_v58  ;;  %v1268_v6 = vrot.slane %v1260_v62, %v15180_v18  ;;  %v1277_v7 = vcombine.low %v11752_v60, %v11753_v63  ;;  %v15291_v8 = vld.sshfl [vmem:[%s18003_s0] sm:$0x33 pattern:$0x76325410]  ;;  %12923 = vmatpush3.bf16.msra.mxu0 %v15150_v10 }
  0xa8   :  { %18136 = vst [vmem:[#allocation28_spill] sm:$0xff] %v15283_v3  ;;  %v1275_v4 = vrot.slane %v1261_v1, %v15180_v18  ;;  %v1278_v9 = vcombine.low %v15283_v3, %v11754_v2  ;;  %v15299_v13 = vld.sshfl [vmem:[%s18003_s0 + $0x4] sm:$0x13 pattern:$0x76325410]  ;;  %v15303_v19 = vcombine.high %v15291_v8, %v15291_v8  ;;  %v457_v10 = vshrl.u32 %v15291_v8, 16  ;;  %1978 = vmatprep.subr.bf16.mxu0 %v15247_v53 }
  0xa9   :  { %18137 = vst [vmem:[#allocation29_spill] sm:$0xff] %v15285_v5  ;;  %11779 = vmatmul.mubr.msk.bf16.gmra.mrb[4].mxu0 %vm1323_vm1, %v15239_v48  ;;  %1649 = vmatpush1.bf16.msra.mxu1 %v15158_v12  ;;  %v1285_v21 = vrot.slane %v1277_v7, %v15180_v18  ;;  %v15320_v22 = vld.sshfl [vmem:[%s18003_s0 + $0x8] sm:$0x33 pattern:$0x76325410]  ;;  %v15324_v25 = vcombine.high %v15299_v13, %v15299_v13  ;;  %v460_v27 = vshll.u32 %v15291_v8, 16 }
  0xaa   :  { %v476_v30 = vshll.u32 %v15299_v13, 16  ;;  %1404 = vmatprep.mubr.bf16.mxu0 %v18014_v0  ;;  %v15329_v31 = vcombine.low %v1268_v6, %v1275_v4  ;;  %v1292_v12 = vrot.slane %v1278_v9, %v15180_v18  ;;  %v15334_v32 = vcombine.high %v15320_v22, %v15320_v22  ;;  %12936 = vmatprep.subr.bf16.mxu1 %v15266_v61  ;;  %v15356_v49 = vld.sshfl [vmem:[%s18003_s0 + $0xc] sm:$0x13 pattern:$0x76325410] }
  0xab   :  { %18140 = vst [vmem:[#allocation30_spill] sm:$0xff] %v15324_v25  ;;  %v459_v33 = vrot.slane %v457_v10, 6  ;;  %v462_v36 = vrot.slane %v460_v27, 7  ;;  %v466_v38 = vshll.u32 %v15303_v19, 16  ;;  %v470_v39 = vshrl.u32 %v15303_v19, 16 }
  0xac   :  { %18141 = vst [vmem:[#allocation31_spill] sm:$0xff] %v15329_v31  ;;  %v478_v40 = vrot.slane %v476_v30, 7  ;;  %12913 = vmatmul.mubr.msk.bf16.gmra.mrb[4].mxu1 %vm1323_vm1, %v15285_v5  ;;  %v15348_v41 = vcombine.low %v1285_v21, %v1292_v12  ;;  %v480_v42 = vshrl.u32 %v15299_v13, 16  ;;  %v486_v43 = vshll.u32 %v15324_v25, 16 }
  0xad   :  { %v491_v47 = vshrl.u32 %v15320_v22, 16  ;;  %12916 = vmatprep.mubr.msk.bf16.mxu1 %vm1323_vm1, %v15329_v31  ;;  %v463_v50 = vor.u32 %v462_v36, %v459_v33  ;;  %v468_v51 = vrot.slane %v466_v38, 7  ;;  %v472_v52 = vrot.slane %v470_v39, 6 }
  0xae   :  { %18144 = vst [vmem:[#allocation32_spill] sm:$0xff] %v15348_v41  ;;  %v494_v54 = vshll.u32 %v15320_v22, 16  ;;  %v482_v58 = vrot.slane %v480_v42, 6  ;;  %v488_v60 = vrot.slane %v486_v43, 7  ;;  %v500_v63 = vshll.u32 %v15334_v32, 16 }
  0xaf   :  { %v493_v62 = vrot.slane %v491_v47, 6  ;;  %v464_v1 = vrot.slane %v463_v50, 2  ;;  %v473_v2 = vor.u32 %v472_v52, %v468_v51  ;;  %v15372_v7 = vld.sshfl [vmem:[%s18003_s0 + $0x10] sm:$0x33 pattern:$0x76325410]  ;;  %v15376_v4 = vcombine.high %v15356_v49, %v15356_v49 }
  0xb0   :  { %v496_v6 = vrot.slane %v494_v54, 7  ;;  %v483_v9 = vor.u32 %v482_v58, %v478_v40  ;;  %v502_v20 = vrot.slane %v500_v63, 7  ;;  %v15380_v10 = vcombine.high %v15372_v7, %v15372_v7  ;;  %v15392_v36 = vld.sshfl [vmem:[%s18003_s0 + $0x14] sm:$0x13 pattern:$0x76325410] }
  0xb1   :  { %18147 = vst [vmem:[#allocation33_spill] sm:$0xff] %v15376_v4  ;;  %v504_v21 = vshrl.u32 %v15334_v32, 16  ;;  %11780 = vmatmul.mubr.msk.bf16.gmra.mrb[8].mxu0 %vm1323_vm1, %v15257_v56  ;;  %v469_v27 = vsel %vm15364_vm8, %v464_v1, %v468_v51  ;;  %v474_v30 = vrot.slane %v473_v2, 2  ;;  %v510_v33 = vshll.u32 %v15356_v49, 16 }
  0xb2   :  { %v497_v12 = vor.u32 %v496_v6, %v493_v62  ;;  %1414 = vmatprep.mubr.bf16.mxu0 %v18014_v0  ;;  %v484_v34 = vrot.slane %v483_v9, 2  ;;  %v514_v39 = vshrl.u32 %v15356_v49, 16  ;;  %v520_v42 = vshll.u32 %v15376_v4, 16 }
  0xb3   :  { %v506_v38 = vrot.slane %v504_v21, 6  ;;  %v479_v43 = vsel %vm15364_vm8, %v474_v30, %v478_v40  ;;  %v512_v50 = vrot.slane %v510_v33, 7  ;;  %v525_v51 = vshrl.u32 %v15372_v7, 16 }
  0xb4   :  { %v498_v47 = vrot.slane %v497_v12, 2  ;;  %12917 = vmatmul.mubr.msk.bf16.gmra.mrb[8].mxu1 %vm1323_vm1, %v15348_v41  ;;  %v489_v52 = vsel %vm15364_vm8, %v484_v34, %v488_v60  ;;  %v1526_v54 = vcombine.low %v469_v27, %v479_v43  ;;  %v516_v62 = vrot.slane %v514_v39, 6  ;;  %v15406_v63 = vld.sshfl [vmem:[%s18003_s0 + $0x18] sm:$0x33 pattern:$0x76325410] }
  0xb5   :  { %v507_v58 = vor.u32 %v506_v38, %v502_v20  ;;  %1678 = vmatprep.mubr.bf16.mxu1 %v18014_v0  ;;  %v522_v1 = vrot.slane %v520_v42, 7  ;;  %v527_v2 = vrot.slane %v525_v51, 6  ;;  %v528_v6 = vshll.u32 %v15372_v7, 16 }
  0xb6   :  { %v503_v40 = vsel %vm15364_vm8, %v498_v47, %v502_v20  ;;  %v1534_v60 = vrot.slane %v1526_v54, %v15180_v18  ;;  %v517_v27 = vor.u32 %v516_v62, %v512_v50  ;;  %v534_v12 = vshll.u32 %v15380_v10, 16  ;;  %v15422_v42 = vld.sshfl [vmem:[%s18003_s0 + $0x1c] sm:$0x13 pattern:$0x76325410] }
  0xb7   :  { %v1527_v9 = vcombine.low %v489_v52, %v503_v40  ;;  %v508_v21 = vrot.slane %v507_v58, 2  ;;  %v530_v30 = vrot.slane %v528_v6, 7  ;;  %v538_v33 = vshrl.u32 %v15380_v10, 16  ;;  %v15443_v6 = vld [vmem:[#allocation2 + $0x20] ss:$12 sps:$4 sm:$0x3f]  }
  0xb8   :  { %v544_v34 = vshll.u32 %v15392_v36, 16  ;;  %v518_v39 = vrot.slane %v517_v27, 2  ;;  %v15426_v43 = vcombine.high %v15406_v63, %v15406_v63  ;;  %v536_v51 = vrot.slane %v534_v12, 7 }
  0xb9   :  { %v1541_v38 = vrot.slane %v1527_v9, %v15180_v18  ;;  %v513_v20 = vsel %vm15364_vm8, %v508_v21, %v512_v50  ;;  %11781 = vmatmul.mubr.msk.bf16.gmra.mrb[12].mxu0 %vm1323_vm1, %v15285_v5  ;;  %v531_v47 = vor.u32 %v530_v30, %v527_v2  ;;  %v540_v52 = vrot.slane %v538_v33, 6 }
  0xba   :  { %v546_v54 = vrot.slane %v544_v34, 7  ;;  %1424 = vmatprep.mubr.bf16.mxu0 %v18014_v0  ;;  %v523_v50 = vsel %vm15364_vm8, %v518_v39, %v522_v1  ;;  %v15437_v62 = vcombine.high %v15392_v36, %v15392_v36  ;;  %v15441_v40 = vcombine.high %v15422_v42, %v15422_v42  ;;  %v15460_v39 = vld.sshfl [vmem:[%s18003_s0 + $0x20] sm:$0x33 pattern:$0x76325410] }
  0xbb   :  { %v15430_v58 = vcombine.low %v1534_v60, %v1541_v38  ;;  %v532_v2 = vrot.slane %v531_v47, 2  ;;  %v541_v9 = vor.u32 %v540_v52, %v536_v51  ;;  %v1543_v21 = vcombine.low %v513_v20, %v523_v50 }
  0xbc   :  { %18149 = vst [vmem:[#allocation35_spill] sm:$0xff] %v15437_v62  ;;  %18150 = vst [vmem:[#allocation36_spill] sm:$0xff] %v15441_v40  ;;  %v548_v60 = vshrl.u32 %v15392_v36, 16  ;;  %v554_v1 = vshll.u32 %v15437_v62, 16  ;;  %v559_v27 = vshrl.u32 %v15406_v63, 16  ;;  %v562_v30 = vshll.u32 %v15406_v63, 16 }
  0xbd   :  { %18148 = vst [vmem:[#allocation34_spill] sm:$0xff] %v15430_v58  ;;  %11791 = vmatmul.mubr.msk.bf16.vlgmr.msra.gmra.mrb[12].mxu1 %vm1323_vm1, %v15430_v58  ;;  %v568_v12 = vshll.u32 %v15426_v43, 16  ;;  %v537_v33 = vsel %vm15364_vm8, %v532_v2, %v536_v51  ;;  %v542_v34 = vrot.slane %v541_v9, 2  ;;  %v1551_v38 = vrot.slane %v1543_v21, %v15180_v18 }
  0xbe   :  { %12937 = vmatpush3.bf16.msra.mxu1 %v15266_v61  ;;  %1688 = vmatprep.mubr.bf16.mxu1 %v18014_v0  ;;  %v550_v20 = vrot.slane %v548_v60, 6  ;;  %v556_v47 = vrot.slane %v554_v1, 7  ;;  %v561_v52 = vrot.slane %v559_v27, 6  ;;  %v564_v50 = vrot.slane %v562_v30, 7 }
  0xbf   :  { %v570_v28 = vrot.slane %v568_v12, 7  ;;  %13498 = vmatprep.subr.msk.bf16.mxu1 %vm1342_vm0, %v15443_v6  ;;  %v547_v46 = vsel %vm15364_vm8, %v542_v34, %v546_v54  ;;  %v572_v2 = vshrl.u32 %v15426_v43, 16  ;;  %v578_v9 = vshll.u32 %v15422_v42, 16 }
  0xc0   :  { %v551_v51 = vor.u32 %v550_v20, %v546_v54  ;;  %v1544_v21 = vcombine.low %v537_v33, %v547_v46  ;;  %v565_v60 = vor.u32 %v564_v50, %v561_v52  ;;  %v582_v24 = vshrl.u32 %v15422_v42, 16  ;;  %v15473_v27 = vld.sshfl [vmem:[%s18003_s0 + $0x24] sm:$0x13 pattern:$0x76325410] }
  0xc1   :  { %v588_v1 = vshll.u32 %v15441_v40, 16  ;;  %v15478_v30 = vld.sshfl [vmem:[%s18003_s0 + $0x28] sm:$0x33 pattern:$0x76325410]  ;;  %11782 = vmatmul.mubr.msk.bf16.gmra.mrb[16].mxu0 %vm1323_vm1, %v15329_v31  ;;  %v574_v46 = vrot.slane %v572_v2, 6  ;;  %v15484_v33 = vcombine.high %v15460_v39, %v15460_v39  ;;  %v15496_v2 = vcombine.high %v15473_v27, %v15473_v27 }
  0xc2   :  { %v552_v54 = vrot.slane %v551_v51, 2  ;;  %v580_v12 = vrot.slane %v578_v9, 7  ;;  %v1558_v34 = vrot.slane %v1544_v21, %v15180_v18  ;;  %1434 = vmatprep.mubr.bf16.mxu0 %v18014_v0  ;;  %v566_v20 = vrot.slane %v565_v60, 2 }
  0xc3   :  { %v584_v52 = vrot.slane %v582_v24, 6  ;;  %v590_v50 = vrot.slane %v588_v1, 7  ;;  %v575_v29 = vor.u32 %v574_v46, %v570_v28  ;;  %v15492_v51 = vcombine.high %v15478_v30, %v15478_v30  ;;  %18151 = vst [vmem:[#allocation37_spill] sm:$0xff] %v15496_v2 }
  0xc4   :  { %v557_v45 = vsel %vm15364_vm8, %v552_v54, %v556_v47  ;;  %v15498_v9 = vcombine.low %v1551_v38, %v1558_v34  ;;  %v571_v21 = vsel %vm15364_vm8, %v566_v20, %v570_v28  ;;  %v593_v24 = vshrl.u32 %v15460_v39, 16 }
  0xc5   :  { %v585_v60 = vor.u32 %v584_v52, %v580_v12  ;;  %v576_v1 = vrot.slane %v575_v29, 2  ;;  %v1560_v0 = vcombine.low %v557_v45, %v571_v21  ;;  %v596_v47 = vshll.u32 %v15460_v39, 16 }
  0xc6   :  { %18152 = vst [vmem:[#allocation38_spill] sm:$0xff] %v15498_v9  ;;  %v602_v54 = vshll.u32 %v15484_v33, 16  ;;  %11792 = vmatmul.mubr.msk.bf16.gmra.mrb[16].mxu1 %vm1323_vm1, %v15498_v9  ;;  %v595_v14 = vrot.slane %v593_v24, 6  ;;  %v606_v38 = vshrl.u32 %v15484_v33, 16  ;;  %v612_v34 = vshll.u32 %v15473_v27, 16 }
  0xc7   :  { %v586_v46 = vrot.slane %v585_v60, 2  ;;  %v18153_v40 = vmov 0   ;;  %v581_v28 = vsel %vm15364_vm8, %v576_v1, %v580_v12  ;;  %v1568_v29 = vrot.slane %v1560_v0, %v15180_v18  ;;  %v15519_v24 = vld.sshfl [vmem:[%s18003_s0 + $0x30] sm:$0x33 pattern:$0x76325410] }
  0xc8   :  { %1698 = vmatprep.mubr.bf16.mxu1 %v18153_v40  ;;  %v598_v45 = vrot.slane %v596_v47, 7  ;;  %v604_v20 = vrot.slane %v602_v54, 7  ;;  %v608_v21 = vrot.slane %v606_v38, 6  ;;  %v614_v62 = vrot.slane %v612_v34, 7 }
  0xc9   :  { %v591_v52 = vsel %vm15364_vm8, %v586_v46, %v590_v50  ;;  %v616_v60 = vshrl.u32 %v15473_v27, 16  ;;  %11783 = vmatmul.mubr.msk.bf16.gmra.mrb[20].mxu0 %vm1323_vm1, %v15348_v41  ;;  %v622_v0 = vshll.u32 %v15496_v2, 16  ;;  %v627_v47 = vshrl.u32 %v15478_v30, 16 }
  0xca   :  { %v1561_v12 = vcombine.low %v581_v28, %v591_v52  ;;  %v599_v1 = vor.u32 %v598_v45, %v595_v14  ;;  %12924 = vmatprep.mubr.msk.bf16.mxu0 %vm1323_vm1, %v15430_v58  ;;  %v609_v50 = vor.u32 %v608_v21, %v604_v20  ;;  %v630_v46 = vshll.u32 %v15478_v30, 16  ;;  %v15532_v34 = vld.sshfl [vmem:[%s18003_s0 + $0x2c] sm:$0x13 pattern:$0x76325410] }
  0xcb   :  { %v618_v54 = vrot.slane %v616_v60, 6  ;;  %v636_v38 = vshll.u32 %v15492_v51, 16  ;;  %v624_v45 = vrot.slane %v622_v0, 7  ;;  %v629_v52 = vrot.slane %v627_v47, 6  ;;  %v15535_v21 = vld [vmem:[#allocation2] ss:$12 sps:$4 sm:$0xff]  }
  0xcc   :  { %v1575_v14 = vrot.slane %v1561_v12, %v15180_v18  ;;  %v600_v28 = vrot.slane %v599_v1, 2  ;;  %v610_v2 = vrot.slane %v609_v50, 2  ;;  %v632_v25 = vrot.slane %v630_v46, 7  ;;  %v15549_v1 = vld [vmem:[#allocation2 + $0x1c] ss:$12 sps:$4 sm:$0x3f]  }
  0xcd   :  { %v619_v4 = vor.u32 %v618_v54, %v614_v62  ;;  %v638_v3 = vrot.slane %v636_v38, 7  ;;  %v15543_v55 = vsel %vm1342_vm0, %v15443_v6, 0  ;;  %v15547_v12 = vcombine.high %v15519_v24, %v15519_v24  ;;  %v15563_v54 = vld.sshfl [vmem:[%s18003_s0 + $0x34] sm:$0x13 pattern:$0x76325410] }
  0xce   :  { %v15537_v60 = vcombine.low %v1568_v29, %v1575_v14  ;;  %v605_v59 = vsel %vm15364_vm8, %v600_v28, %v604_v20  ;;  %v615_v0 = vsel %vm15364_vm8, %v610_v2, %v614_v62  ;;  %v633_v50 = vor.u32 %v632_v25, %v629_v52  ;;  %12939 = vmatpush3.bf16.msra.mxu1 %v15543_v55  ;;  %v15571_v62 = vld.sshfl [vmem:[%s18003_s0 + $0x38] sm:$0x33 pattern:$0x76325410] }
  0xcf   :  { %v620_v47 = vrot.slane %v619_v4, 2  ;;  %v15556_v29 = vcombine.high %v15532_v34, %v15532_v34  ;;  %v1577_v20 = vcombine.low %v605_v59, %v615_v0  ;;  %v640_v46 = vshrl.u32 %v15492_v51, 16  ;;  %2152 = vmatprep.subr.bf16.mxu1 %v15247_v53 }
  0xd0   :  { %18154 = vst [vmem:[#allocation39_spill] sm:$0xff] %v15537_v60  ;;  %11793 = vmatmul.mubr.msk.bf16.gmra.mrb[20].mxu1 %vm1323_vm1, %v15537_v60  ;;  %v646_v4 = vshll.u32 %v15532_v34, 16  ;;  %v650_v25 = vshrl.u32 %v15532_v34, 16  ;;  %v634_v2 = vrot.slane %v633_v50, 2  ;;  %v661_v14 = vshrl.u32 %v15519_v24, 16 }
  0xd1   :  { %18155 = vst [vmem:[#allocation40_spill] sm:$0xff] %v15556_v29  ;;  %1708 = vmatprep.mubr.bf16.mxu1 %v18153_v40  ;;  %v625_v59 = vsel %vm15364_vm8, %v620_v47, %v624_v45  ;;  %v656_v38 = vshll.u32 %v15556_v29, 16  ;;  %v1585_v28 = vrot.slane %v1577_v20, %v15180_v18  ;;  %12925 = vmatmul.mubr.msk.bf16.vlgmr.msra.gmra.mrb[24].mxu0 %vm1323_vm1, %v15498_v9  ;;  %v642_v52 = vrot.slane %v640_v46, 6 }
  0xd2   :  { %v648_v0 = vrot.slane %v646_v4, 7  ;;  %v652_v44 = vrot.slane %v650_v25, 6  ;;  %v639_v53 = vsel %vm15364_vm8, %v634_v2, %v638_v3  ;;  %12928 = vmatprep.mubr.msk.bf16.mxu0 %vm1323_vm1, %v15537_v60  ;;  %v663_v47 = vrot.slane %v661_v14, 6  ;;  %1979 = vmatpush1.bf16.msra.mxu0 %v15535_v21 }
  0xd3   :  { %v658_v45 = vrot.slane %v656_v38, 7  ;;  %v664_v50 = vshll.u32 %v15519_v24, 16  ;;  %v1578_v29 = vcombine.low %v625_v59, %v639_v53  ;;  %v643_v20 = vor.u32 %v642_v52, %v638_v3  ;;  %11809 = vmatprep.subr.msk.bf16.mxu0 %vm1342_vm0, %v15549_v1  ;;  %v15596_v2 = vld.sshfl [vmem:[%s18003_s0 + $0x3c] sm:$0x13 pattern:$0x76325410] }
  0xd4   :  { %v653_v35 = vor.u32 %v652_v44, %v648_v0  ;;  %v670_v9 = vshll.u32 %v15547_v12, 16  ;;  %v674_v4 = vshrl.u32 %v15547_v12, 16  ;;  %v680_v25 = vshll.u32 %v15563_v54, 16 }
  0xd5   :  { %v666_v46 = vrot.slane %v664_v50, 7  ;;  %v15600_v59 = vcombine.high %v15571_v62, %v15571_v62  ;;  %v1592_v44 = vrot.slane %v1578_v29, %v15180_v18  ;;  %v644_v3 = vrot.slane %v643_v20, 2 }
  0xd6   :  { %v654_v38 = vrot.slane %v653_v35, 2  ;;  %v672_v14 = vrot.slane %v670_v9, 7  ;;  %v676_v53 = vrot.slane %v674_v4, 6  ;;  %v682_v50 = vrot.slane %v680_v25, 7 }
  0xd7   :  { %v667_v52 = vor.u32 %v666_v46, %v663_v47  ;;  %v15605_v60 = vcombine.high %v15563_v54, %v15563_v54  ;;  %v15607_v58 = vcombine.low %v1585_v28, %v1592_v44  ;;  %v649_v41 = vsel %vm15364_vm8, %v644_v3, %v648_v0  ;;  %v13539_v46 = vld [vmem:[#allocation2 + $0x18] ss:$12 sps:$4 sm:$0x3f]  }
  0xd8   :  { %v659_v26 = vsel %vm15364_vm8, %v654_v38, %v658_v45  ;;  %v15615_v29 = vcombine.high %v15596_v2, %v15596_v2  ;;  %v677_v9 = vor.u32 %v676_v53, %v672_v14  ;;  %v684_v20 = vshrl.u32 %v15563_v54, 16 }
  0xd9   :  { %18156 = vst [vmem:[#allocation41_spill] sm:$0xff] %v15605_v60  ;;  %18157 = vst [vmem:[#allocation42_spill] sm:$0xff] %v15607_v58  ;;  %v668_v35 = vrot.slane %v667_v52, 2  ;;  %v1594_v47 = vcombine.low %v649_v41, %v659_v26  ;;  %11794 = vmatmul.mubr.msk.bf16.gmra.mrb[24].mxu1 %vm1323_vm1, %v15607_v58  ;;  %12929 = vmatmul.mubr.msk.bf16.gmra.mrb[28].mxu0 %vm1323_vm1, %v15607_v58  ;;  %v690_v28 = vshll.u32 %v15605_v60, 16  ;;  %v695_v0 = vshrl.u32 %v15571_v62, 16 }
  0xda   :  { %v698_v45 = vshll.u32 %v15571_v62, 16  ;;  %v704_v4 = vshll.u32 %v15600_v59, 16  ;;  %1718 = vmatprep.mubr.bf16.mxu1 %v18153_v40  ;;  %v678_v41 = vrot.slane %v677_v9, 2  ;;  %v686_v44 = vrot.slane %v684_v20, 6 }
  0xdb   :  { %v673_v26 = vsel %vm15364_vm8, %v668_v35, %v672_v14  ;;  %v1602_v25 = vrot.slane %v1594_v47, %v15180_v18  ;;  %v692_v3 = vrot.slane %v690_v28, 7  ;;  %v697_v38 = vrot.slane %v695_v0, 6 }
  0xdc   :  { %v700_v52 = vrot.slane %v698_v45, 7  ;;  %v706_v53 = vrot.slane %v704_v4, 7  ;;  %v683_v60 = vsel %vm15364_vm8, %v678_v41, %v682_v50  ;;  %v687_v58 = vor.u32 %v686_v44, %v682_v50 }
  0xdd   :  { %v708_v31 = vshrl.u32 %v15600_v59, 16  ;;  %v714_v5 = vshll.u32 %v15596_v2, 16  ;;  %v1595_v56 = vcombine.low %v673_v26, %v683_v60  ;;  %v718_v14 = vshrl.u32 %v15596_v2, 16 }
  0xde   :  { %v701_v48 = vor.u32 %v700_v52, %v697_v38  ;;  %v724_v35 = vshll.u32 %v15615_v29, 16  ;;  %v688_v9 = vrot.slane %v687_v58, 2  ;;  %v15637_v28 = vsel %vm1342_vm0, %v13539_v46, 0 }
  0xdf   :  { %v710_v47 = vrot.slane %v708_v31, 6  ;;  %v716_v20 = vrot.slane %v714_v5, 7  ;;  %v774_v0 = vshll.u32 %v15177_v17, 16  ;;  %v1609_v50 = vrot.slane %v1595_v56, %v15180_v18  ;;  %1981 = vmatpush1.bf16.msra.mxu0 %v15637_v28 }
  0xe0   :  { %v702_v45 = vrot.slane %v701_v48, 2  ;;  %v720_v4 = vrot.slane %v718_v14, 6  ;;  %v693_v60 = vsel %vm15364_vm8, %v688_v9, %v692_v3  ;;  %v726_v41 = vrot.slane %v724_v35, 7  ;;  %12952 = vmatprep.subr.bf16.mxu0 %v15266_v61 }
  0xe1   :  { %v711_v26 = vor.u32 %v710_v47, %v706_v53  ;;  %v1820_v31 = vcombine.low %v15291_v8, %v15303_v19  ;;  %v15647_v5 = vcombine.low %v1602_v25, %v1609_v50  ;;  %v1821_v48 = vcombine.low %v15299_v13, %v15320_v22 }
  0xe2   :  { %v707_v58 = vsel %vm15364_vm8, %v702_v45, %v706_v53  ;;  %v721_v56 = vor.u32 %v720_v4, %v716_v20  ;;  %v15655_v46 = vcombine.high %v15172_v16, %v15172_v16  ;;  %v18158_v38 = vshll.u32 %v15172_v16, 16 }
  0xe3   :  { %v712_v44 = vrot.slane %v711_v26, 2  ;;  %v1611_v3 = vcombine.low %v693_v60, %v707_v58  ;;  %v18159_v61 = vshrl.u32 %v15172_v16, 16  ;;  %11795 = vmatmul.mubr.msk.bf16.gmra.mrb[28].mxu1 %vm1323_vm1, %v15647_v5  ;;  %12932 = vmatprep.mubr.msk.bf16.mxu0 %vm1323_vm1, %v15647_v5  ;;  %v18160_v22 = vshrl.u32 %v15155_v11, 16 }
  0xe4   :  { %v15659_v8 = vrot.slane %v18158_v38, 7  ;;  %v722_v13 = vrot.slane %v721_v56, 2  ;;  %v18161_v53 = vshrl.u32 %v15177_v17, 16  ;;  %v776_v35 = vrot.slane %v774_v0, 7  ;;  %1728 = vmatprep.mubr.bf16.mxu1 %v18153_v40 }
  0xe5   :  { %v762_v25 = vrot.slane %v18159_v61, 6  ;;  %v739_v52 = vrot.slane %v18160_v22, 6  ;;  %v717_v16 = vsel %vm15364_vm8, %v712_v44, %v716_v20  ;;  %v18162_v9 = vshll.u32 %v15155_v11, 16 }
  0xe6   :  { %v773_v14 = vrot.slane %v18161_v53, 6  ;;  %v727_v50 = vsel %vm15364_vm8, %v722_v13, %v726_v41  ;;  %v1828_v45 = vrot.slane %v1820_v31, %v15180_v18  ;;  %v1835_v4 = vrot.slane %v1821_v48, %v15180_v18 }
  0xe7   :  { %v742_v47 = vrot.slane %v18162_v9, 7  ;;  %v766_v60 = vshll.u32 %v15655_v46, 16  ;;  %v1612_v17 = vcombine.low %v717_v16, %v727_v50  ;;  %v1619_v0 = vrot.slane %v1611_v3, %v15180_v18 }
  0xe8   :  { %v750_v26 = vshrl.u32 %v15166_v15, 16  ;;  %v763_v58 = vor.u32 %v762_v25, %v15659_v8  ;;  %v777_v20 = vor.u32 %v776_v35, %v773_v14  ;;  %v1837_v56 = vcombine.low %v15334_v32, %v15356_v49 }
  0xe9   :  { %v1626_v11 = vrot.slane %v1612_v17, %v15180_v18  ;;  %v1838_v41 = vcombine.low %v15372_v7, %v15380_v10  ;;  %v743_v31 = vor.u32 %v742_v47, %v739_v52  ;;  %v1836_v48 = vcombine.low %v1828_v45, %v1835_v4 }
  0xea   :  { %v768_v44 = vrot.slane %v766_v60, 7  ;;  %v1854_v3 = vcombine.low %v15392_v36, %v15406_v63  ;;  %v1855_v61 = vcombine.low %v15426_v43, %v15422_v42  ;;  %v752_v25 = vrot.slane %v750_v26, 6 }
  0xeb   :  { %v15689_v38 = vcombine.low %v1619_v0, %v1626_v11  ;;  %v746_v13 = vshll.u32 %v15166_v15, 16  ;;  %v764_v22 = vrot.slane %v763_v58, 2  ;;  %v1845_v49 = vrot.slane %v1837_v56, %v15180_v18 }
  0xec   :  { %v1852_v7 = vrot.slane %v1838_v41, %v15180_v18  ;;  %v778_v52 = vrot.slane %v777_v20, 2  ;;  %v780_v36 = vshll.u32 %v15194_v23, 16  ;;  %v744_v63 = vrot.slane %v743_v31, 2  ;;  %v14724_v31 = vld [vmem:[#allocation2 + $0x8] ss:$12 sps:$4 sm:$0xff]  }
  0xed   :  { %11796 = vmatmul.mubr.msk.bf16.gmra.mrb[32].mxu1 %vm1323_vm1, %v15689_v38  ;;  %12933 = vmatmul.mubr.msk.bf16.gmra.mrb[32].mxu0 %vm1323_vm1, %v15689_v38  ;;  %v748_v42 = vrot.slane %v746_v13, 7  ;;  %v1862_v53 = vrot.slane %v1854_v3, %v15180_v18  ;;  %v1869_v14 = vrot.slane %v1855_v61, %v15180_v18  ;;  %v769_v35 = vsel %vm15364_vm8, %v764_v22, %v768_v44  ;;  %v15789_v13 = vld [vmem:[#allocation2 + $0x60] ss:$12 sps:$4 sm:$0xff]   ;;  %v15791_v22 = vld [vmem:[#allocation2 + $0x7c] ss:$12 sps:$4 sm:$0x3f]  }
  0xee   :  { %2010 = vmatprep.mubr.bf16.mxu0 %v18153_v40  ;;  %12940 = vmatprep.mubr.msk.bf16.mxu1 %vm1323_vm1, %v1836_v48  ;;  %v15709_v16 = vrot.slane %v780_v36, 7  ;;  %v1871_v9 = vcombine.low %v15460_v39, %v15484_v33  ;;  %v1853_v50 = vcombine.low %v1845_v49, %v1852_v7  ;;  %v1872_v45 = vcombine.low %v15473_v27, %v15478_v30  ;;  %v13547_v49 = vld [vmem:[#allocation2 + $0x78] ss:$12 sps:$4 sm:$0x3f]  }
  0xef   :  { %v753_v47 = vor.u32 %v752_v25, %v748_v42  ;;  %v1888_v4 = vcombine.low %v15492_v51, %v15532_v34  ;;  %v1889_v17 = vcombine.low %v15519_v24, %v15547_v12  ;;  %v749_v0 = vsel %vm15364_vm8, %v744_v63, %v748_v42  ;;  %v15731_v34 = vld [vmem:[#allocation2 + $0x68] ss:$12 sps:$4 sm:$0xff]   ;;  %v18164_v25 = vld [vmem:[#allocation26_spill] sm:$0xff] }
  0xf0   :  { %v783_v60 = vsel %vm15364_vm8, %v778_v52, %v15709_v16  ;;  %v1870_v58 = vcombine.low %v1862_v53, %v1869_v14  ;;  %v1879_v20 = vrot.slane %v1871_v9, %v15180_v18  ;;  %v1886_v30 = vrot.slane %v1872_v45, %v15180_v18  ;;  %v18165_v7 = vld [vmem:[#allocation29_spill] sm:$0xff]  ;;  %v18166_v52 = vld [vmem:[#allocation31_spill] sm:$0xff]  ;;  %v14725_v63 = vld.sshfl [vmem:[%s18004_s1 + $0xc] sm:$0x13 pattern:$0x76325410] }
  0xf1   :  { %v754_v26 = vrot.slane %v753_v47, 2  ;;  %v2548_v39 = vcombine.low %v769_v35, %v783_v60  ;;  %v1896_v56 = vrot.slane %v1888_v4, %v15180_v18  ;;  %v1903_v41 = vrot.slane %v1889_v17, %v15180_v18  ;;  %v14726_v14 = vld.sshfl [vmem:[%s18004_s1 + $0x10] sm:$0x33 pattern:$0x76325410]  ;;  %v18167_v47 = vld [vmem:[#allocation21_spill] sm:$0xff] }
  0xf2   :  { %v1905_v44 = vcombine.low %v15563_v54, %v15571_v62  ;;  %v784_v36 = vshrl.u32 %v15194_v23, 16  ;;  %v790_v42 = vshll.u32 %v14725_v63, 16  ;;  %v794_v53 = vshrl.u32 %v14725_v63, 16  ;;  %v18168_v4 = vld [vmem:[#allocation32_spill] sm:$0xff]  ;;  %v18169_v60 = vld [vmem:[#allocation34_spill] sm:$0xff] }
  0xf3   :  { %v759_v27 = vsel %vm15364_vm8, %v754_v26, %v15659_v8  ;;  %v2562_v11 = vrot.slane %v2548_v39, %v15180_v18  ;;  %v1904_v61 = vcombine.low %v1896_v56, %v1903_v41  ;;  %v805_v35 = vshrl.u32 %v14726_v14, 16 }
  0xf4   :  { %v2547_v24 = vcombine.low %v749_v0, %v759_v27  ;;  %v1913_v54 = vrot.slane %v1905_v44, %v15180_v18  ;;  %v808_v9 = vshll.u32 %v14726_v14, 16  ;;  %v818_v45 = vshrl.u32 %v18167_v47, 16  ;;  %v14727_v27 = vld.sshfl [vmem:[%s18004_s1 + $0x14] sm:$0x13 pattern:$0x76325410] }
  0xf5   :  { %11810 = vmatmul.mubr.msk.bf16.vlgmr.msra.gmra.mrb[0].mxu0 %vm1323_vm1, %v1836_v48  ;;  %12941 = vmatmul.mubr.msk.bf16.vlgmr.msra.gmra.mrb[0].mxu1 %vm1323_vm1, %v1853_v50  ;;  %v1887_v48 = vcombine.low %v1879_v20, %v1886_v30  ;;  %v786_v17 = vrot.slane %v784_v36, 6  ;;  %v15831_v0 = vrot.slane %v790_v42, 7  ;;  %v796_v26 = vrot.slane %v794_v53, 6  ;;  %v18171_v44 = vld [vmem:[#allocation22_spill] sm:$0xff]  ;;  %v15862_v53 = vld [vmem:[#allocation2 + $0x98] ss:$12 sps:$4 sm:$0xff]  }
  0xf6   :  { %2153 = vmatpush1.bf16.msra.mxu1 %v15535_v21  ;;  %2020 = vmatprep.mubr.bf16.mxu0 %v18153_v40  ;;  %v2555_v8 = vrot.slane %v2547_v24, %v15180_v18  ;;  %v1906_v21 = vcombine.low %v15600_v59, %v15596_v2  ;;  %v15833_v39 = vcombine.high %v14725_v63, %v14725_v63  ;;  %v810_v20 = vrot.slane %v808_v9, 7  ;;  %v18173_v42 = vld [vmem:[#allocation38_spill] sm:$0xff] }
  0xf7   :  { %12944 = vmatprep.mubr.msk.bf16.mxu1 %vm1323_vm1, %v1870_v58  ;;  %11822 = vmatprep.subr.msk.bf16.mxu1 %vm1342_vm0, %v15549_v1  ;;  %v13544_v1 = vld [vmem:[#allocation2 + $0x64] ss:$12 sps:$4 sm:$0xff]   ;;  %v824_v30 = vshll.u32 %v14727_v27, 16  ;;  %v15840_v56 = vcombine.high %v14727_v27, %v14727_v27  ;;  %v828_v41 = vshrl.u32 %v14727_v27, 16 }
  0xf8   :  { %12953 = vmatpush3.bf16.msra.mxu0 %v14724_v31  ;;  %v15748_v3 = vcombine.low %v2555_v8, %v2562_v11  ;;  %v1920_v62 = vrot.slane %v1906_v21, %v15180_v18  ;;  %v820_v11 = vrot.slane %v818_v45, 6  ;;  %v14728_v8 = vld.sshfl [vmem:[%s18004_s1 + $0x18] sm:$0x33 pattern:$0x76325410]  ;;  %v848_v21 = vshll.u32 %v18171_v44, 16 }
  0xf9   :  { %13499 = vmatprep.subr.msk.bf16.mxu0 %vm1342_vm0, %v15443_v6  ;;  %v839_v31 = vshrl.u32 %v14728_v8, 16  ;;  %v830_v36 = vrot.slane %v828_v41, 6  ;;  %v834_v63 = vshll.u32 %v15840_v56, 16 }
  0xfa   :  { %2155 = vmatpush1.bf16.msra.mxu1 %v15637_v28  ;;  %v1921_v6 = vcombine.low %v1913_v54, %v1920_v62  ;;  %v18163_v28 = vld [vmem:[#allocation24_spill] sm:$0xff]  ;;  %v15865_v9 = vrot.slane %v848_v21, 7 }
  0xfb   :  { %12968 = vmatprep.subr.bf16.mxu1 %v15731_v34  ;;  %18170 = vst [vmem:[#allocation24_spill] sm:$0xff] %v15840_v56  ;;  %v841_v14 = vrot.slane %v839_v31, 6  ;;  %v15893_v41 = vrot.slane %v834_v63, 7 }
  0xfc   :  { %12955 = vmatpush3.bf16.msra.mxu0 %v15543_v55  ;;  %v15763_v55 = vld [vmem:[#allocation2 + $0x80] ss:$12 sps:$4 sm:$0x3f]  }
  0xfd   :  { %11811 = vmatmul.mubr.msk.bf16.gmra.mrb[4].mxu0 %vm1323_vm1, %v1853_v50  ;;  %12945 = vmatmul.mubr.msk.bf16.gmra.mrb[4].mxu1 %vm1323_vm1, %v1887_v48  ;;  %v15775_v2 = vsel %vm1342_vm0, %v15763_v55, 0  ;;  %v814_v50 = vshll.u32 %v18167_v47, 16 }
  0xfe   :  { %2030 = vmatprep.mubr.bf16.mxu0 %v18153_v40  ;;  %12948 = vmatprep.mubr.msk.bf16.mxu1 %vm1323_vm1, %v1904_v61 }
  0xff   :  { %2373 = vmatprep.subr.bf16.mxu0 %v13544_v1  ;;  %v15838_v24 = vrot.slane %v814_v50, 7 }
 0x105   :  { %11812 = vmatmul.mubr.msk.bf16.gmra.mrb[8].mxu0 %vm1323_vm1, %v1870_v58  ;;  %12949 = vmatmul.mubr.msk.bf16.gmra.mrb[8].mxu1 %vm1323_vm1, %v1921_v6  ;;  %v807_v58 = vrot.slane %v805_v35, 6 }
 0x106   :  { %2040 = vmatprep.mubr.bf16.mxu0 %v18153_v40  ;;  %2184 = vmatprep.mubr.bf16.mxu1 %v18153_v40 }
 0x10d   :  { %11813 = vmatmul.mubr.msk.bf16.gmra.mrb[12].mxu0 %vm1323_vm1, %v1887_v48  ;;  %11823 = vmatmul.mubr.msk.bf16.vlgmr.msra.gmra.mrb[12].mxu1 %vm1323_vm1, %v15216_v37  ;;  %v842_v48 = vshll.u32 %v14728_v8, 16 }
 0x10e   :  { %12969 = vmatpush3.bf16.msra.mxu1 %v15731_v34  ;;  %2050 = vmatprep.mubr.bf16.mxu0 %v18153_v40 }
 0x10f   :  { %2194 = vmatprep.mubr.bf16.mxu1 %v18153_v40  ;;  %13500 = vmatprep.subr.msk.bf16.mxu1 %vm1342_vm0, %v15763_v55  ;;  %v844_v35 = vrot.slane %v842_v48, 7  ;;  %v14731_v48 = vld.sshfl [vmem:[%s18004_s1 + $0x20] sm:$0x33 pattern:$0x76325410] }
 0x110   :  { %v873_v21 = vshrl.u32 %v14731_v48, 16 }
 0x111   :  { %v845_v8 = vor.u32 %v844_v35, %v841_v14 }
 0x112   :  { %12971 = vmatpush3.bf16.msra.mxu1 %v15775_v2 }
 0x113   :  { %2667 = vmatprep.subr.bf16.mxu1 %v13544_v1  ;;  %v14729_v1 = vld.sshfl [vmem:[%s18004_s1 + $0x1c] sm:$0x13 pattern:$0x76325410] }
 0x114   :  { %v858_v54 = vshll.u32 %v14729_v1, 16  ;;  %v862_v62 = vshrl.u32 %v14729_v1, 16 }
 0x115   :  { %11814 = vmatmul.mubr.msk.bf16.gmra.mrb[16].mxu0 %vm1323_vm1, %v1904_v61  ;;  %11824 = vmatmul.mubr.msk.bf16.gmra.mrb[16].mxu1 %vm1323_vm1, %v18163_v28  ;;  %v852_v61 = vshrl.u32 %v18171_v44, 16 }
 0x116   :  { %2060 = vmatprep.mubr.bf16.mxu0 %v18153_v40  ;;  %2204 = vmatprep.mubr.bf16.mxu1 %v18153_v40  ;;  %v15869_v45 = vrot.slane %v858_v54, 7 }
 0x117   :  { %v854_v50 = vrot.slane %v852_v61, 6  ;;  %v876_v61 = vshll.u32 %v14731_v48, 16 }
 0x11d   :  { %11815 = vmatmul.mubr.msk.bf16.gmra.mrb[20].mxu0 %vm1323_vm1, %v1921_v6  ;;  %11825 = vmatmul.mubr.msk.bf16.gmra.mrb[20].mxu1 %vm1323_vm1, %v18164_v25  ;;  %v787_v6 = vor.u32 %v786_v17, %v15709_v16  ;;  %v821_v16 = vor.u32 %v820_v11, %v15838_v24 }
 0x11e   :  { %2214 = vmatprep.mubr.bf16.mxu1 %v18153_v40  ;;  %12956 = vmatprep.mubr.msk.bf16.mxu0 %vm1323_vm1, %v15216_v37  ;;  %v15804_v37 = vsel %vm1342_vm0, %v13547_v49, 0  ;;  %v811_v49 = vor.u32 %v810_v20, %v807_v58 }
 0x11f   :  { %v15884_v58 = vrot.slane %v787_v6, 2  ;;  %v15891_v11 = vrot.slane %v821_v16, 2  ;;  %v14732_v6 = vld.sshfl [vmem:[%s18004_s1 + $0x24] sm:$0x13 pattern:$0x76325410] }
 0x120   :  { %v15888_v27 = vrot.slane %v811_v49, 2  ;;  %v846_v49 = vrot.slane %v845_v8, 2  ;;  %v15930_v8 = vcombine.high %v14732_v6, %v14732_v6 }
 0x125   :  { %11826 = vmatmul.mubr.msk.bf16.gmra.mrb[24].mxu1 %vm1323_vm1, %v18165_v7  ;;  %12957 = vmatmul.mubr.msk.bf16.vlgmr.msra.gmra.mrb[24].mxu0 %vm1323_vm1, %v18163_v28  ;;  %v797_v28 = vor.u32 %v796_v26, %v15831_v0  ;;  %v18174_v26 = vld [vmem:[#allocation39_spill] sm:$0xff] }
 0x126   :  { %2224 = vmatprep.mubr.bf16.mxu1 %v18153_v40  ;;  %12960 = vmatprep.mubr.msk.bf16.mxu0 %vm1323_vm1, %v18164_v25  ;;  %v800_v25 = vshll.u32 %v15833_v39, 16 }
 0x127   :  { %2374 = vmatpush1.bf16.msra.mxu0 %v15789_v13  ;;  %v15886_v20 = vrot.slane %v797_v28, 2  ;;  %v892_v28 = vshll.u32 %v14732_v6, 16 }
 0x128   :  { %11841 = vmatprep.subr.msk.bf16.mxu0 %vm1342_vm0, %v15791_v22 }
 0x129   :  { %v15934_v17 = vrot.slane %v892_v28, 7 }
 0x12b   :  { %2376 = vmatpush1.bf16.msra.mxu0 %v15804_v37 }
 0x12c   :  { %12984 = vmatprep.subr.bf16.mxu0 %v15731_v34 }
 0x12d   :  { %11827 = vmatmul.mubr.msk.bf16.gmra.mrb[28].mxu1 %vm1323_vm1, %v18166_v52  ;;  %12961 = vmatmul.mubr.msk.bf16.gmra.mrb[28].mxu0 %vm1323_vm1, %v18165_v7  ;;  %v15853_v7 = vrot.slane %v824_v30, 7 }
 0x12e   :  { %2234 = vmatprep.mubr.bf16.mxu1 %v18153_v40  ;;  %12964 = vmatprep.mubr.msk.bf16.mxu0 %vm1323_vm1, %v18166_v52  ;;  %v15855_v52 = vcombine.high %v14729_v1, %v14729_v1  ;;  %v15905_v1 = vld [vmem:[#allocation2 + $0x94] ss:$12 sps:$4 sm:$0xff]  }
 0x12f   :  { %v831_v30 = vor.u32 %v830_v36, %v15853_v7  ;;  %v896_v36 = vshrl.u32 %v14732_v6, 16 }
 0x130   :  { %18172 = vst [vmem:[#allocation26_spill] sm:$0xff] %v15855_v52  ;;  %v868_v31 = vshll.u32 %v15855_v52, 16 }
 0x131   :  { %v832_v54 = vrot.slane %v831_v30, 2  ;;  %v878_v30 = vrot.slane %v876_v61, 7 }
 0x135   :  { %11828 = vmatmul.mubr.msk.bf16.gmra.mrb[32].mxu1 %vm1323_vm1, %v18168_v4  ;;  %12965 = vmatmul.mubr.msk.bf16.gmra.mrb[32].mxu0 %vm1323_vm1, %v18168_v4  ;;  %v864_v4 = vrot.slane %v862_v62, 6 }
 0x136   :  { %2405 = vmatprep.mubr.bf16.mxu0 %v18153_v40  ;;  %12972 = vmatprep.mubr.msk.bf16.mxu1 %vm1323_vm1, %v18169_v60 }
 0x13d   :  { %11842 = vmatmul.mubr.msk.bf16.vlgmr.msra.gmra.mrb[0].mxu0 %vm1323_vm1, %v18169_v60  ;;  %12973 = vmatmul.mubr.msk.bf16.vlgmr.msra.gmra.mrb[0].mxu1 %vm1323_vm1, %v18173_v42  ;;  %v15874_v60 = vld.sshfl [vmem:[%s18004_s1] sm:$0x33 pattern:$0x76325410] }
 0x13e   :  { %2668 = vmatpush1.bf16.msra.mxu1 %v15789_v13  ;;  %2415 = vmatprep.mubr.bf16.mxu0 %v18153_v40  ;;  %v15881_v13 = vrot.slane %v800_v25, 7  ;;  %v18176_v25 = vld [vmem:[#allocation42_spill] sm:$0xff] }
 0x13f   :  { %12976 = vmatprep.mubr.msk.bf16.mxu1 %vm1323_vm1, %v18174_v26  ;;  %11854 = vmatprep.subr.msk.bf16.mxu1 %vm1342_vm0, %v15791_v22  ;;  %v865_v22 = vor.u32 %v864_v4, %v15869_v45  ;;  %v875_v4 = vrot.slane %v873_v21, 6  ;;  %v793_v21 = vsel %vm15364_vm8, %v15884_v58, %v15831_v0  ;;  %v827_v0 = vsel %vm15364_vm8, %v15891_v11, %v15853_v7 }
 0x140   :  { %12985 = vmatpush3.bf16.msra.mxu0 %v15731_v34  ;;  %v855_v34 = vor.u32 %v854_v50, %v15865_v9  ;;  %v870_v50 = vrot.slane %v868_v31, 7  ;;  %v803_v61 = vsel %vm15364_vm8, %v15886_v20, %v15881_v13  ;;  %v837_v13 = vsel %vm15364_vm8, %v832_v54, %v15893_v41  ;;  %v18181_v41 = vld [vmem:[#allocation25_spill] sm:$0xff] }
 0x141   :  { %13501 = vmatprep.subr.msk.bf16.mxu0 %vm1342_vm0, %v15763_v55  ;;  %v18175_v55 = vld [vmem:[#allocation23_spill] sm:$0xff]  ;;  %v866_v35 = vrot.slane %v865_v22, 2  ;;  %v851_v58 = vsel %vm15364_vm8, %v846_v49, %v15865_v9  ;;  %v879_v6 = vor.u32 %v878_v30, %v875_v4  ;;  %v916_v54 = vshll.u32 %v18181_v41, 16 }
 0x142   :  { %2670 = vmatpush1.bf16.msra.mxu1 %v15804_v37  ;;  %v882_v37 = vshll.u32 %v18175_v55, 16  ;;  %v886_v62 = vshrl.u32 %v18175_v55, 16  ;;  %v898_v55 = vrot.slane %v896_v36, 6  ;;  %v2581_v36 = vcombine.low %v837_v13, %v851_v58  ;;  %v18183_v58 = vld [vmem:[#allocation27_spill] sm:$0xff] }
 0x143   :  { %13000 = vmatprep.subr.bf16.mxu1 %v15862_v53  ;;  %v871_v7 = vsel %vm15364_vm8, %v866_v35, %v870_v50  ;;  %v880_v14 = vrot.slane %v879_v6, 2  ;;  %v15997_v50 = vld [vmem:[#allocation2 + $0xb0] ss:$12 sps:$4 sm:$0x3f]   ;;  %v954_v6 = vshrl.u32 %v18183_v58, 16 }
 0x144   :  { %12987 = vmatpush3.bf16.msra.mxu0 %v15775_v2  ;;  %v14733_v2 = vld.sshfl [vmem:[%s18004_s1 + $0x28] sm:$0x33 pattern:$0x76325410]  ;;  %v15932_v48 = vrot.slane %v882_v37, 7  ;;  %v899_v9 = vor.u32 %v898_v55, %v15934_v17 }
 0x145   :  { %11843 = vmatmul.mubr.msk.bf16.gmra.mrb[4].mxu0 %vm1323_vm1, %v18173_v42  ;;  %12977 = vmatmul.mubr.msk.bf16.gmra.mrb[4].mxu1 %vm1323_vm1, %v18176_v25  ;;  %v907_v63 = vshrl.u32 %v14733_v2, 16  ;;  %v910_v16 = vshll.u32 %v14733_v2, 16  ;;  %v856_v42 = vrot.slane %v855_v34, 2  ;;  %v888_v2 = vrot.slane %v886_v62, 6 }
 0x146   :  { %2425 = vmatprep.mubr.bf16.mxu0 %v18153_v40  ;;  %12980 = vmatprep.mubr.msk.bf16.mxu1 %vm1323_vm1, %v15647_v5  ;;  %v15939_v34 = vld.sshfl [vmem:[%s18004_s1 + $0x4] sm:$0x13 pattern:$0x76325410]  ;;  %v817_v62 = vsel %vm15364_vm8, %v15888_v27, %v15838_v24  ;;  %v902_v27 = vshll.u32 %v15930_v8, 16  ;;  %v900_v4 = vrot.slane %v899_v9, 2 }
 0x147   :  { %2960 = vmatprep.subr.bf16.mxu0 %v15905_v1  ;;  %v909_v52 = vrot.slane %v907_v63, 6  ;;  %v912_v56 = vrot.slane %v910_v16, 7  ;;  %v861_v20 = vsel %vm15364_vm8, %v856_v42, %v15869_v45  ;;  %v889_v24 = vor.u32 %v888_v2, %v15932_v48  ;;  %v15988_v45 = vld.sshfl [vmem:[%s18004_s1 + $0x8] sm:$0x33 pattern:$0x76325410] }
 0x148   :  { %v14736_v55 = vld.sshfl [vmem:[%s18004_s1 + $0x2c] sm:$0x13 pattern:$0x76325410]  ;;  %v2565_v49 = vcombine.low %v817_v62, %v827_v0  ;;  %v2582_v16 = vcombine.low %v861_v20, %v871_v7  ;;  %v904_v35 = vrot.slane %v902_v27, 7  ;;  %v918_v2 = vrot.slane %v916_v54, 7 }
 0x149   :  { %v913_v11 = vor.u32 %v912_v56, %v909_v52  ;;  %v926_v56 = vshll.u32 %v14736_v55, 16  ;;  %v2564_v52 = vcombine.low %v793_v21, %v803_v61  ;;  %v930_v63 = vshrl.u32 %v14736_v55, 16  ;;  %v14737_v21 = vld.sshfl [vmem:[%s18004_s1 + $0x30] sm:$0x33 pattern:$0x76325410] }
 0x14a   :  { %v890_v42 = vrot.slane %v889_v24, 2  ;;  %v15999_v28 = vcombine.high %v14736_v55, %v14736_v55  ;;  %v941_v61 = vshrl.u32 %v14737_v21, 16  ;;  %v944_v62 = vshll.u32 %v14737_v21, 16 }
 0x14b   :  { %v914_v30 = vrot.slane %v913_v11, 2  ;;  %v16001_v31 = vrot.slane %v926_v56, 7  ;;  %v2572_v0 = vrot.slane %v2564_v52, %v15180_v18  ;;  %v2579_v13 = vrot.slane %v2565_v49, %v15180_v18  ;;  %v13575_v11 = vld [vmem:[#allocation6 + $0x1b4] ss:$8 sps:$4 sm:$0xff]  }
 0x14c   :  { %18182 = vst [vmem:[#allocation29_spill] sm:$0xff] %v15999_v28  ;;  %v950_v20 = vshll.u32 %v18183_v58, 16  ;;  %v2589_v24 = vrot.slane %v2581_v36, %v15180_v18  ;;  %v2596_v27 = vrot.slane %v2582_v16, %v15180_v18  ;;  %v885_v7 = vsel %vm15364_vm8, %v880_v14, %v15932_v48 }
 0x14d   :  { %11844 = vmatmul.mubr.msk.bf16.gmra.mrb[8].mxu0 %vm1323_vm1, %v18174_v26  ;;  %12981 = vmatmul.mubr.msk.bf16.gmra.mrb[8].mxu1 %vm1323_vm1, %v15689_v38  ;;  %v920_v26 = vshrl.u32 %v18181_v41, 16  ;;  %v932_v41 = vrot.slane %v930_v63, 6  ;;  %v936_v9 = vshll.u32 %v15999_v28, 16  ;;  %v905_v48 = vsel %vm15364_vm8, %v900_v4, %v904_v35 }
 0x14e   :  { %2435 = vmatprep.mubr.bf16.mxu0 %v18153_v40  ;;  %2699 = vmatprep.mubr.bf16.mxu1 %v18153_v40  ;;  %v16036_v54 = vsel %vm1342_vm0, %v15997_v50, 0  ;;  %v943_v56 = vrot.slane %v941_v61, 6  ;;  %v18186_v52 = vrot.slane %v15939_v34, 7  ;;  %v16046_v36 = vrot.slane %v950_v20, 7 }
 0x14f   :  { %v922_v22 = vrot.slane %v920_v26, 6  ;;  %v919_v26 = vsel %vm15364_vm8, %v914_v30, %v918_v2  ;;  %v933_v55 = vor.u32 %v932_v41, %v16001_v31  ;;  %v956_v63 = vrot.slane %v954_v6, 6  ;;  %v14738_v4 = vld.sshfl [vmem:[%s18004_s1 + $0x34] sm:$0x13 pattern:$0x76325410] }
 0x150   :  { %v1102_v49 = vrot.slane %v18186_v52, 2  ;;  %v16048_v16 = vcombine.low %v2572_v0, %v2579_v13  ;;  %v16056_v35 = vcombine.low %v905_v48, %v919_v26  ;;  %v960_v30 = vshll.u32 %v14738_v4, 16  ;;  %v14739_v0 = vld.sshfl [vmem:[%s18004_s1 + $0x38] sm:$0x33 pattern:$0x76325410] }
 0x151   :  { %v923_v37 = vor.u32 %v922_v22, %v918_v2  ;;  %v16050_v22 = vcombine.low %v2589_v24, %v2596_v27  ;;  %v1097_v2 = vrot.slane %v15166_v15, 7  ;;  %v934_v21 = vrot.slane %v933_v55, 2 }
 0x152   :  { %v975_v13 = vshrl.u32 %v14739_v0, 16  ;;  %v957_v20 = vor.u32 %v956_v63, %v16046_v36  ;;  %v978_v6 = vshll.u32 %v14739_v0, 16  ;;  %v1107_v27 = vrot.slane %v15194_v23, 7 }
 0x153   :  { %v924_v41 = vrot.slane %v923_v37, 2  ;;  %v1099_v24 = vrot.slane %v1097_v2, 2  ;;  %v16073_v15 = vcombine.high %v14738_v4, %v14738_v4  ;;  %v18189_v55 = vmov %v18186_v52  ;;  %v14761_v23 = vld.sshfl [vmem:[%s18004_s1 + $0x18] sm:$0x33 pattern:$0x76325410] }
 0x154   :  { %v962_v63 = vrot.slane %v960_v30, 7 }
 0x155   :  { %11845 = vmatmul.mubr.msk.bf16.gmra.mrb[12].mxu0 %vm1323_vm1, %v18176_v25  ;;  %11855 = vmatmul.mubr.msk.bf16.vlgmr.msra.gmra.mrb[12].mxu1 %vm1323_vm1, %v15748_v3  ;;  %v895_v25 = vsel %vm15364_vm8, %v890_v42, %v15934_v17  ;;  %v946_v17 = vrot.slane %v944_v62, 7  ;;  %v16054_v42 = vrot.slane %v936_v9, 7  ;;  %v964_v62 = vshrl.u32 %v14738_v4, 16 }
 0x156   :  { %13001 = vmatpush3.bf16.msra.mxu1 %v15862_v53  ;;  %2445 = vmatprep.mubr.bf16.mxu0 %v18153_v40  ;;  %v16052_v14 = vcombine.low %v885_v7, %v895_v25  ;;  %v18187_v7 = vld [vmem:[#allocation28_spill] sm:$0xff] }
 0x157   :  { %2709 = vmatprep.mubr.bf16.mxu1 %v18153_v40  ;;  %13502 = vmatprep.subr.msk.bf16.mxu1 %vm1342_vm0, %v15997_v50  ;;  %v947_v61 = vor.u32 %v946_v17, %v943_v56  ;;  %v984_v9 = vshll.u32 %v18187_v7, 16  ;;  %v988_v25 = vshrl.u32 %v18187_v7, 16  ;;  %v1101_v56 = vsel %vm16023_vm15, %v1099_v24, %v18189_v55 }
 0x158   :  { %v18190_v17 = vrot.slane %v15655_v46, 7  ;;  %v966_v7 = vrot.slane %v964_v62, 6  ;;  %v977_v55 = vrot.slane %v975_v13, 6  ;;  %v980_v46 = vrot.slane %v978_v6, 7 }
 0x159   :  { %v948_v34 = vrot.slane %v947_v61, 2  ;;  %v986_v28 = vrot.slane %v984_v9, 7  ;;  %v990_v30 = vrot.slane %v988_v25, 6  ;;  %v929_v61 = vsel %vm15364_vm8, %v924_v41, %v16001_v31 }
 0x15a   :  { %13003 = vmatpush3.bf16.msra.mxu1 %v16036_v54  ;;  %v1104_v52 = vsel %vm16023_vm15, %v1102_v49, %v18190_v17  ;;  %v939_v62 = vsel %vm15364_vm8, %v934_v21, %v16054_v42  ;;  %v981_v31 = vor.u32 %v980_v46, %v977_v55 }
 0x15b   :  { %3254 = vmatprep.subr.bf16.mxu1 %v15905_v1  ;;  %v14740_v1 = vld.sshfl [vmem:[%s18004_s1 + $0x3c] sm:$0x13 pattern:$0x76325410]  ;;  %v2615_v6 = vcombine.low %v929_v61, %v939_v62 }
 0x15c   :  { %v994_v48 = vshll.u32 %v14740_v1, 16  ;;  %v998_v37 = vshrl.u32 %v14740_v1, 16  ;;  %v16094_v4 = vcombine.high %v14740_v1, %v14740_v1  ;;  %v982_v25 = vrot.slane %v981_v31, 2 }
 0x15d   :  { %11846 = vmatmul.mubr.msk.bf16.gmra.mrb[16].mxu0 %vm1323_vm1, %v15647_v5  ;;  %11856 = vmatmul.mubr.msk.bf16.gmra.mrb[16].mxu1 %vm1323_vm1, %v16048_v16  ;;  %v18188_v5 = vrot.slane %v15874_v60, 9  ;;  %v18191_v60 = vrot.slane %v15988_v45, 9  ;;  %v2606_v45 = vrot.slane %v16052_v14, %v15180_v18  ;;  %v953_v14 = vsel %vm15364_vm8, %v948_v34, %v16046_v36  ;;  %v14741_v61 = vld.sshfl [vmem:[%s18003_s0 + $0x4] sm:$0x13 pattern:$0x76325410] }
 0x15e   :  { %2455 = vmatprep.mubr.bf16.mxu0 %v18153_v40  ;;  %2719 = vmatprep.mubr.bf16.mxu1 %v18153_v40  ;;  %v996_v1 = vrot.slane %v994_v48, 7  ;;  %v1000_v17 = vrot.slane %v998_v37, 6  ;;  %v1004_v41 = vshll.u32 %v16094_v4, 16  ;;  %v13550_v48 = vld [vmem:[#allocation2 + $0x90] ss:$12 sps:$4 sm:$0xff]   ;;  %v1020_v62 = vrot.slane %v14741_v61, 7 }
 0x15f   :  { %v1098_v26 = vsel %vm16023_vm15, %v18188_v5, %v1097_v2  ;;  %v1108_v2 = vsel %vm16023_vm15, %v18191_v60, %v1107_v27  ;;  %v958_v5 = vrot.slane %v957_v20, 2  ;;  %v970_v20 = vshll.u32 %v16073_v15, 16  ;;  %v13553_v60 = vld [vmem:[#allocation2 + $0xac] ss:$12 sps:$4 sm:$0x3f]  }
 0x160   :  { %v3721_v0 = vcombine.low %v1098_v26, %v1101_v56  ;;  %v3722_v24 = vcombine.low %v1104_v52, %v1108_v2  ;;  %v2613_v26 = vrot.slane %v16056_v35, %v15180_v18  ;;  %v967_v35 = vor.u32 %v966_v7, %v962_v63  ;;  %v13555_v2 = vld [vmem:[#allocation2 + $0xa8] ss:$12 sps:$4 sm:$0x3f]  }
 0x161   :  { %v1001_v42 = vor.u32 %v1000_v17, %v996_v1  ;;  %v972_v9 = vrot.slane %v970_v20, 7  ;;  %v1006_v52 = vrot.slane %v1004_v41, 7  ;;  %v2952_v46 = vsel %vm1342_vm0, %v13555_v2, 0 }
 0x162   :  { %v3729_v49 = vrot.slane %v3721_v0, %v15180_v18  ;;  %v3736_v58 = vrot.slane %v3722_v24, %v15180_v18  ;;  %v16130_v21 = vcombine.low %v2606_v45, %v2613_v26  ;;  %v968_v7 = vrot.slane %v967_v35, 2  ;;  %v16176_v45 = vld [vmem:[#allocation2 + $0xc8] ss:$12 sps:$4 sm:$0xff]   ;;  %v18192_v35 = vld [vmem:[#allocation30_spill] sm:$0xff] }
 0x163   :  { %v1002_v56 = vrot.slane %v1001_v42, 2  ;;  %v1017_v26 = vrot.slane %v15303_v19, 7  ;;  %v1023_v20 = vrot.slane %v18192_v35, 7  ;;  %v1027_v42 = vrot.slane %v15334_v32, 7 }
 0x164   :  { %v16114_v13 = vcombine.low %v3729_v49, %v3736_v58  ;;  %v963_v58 = vsel %vm15364_vm8, %v958_v5, %v962_v63  ;;  %v2623_v63 = vrot.slane %v2615_v6, %v15180_v18  ;;  %v973_v34 = vsel %vm15364_vm8, %v968_v7, %v972_v9  ;;  %v14743_v19 = vld.sshfl [vmem:[%s18003_s0 + $0x8] sm:$0x33 pattern:$0x76325410] }
 0x165   :  { %11847 = vmatmul.mubr.msk.bf16.gmra.mrb[20].mxu0 %vm1323_vm1, %v15689_v38  ;;  %11857 = vmatmul.mubr.msk.bf16.gmra.mrb[20].mxu1 %vm1323_vm1, %v16050_v22  ;;  %v991_v38 = vor.u32 %v990_v30, %v986_v28  ;;  %v2616_v36 = vcombine.low %v953_v14, %v963_v58  ;;  %v987_v5 = vsel %vm15364_vm8, %v982_v25, %v986_v28  ;;  %v11756_v31 = vrot.slane %v14743_v19, 9  ;;  %v16196_v58 = vld [vmem:[#allocation2 + $0xc4] ss:$12 sps:$4 sm:$0xff]  }
 0x166   :  { %2729 = vmatprep.mubr.bf16.mxu1 %v18153_v40  ;;  %12988 = vmatprep.mubr.msk.bf16.mxu0 %vm1323_vm1, %v15748_v3  ;;  %v1007_v55 = vsel %vm15364_vm8, %v1002_v56, %v1006_v52  ;;  %v2632_v30 = vcombine.low %v973_v34, %v987_v5  ;;  %v14744_v41 = vld.sshfl [vmem:[%s18003_s0 + $0xc] sm:$0x13 pattern:$0x76325410]  ;;  %v1029_v7 = vrot.slane %v1027_v42, 2 }
 0x167   :  { %v992_v37 = vrot.slane %v991_v38, 2  ;;  %v2630_v0 = vrot.slane %v2616_v36, %v15180_v18  ;;  %v1019_v38 = vrot.slane %v1017_v26, 2  ;;  %v1030_v6 = vrot.slane %v14744_v41, 7 }
 0x168   :  { %v2640_v57 = vrot.slane %v2632_v30, %v15180_v18  ;;  %v1037_v36 = vrot.slane %v15380_v10, 7  ;;  %v14745_v52 = vld.sshfl [vmem:[%s18003_s0 + $0x10] sm:$0x33 pattern:$0x76325410] }
 0x169   :  { %v997_v24 = vsel %vm15364_vm8, %v992_v37, %v996_v1  ;;  %v16151_v49 = vcombine.low %v2623_v63, %v2630_v0  ;;  %v1021_v32 = vsel %vm16023_vm15, %v1019_v38, %v1020_v62  ;;  %v18193_v37 = vld [vmem:[#allocation33_spill] sm:$0xff]  ;;  %v14746_v63 = vld.sshfl [vmem:[%s18003_s0 + $0x14] sm:$0x13 pattern:$0x76325410]  ;;  %v1031_v10 = vsel %vm16023_vm15, %v1029_v7, %v1030_v6 }
 0x16a   :  { %v2633_v17 = vcombine.low %v997_v24, %v1007_v55  ;;  %v1033_v56 = vrot.slane %v18193_v37, 7  ;;  %v1039_v2 = vrot.slane %v1037_v36, 2  ;;  %v1040_v0 = vrot.slane %v14746_v63, 7  ;;  %v18196_v37 = vld [vmem:[#allocation37_spill] sm:$0xff] }
 0x16b   :  { %v14747_v30 = vld.sshfl [vmem:[%s18003_s0 + $0x1c] sm:$0x13 pattern:$0x76325410]  ;;  %vm7451_vm8 = vcmask 1043459  }
 0x16c   :  { %v2647_v28 = vrot.slane %v2633_v17, %v15180_v18  ;;  %v1050_v17 = vrot.slane %v14747_v30, 7 }
 0x16d   :  { %11858 = vmatmul.mubr.msk.bf16.gmra.mrb[24].mxu1 %vm1323_vm1, %v16130_v21  ;;  %12989 = vmatmul.mubr.msk.bf16.vlgmr.msra.gmra.mrb[24].mxu0 %vm1323_vm1, %v16048_v16 }
 0x16e   :  { %2739 = vmatprep.mubr.bf16.mxu1 %v18153_v40  ;;  %12992 = vmatprep.mubr.msk.bf16.mxu0 %vm1323_vm1, %v16050_v22  ;;  %v16163_v1 = vcombine.low %v2640_v57, %v2647_v28  ;;  %v1042_v57 = vrot.slane %v1040_v0, 2  ;;  %v18194_v28 = vld [vmem:[#allocation35_spill] sm:$0xff]  ;;  %v1052_v19 = vrot.slane %v1050_v17, 2 }
 0x16f   :  { %2961 = vmatpush1.bf16.msra.mxu0 %v13550_v48 }
 0x170   :  { %11873 = vmatprep.subr.msk.bf16.mxu0 %vm1342_vm0, %v13553_v60 }
 0x173   :  { %2963 = vmatpush1.bf16.msra.mxu0 %v2952_v46 }
 0x174   :  { %13016 = vmatprep.subr.bf16.mxu0 %v15862_v53 }
 0x175   :  { %11859 = vmatmul.mubr.msk.bf16.gmra.mrb[28].mxu1 %vm1323_vm1, %v16151_v49  ;;  %12993 = vmatmul.mubr.msk.bf16.gmra.mrb[28].mxu0 %vm1323_vm1, %v16130_v21 }
 0x176   :  { %2749 = vmatprep.mubr.bf16.mxu1 %v18153_v40  ;;  %12996 = vmatprep.mubr.msk.bf16.mxu0 %vm1323_vm1, %v16151_v49 }
 0x17d   :  { %11860 = vmatmul.mubr.msk.bf16.gmra.mrb[32].mxu1 %vm1323_vm1, %v16163_v1  ;;  %12997 = vmatmul.mubr.msk.bf16.gmra.mrb[32].mxu0 %vm1323_vm1, %v16163_v1 }
 0x17e   :  { %2992 = vmatprep.mubr.bf16.mxu0 %v18153_v40  ;;  %13004 = vmatprep.mubr.msk.bf16.mxu1 %vm1323_vm1, %v15748_v3 }
 0x185   :  { %11874 = vmatmul.mubr.msk.bf16.vlgmr.msra.gmra.mrb[0].mxu0 %vm1323_vm1, %v15748_v3  ;;  %13005 = vmatmul.mubr.msk.bf16.vlgmr.msra.gmra.mrb[0].mxu1 %vm1323_vm1, %v16048_v16  ;;  %v14742_v3 = vld.sshfl [vmem:[%s18003_s0] sm:$0x33 pattern:$0x76325410] }
 0x186   :  { %3255 = vmatpush1.bf16.msra.mxu1 %v13550_v48  ;;  %3002 = vmatprep.mubr.bf16.mxu0 %v18153_v40  ;;  %v11755_v14 = vrot.slane %v14742_v3, 9  ;;  %v1032_v48 = vrot.slane %v1030_v6, 2 }
 0x187   :  { %13008 = vmatprep.mubr.msk.bf16.mxu1 %vm1323_vm1, %v16050_v22  ;;  %11886 = vmatprep.subr.msk.bf16.mxu1 %vm1342_vm0, %v13553_v60  ;;  %v11757_v60 = vrot.slane %v14745_v52, 9 }
 0x188   :  { %13017 = vmatpush3.bf16.msra.mxu0 %v15862_v53  ;;  %v1022_v53 = vrot.slane %v1020_v62, 2  ;;  %v1034_v24 = vsel %vm16023_vm15, %v1032_v48, %v1033_v56  ;;  %v1063_v56 = vrot.slane %v18196_v37, 7 }
 0x189   :  { %13503 = vmatprep.subr.msk.bf16.mxu0 %vm1342_vm0, %v15997_v50  ;;  %v1018_v50 = vsel %vm16023_vm15, %v11755_v14, %v1017_v26  ;;  %v1038_v55 = vsel %vm16023_vm15, %v11757_v60, %v1037_v36  ;;  %v1043_v26 = vrot.slane %v18194_v28, 7  ;;  %v3151_v62 = vcombine.low %v1031_v10, %v1034_v24  ;;  %v14748_v14 = vld.sshfl [vmem:[%s18003_s0 + $0x18] sm:$0x33 pattern:$0x76325410] }
 0x18a   :  { %3257 = vmatpush1.bf16.msra.mxu1 %v2952_v46  ;;  %v3134_v9 = vcombine.low %v1018_v50, %v1021_v32  ;;  %v1047_v46 = vrot.slane %v15426_v43, 7  ;;  %v11758_v35 = vrot.slane %v14748_v14, 9  ;;  %v14749_v50 = vld.sshfl [vmem:[%s18003_s0 + $0x24] sm:$0x13 pattern:$0x76325410] }
 0x18b   :  { %13032 = vmatprep.subr.bf16.mxu1 %v16176_v45  ;;  %v1060_v41 = vrot.slane %v14749_v50, 7  ;;  %v3159_v6 = vrot.slane %v3151_v62, %v15180_v18  ;;  %v1087_v50 = vrot.slane %v15600_v59, 7 }
 0x18c   :  { %13019 = vmatpush3.bf16.msra.mxu0 %v16036_v54  ;;  %v1024_v54 = vsel %vm16023_vm15, %v1022_v53, %v1023_v20  ;;  %v3142_v34 = vrot.slane %v3134_v9, %v15180_v18  ;;  %v16254_v20 = vld [vmem:[#allocation2 + $0xe0] ss:$12 sps:$4 sm:$0x3f]   ;;  %v1049_v43 = vrot.slane %v1047_v46, 2  ;;  %v1044_v53 = vsel %vm16023_vm15, %v1042_v57, %v1043_v26 }
 0x18d   :  { %11875 = vmatmul.mubr.msk.bf16.gmra.mrb[4].mxu0 %vm1323_vm1, %v16048_v16  ;;  %13009 = vmatmul.mubr.msk.bf16.gmra.mrb[4].mxu1 %vm1323_vm1, %v16130_v21  ;;  %v1028_v16 = vsel %vm16023_vm15, %v11756_v31, %v1027_v42  ;;  %v18195_v31 = vld [vmem:[#allocation36_spill] sm:$0xff]  ;;  %v1057_v42 = vrot.slane %v15484_v33, 7  ;;  %v16285_v7 = vsel %vm1342_vm0, %v16254_v20, 0  ;;  %v1062_v48 = vrot.slane %v1060_v41, 2 }
 0x18e   :  { %3012 = vmatprep.mubr.bf16.mxu0 %v18153_v40  ;;  %13012 = vmatprep.mubr.msk.bf16.mxu1 %vm1323_vm1, %v16151_v49  ;;  %v3135_v25 = vcombine.low %v1024_v54, %v1028_v16  ;;  %v1053_v38 = vrot.slane %v18195_v31, 7  ;;  %v1048_v54 = vsel %vm16023_vm15, %v11758_v35, %v1047_v46  ;;  %v1051_v33 = vsel %vm16023_vm15, %v1049_v43, %v1050_v17  ;;  %v14750_v16 = vld.sshfl [vmem:[%s18003_s0 + $0x20] sm:$0x33 pattern:$0x76325410] }
 0x18f   :  { %3547 = vmatprep.subr.bf16.mxu0 %v16196_v58  ;;  %v11759_v36 = vrot.slane %v14750_v16, 9  ;;  %v3168_v9 = vcombine.low %v1044_v53, %v1048_v54  ;;  %v1064_v24 = vsel %vm16023_vm15, %v1062_v48, %v1063_v56  ;;  %v18197_v26 = vld [vmem:[#allocation40_spill] sm:$0xff]  ;;  %v14754_v43 = vld.sshfl [vmem:[%s18003_s0 + $0x34] sm:$0x13 pattern:$0x76325410] }
 0x190   :  { %v3149_v5 = vrot.slane %v3135_v25, %v15180_v18  ;;  %v1059_v25 = vrot.slane %v1057_v42, 2  ;;  %v1073_v62 = vrot.slane %v18197_v26, 7  ;;  %v18198_v16 = vld [vmem:[#allocation41_spill] sm:$0xff]  ;;  %v13558_v48 = vld [vmem:[#allocation2 + $0xc0] ss:$12 sps:$4 sm:$0xff]   ;;  %v1089_v37 = vrot.slane %v1087_v50, 2 }
 0x191   :  { %v3176_v10 = vrot.slane %v3168_v9, %v15180_v18  ;;  %v14756_v9 = vld.sshfl [vmem:[%s18003_s0 + $0x38] sm:$0x33 pattern:$0x76325410]  ;;  %v1093_v56 = vrot.slane %v15615_v29, 7  ;;  %v1127_v26 = vrot.slane %v18171_v44, 7 }
 0x192   :  { %v16249_v61 = vcombine.low %v3142_v34, %v3149_v5  ;;  %v1058_v34 = vsel %vm16023_vm15, %v11759_v36, %v1057_v42  ;;  %v1061_v5 = vsel %vm16023_vm15, %v1059_v25, %v1060_v41  ;;  %v14755_v41 = vld.sshfl [vmem:[%s18003_s0 + $0x3c] sm:$0x13 pattern:$0x76325410]  ;;  %v1083_v36 = vrot.slane %v18198_v16, 7 }
 0x193   :  { %v3185_v46 = vcombine.low %v1058_v34, %v1061_v5  ;;  %v11762_v25 = vrot.slane %v14756_v9, 9  ;;  %v13564_v16 = vld [vmem:[#allocation6 + $0x180] ss:$8 sps:$4 sm:$0xff]  }
 0x194   :  { %v18201_v9 = vld [vmem:[#allocation23_spill] sm:$0xff] }
 0x195   :  { %11876 = vmatmul.mubr.msk.bf16.gmra.mrb[8].mxu0 %vm1323_vm1, %v16050_v22  ;;  %13013 = vmatmul.mubr.msk.bf16.gmra.mrb[8].mxu1 %vm1323_vm1, %v16163_v1  ;;  %v1041_v22 = vsel %vm16023_vm15, %v1039_v2, %v1040_v0  ;;  %v14751_v2 = vld.sshfl [vmem:[%s18003_s0 + $0x28] sm:$0x33 pattern:$0x76325410]  ;;  %v1067_v0 = vrot.slane %v15492_v51, 7  ;;  %v1088_v29 = vsel %vm16023_vm15, %v11762_v25, %v1087_v50  ;;  %v1137_v25 = vrot.slane %v18201_v9, 7 }
 0x196   :  { %3022 = vmatprep.mubr.bf16.mxu0 %v18153_v40  ;;  %3286 = vmatprep.mubr.bf16.mxu1 %v18153_v40  ;;  %v3152_v3 = vcombine.low %v1038_v55, %v1041_v22  ;;  %v11760_v63 = vrot.slane %v14751_v2, 9  ;;  %v14752_v55 = vld.sshfl [vmem:[%s18003_s0 + $0x2c] sm:$0x13 pattern:$0x76325410] }
 0x197   :  { %v1070_v22 = vrot.slane %v14752_v55, 7  ;;  %v1069_v57 = vrot.slane %v1067_v0, 2  ;;  %v13563_v2 = vld [vmem:[#allocation2 + $0xd8] ss:$12 sps:$4 sm:$0x3f]  }
 0x198   :  { %v3166_v32 = vrot.slane %v3152_v3, %v15180_v18  ;;  %v14753_v3 = vld.sshfl [vmem:[%s18003_s0 + $0x30] sm:$0x33 pattern:$0x76325410] }
 0x199   :  { %v1072_v28 = vrot.slane %v1070_v22, 2  ;;  %v11761_v14 = vrot.slane %v14753_v3, 9 }
 0x19a   :  { %v16288_v52 = vcombine.low %v3159_v6, %v3166_v32  ;;  %v1090_v6 = vrot.slane %v14755_v41, 7 }
 0x19b   :  { %v1074_v53 = vsel %vm16023_vm15, %v1072_v28, %v1073_v62  ;;  %v14758_v62 = vld.sshfl [vmem:[%s18004_s1 + $0x14] sm:$0x13 pattern:$0x76325410] }
 0x19c   :  { %v1092_v59 = vrot.slane %v1090_v6, 2  ;;  %v1091_v34 = vsel %vm16023_vm15, %v1089_v37, %v1090_v6  ;;  %v1120_v3 = vrot.slane %v14758_v62, 7 }
 0x19d   :  { %11877 = vmatmul.mubr.msk.bf16.gmra.mrb[12].mxu0 %vm1323_vm1, %v16130_v21  ;;  %11887 = vmatmul.mubr.msk.bf16.vlgmr.msra.gmra.mrb[12].mxu1 %vm1323_vm1, %v16249_v61  ;;  %v1054_v21 = vsel %vm16023_vm15, %v1052_v19, %v1053_v38  ;;  %v1080_v19 = vrot.slane %v14754_v43, 7  ;;  %v1071_v38 = vsel %vm16023_vm15, %v1069_v57, %v1070_v22  ;;  %v14757_v57 = vld.sshfl [vmem:[%s18004_s1 + $0xc] sm:$0x13 pattern:$0x76325410] }
 0x19e   :  { %13033 = vmatpush3.bf16.msra.mxu1 %v16176_v45  ;;  %3032 = vmatprep.mubr.bf16.mxu0 %v18153_v40  ;;  %v3169_v60 = vcombine.low %v1051_v33, %v1054_v21  ;;  %v3202_v54 = vcombine.low %v1071_v38, %v1074_v53  ;;  %v1094_v5 = vsel %vm16023_vm15, %v1092_v59, %v1093_v56  ;;  %v1110_v28 = vrot.slane %v14757_v57, 7  ;;  %v18200_v38 = vld [vmem:[#allocation26_spill] sm:$0xff]  ;;  %v14762_v56 = vld.sshfl [vmem:[%s18004_s1 + $0x24] sm:$0x13 pattern:$0x76325410] }
 0x19f   :  { %3296 = vmatprep.mubr.bf16.mxu1 %v18153_v40  ;;  %13504 = vmatprep.subr.msk.bf16.mxu1 %vm1342_vm0, %v16254_v20  ;;  %v1082_v21 = vrot.slane %v1080_v19, 2  ;;  %v3220_v55 = vcombine.low %v1091_v34, %v1094_v5  ;;  %v1122_v43 = vrot.slane %v1120_v3, 2  ;;  %v1133_v53 = vrot.slane %v18200_v38, 7  ;;  %v13572_v5 = vld [vmem:[#allocation6 + $0x1a4] ss:$8 sps:$4 sm:$0xff]  }
 0x1a0   :  { %v3183_v51 = vrot.slane %v3169_v60, %v15180_v18  ;;  %v13561_v60 = vld [vmem:[#allocation2 + $0xdc] ss:$12 sps:$4 sm:$0x3f]   ;;  %v1112_v44 = vrot.slane %v1110_v28, 2  ;;  %v1139_v34 = vrot.slane %v1137_v25, 2 }
 0x1a1   :  { %v13570_v57 = vld [vmem:[#allocation6 + $0x1a0] ss:$8 sps:$4 sm:$0xff]  }
 0x1a2   :  { %13035 = vmatpush3.bf16.msra.mxu1 %v16285_v7  ;;  %v16316_v17 = vcombine.low %v3176_v10, %v3183_v51  ;;  %v1084_v10 = vsel %vm16023_vm15, %v1082_v21, %v1083_v36  ;;  %v3539_v51 = vsel %vm1342_vm0, %v13563_v2, 0  ;;  %v13567_v2 = vld [vmem:[#allocation6 + $0x190] ss:$8 sps:$4 sm:$0xff]  }
 0x1a3   :  { %3841 = vmatprep.subr.bf16.mxu1 %v16196_v58  ;;  %v1068_v58 = vsel %vm16023_vm15, %v11760_v63, %v1067_v0  ;;  %v3210_v63 = vrot.slane %v3202_v54, %v15180_v18 }
 0x1a4   :  { %v3186_v30 = vcombine.low %v1064_v24, %v1068_v58  ;;  %v3219_v58 = vcombine.low %v1084_v10, %v1088_v29  ;;  %v14763_v10 = vld.sshfl [vmem:[%s18004_s1 + $0x20] sm:$0x33 pattern:$0x76325410] }
 0x1a5   :  { %11878 = vmatmul.mubr.msk.bf16.gmra.mrb[16].mxu0 %vm1323_vm1, %v16151_v49  ;;  %11888 = vmatmul.mubr.msk.bf16.gmra.mrb[16].mxu1 %vm1323_vm1, %v16288_v52  ;;  %v1077_v49 = vrot.slane %v15547_v12, 7  ;;  %v3193_v12 = vrot.slane %v3185_v46, %v15180_v18  ;;  %v11767_v29 = vrot.slane %v14763_v10, 9 }
 0x1a6   :  { %3042 = vmatprep.mubr.bf16.mxu0 %v18153_v40  ;;  %3306 = vmatprep.mubr.bf16.mxu1 %v18153_v40  ;;  %v3200_v31 = vrot.slane %v3186_v30, %v15180_v18  ;;  %v3227_v22 = vrot.slane %v3219_v58, %v15180_v18  ;;  %v13566_v30 = vld [vmem:[#allocation6 + $0x184] ss:$8 sps:$4 sm:$0xff]   ;;  %v1143_v58 = vrot.slane %v15930_v8, 7 }
 0x1a7   :  { %v1079_v35 = vrot.slane %v1077_v49, 2  ;;  %v1078_v42 = vsel %vm16023_vm15, %v11761_v14, %v1077_v49  ;;  %v3234_v49 = vrot.slane %v3220_v55, %v15180_v18  ;;  %v14764_v55 = vld.sshfl [vmem:[%s18004_s1 + $0x28] sm:$0x33 pattern:$0x76325410] }
 0x1a8   :  { %v16346_v32 = vcombine.low %v3193_v12, %v3200_v31 }
 0x1a9   :  { %v16384_v46 = vcombine.low %v3227_v22, %v3234_v49  ;;  %v11768_v22 = vrot.slane %v14764_v55, 9  ;;  %v18202_v49 = vld [vmem:[#allocation25_spill] sm:$0xff]  ;;  %v13576_v55 = vld [vmem:[#allocation6 + $0x1c0] ss:$8 sps:$4 sm:$0xff]  }
 0x1ad   :  { %11879 = vmatmul.mubr.msk.bf16.gmra.mrb[20].mxu0 %vm1323_vm1, %v16163_v1  ;;  %11889 = vmatmul.mubr.msk.bf16.gmra.mrb[20].mxu1 %vm1323_vm1, %v16316_v17  ;;  %v1081_v1 = vsel %vm16023_vm15, %v1079_v35, %v1080_v19  ;;  %v18199_v19 = vld [vmem:[#allocation24_spill] sm:$0xff] }
 0x1ae   :  { %3316 = vmatprep.mubr.bf16.mxu1 %v18153_v40  ;;  %13020 = vmatprep.mubr.msk.bf16.mxu0 %vm1323_vm1, %v16249_v61  ;;  %v3203_v33 = vcombine.low %v1078_v42, %v1081_v1  ;;  %v1123_v12 = vrot.slane %v18199_v19, 7 }
 0x1b0   :  { %v3217_v0 = vrot.slane %v3203_v33, %v15180_v18  ;;  %v1124_v36 = vsel %vm16023_vm15, %v1122_v43, %v1123_v12  ;;  %v18204_v43 = vld [vmem:[#allocation29_spill] sm:$0xff]  ;;  %v14766_v12 = vld.sshfl [vmem:[%s18004_s1 + $0x30] sm:$0x33 pattern:$0x76325410] }
 0x1b1   :  { %v1153_v19 = vrot.slane %v18204_v43, 7  ;;  %v13611_v43 = vld [vmem:[#allocation6 + $0x274] ss:$8 sps:$4 sm:$0xff]  }
 0x1b2   :  { %v16372_v24 = vcombine.low %v3210_v63, %v3217_v0 }
 0x1b5   :  { %11890 = vmatmul.mubr.msk.bf16.gmra.mrb[24].mxu1 %vm1323_vm1, %v16346_v32  ;;  %13021 = vmatmul.mubr.msk.bf16.vlgmr.msra.gmra.mrb[24].mxu0 %vm1323_vm1, %v16288_v52 }
 0x1b6   :  { %3326 = vmatprep.mubr.bf16.mxu1 %v18153_v40  ;;  %13024 = vmatprep.mubr.msk.bf16.mxu0 %vm1323_vm1, %v16316_v17 }
 0x1b7   :  { %3548 = vmatpush1.bf16.msra.mxu0 %v13558_v48 }
 0x1b8   :  { %11905 = vmatprep.subr.msk.bf16.mxu0 %vm1342_vm0, %v13561_v60 }
 0x1bb   :  { %3550 = vmatpush1.bf16.msra.mxu0 %v3539_v51 }
 0x1bc   :  { %13048 = vmatprep.subr.bf16.mxu0 %v16176_v45 }
 0x1bd   :  { %11891 = vmatmul.mubr.msk.bf16.gmra.mrb[28].mxu1 %vm1323_vm1, %v16372_v24  ;;  %13025 = vmatmul.mubr.msk.bf16.gmra.mrb[28].mxu0 %vm1323_vm1, %v16346_v32 }
 0x1be   :  { %3336 = vmatprep.mubr.bf16.mxu1 %v18153_v40  ;;  %13028 = vmatprep.mubr.msk.bf16.mxu0 %vm1323_vm1, %v16372_v24 }
 0x1c5   :  { %11892 = vmatmul.mubr.msk.bf16.gmra.mrb[32].mxu1 %vm1323_vm1, %v16384_v46  ;;  %13029 = vmatmul.mubr.msk.bf16.gmra.mrb[32].mxu0 %vm1323_vm1, %v16384_v46 }
 0x1c6   :  { %3579 = vmatprep.mubr.bf16.mxu0 %v18153_v40  ;;  %13036 = vmatprep.mubr.msk.bf16.mxu1 %vm1323_vm1, %v16249_v61 }
 0x1cd   :  { %11906 = vmatmul.mubr.msk.bf16.vlgmr.msra.gmra.mrb[0].mxu0 %vm1323_vm1, %v16249_v61  ;;  %13037 = vmatmul.mubr.msk.bf16.vlgmr.msra.gmra.mrb[0].mxu1 %vm1323_vm1, %v16288_v52  ;;  %v1117_v61 = vrot.slane %v18167_v47, 7  ;;  %v1109_v47 = vrot.slane %v1107_v27, 2  ;;  %v11766_v27 = vrot.slane %v14761_v23, 9  ;;  %v11769_v23 = vrot.slane %v14766_v12, 9  ;;  %v13614_v12 = vld [vmem:[#allocation6 + $0x284] ss:$8 sps:$4 sm:$0xff]  }
 0x1ce   :  { %3842 = vmatpush1.bf16.msra.mxu1 %v13558_v48  ;;  %3589 = vmatprep.mubr.bf16.mxu0 %v18153_v40 }
 0x1cf   :  { %13040 = vmatprep.mubr.msk.bf16.mxu1 %vm1323_vm1, %v16316_v17  ;;  %11918 = vmatprep.subr.msk.bf16.mxu1 %vm1342_vm0, %v13561_v60  ;;  %v1111_v42 = vsel %vm16023_vm15, %v1109_v47, %v1110_v28  ;;  %v1128_v48 = vsel %vm16023_vm15, %v11766_v27, %v1127_v26  ;;  %v1140_v60 = vrot.slane %v14762_v56, 7 }
 0x1d0   :  { %13049 = vmatpush3.bf16.msra.mxu0 %v16176_v45  ;;  %v14759_v45 = vld.sshfl [vmem:[%s18004_s1 + $0x1c] sm:$0x13 pattern:$0x76325410]  ;;  %v3755_v63 = vcombine.low %v1124_v36, %v1128_v48 }
 0x1d1   :  { %13505 = vmatprep.subr.msk.bf16.mxu0 %vm1342_vm0, %v16254_v20  ;;  %v1130_v14 = vrot.slane %v14759_v45, 7  ;;  %v1113_v20 = vrot.slane %v15833_v39, 7  ;;  %v1129_v39 = vrot.slane %v1127_v26, 2  ;;  %v1138_v26 = vsel %vm16023_vm15, %v11767_v29, %v1137_v25 }
 0x1d2   :  { %3844 = vmatpush1.bf16.msra.mxu1 %v3539_v51  ;;  %v1142_v51 = vrot.slane %v1140_v60, 2  ;;  %v3763_v28 = vrot.slane %v3755_v63, %v15180_v18  ;;  %v1141_v8 = vsel %vm16023_vm15, %v1139_v34, %v1140_v60  ;;  %v14765_v45 = vld.sshfl [vmem:[%s18004_s1 + $0x2c] sm:$0x13 pattern:$0x76325410]  ;;  %v1163_v25 = vrot.slane %v16073_v15, 7 }
 0x1d3   :  { %4928 = vmatprep.subr.bf16.mxu1 %v13566_v30  ;;  %v1132_v31 = vrot.slane %v1130_v14, 2  ;;  %v1114_v1 = vsel %vm16023_vm15, %v1112_v44, %v1113_v20  ;;  %v1131_v37 = vsel %vm16023_vm15, %v1129_v39, %v1130_v14  ;;  %v1147_v30 = vrot.slane %v18202_v49, 7  ;;  %v14767_v39 = vld.sshfl [vmem:[%s18004_s1 + $0x34] sm:$0x13 pattern:$0x76325410] }
 0x1d4   :  { %13051 = vmatpush3.bf16.msra.mxu0 %v16285_v7  ;;  %v14760_v7 = vld.sshfl [vmem:[%s18004_s1 + $0x10] sm:$0x33 pattern:$0x76325410]  ;;  %v3738_v6 = vcombine.low %v1111_v42, %v1114_v1  ;;  %v1144_v62 = vsel %vm16023_vm15, %v1142_v51, %v1143_v58  ;;  %v1150_v14 = vrot.slane %v14765_v45, 7  ;;  %v3772_v44 = vcombine.low %v1138_v26, %v1141_v8 }
 0x1d5   :  { %11907 = vmatmul.mubr.msk.bf16.gmra.mrb[4].mxu0 %vm1323_vm1, %v16288_v52  ;;  %13041 = vmatmul.mubr.msk.bf16.gmra.mrb[4].mxu1 %vm1323_vm1, %v16346_v32  ;;  %v11765_v35 = vrot.slane %v14760_v7, 9  ;;  %v1119_v52 = vrot.slane %v1117_v61, 2  ;;  %v1134_v59 = vsel %vm16023_vm15, %v1132_v31, %v1133_v53  ;;  %v1160_v31 = vrot.slane %v14767_v39, 7  ;;  %v13573_v51 = vld [vmem:[#allocation6 + $0x1b0] ss:$8 sps:$4 sm:$0xff]  }
 0x1d6   :  { %3599 = vmatprep.mubr.bf16.mxu0 %v18153_v40  ;;  %13044 = vmatprep.mubr.msk.bf16.mxu1 %vm1323_vm1, %v16372_v24  ;;  %v3746_v33 = vrot.slane %v3738_v6, %v15180_v18  ;;  %v3756_v0 = vcombine.low %v1131_v37, %v1134_v59  ;;  %v3780_v38 = vrot.slane %v3772_v44, %v15180_v18  ;;  %v1173_v59 = vrot.slane %v16094_v4, 7  ;;  %v13578_v58 = vld [vmem:[#allocation6 + $0x1c4] ss:$8 sps:$4 sm:$0xff]   ;;  %v13579_v49 = vld [vmem:[#allocation6 + $0x1d0] ss:$8 sps:$4 sm:$0xff]  }
 0x1d7   :  { %v1118_v50 = vsel %vm16023_vm15, %v11765_v35, %v1117_v61  ;;  %v1121_v41 = vsel %vm16023_vm15, %v1119_v52, %v1120_v3  ;;  %v1148_v3 = vsel %vm16023_vm15, %v11768_v22, %v1147_v30  ;;  %v1149_v35 = vrot.slane %v1147_v30, 2  ;;  %v13581_v22 = vld [vmem:[#allocation6 + $0x1d4] ss:$8 sps:$4 sm:$0xff]   ;;  %v13582_v30 = vld [vmem:[#allocation6 + $0x1e0] ss:$8 sps:$4 sm:$0xff]  }
 0x1d8   :  { %v3739_v54 = vcombine.low %v1118_v50, %v1121_v41  ;;  %v3770_v61 = vrot.slane %v3756_v0, %v15180_v18  ;;  %v3773_v20 = vcombine.low %v1144_v62, %v1148_v3  ;;  %v1152_v52 = vrot.slane %v1150_v14, 2  ;;  %v13588_v26 = vld [vmem:[#allocation6 + $0x200] ss:$8 sps:$4 sm:$0xff]   ;;  %v13593_v8 = vld [vmem:[#allocation6 + $0x214] ss:$8 sps:$4 sm:$0xff]  }
 0x1d9   :  { %v1151_v42 = vsel %vm16023_vm15, %v1149_v35, %v1150_v14  ;;  %v1162_v9 = vrot.slane %v1160_v31, 2  ;;  %v13591_v62 = vld [vmem:[#allocation6 + $0x210] ss:$8 sps:$4 sm:$0xff]   ;;  %v13596_v3 = vld [vmem:[#allocation6 + $0x224] ss:$8 sps:$4 sm:$0xff]   ;;  %vm4464_vm0 = vcmask 1042432  }
 0x1da   :  { %v3753_v21 = vrot.slane %v3739_v54, %v15180_v18  ;;  %v3771_v7 = vcombine.low %v3763_v28, %v3770_v61  ;;  %v3787_v53 = vrot.slane %v3773_v20, %v15180_v18  ;;  %v1154_v1 = vsel %vm16023_vm15, %v1152_v52, %v1153_v19  ;;  %v14768_v54 = vld.sshfl [vmem:[%s18004_s1 + $0x3c] sm:$0x13 pattern:$0x76325410]  ;;  %v13585_v28 = vld [vmem:[#allocation6 + $0x1f0] ss:$8 sps:$4 sm:$0xff]  }
 0x1db   :  { %v1164_v15 = vsel %vm16023_vm15, %v1162_v9, %v1163_v25  ;;  %v13590_v61 = vld [vmem:[#allocation6 + $0x204] ss:$8 sps:$4 sm:$0xff]   ;;  %v13594_v45 = vld [vmem:[#allocation6 + $0x220] ss:$8 sps:$4 sm:$0xff]   ;;  %v13599_v14 = vld [vmem:[#allocation6 + $0x234] ss:$8 sps:$4 sm:$0xff]  }
 0x1dc   :  { %v13600_v44 = vld [vmem:[#allocation6 + $0x240] ss:$8 sps:$4 sm:$0xff]   ;;  %v13605_v20 = vld [vmem:[#allocation6 + $0x254] ss:$8 sps:$4 sm:$0xff]   ;;  %v13608_v35 = vld [vmem:[#allocation6 + $0x264] ss:$8 sps:$4 sm:$0xff]  }
 0x1dd   :  { %11908 = vmatmul.mubr.msk.bf16.gmra.mrb[8].mxu0 %vm1323_vm1, %v16316_v17  ;;  %13045 = vmatmul.mubr.msk.bf16.gmra.mrb[8].mxu1 %vm1323_vm1, %v16384_v46  ;;  %v13569_v17 = vld [vmem:[#allocation6 + $0x194] ss:$8 sps:$4 sm:$0xff]   ;;  %v13606_v52 = vld [vmem:[#allocation6 + $0x260] ss:$8 sps:$4 sm:$0xff]   ;;  %v13609_v19 = vld [vmem:[#allocation6 + $0x270] ss:$8 sps:$4 sm:$0xff]  }
 0x1de   :  { %3609 = vmatprep.mubr.bf16.mxu0 %v18153_v40  ;;  %3873 = vmatprep.mubr.bf16.mxu1 %v18153_v40 }
 0x1e5   :  { %11909 = vmatmul.mubr.msk.bf16.gmra.mrb[12].mxu0 %vm1323_vm1, %v16346_v32  ;;  %11919 = vmatmul.mubr.msk.bf16.vlgmr.msra.gmra.mrb[12].mxu1 %vm1323_vm1, %v16114_v13  ;;  %v16468_v32 = vcombine.low %v3746_v33, %v3753_v21  ;;  %v1170_v33 = vrot.slane %v14768_v54, 7  ;;  %v3788_v21 = vcombine.low %v3780_v38, %v3787_v53 }
 0x1e6   :  { %3619 = vmatprep.mubr.bf16.mxu0 %v18153_v40  ;;  %3883 = vmatprep.mubr.bf16.mxu1 %v18153_v40 }
 0x1e7   :  { %4929 = vmatpush1.bf16.msra.mxu1 %v13564_v16  ;;  %v3789_v16 = vcombine.low %v1151_v42, %v1154_v1  ;;  %v1172_v37 = vrot.slane %v1170_v33, 2 }
 0x1e8   :  { %4930 = vmatprep.subr.bf16.mxu1 %v13569_v17 }
 0x1e9   :  { %v3797_v56 = vrot.slane %v3789_v16, %v15180_v18 }
 0x1eb   :  { %4931 = vmatpush1.bf16.msra.mxu1 %v13567_v2 }
 0x1ec   :  { %4932 = vmatprep.subr.bf16.mxu1 %v13572_v5 }
 0x1ed   :  { %11910 = vmatmul.mubr.msk.bf16.gmra.mrb[16].mxu0 %vm1323_vm1, %v16372_v24  ;;  %11920 = vmatmul.mubr.msk.bf16.gmra.mrb[16].mxu1 %vm1323_vm1, %v16468_v32  ;;  %v18203_v24 = vld [vmem:[#allocation27_spill] sm:$0xff] }
 0x1ee   :  { %3629 = vmatprep.mubr.bf16.mxu0 %v18153_v40  ;;  %3893 = vmatprep.mubr.bf16.mxu1 %v18153_v40  ;;  %v1157_v47 = vrot.slane %v18203_v24, 7  ;;  %v13597_v24 = vld [vmem:[#allocation6 + $0x230] ss:$8 sps:$4 sm:$0xff]  }
 0x1ef   :  { %4933 = vmatpush1.bf16.msra.mxu1 %v13570_v57  ;;  %v13587_v57 = vld [vmem:[#allocation6 + $0x1f4] ss:$8 sps:$4 sm:$0xff]  }
 0x1f0   :  { %v1159_v27 = vrot.slane %v1157_v47, 2  ;;  %v1158_v50 = vsel %vm16023_vm15, %v11769_v23, %v1157_v47  ;;  %4934 = vmatprep.subr.bf16.mxu1 %v13575_v11  ;;  %v13602_v47 = vld [vmem:[#allocation6 + $0x244] ss:$8 sps:$4 sm:$0xff]  }
 0x1f2   :  { %v1161_v41 = vsel %vm16023_vm15, %v1159_v27, %v1160_v31 }
 0x1f3   :  { %v3790_v36 = vcombine.low %v1158_v50, %v1161_v41  ;;  %4935 = vmatpush1.bf16.msra.mxu1 %v13573_v51 }
 0x1f4   :  { %4936 = vmatprep.subr.bf16.mxu1 %v13578_v58 }
 0x1f5   :  { %11911 = vmatmul.mubr.msk.bf16.gmra.mrb[20].mxu0 %vm1323_vm1, %v16384_v46  ;;  %11921 = vmatmul.mubr.msk.bf16.gmra.mrb[20].mxu1 %vm1323_vm1, %v3771_v7  ;;  %v18205_v46 = vld [vmem:[#allocation28_spill] sm:$0xff]  ;;  %v3804_v60 = vrot.slane %v3790_v36, %v15180_v18 }
 0x1f6   :  { %3903 = vmatprep.mubr.bf16.mxu1 %v18153_v40  ;;  %13052 = vmatprep.mubr.msk.bf16.mxu0 %vm1323_vm1, %v16114_v13  ;;  %v1167_v6 = vrot.slane %v18205_v46, 7  ;;  %v14769_v13 = vld.sshfl [vmem:[%s18004_s1 + $0x38] sm:$0x33 pattern:$0x76325410] }
 0x1f7   :  { %v11770_v17 = vrot.slane %v14769_v13, 9  ;;  %v3805_v63 = vcombine.low %v3797_v56, %v3804_v60  ;;  %4937 = vmatpush1.bf16.msra.mxu1 %v13576_v55 }
 0x1f8   :  { %v1169_v48 = vrot.slane %v1167_v6, 2  ;;  %4938 = vmatprep.subr.bf16.mxu1 %v13581_v22 }
 0x1f9   :  { %v1168_v2 = vsel %vm16023_vm15, %v11770_v17, %v1167_v6  ;;  %v4087_v17 = vld [vmem:[#allocation4] sm:$0x7] }
 0x1fa   :  { %v1171_v4 = vsel %vm16023_vm15, %v1169_v48, %v1170_v33  ;;  %v3806_v0 = vcombine.low %v1164_v15, %v1168_v2 }
 0x1fb   :  { %4939 = vmatpush1.bf16.msra.mxu1 %v13579_v49 }
 0x1fc   :  { %v3814_v29 = vrot.slane %v3806_v0, %v15180_v18 }
 0x1fd   :  { %11922 = vmatmul.mubr.msk.bf16.gmra.mrb[24].mxu1 %vm1323_vm1, %v3788_v21  ;;  %13053 = vmatmul.mubr.msk.bf16.vlgmr.msra.gmra.mrb[24].mxu0 %vm1323_vm1, %v16468_v32  ;;  %v1174_v32 = vsel %vm16023_vm15, %v1172_v37, %v1173_v59 }
 0x1fe   :  { %3913 = vmatprep.mubr.bf16.mxu1 %v18153_v40  ;;  %13056 = vmatprep.mubr.msk.bf16.mxu0 %vm1323_vm1, %v3771_v7  ;;  %v3807_v10 = vcombine.low %v1171_v4, %v1174_v32  ;;  %v13603_v7 = vld [vmem:[#allocation6 + $0x250] ss:$8 sps:$4 sm:$0xff]  }
 0x200   :  { %v3821_v34 = vrot.slane %v3807_v10, %v15180_v18  ;;  %v13584_v18 = vld [vmem:[#allocation6 + $0x1e4] ss:$8 sps:$4 sm:$0xff]  }
 0x201   :  { %4940 = vmatprep.subr.bf16.mxu1 %v13584_v18 }
 0x202   :  { %v3822_v5 = vcombine.low %v3814_v29, %v3821_v34  ;;  %4941 = vmatpush1.bf16.msra.mxu1 %v13582_v30 }
 0x203   :  { %4942 = vmatprep.subr.bf16.mxu1 %v13587_v57 }
 0x205   :  { %11923 = vmatmul.mubr.msk.bf16.gmra.mrb[28].mxu1 %vm1323_vm1, %v3805_v63  ;;  %13057 = vmatmul.mubr.msk.bf16.gmra.mrb[28].mxu0 %vm1323_vm1, %v3788_v21  ;;  %v18206_v21 = vld [vmem:[#allocation20_spill] sm:$0xff] }
 0x206   :  { %3923 = vmatprep.mubr.bf16.mxu1 %v18153_v40  ;;  %13060 = vmatprep.mubr.msk.bf16.mxu0 %vm1323_vm1, %v3805_v63  ;;  %v16554_v16 = vsub.s32 0, %v18206_v21  ;;  %v18062_v36 = vsub.s32 2, %v18206_v21  ;;  %v16558_v9 = vsub.s32 1, %v18206_v21 }
 0x207   :  { %4943 = vmatpush1.bf16.msra.mxu1 %v13585_v28 }
 0x208   :  { %4944 = vmatprep.subr.bf16.mxu1 %v13590_v61  ;;  %18207 = vst [vmem:[#allocation31_spill] sm:$0xff] %v16554_v16  ;;  %18208 = vst [vmem:[#allocation21_spill] sm:$0xff] %v16558_v9  ;;  %v16561_v48 = vrot.slane %v4087_v17, %v16554_v16  ;;  %v16565_v37 = vrot.slane %v4087_v17, %v18062_v36  ;;  %v16568_v59 = vrot.slane %v4087_v17, %v16558_v9 }
 0x20b   :  { %4945 = vmatpush1.bf16.msra.mxu1 %v13588_v26 }
 0x20c   :  { %4946 = vmatprep.subr.bf16.mxu1 %v13593_v8 }
 0x20d   :  { %11924 = vmatmul.mubr.msk.bf16.gmra.mrb[32].mxu1 %vm1323_vm1, %v3822_v5  ;;  %13061 = vmatmul.mubr.msk.bf16.gmra.mrb[32].mxu0 %vm1323_vm1, %v3822_v5  ;;  %vm4465_vm1 = vcmask 1046532  }
 0x20e   :  { %vm16761_vm2 = vmor %vm4464_vm0, %vm4465_vm1 }
 0x20f   :  { %4947 = vmatpush1.bf16.msra.mxu1 %v13591_v62 }
 0x210   :  { %4948 = vmatprep.subr.bf16.mxu1 %v13596_v3 }
 0x213   :  { %4949 = vmatpush1.bf16.msra.mxu1 %v13594_v45 }
 0x214   :  { %4950 = vmatprep.subr.bf16.mxu1 %v13599_v14 }
 0x217   :  { %4951 = vmatpush1.bf16.msra.mxu1 %v13597_v24 }
 0x218   :  { %4952 = vmatprep.subr.bf16.mxu1 %v13602_v47 }
 0x21b   :  { %4953 = vmatpush1.bf16.msra.mxu1 %v13600_v44 }
 0x21c   :  { %4954 = vmatprep.subr.bf16.mxu1 %v13605_v20 }
 0x21f   :  { %4955 = vmatpush1.bf16.msra.mxu1 %v13603_v7 }
 0x220   :  { %4956 = vmatprep.subr.bf16.mxu1 %v13608_v35 }
 0x223   :  { %4957 = vmatpush1.bf16.msra.mxu1 %v13606_v52 }
 0x224   :  { %4958 = vmatprep.subr.bf16.mxu1 %v13611_v43 }
 0x227   :  { %4959 = vmatpush1.bf16.msra.mxu1 %v13609_v19 }
 0x228   :  { %5001 = vmatprep.subr.bf16.mxu1 %v13614_v12 }
 0x2a0   :  { %v3581_v23 = vpop.f32.mrb[0].mxu0  ;;  %v13038_v27 = vpop.f32.mrb[0].mxu1 }
 0x2a1   :  { %v3583_v39 = vpop.f32.mrb[1].mxu0  ;;  %v3674_v31 = vpop.f32.mrb[1].mxu1  ;;  %v4104_v63 = vadd.f32 %v16561_v48, %v3581_v23  ;;  %v16574_v0 = vadd.f32 %v13038_v27, %v16565_v37 }
 0x2a2   :  { %v3585_v38 = vpop.f32.mrb[2].mxu0  ;;  %v13039_v53 = vpop.f32.mrb[2].mxu1  ;;  %v4105_v10 = vadd.f32 %v16568_v59, %v3583_v39  ;;  %v16582_v5 = vadd.f32 %v16565_v37, %v3674_v31 }
 0x2a3   :  { %v3587_v42 = vpop.f32.mrb[3].mxu0  ;;  %v3677_v1 = vpop.f32.mrb[3].mxu1  ;;  %v4107_v11 = vadd.f32 %v16561_v48, %v3585_v38  ;;  %v16586_v51 = vadd.f32 %v13039_v53, %v16565_v37  ;;  %v4140_v18 = vmax.f32 %v4104_v63, 0.0 }
 0x2a4   :  { %v4108_v58 = vadd.f32 %v16568_v59, %v3587_v42  ;;  %v16590_v55 = vadd.f32 %v16565_v37, %v3677_v1  ;;  %v4141_v57 = vmax.f32 %v4105_v10, 0.0 }
 0x2a5   :  { %v4143_v26 = vmax.f32 %v4107_v11, 0.0 }
 0x2a6   :  { %v4144_v62 = vmax.f32 %v4108_v58, 0.0 }
 0x2a8   :  { %v3591_v50 = vpop.f32.mrb[4].mxu0  ;;  %v13042_v41 = vpop.f32.mrb[4].mxu1 }
 0x2a9   :  { %v3593_v46 = vpop.f32.mrb[5].mxu0  ;;  %v3690_v6 = vpop.f32.mrb[5].mxu1  ;;  %v16593_v22 = vadd.f32 %v16561_v48, %v3591_v50  ;;  %v16596_v49 = vadd.f32 %v13042_v41, %v16565_v37 }
 0x2aa   :  { %v3595_v54 = vpop.f32.mrb[6].mxu0  ;;  %v13043_v33 = vpop.f32.mrb[6].mxu1  ;;  %v16600_v28 = vadd.f32 %v16568_v59, %v3593_v46  ;;  %v16607_v47 = vadd.f32 %v16565_v37, %v3690_v6 }
 0x2ab   :  { %v3597_v25 = vpop.f32.mrb[7].mxu0  ;;  %v3693_v13 = vpop.f32.mrb[7].mxu1  ;;  %v4146_v24 = vmax.f32 %v16593_v22, 0.0  ;;  %v16612_v52 = vadd.f32 %v16561_v48, %v3595_v54  ;;  %v16615_v43 = vadd.f32 %v13043_v33, %v16565_v37 }
 0x2ac   :  { %v4147_v27 = vmax.f32 %v16600_v28, 0.0  ;;  %v16620_v39 = vadd.f32 %v16568_v59, %v3597_v25  ;;  %v16624_v1 = vadd.f32 %v16565_v37, %v3693_v13 }
 0x2ad   :  { %v4149_v10 = vmax.f32 %v16612_v52, 0.0 }
 0x2b0   :  { %v3601_v56 = vpop.f32.mrb[8].mxu0  ;;  %v13046_v60 = vpop.f32.mrb[8].mxu1 }
 0x2b1   :  { %v3603_v15 = vpop.f32.mrb[9].mxu0  ;;  %v3706_v2 = vpop.f32.mrb[9].mxu1  ;;  %v16627_v50 = vadd.f32 %v16561_v48, %v3601_v56  ;;  %v16632_v54 = vadd.f32 %v13046_v60, %v16565_v37 }
 0x2b2   :  { %v3605_v4 = vpop.f32.mrb[10].mxu0  ;;  %v16570_v32 = vpop.f32.mrb[10].mxu1  ;;  %v16637_v17 = vadd.f32 %v16568_v59, %v3603_v15  ;;  %v16640_v13 = vadd.f32 %v16565_v37, %v3706_v2 }
 0x2b3   :  { %v16577_v29 = vpop.f32.mrb[11].mxu0  ;;  %v16579_v34 = vpop.f32.mrb[11].mxu1  ;;  %v16647_v58 = vadd.f32 %v16561_v48, %v3605_v4  ;;  %v16659_v52 = vadd.f32 %v16570_v32, %v16565_v37 }
 0x2b4   :  { %v16674_v32 = vadd.f32 %v16565_v37, %v16579_v34 }
 0x2b8   :  { %v3611_v3 = vpop.f32.mrb[12].mxu0  ;;  %v3875_v45 = vpop.f32.mrb[12].mxu1 }
 0x2b9   :  { %v4176_v44 = vadd.f32 %v16561_v48, %v3875_v45  ;;  %v3613_v20 = vpop.f32.mrb[13].mxu0  ;;  %v3877_v7 = vpop.f32.mrb[13].mxu1  ;;  %v4152_v45 = vmax.f32 %v16627_v50, 0.0 }
 0x2ba   :  { %v4177_v19 = vadd.f32 %v16568_v59, %v3877_v7  ;;  %v3615_v12 = vpop.f32.mrb[14].mxu0  ;;  %v3879_v23 = vpop.f32.mrb[14].mxu1 }
 0x2bb   :  { %v4212_v31 = vmax.f32 %v4176_v44, 0.0  ;;  %v4179_v38 = vadd.f32 %v16561_v48, %v3879_v23  ;;  %v3617_v53 = vpop.f32.mrb[15].mxu0  ;;  %v3881_v42 = vpop.f32.mrb[15].mxu1  ;;  %v16685_v34 = vadd.f32 %v16561_v48, %v3615_v12 }
 0x2bc   :  { %v4213_v41 = vmax.f32 %v4177_v19, 0.0  ;;  %v4180_v46 = vadd.f32 %v16568_v59, %v3881_v42 }
 0x2bd   :  { %v16634_v33 = vadd.f32 %v4212_v31, %v4140_v18  ;;  %v4215_v25 = vmax.f32 %v4179_v38, 0.0  ;;  %v4150_v18 = vmax.f32 %v16620_v39, 0.0  ;;  %v4153_v39 = vmax.f32 %v16637_v17, 0.0 }
 0x2be   :  { %v16642_v63 = vadd.f32 %v4213_v41, %v4141_v57  ;;  %v4216_v56 = vmax.f32 %v4180_v46, 0.0  ;;  %v16670_v31 = vadd.f32 %v16568_v59, %v16577_v29  ;;  %v4155_v41 = vmax.f32 %v16647_v58, 0.0 }
 0x2bf   :  { %18209 = vst [vmem:[#allocation32_spill] sm:$0xff] %v16634_v33  ;;  %v16649_v60 = vadd.f32 %v4215_v25, %v4143_v26  ;;  %v16678_v46 = vadd.f32 %v16561_v48, %v3611_v3  ;;  %v16682_v29 = vadd.f32 %v16568_v59, %v3613_v20  ;;  %v16692_v3 = vadd.f32 %v16568_v59, %v3617_v53 }
 0x2c0   :  { %18210 = vst [vmem:[#allocation34_spill] sm:$0xff] %v16642_v63  ;;  %v16654_v2 = vadd.f32 %v4216_v56, %v4144_v62  ;;  %v3621_v57 = vpop.f32.mrb[16].mxu0  ;;  %v3885_v44 = vpop.f32.mrb[16].mxu1  ;;  %v16663_v4 = vcombine.high %v16634_v33, %v16642_v63  ;;  %v4156_v12 = vmax.f32 %v16670_v31, 0.0 }
 0x2c1   :  { %v4182_v26 = vadd.f32 %v16561_v48, %v3885_v44  ;;  %v3623_v19 = vpop.f32.mrb[17].mxu0  ;;  %v3887_v23 = vpop.f32.mrb[17].mxu1  ;;  %v16721_v28 = vadd.f32 %v16561_v48, %v3621_v57 }
 0x2c2   :  { %18211 = vst [vmem:[#allocation22_spill] sm:$0xff] %v16663_v4  ;;  %v3625_v38 = vpop.f32.mrb[18].mxu0  ;;  %v3889_v42 = vpop.f32.mrb[18].mxu1  ;;  %v4183_v56 = vadd.f32 %v16568_v59, %v3887_v23  ;;  %v12179_v58 = vcombine.low %v16663_v4, %v16649_v60  ;;  %v16726_v20 = vcombine.low %v16649_v60, %v16654_v2  ;;  %v4469_v61 = vrot.slane %v16663_v4, 5 }
 0x2c3   :  { %v4218_v25 = vmax.f32 %v4182_v26, 0.0  ;;  %v3627_v44 = vpop.f32.mrb[19].mxu0  ;;  %v3891_v36 = vpop.f32.mrb[19].mxu1  ;;  %v4185_v62 = vadd.f32 %v16561_v48, %v3889_v42  ;;  %v16752_v22 = vcombine.high %v16649_v60, %v16654_v2 }
 0x2c4   :  { %v4186_v7 = vadd.f32 %v16568_v59, %v3891_v36  ;;  %v4219_v23 = vmax.f32 %v4183_v56, 0.0  ;;  %18218 = vst [vmem:[#allocation36_spill] sm:$0xff] %v16726_v20  ;;  %v16742_v35 = vadd.f32 %v16568_v59, %v3627_v44  ;;  %v4475_v17 = vrot.slane %v4469_v61, 4 }
 0x2c5   :  { %v16696_v26 = vadd.f32 %v4218_v25, %v4146_v24  ;;  %v4221_v15 = vmax.f32 %v4185_v62, 0.0  ;;  %v16712_v24 = vcombine.low %v16634_v33, %v16642_v63  ;;  %18219 = vst [vmem:[#allocation37_spill] sm:$0xff] %v16752_v22 }
 0x2c6   :  { %v4222_v11 = vmax.f32 %v4186_v7, 0.0  ;;  %v16707_v53 = vadd.f32 %v4219_v23, %v4147_v27 }
 0x2c7   :  { %18212 = vst [vmem:[#allocation38_spill] sm:$0xff] %v16696_v26  ;;  %v16703_v6 = vpack.c.bf16 %v16696_v26, %v12179_v58  ;;  %18215 = vst [vmem:[#allocation30_spill] sm:$0xff] %v16712_v24  ;;  %v16714_v31 = vadd.f32 %v4221_v15, %v4149_v10  ;;  %v16729_v10 = vadd.f32 %v16568_v59, %v3623_v19 }
 0x2c8   :  { %18214 = vst [vmem:[#allocation42_spill] sm:$0xff] %v16707_v53  ;;  %v16716_v7 = vadd.f32 %v4222_v11, %v4150_v18  ;;  %v3631_v62 = vpop.f32.mrb[20].mxu0  ;;  %v3895_v25 = vpop.f32.mrb[20].mxu1  ;;  %v16732_v11 = vadd.f32 %v16561_v48, %v3625_v38  ;;  %v16768_v30 = vcombine.high %v16696_v26, %v16707_v53 }
 0x2c9   :  { %18213 = vst [vmem:[#allocation39_spill] sm:$0xff] %v16703_v6  ;;  %18216 = vst [vmem:[#allocation33_spill] sm:$0xff] %v16714_v31  ;;  %v4188_v27 = vadd.f32 %v16561_v48, %v3895_v25  ;;  %v3633_v23 = vpop.f32.mrb[21].mxu0  ;;  %v3897_v42 = vpop.f32.mrb[21].mxu1  ;;  %v16739_v25 = vcombine.low %v16696_v26, %v16707_v53 }
 0x2ca   :  { %18217 = vst [vmem:[#allocation35_spill] sm:$0xff] %v16716_v7  ;;  %v4189_v18 = vadd.f32 %v16568_v59, %v3897_v42  ;;  %v16735_v15 = vpop.f32.mrb[22].mxu0  ;;  %v3899_v57 = vpop.f32.mrb[22].mxu1  ;;  %v11939_v42 = vrot.slane %v16712_v24, 9  ;;  %18223 = vst [vmem:[#allocation41_spill] sm:$0xff] %v16768_v30  ;;  %v4490_v6 = vrot.slane %v16768_v30, 5 }
 0x2cb   :  { %v4224_v14 = vmax.f32 %v4188_v27, 0.0  ;;  %v4191_v58 = vadd.f32 %v16561_v48, %v3899_v57  ;;  %v16745_v19 = vpop.f32.mrb[23].mxu0  ;;  %v3901_v8 = vpop.f32.mrb[23].mxu1  ;;  %v4483_v44 = vrot.slane %v16739_v25, 5  ;;  %v18229_v30 = vmax.f32 %v16574_v0, 0.0 }
 0x2cc   :  { %v4225_v38 = vmax.f32 %v4189_v18, 0.0  ;;  %v4192_v56 = vadd.f32 %v16568_v59, %v3901_v8  ;;  %v16783_v9 = vsel %vm16761_vm2, %v11939_v42, %v4469_v61  ;;  %v18236_v0 = vmax.f32 %v16586_v51, 0.0 }
 0x2cd   :  { %v16757_v27 = vadd.f32 %v4224_v14, %v4152_v45  ;;  %v4227_v57 = vmax.f32 %v4191_v58, 0.0  ;;  %v4489_v16 = vrot.slane %v4483_v44, 4 }
 0x2ce   :  { %v16772_v60 = vadd.f32 %v4225_v38, %v4153_v39  ;;  %v4228_v50 = vmax.f32 %v4192_v56, 0.0  ;;  %v4476_v39 = vrot.slane %v16726_v20, 5  ;;  %v16787_v56 = vadd.f32 %v16561_v48, %v3631_v62 }
 0x2cf   :  { %18220 = vst [vmem:[#allocation40_spill] sm:$0xff] %v16757_v27  ;;  %v16776_v58 = vadd.f32 %v4227_v57, %v4155_v41  ;;  %v16790_v38 = vadd.f32 %v16568_v59, %v3633_v23 }
 0x2d0   :  { %18224 = vst [vmem:[#allocation24_spill] sm:$0xff] %v16772_v60  ;;  %v16779_v36 = vadd.f32 %v4228_v50, %v4156_v12  ;;  %v3905_v8 = vpop.f32.mrb[24].mxu1  ;;  %v13054_v21 = vpop.f32.mrb[24].mxu0  ;;  %v4477_v51 = vsel %vm16761_vm2, %v4475_v17, %v4476_v39 }
 0x2d1   :  { %18225 = vst [vmem:[#allocation26_spill] sm:$0xff] %v16776_v58  ;;  %v4194_v41 = vadd.f32 %v16561_v48, %v3905_v8  ;;  %v4184_v12 = vadd.f32 %v13054_v21, %v16565_v37  ;;  %v3907_v57 = vpop.f32.mrb[25].mxu1  ;;  %v3968_v50 = vpop.f32.mrb[25].mxu0 }
 0x2d2   :  { %18226 = vst [vmem:[#allocation23_spill] sm:$0xff] %v16779_v36  ;;  %v4195_v45 = vadd.f32 %v16568_v59, %v3907_v57  ;;  %v4178_v42 = vadd.f32 %v16565_v37, %v3968_v50  ;;  %v3909_v14 = vpop.f32.mrb[26].mxu1  ;;  %v13055_v61 = vpop.f32.mrb[26].mxu0  ;;  %v18227_v50 = vmax.f32 %v16678_v46, 0.0  ;;  %v18234_v46 = vmax.f32 %v16685_v34, 0.0 }
 0x2d3   :  { %v4230_v62 = vmax.f32 %v4194_v41, 0.0  ;;  %v4220_v53 = vmax.f32 %v4184_v12, 0.0  ;;  %v4197_v23 = vadd.f32 %v16561_v48, %v3909_v14  ;;  %v4187_v24 = vadd.f32 %v13055_v61, %v16565_v37  ;;  %v3911_v8 = vpop.f32.mrb[27].mxu1  ;;  %v3971_v20 = vpop.f32.mrb[27].mxu0 }
 0x2d4   :  { %v4231_v21 = vmax.f32 %v4195_v45, 0.0  ;;  %v4214_v4 = vmax.f32 %v4178_v42, 0.0  ;;  %v4198_v33 = vadd.f32 %v16568_v59, %v3911_v8  ;;  %v4181_v57 = vadd.f32 %v16565_v37, %v3971_v20 }
 0x2d5   :  { %v16803_v26 = vadd.f32 %v4230_v62, %v18227_v50  ;;  %v16807_v41 = vadd.f32 %v4220_v53, %v18229_v30  ;;  %v4233_v12 = vmax.f32 %v4197_v23, 0.0  ;;  %v4223_v14 = vmax.f32 %v4187_v24, 0.0 }
 0x2d6   :  { %v18231_v61 = vmax.f32 %v16682_v29, 0.0  ;;  %v18233_v45 = vmax.f32 %v16582_v5, 0.0  ;;  %v4234_v8 = vmax.f32 %v4198_v33, 0.0  ;;  %v4217_v20 = vmax.f32 %v4181_v57, 0.0 }
 0x2d7   :  { %18228 = vst [vmem:[#allocation25_spill] sm:$0xff] %v16803_v26  ;;  %18230 = vst [vmem:[#allocation27_spill] sm:$0xff] %v16807_v41  ;;  %v16819_v62 = vadd.f32 %v4233_v12, %v18234_v46  ;;  %v16823_v30 = vadd.f32 %v4223_v14, %v18236_v0  ;;  %v11941_v53 = vrot.slane %v16752_v22, 9  ;;  %v4491_v29 = vsel %vm16761_vm2, %v4489_v16, %v4490_v6  ;;  %v13621_v22 = vld [vmem:[#allocation6 + $0x2b0] ss:$8 sps:$4 sm:$0xff]  }
 0x2d8   :  { %v16811_v63 = vadd.f32 %v4231_v21, %v18231_v61  ;;  %v16815_v42 = vadd.f32 %v4214_v4, %v18233_v45  ;;  %v16830_v5 = vcombine.low %v16714_v31, %v16716_v7  ;;  %v16834_v33 = vcombine.high %v16714_v31, %v16716_v7  ;;  %v3915_v34 = vpop.f32.mrb[28].mxu1  ;;  %v13058_v24 = vpop.f32.mrb[28].mxu0  ;;  %v13617_v31 = vld [vmem:[#allocation6 + $0x294] ss:$8 sps:$4 sm:$0xff]  }
 0x2d9   :  { %18235 = vst [vmem:[#allocation28_spill] sm:$0xff] %v16819_v62  ;;  %v16842_v16 = vadd.f32 %v16561_v48, %v16735_v15  ;;  %v18239_v6 = vmax.f32 %v16692_v3, 0.0  ;;  %v4484_v57 = vsel %vm16761_vm2, %v11941_v53, %v4483_v44  ;;  %v3917_v50 = vpop.f32.mrb[29].mxu1  ;;  %v3984_v12 = vpop.f32.mrb[29].mxu0  ;;  %v18240_v14 = vmax.f32 %v16590_v55, 0.0 }
 0x2da   :  { %18232 = vst [vmem:[#allocation29_spill] sm:$0xff] %v16811_v63  ;;  %18237 = vst [vmem:[#allocation43_spill] sm:$0xff] %v16830_v5  ;;  %v4582_v39 = vcombine.low %v4484_v57, %v4491_v29  ;;  %v4583_v61 = vcombine.high %v4484_v57, %v4491_v29  ;;  %v4200_v45 = vadd.f32 %v16561_v48, %v3915_v34  ;;  %v3919_v46 = vpop.f32.mrb[30].mxu1  ;;  %v13059_v15 = vpop.f32.mrb[30].mxu0 }
 0x2db   :  { %18238 = vst [vmem:[#allocation44_spill] sm:$0xff] %v16834_v33  ;;  %v16846_v21 = vadd.f32 %v4234_v8, %v18239_v6  ;;  %v16852_v17 = vadd.f32 %v4217_v20, %v18240_v14  ;;  %v4579_v0 = vcombine.low %v16783_v9, %v4477_v51  ;;  %v4580_v3 = vcombine.high %v16783_v9, %v4477_v51  ;;  %v3921_v53 = vpop.f32.mrb[31].mxu1  ;;  %v3987_v6 = vpop.f32.mrb[31].mxu0 }
 0x2dc   :  { %v4196_v8 = vadd.f32 %v13058_v24, %v16565_v37  ;;  %v4201_v44 = vadd.f32 %v16568_v59, %v3917_v50  ;;  %v16861_v55 = vcombine.low %v16757_v27, %v16772_v60  ;;  %v16865_v20 = vcombine.high %v16757_v27, %v16772_v60  ;;  %v13612_v50 = vld [vmem:[#allocation6 + $0x280] ss:$8 sps:$4 sm:$0xff]  }
 0x2dd   :  { %18241 = vst [vmem:[#allocation45_spill] sm:$0xff] %v16852_v17  ;;  %v16869_v29 = vadd.f32 %v16568_v59, %v16745_v19  ;;  %v16873_v9 = vcombine.low %v16776_v58, %v16779_v36  ;;  %v4627_v51 = vpack.c.bf16 %v4582_v39, %v4579_v0  ;;  %v4628_v34 = vpack.c.bf16 %v4583_v61, %v4580_v3  ;;  %v13615_v0 = vld [vmem:[#allocation6 + $0x290] ss:$8 sps:$4 sm:$0xff]  }
 0x2de   :  { %18242 = vst [vmem:[#allocation46_spill] sm:$0xff] %v16861_v55  ;;  %18243 = vst [vmem:[#allocation47_spill] sm:$0xff] %v16865_v20  ;;  %v4236_v24 = vmax.f32 %v4200_v45, 0.0  ;;  %v4232_v57 = vmax.f32 %v4196_v8, 0.0  ;;  %v4237_v14 = vmax.f32 %v4201_v44, 0.0  ;;  %v4190_v23 = vadd.f32 %v16565_v37, %v3984_v12 }
 0x2df   :  { %18244 = vst [vmem:[#allocation48_spill] sm:$0xff] %v16873_v9  ;;  %v4203_v4 = vadd.f32 %v16561_v48, %v3919_v46  ;;  %v4199_v27 = vadd.f32 %v13059_v15, %v16565_v37  ;;  %4960 = vmatprep.mubr.bf16.mxu1 %v4628_v34  ;;  %v18245_v19 = vmax.f32 %v16721_v28, 0.0  ;;  %v18247_v60 = vmax.f32 %v16596_v49, 0.0 }
 0x2e0   :  { %v4204_v61 = vadd.f32 %v16568_v59, %v3921_v53  ;;  %v4193_v45 = vadd.f32 %v16565_v37, %v3987_v6  ;;  %4961 = vmatmul.mubr.bf16.vlgmr.msra.gmra.mrb[36].mxu1 %v4627_v51  ;;  %v18248_v12 = vmax.f32 %v16729_v10, 0.0  ;;  %v4226_v15 = vmax.f32 %v4190_v23, 0.0  ;;  %v3925_v28 = vpop.f32.mrb[32].mxu1  ;;  %v13062_v44 = vpop.f32.mrb[32].mxu0 }
 0x2e1   :  { %v16880_v7 = vadd.f32 %v4236_v24, %v18245_v19  ;;  %v16884_v39 = vadd.f32 %v4232_v57, %v18247_v60  ;;  %v4239_v3 = vmax.f32 %v4203_v4, 0.0  ;;  %v4235_v8 = vmax.f32 %v4199_v27, 0.0  ;;  %5002 = vmatpush1.bf16.msra.mxu1 %v13612_v50  ;;  %v3927_v53 = vpop.f32.mrb[33].mxu1  ;;  %v4000_v6 = vpop.f32.mrb[33].mxu0  ;;  %v13620_v50 = vld [vmem:[#allocation6 + $0x2a4] ss:$8 sps:$4 sm:$0xff]  }
 0x2e2   :  { %v16890_v46 = vadd.f32 %v4237_v14, %v18248_v12  ;;  %v4240_v49 = vmax.f32 %v4204_v61, 0.0  ;;  %v4229_v60 = vmax.f32 %v4193_v45, 0.0  ;;  %v11943_v24 = vrot.slane %v16830_v5, 9  ;;  %5003 = vmatprep.subr.bf16.mxu1 %v13617_v31  ;;  %v3929_v14 = vpop.f32.mrb[34].mxu1  ;;  %v13063_v19 = vpop.f32.mrb[34].mxu0 }
 0x2e3   :  { %18246 = vst [vmem:[#allocation49_spill] sm:$0xff] %v16880_v7  ;;  %v16897_v10 = vcombine.high %v16776_v58, %v16779_v36  ;;  %v18251_v4 = vmax.f32 %v16607_v47, 0.0  ;;  %v18252_v23 = vmax.f32 %v16732_v11, 0.0  ;;  %v18253_v61 = vmax.f32 %v16615_v43, 0.0  ;;  %v13623_v5 = vld [vmem:[#allocation6 + $0x2b4] ss:$8 sps:$4 sm:$0xff]  }
 0x2e4   :  { %18249 = vst [vmem:[#allocation50_spill] sm:$0xff] %v16890_v46  ;;  %v18255_v12 = vmax.f32 %v16742_v35, 0.0  ;;  %v18257_v47 = vmax.f32 %v16624_v1, 0.0  ;;  %v4497_v11 = vrot.slane %v16834_v33, 5  ;;  %v16922_v31 = vcombine.low %v16803_v26, %v16811_v63 }
 0x2e5   :  { %18250 = vst [vmem:[#allocation51_spill] sm:$0xff] %v16897_v10  ;;  %v16901_v27 = vadd.f32 %v4226_v15, %v18251_v4  ;;  %v16905_v57 = vadd.f32 %v4239_v3, %v18252_v23  ;;  %v16909_v45 = vadd.f32 %v4235_v8, %v18253_v61  ;;  %v3931_v3 = vpop.f32.mrb[35].mxu1  ;;  %v4003_v4 = vpop.f32.mrb[35].mxu0  ;;  %v4504_v43 = vrot.slane %v16861_v55, 5  ;;  %5004 = vmatpush1.bf16.msra.mxu1 %v13615_v0  ;;  %v13618_v61 = vld [vmem:[#allocation6 + $0x2a0] ss:$8 sps:$4 sm:$0xff]  }
 0x2e6   :  { %v16913_v51 = vadd.f32 %v4240_v49, %v18255_v12  ;;  %v16917_v15 = vadd.f32 %v4229_v60, %v18257_v47  ;;  %v11945_v8 = vrot.slane %v16865_v20, 9  ;;  %v4511_v35 = vrot.slane %v16873_v9, 5  ;;  %5005 = vmatprep.subr.bf16.mxu1 %v13620_v50 }
 0x2e7   :  { %18254 = vst [vmem:[#allocation52_spill] sm:$0xff] %v16909_v45  ;;  %v16929_v49 = vcombine.high %v16803_v26, %v16811_v63  ;;  %v16933_v1 = vcombine.low %v16819_v62, %v16846_v21  ;;  %v16937_v60 = vcombine.low %v16880_v7, %v16890_v46  ;;  %v4498_v23 = vsel %vm16761_vm2, %v11943_v24, %v4497_v11 }
 0x2e8   :  { %18256 = vst [vmem:[#allocation53_spill] sm:$0xff] %v16913_v51  ;;  %v4503_v12 = vrot.slane %v4497_v11, 4  ;;  %v4512_v47 = vsel %vm16761_vm2, %v11945_v8, %v4511_v35  ;;  %v4517_v34 = vrot.slane %v4511_v35, 4  ;;  %v4518_v36 = vrot.slane %v16897_v10, 5 }
 0x2e9   :  { %18258 = vst [vmem:[#allocation54_spill] sm:$0xff] %v16929_v49  ;;  %18259 = vst [vmem:[#allocation55_spill] sm:$0xff] %v16937_v60  ;;  %v4206_v55 = vadd.f32 %v16561_v48, %v3925_v28  ;;  %v4208_v33 = vadd.f32 %v13062_v44, %v16565_v37  ;;  %v4207_v26 = vadd.f32 %v16568_v59, %v3927_v53  ;;  %5006 = vmatpush1.bf16.msra.mxu1 %v13618_v61 }
 0x2ea   :  { %v4202_v63 = vadd.f32 %v16565_v37, %v4000_v6  ;;  %v4505_v0 = vsel %vm16761_vm2, %v4503_v12, %v4504_v43  ;;  %v4519_v24 = vsel %vm16761_vm2, %v4517_v34, %v4518_v36  ;;  %v4209_v11 = vadd.f32 %v16561_v48, %v3929_v14  ;;  %5007 = vmatprep.subr.bf16.mxu1 %v13623_v5  ;;  %v13626_v5 = vld [vmem:[#allocation6 + $0x2c4] ss:$8 sps:$4 sm:$0xff]  }
 0x2eb   :  { %v4211_v8 = vadd.f32 %v13063_v19, %v16565_v37  ;;  %v4586_v50 = vcombine.high %v4498_v23, %v4505_v0  ;;  %v4589_v35 = vcombine.high %v4512_v47, %v4519_v24  ;;  %v4585_v10 = vcombine.low %v4498_v23, %v4505_v0  ;;  %v13629_v0 = vld [vmem:[#allocation6 + $0x2d4] ss:$8 sps:$4 sm:$0xff]  }
 0x2ec   :  { %v4588_v28 = vcombine.low %v4512_v47, %v4519_v24  ;;  %v4242_v44 = vmax.f32 %v4206_v55, 0.0  ;;  %v4244_v20 = vmax.f32 %v4208_v33, 0.0  ;;  %v4243_v53 = vmax.f32 %v4207_v26, 0.0 }
 0x2ed   :  { %v4238_v58 = vmax.f32 %v4202_v63, 0.0  ;;  %v4631_v6 = vpack.c.bf16 %v4589_v35, %v4586_v50  ;;  %v4245_v43 = vmax.f32 %v4209_v11, 0.0  ;;  %v4247_v12 = vmax.f32 %v4211_v8, 0.0  ;;  %5008 = vmatpush1.bf16.msra.mxu1 %v13621_v22 }
 0x2ee   :  { %v4630_v9 = vpack.c.bf16 %v4588_v28, %v4585_v10  ;;  %v18260_v36 = vmax.f32 %v16787_v56, 0.0  ;;  %v18262_v34 = vmax.f32 %v16632_v54, 0.0  ;;  %v18264_v19 = vmax.f32 %v16790_v38, 0.0  ;;  %5009 = vmatprep.subr.bf16.mxu1 %v13626_v5 }
 0x2ef   :  { %v18265_v63 = vmax.f32 %v16640_v13, 0.0  ;;  %4970 = vmatprep.mubr.bf16.mxu1 %v4631_v6  ;;  %v18266_v33 = vmax.f32 %v16842_v16, 0.0  ;;  %v18268_v56 = vmax.f32 %v16659_v52, 0.0  ;;  %v4210_v54 = vadd.f32 %v16568_v59, %v3931_v3  ;;  %v13624_v3 = vld [vmem:[#allocation6 + $0x2c0] ss:$8 sps:$4 sm:$0xff]  }
 0x2f0   :  { %v16956_v48 = vadd.f32 %v4242_v44, %v18260_v36  ;;  %v16960_v14 = vadd.f32 %v4244_v20, %v18262_v34  ;;  %v16964_v55 = vadd.f32 %v4243_v53, %v18264_v19  ;;  %v4205_v38 = vadd.f32 %v16565_v37, %v4003_v4  ;;  %4971 = vmatmul.mubr.bf16.gmra.mrb[40].mxu1 %v4630_v9  ;;  %v13627_v36 = vld [vmem:[#allocation6 + $0x2d0] ss:$8 sps:$4 sm:$0xff]  }
 0x2f1   :  { %v16968_v26 = vadd.f32 %v4238_v58, %v18265_v63  ;;  %v16972_v10 = vadd.f32 %v4245_v43, %v18266_v33  ;;  %v16976_v23 = vadd.f32 %v4247_v12, %v18268_v56  ;;  %v16982_v20 = vcombine.high %v16819_v62, %v16846_v21  ;;  %5010 = vmatpush1.bf16.msra.mxu1 %v13624_v3  ;;  %v13632_v33 = vld [vmem:[#allocation6 + $0x2e4] ss:$8 sps:$4 sm:$0xff]   ;;  %v13647_v62 = vld [vmem:[#allocation6 + $0x34] ss:$8 sps:$4 sm:$0xff]  }
 0x2f2   :  { %18261 = vst [vmem:[#allocation56_spill] sm:$0xff] %v16956_v48  ;;  %18263 = vst [vmem:[#allocation57_spill] sm:$0xff] %v16960_v14  ;;  %v16986_v13 = vcombine.high %v16880_v7, %v16890_v46  ;;  %v16990_v58 = vcombine.high %v16905_v57, %v16913_v51  ;;  %v11947_v52 = vrot.slane %v16922_v31, 9  ;;  %v4246_v16 = vmax.f32 %v4210_v54, 0.0  ;;  %5011 = vmatprep.subr.bf16.mxu1 %v13629_v0 }
 0x2f3   :  { %18267 = vst [vmem:[#allocation58_spill] sm:$0xff] %v16972_v10  ;;  %v4241_v61 = vmax.f32 %v4205_v38, 0.0  ;;  %v4525_v37 = vrot.slane %v16929_v49, 5  ;;  %v4532_v59 = vrot.slane %v16933_v1, 5  ;;  %v16997_v4 = vcombine.high %v16815_v42, %v16815_v42 }
 0x2f4   :  { %v17001_v47 = vcombine.low %v16956_v48, %v16964_v55  ;;  %v4539_v9 = vrot.slane %v16937_v60, 5  ;;  %v17006_v22 = vcombine.low %v16905_v57, %v16913_v51  ;;  %v18270_v24 = vmax.f32 %v16869_v29, 0.0 }
 0x2f5   :  { %18269 = vst [vmem:[#allocation59_spill] sm:$0xff] %v16997_v4  ;;  %v18272_v8 = vmax.f32 %v16674_v32, 0.0  ;;  %v4531_v35 = vrot.slane %v4525_v37, 4  ;;  %v11949_v28 = vrot.slane %v16982_v20, 9  ;;  %v4546_v53 = vrot.slane %v16986_v13, 5  ;;  %5012 = vmatpush1.bf16.msra.mxu1 %v13627_v36 }
 0x2f6   :  { %v17010_v11 = vadd.f32 %v4246_v16, %v18270_v24  ;;  %v4545_v44 = vrot.slane %v4539_v9, 4  ;;  %v4553_v6 = vrot.slane %v16990_v58, 5  ;;  %v17021_v43 = vcombine.high %v16956_v48, %v16964_v55  ;;  %5013 = vmatprep.subr.bf16.mxu1 %v13632_v33 }
 0x2f7   :  { %v17014_v50 = vadd.f32 %v4241_v61, %v18272_v8  ;;  %v4526_v32 = vsel %vm16761_vm2, %v11947_v52, %v4525_v37  ;;  %v4533_v12 = vsel %vm16761_vm2, %v4531_v35, %v4532_v59  ;;  %v4540_v19 = vsel %vm16761_vm2, %v11949_v28, %v4539_v9  ;;  %v13630_v9 = vld [vmem:[#allocation6 + $0x2e0] ss:$8 sps:$4 sm:$0xff]   ;;  %v13635_v28 = vld [vmem:[#allocation6 + $0x2f4] ss:$8 sps:$4 sm:$0xff]  }
 0x2f8   :  { %18271 = vst [vmem:[#allocation60_spill] sm:$0xff] %v17010_v11  ;;  %v17025_v29 = vcombine.low %v16972_v10, %v17010_v11  ;;  %v17033_v34 = vcombine.high %v16972_v10, %v17010_v11  ;;  %v4547_v63 = vsel %vm16761_vm2, %v4545_v44, %v4546_v53  ;;  %v4560_v5 = vrot.slane %v17001_v47, 5 }
 0x2f9   :  { %v4592_v56 = vcombine.high %v4526_v32, %v4533_v12  ;;  %v4595_v54 = vcombine.high %v4540_v19, %v4547_v63  ;;  %v4591_v38 = vcombine.low %v4526_v32, %v4533_v12  ;;  %v4594_v52 = vcombine.low %v4540_v19, %v4547_v63  ;;  %5014 = vmatpush1.bf16.msra.mxu1 %v13630_v9 }
 0x2fa   :  { %v11951_v16 = vrot.slane %v17006_v22, 9  ;;  %v4559_v61 = vrot.slane %v4553_v6, 4  ;;  %v4567_v37 = vrot.slane %v17025_v29, 5  ;;  %v11953_v0 = vrot.slane %v17021_v43, 9  ;;  %5015 = vmatprep.subr.bf16.mxu1 %v13635_v28 }
 0x2fb   :  { %v4634_v59 = vpack.c.bf16 %v4595_v54, %v4592_v56  ;;  %v4633_v3 = vpack.c.bf16 %v4594_v52, %v4591_v38  ;;  %v4574_v35 = vrot.slane %v17033_v34, 5  ;;  %v17048_v44 = vcombine.high %v16852_v17, %v16852_v17  ;;  %v13633_v56 = vld [vmem:[#allocation6 + $0x2f0] ss:$8 sps:$4 sm:$0xff]   ;;  %v13638_v52 = vld [vmem:[#allocation6 + $0x4] ss:$8 sps:$4 sm:$0xff]  }
 0x2fc   :  { %v4561_v24 = vsel %vm16761_vm2, %v4559_v61, %v4560_v5  ;;  %v4573_v8 = vrot.slane %v4567_v37, 4  ;;  %v4473_v53 = vrot.slane %v16997_v4, 5  ;;  %v17053_v32 = vcombine.high %v16807_v41, %v16807_v41 }
 0x2fd   :  { %4980 = vmatprep.mubr.bf16.mxu1 %v4634_v59  ;;  %v4554_v12 = vsel %vm16761_vm2, %v11951_v16, %v4553_v6  ;;  %v4568_v36 = vsel %vm16761_vm2, %v11953_v0, %v4567_v37  ;;  %v4487_v54 = vrot.slane %v16807_v41, 5  ;;  %v11942_v6 = vrot.slane %v17048_v44, 9  ;;  %5016 = vmatpush1.bf16.msra.mxu1 %v13633_v56 }
 0x2fe   :  { %18273 = vst [vmem:[#allocation61_spill] sm:$0xff] %v17053_v32  ;;  %4981 = vmatmul.mubr.bf16.gmra.mrb[44].mxu1 %v4633_v3  ;;  %v4575_v19 = vsel %vm16761_vm2, %v4573_v8, %v4574_v35  ;;  %v4598_v63 = vcombine.high %v4554_v12, %v4561_v24  ;;  %v4597_v38 = vcombine.low %v4554_v12, %v4561_v24  ;;  %v4478_v59 = vrot.slane %v4473_v53, 4 }
 0x2ff   :  { %v4601_v5 = vcombine.high %v4568_v36, %v4575_v19  ;;  %v4600_v33 = vcombine.low %v4568_v36, %v4575_v19  ;;  %v4479_v37 = vrot.slane %v16852_v17, 5  ;;  %v4492_v3 = vrot.slane %v4487_v54, 4  ;;  %5314 = vmatprep.subr.bf16.mxu1 %v13638_v52 }
 0x300   :  { %v4493_v0 = vrot.slane %v17053_v32, 5  ;;  %v11940_v9 = vrot.slane %v16815_v42, 9  ;;  %v17068_v8 = vcombine.high %v16823_v30, %v16823_v30  ;;  %v4488_v35 = vsel %vm16761_vm2, %v11942_v6, %v4487_v54 }
 0x301   :  { %v4637_v61 = vpack.c.bf16 %v4601_v5, %v4598_v63  ;;  %v4636_v16 = vpack.c.bf16 %v4600_v33, %v4597_v38  ;;  %v4480_v24 = vsel %vm16761_vm2, %v4478_v59, %v4479_v37  ;;  %v17076_v28 = vcombine.high %v16917_v15, %v16917_v15 }
 0x302   :  { %v4515_v12 = vrot.slane %v16917_v15, 5  ;;  %v17081_v36 = vcombine.high %v16901_v27, %v16901_v27  ;;  %v4474_v19 = vsel %vm16761_vm2, %v11940_v9, %v4473_v53  ;;  %v4494_v63 = vsel %vm16761_vm2, %v4492_v3, %v4493_v0 }
 0x303   :  { %4990 = vmatprep.mubr.bf16.mxu1 %v4637_v61  ;;  %v4581_v5 = vcombine.low %v4474_v19, %v4480_v24  ;;  %v4584_v33 = vcombine.low %v4488_v35, %v4494_v63  ;;  %v4501_v56 = vrot.slane %v17068_v8, 5  ;;  %v4521_v38 = vrot.slane %v17076_v28, 5  ;;  %v13636_v61 = vld [vmem:[#allocation6] ss:$8 sps:$4 sm:$0xff]   ;;  %v13639_v24 = vld [vmem:[#allocation6 + $0x10] ss:$8 sps:$4 sm:$0xff]  }
 0x304   :  { %v4520_v54 = vrot.slane %v4515_v12, 4  ;;  %v17092_v52 = vcombine.high %v16884_v39, %v16884_v39  ;;  %v4507_v59 = vrot.slane %v16901_v27, 5  ;;  %v11946_v6 = vrot.slane %v17081_v36, 9 }
 0x305   :  { %v4629_v53 = vpack.c.bf16 %v4584_v33, %v4581_v5  ;;  %v4506_v37 = vrot.slane %v4501_v56, 4  ;;  %v17100_v0 = vcombine.high %v16968_v26, %v16968_v26  ;;  %v4543_v9 = vrot.slane %v16968_v26, 5 }
 0x306   :  { %4991 = vmatmul.mubr.bf16.gmra.mrb[48].mxu1 %v4636_v16  ;;  %v13641_v16 = vld [vmem:[#allocation6 + $0x14] ss:$8 sps:$4 sm:$0xff]   ;;  %v4522_v3 = vsel %vm16761_vm2, %v4520_v54, %v4521_v38  ;;  %v11944_v35 = vrot.slane %v16823_v30, 9  ;;  %v4516_v63 = vsel %vm16761_vm2, %v11946_v6, %v4515_v12  ;;  %v4529_v5 = vrot.slane %v17092_v52, 5  ;;  %v13644_v54 = vld [vmem:[#allocation6 + $0x24] ss:$8 sps:$4 sm:$0xff]  }
 0x307   :  { %5033 = vmatprep.mubr.bf16.mxu1 %v18153_v40  ;;  %18274 = vst [vmem:[#allocation62_spill] sm:$0xff] %v17100_v0  ;;  %v4508_v19 = vsel %vm16761_vm2, %v4506_v37, %v4507_v59  ;;  %v17112_v33 = vcombine.high %v16909_v45, %v16909_v45  ;;  %v4590_v38 = vcombine.low %v4516_v63, %v4522_v3  ;;  %v4548_v59 = vrot.slane %v4543_v9, 4  ;;  %v13642_v6 = vld [vmem:[#allocation6 + $0x20] ss:$8 sps:$4 sm:$0xff]  }
 0x308   :  { %v4549_v37 = vrot.slane %v17100_v0, 5  ;;  %v4534_v48 = vrot.slane %v4529_v5, 4 }
 0x309   :  { %v11950_v3 = vrot.slane %v17112_v33, 9 }
 0x30a   :  { %v4550_v63 = vsel %vm16761_vm2, %v4548_v59, %v4549_v37  ;;  %v17139_v59 = vcombine.high %v16960_v14, %v16960_v14 }
 0x30c   :  { %v11954_v0 = vrot.slane %v17139_v59, 9 }
 0x30e   :  { %5034 = vmatmul.mubr.bf16.vlgmr.msra.gmra.mrb[36].mxu1 %v4629_v53  ;;  %v4502_v53 = vsel %vm16761_vm2, %v11944_v35, %v4501_v56  ;;  %v11948_v56 = vrot.slane %v16884_v39, 9  ;;  %v13645_v35 = vld [vmem:[#allocation6 + $0x30] ss:$8 sps:$4 sm:$0xff]  }
 0x30f   :  { %5315 = vmatpush1.bf16.msra.mxu1 %v13636_v61  ;;  %5043 = vmatprep.mubr.bf16.mxu1 %v18153_v40  ;;  %v17116_v61 = vcombine.high %v17014_v50, %v17014_v50  ;;  %v4587_v12 = vcombine.low %v4502_v53, %v4508_v19  ;;  %v4544_v19 = vsel %vm16761_vm2, %v11950_v3, %v4543_v9  ;;  %v13648_v9 = vld [vmem:[#allocation6 + $0x40] ss:$8 sps:$4 sm:$0xff]  }
 0x310   :  { %5316 = vmatprep.subr.bf16.mxu1 %v13641_v16  ;;  %v4535_v16 = vrot.slane %v16909_v45, 5  ;;  %v4596_v53 = vcombine.low %v4544_v19, %v4550_v63  ;;  %v4530_v37 = vsel %vm16761_vm2, %v11948_v56, %v4529_v5  ;;  %v13653_v45 = vld [vmem:[#allocation6 + $0x54] ss:$8 sps:$4 sm:$0xff]   ;;  %v11952_v63 = vrot.slane %v17014_v50, 9  ;;  %v13651_v5 = vld [vmem:[#allocation6 + $0x50] ss:$8 sps:$4 sm:$0xff]  }
 0x311   :  { %v4632_v11 = vpack.c.bf16 %v4590_v38, %v4587_v12  ;;  %v4557_v46 = vrot.slane %v17116_v61, 5  ;;  %v4571_v38 = vrot.slane %v16976_v23, 5 }
 0x313   :  { %5317 = vmatpush1.bf16.msra.mxu1 %v13639_v24  ;;  %v4536_v24 = vsel %vm16761_vm2, %v4534_v48, %v4535_v16  ;;  %v4562_v48 = vrot.slane %v4557_v46, 4  ;;  %v4576_v16 = vrot.slane %v4571_v38, 4  ;;  %v4558_v56 = vsel %vm16761_vm2, %v11952_v63, %v4557_v46 }
 0x314   :  { %5318 = vmatprep.subr.bf16.mxu1 %v13644_v54  ;;  %v17134_v54 = vcombine.high %v16976_v23, %v16976_v23  ;;  %v4593_v12 = vcombine.low %v4530_v37, %v4536_v24  ;;  %v13656_v24 = vld [vmem:[#allocation6 + $0x64] ss:$8 sps:$4 sm:$0xff]   ;;  %v11932_v37 = vcombine.high %v16654_v2, %v16739_v25  ;;  %v12052_v46 = vrot.slane %v16815_v42, 10  ;;  %v13801_v2 = vld [vmem:[#allocation6 + $0x4f0] ss:$8 sps:$4 sm:$0xff]  }
 0x316   :  { %5044 = vmatmul.mubr.bf16.gmra.mrb[40].mxu1 %v4632_v11  ;;  %18275 = vst [vmem:[#allocation63_spill] sm:$0xff] %v17134_v54  ;;  %v13650_v11 = vld [vmem:[#allocation6 + $0x44] ss:$8 sps:$4 sm:$0xff]   ;;  %v4577_v3 = vrot.slane %v17134_v54, 5 }
 0x317   :  { %5319 = vmatpush1.bf16.msra.mxu1 %v13642_v6  ;;  %5053 = vmatprep.mubr.bf16.mxu1 %v18153_v40  ;;  %v4563_v6 = vrot.slane %v16960_v14, 5  ;;  %v13689_v14 = vld [vmem:[#allocation6 + $0x114] ss:$8 sps:$4 sm:$0xff]  }
 0x318   :  { %5320 = vmatprep.subr.bf16.mxu1 %v13647_v62  ;;  %v4635_v62 = vpack.c.bf16 %v4596_v53, %v4593_v12  ;;  %v4572_v53 = vsel %vm16761_vm2, %v11954_v0, %v4571_v38  ;;  %v5469_v12 = vrot.slane %v16997_v4, 6  ;;  %v13659_v0 = vld [vmem:[#allocation6 + $0x74] ss:$8 sps:$4 sm:$0xff]  }
 0x319   :  { %v4564_v19 = vsel %vm16761_vm2, %v4562_v48, %v4563_v6  ;;  %v13654_v6 = vld [vmem:[#allocation6 + $0x60] ss:$8 sps:$4 sm:$0xff]   ;;  %v18278_v38 = vld [vmem:[#allocation34_spill] sm:$0xff] }
 0x31a   :  { %v5474_v63 = vrot.slane %v5469_v12, 4 }
 0x31b   :  { %5321 = vmatpush1.bf16.msra.mxu1 %v13645_v35  ;;  %v4578_v35 = vsel %vm16761_vm2, %v4576_v16, %v4577_v3  ;;  %v5475_v16 = vrot.slane %v16852_v17, 6  ;;  %v4405_v3 = vpack.c.bf16 %v11932_v37, %v18278_v38  ;;  %v18285_v38 = vld [vmem:[#allocation24_spill] sm:$0xff] }
 0x31c   :  { %5322 = vmatprep.subr.bf16.mxu1 %v13650_v11  ;;  %v4599_v11 = vcombine.low %v4558_v56, %v4564_v19  ;;  %v4602_v48 = vcombine.low %v4572_v53, %v4578_v35  ;;  %v5489_v56 = vrot.slane %v17053_v32, 6  ;;  %v13657_v35 = vld [vmem:[#allocation6 + $0x70] ss:$8 sps:$4 sm:$0xff]  }
 0x31e   :  { %5054 = vmatmul.mubr.bf16.gmra.mrb[44].mxu1 %v4635_v62  ;;  %v4638_v18 = vpack.c.bf16 %v4602_v48, %v4599_v11  ;;  %v5470_v62 = vsel %vm17163_vm5, %v12052_v46, %v5469_v12  ;;  %v13662_v11 = vld [vmem:[#allocation6 + $0x84] ss:$8 sps:$4 sm:$0xff]   ;;  %v13660_v12 = vld [vmem:[#allocation6 + $0x80] ss:$8 sps:$4 sm:$0xff]  }
 0x31f   :  { %5323 = vmatpush1.bf16.msra.mxu1 %v13648_v9  ;;  %5063 = vmatprep.mubr.bf16.mxu1 %v18153_v40  ;;  %v12054_v9 = vrot.slane %v17048_v44, 10 }
 0x320   :  { %5324 = vmatprep.subr.bf16.mxu1 %v13653_v45  ;;  %v5483_v45 = vrot.slane %v16807_v41, 6 }
 0x322   :  { %v5488_v19 = vrot.slane %v5483_v45, 4 }
 0x323   :  { %5325 = vmatpush1.bf16.msra.mxu1 %v13651_v5  ;;  %v5484_v5 = vsel %vm17163_vm5, %v12054_v9, %v5483_v45  ;;  %v13665_v9 = vld [vmem:[#allocation6 + $0x94] ss:$8 sps:$4 sm:$0xff]   ;;  %v13668_v45 = vld [vmem:[#allocation6 + $0xa4] ss:$8 sps:$4 sm:$0xff]  }
 0x324   :  { %5326 = vmatprep.subr.bf16.mxu1 %v13656_v24  ;;  %v5476_v24 = vsel %vm17163_vm5, %v5474_v63, %v5475_v16  ;;  %v5490_v53 = vsel %vm17163_vm5, %v5488_v19, %v5489_v56  ;;  %v13671_v16 = vld [vmem:[#allocation6 + $0xb4] ss:$8 sps:$4 sm:$0xff]   ;;  %v13675_v19 = vld [vmem:[#allocation6 + $0xd0] ss:$8 sps:$4 sm:$0xff]   ;;  %v12116_v56 = vrot.slane %v16815_v42, 11 }
 0x325   :  { %v5577_v37 = vcombine.low %v5470_v62, %v5476_v24  ;;  %v5580_v48 = vcombine.low %v5484_v5, %v5490_v53  ;;  %v13672_v62 = vld [vmem:[#allocation6 + $0xc0] ss:$8 sps:$4 sm:$0xff]   ;;  %v13677_v63 = vld [vmem:[#allocation6 + $0xd4] ss:$8 sps:$4 sm:$0xff]   ;;  %v13680_v5 = vld [vmem:[#allocation6 + $0xe4] ss:$8 sps:$4 sm:$0xff]  }
 0x326   :  { %5064 = vmatmul.mubr.bf16.gmra.mrb[48].mxu1 %v4638_v18  ;;  %v13666_v18 = vld [vmem:[#allocation6 + $0xa0] ss:$8 sps:$4 sm:$0xff]   ;;  %v6095_v24 = vrot.slane %v16997_v4, 7  ;;  %v13683_v53 = vld [vmem:[#allocation6 + $0xf4] ss:$8 sps:$4 sm:$0xff]  }
 0x327   :  { %5327 = vmatpush1.bf16.msra.mxu1 %v13654_v6  ;;  %5346 = vmatprep.mubr.bf16.mxu1 %v4405_v3  ;;  %v17177_v46 = vpack.c.bf16 %v5580_v48, %v5577_v37  ;;  %v13663_v6 = vld [vmem:[#allocation6 + $0x90] ss:$8 sps:$4 sm:$0xff]   ;;  %v13674_v3 = vld [vmem:[#allocation6 + $0xc4] ss:$8 sps:$4 sm:$0xff]   ;;  %v6109_v48 = vrot.slane %v16807_v41, 7 }
 0x328   :  { %5328 = vmatprep.subr.bf16.mxu1 %v13659_v0  ;;  %v13669_v0 = vld [vmem:[#allocation6 + $0xb0] ss:$8 sps:$4 sm:$0xff]   ;;  %v13876_v37 = vld [vmem:[#allocation6 + $0x680] ss:$8 sps:$4 sm:$0xff]  }
 0x329   :  { %18279 = vst [vmem:[#allocation64_spill] sm:$0xff] %v17177_v46 }
 0x32b   :  { %5329 = vmatpush1.bf16.msra.mxu1 %v13657_v35  ;;  %v13678_v35 = vld [vmem:[#allocation6 + $0xe0] ss:$8 sps:$4 sm:$0xff]  }
 0x32c   :  { %5330 = vmatprep.subr.bf16.mxu1 %v13662_v11  ;;  %v12118_v11 = vrot.slane %v17048_v44, 11 }
 0x32f   :  { %5331 = vmatpush1.bf16.msra.mxu1 %v13660_v12  ;;  %v6096_v12 = vsel %vm17184_vm6, %v12116_v56, %v6095_v24  ;;  %v18284_v56 = vld [vmem:[#allocation48_spill] sm:$0xff] }
 0x330   :  { %5332 = vmatprep.subr.bf16.mxu1 %v13665_v9  ;;  %v6101_v9 = vrot.slane %v16852_v17, 7  ;;  %v11934_v17 = vcombine.high %v18285_v38, %v18284_v56  ;;  %v18289_v38 = vld [vmem:[#allocation26_spill] sm:$0xff] }
 0x333   :  { %5333 = vmatpush1.bf16.msra.mxu1 %v13663_v6  ;;  %v6100_v6 = vrot.slane %v6095_v24, 4 }
 0x334   :  { %5334 = vmatprep.subr.bf16.mxu1 %v13668_v45  ;;  %v13681_v45 = vld [vmem:[#allocation6 + $0xf0] ss:$8 sps:$4 sm:$0xff]  }
 0x337   :  { %5335 = vmatpush1.bf16.msra.mxu1 %v13666_v18  ;;  %v6110_v18 = vsel %vm17184_vm6, %v12118_v11, %v6109_v48  ;;  %v13684_v11 = vld [vmem:[#allocation6 + $0x100] ss:$8 sps:$4 sm:$0xff]  }
 0x338   :  { %5336 = vmatprep.subr.bf16.mxu1 %v13671_v16  ;;  %v6114_v16 = vrot.slane %v6109_v48, 4  ;;  %v18286_v48 = vld [vmem:[#allocation32_spill] sm:$0xff] }
 0x33b   :  { %5337 = vmatpush1.bf16.msra.mxu1 %v13669_v0  ;;  %v6115_v0 = vrot.slane %v17053_v32, 7 }
 0x33c   :  { %5338 = vmatprep.subr.bf16.mxu1 %v13674_v3  ;;  %v18282_v3 = vld [vmem:[#allocation38_spill] sm:$0xff] }
 0x33f   :  { %5339 = vmatpush1.bf16.msra.mxu1 %v13672_v62  ;;  %v18283_v62 = vld [vmem:[#allocation37_spill] sm:$0xff] }
 0x340   :  { %5340 = vmatprep.subr.bf16.mxu1 %v13677_v63  ;;  %v11931_v63 = vcombine.low %v18283_v62, %v18282_v3 }
 0x342   :  { %v4404_v32 = vpack.c.bf16 %v11931_v63, %v18286_v48 }
 0x343   :  { %5341 = vmatpush1.bf16.msra.mxu1 %v13675_v19  ;;  %v13686_v19 = vld [vmem:[#allocation6 + $0x104] ss:$8 sps:$4 sm:$0xff]  }
 0x344   :  { %5342 = vmatprep.subr.bf16.mxu1 %v13680_v5  ;;  %v6102_v5 = vsel %vm17184_vm6, %v6100_v6, %v6101_v9  ;;  %v13687_v9 = vld [vmem:[#allocation6 + $0x110] ss:$8 sps:$4 sm:$0xff]   ;;  %v18290_v6 = vld [vmem:[#allocation47_spill] sm:$0xff] }
 0x345   :  { %v6203_v24 = vcombine.low %v6096_v12, %v6102_v5  ;;  %v13692_v12 = vld [vmem:[#allocation6 + $0x124] ss:$8 sps:$4 sm:$0xff]   ;;  %v13696_v5 = vld [vmem:[#allocation6 + $0x140] ss:$8 sps:$4 sm:$0xff]  }
 0x347   :  { %5343 = vmatpush1.bf16.msra.mxu1 %v13678_v35  ;;  %v6116_v35 = vsel %vm17184_vm6, %v6114_v16, %v6115_v0  ;;  %v11933_v16 = vcombine.low %v18290_v6, %v18289_v38  ;;  %v18291_v0 = vld [vmem:[#allocation33_spill] sm:$0xff] }
 0x348   :  { %5344 = vmatprep.subr.bf16.mxu1 %v13683_v53  ;;  %v6206_v54 = vcombine.low %v6110_v18, %v6116_v35  ;;  %v18288_v53 = vld [vmem:[#allocation35_spill] sm:$0xff]  ;;  %v18293_v35 = vld [vmem:[#allocation25_spill] sm:$0xff] }
 0x349   :  { %v4408_v46 = vpack.c.bf16 %v11934_v17, %v18288_v53  ;;  %v13690_v18 = vld [vmem:[#allocation6 + $0x120] ss:$8 sps:$4 sm:$0xff]   ;;  %v4407_v63 = vpack.c.bf16 %v11933_v16, %v18291_v0  ;;  %v11937_v16 = vcombine.low %v17021_v43, %v16972_v10  ;;  %v13705_v0 = vld [vmem:[#allocation6 + $0x170] ss:$8 sps:$4 sm:$0xff]   ;;  %v5521_v53 = vrot.slane %v16929_v49, 6 }
 0x34a   :  { %v17204_v3 = vpack.c.bf16 %v6206_v54, %v6203_v24  ;;  %v13695_v54 = vld [vmem:[#allocation6 + $0x134] ss:$8 sps:$4 sm:$0xff]   ;;  %v12059_v49 = vrot.slane %v16922_v31, 10 }
 0x34b   :  { %5345 = vmatpush1.bf16.msra.mxu1 %v13681_v45  ;;  %v11936_v45 = vcombine.high %v16846_v21, %v16937_v60  ;;  %v11938_v21 = vcombine.high %v16964_v55, %v17025_v29  ;;  %v4413_v55 = vpack.c.bf16 %v11937_v16, %v16905_v57  ;;  %v13713_v57 = vld [vmem:[#allocation6 + $0x314] ss:$8 sps:$4 sm:$0xff]   ;;  %v13722_v16 = vld [vmem:[#allocation6 + $0x344] ss:$8 sps:$4 sm:$0xff]  }
 0x34c   :  { %5387 = vmatprep.subr.bf16.mxu1 %v13686_v19  ;;  %18287 = vst [vmem:[#allocation38_spill] sm:$0xff] %v17204_v3  ;;  %v18292_v19 = vld [vmem:[#allocation29_spill] sm:$0xff] }
 0x34d   :  { %v4411_v17 = vpack.c.bf16 %v11936_v45, %v18292_v19  ;;  %v4414_v48 = vpack.c.bf16 %v11938_v21, %v16913_v51  ;;  %v13702_v45 = vld [vmem:[#allocation6 + $0x160] ss:$8 sps:$4 sm:$0xff]   ;;  %v4367_v21 = vcombine.low %v17081_v36, %v16917_v15  ;;  %v13753_v51 = vld [vmem:[#allocation6 + $0x3f0] ss:$8 sps:$4 sm:$0xff]  }
 0x34e   :  { %5347 = vmatmul.mubr.bf16.vlgmr.msra.gmra.mrb[36].mxu1 %v4404_v32  ;;  %v13693_v32 = vld [vmem:[#allocation6 + $0x130] ss:$8 sps:$4 sm:$0xff]  }
 0x34f   :  { %5356 = vmatprep.mubr.bf16.mxu1 %v4408_v46  ;;  %5388 = vmatpush1.bf16.msra.mxu1 %v13684_v11  ;;  %v13698_v46 = vld [vmem:[#allocation6 + $0x144] ss:$8 sps:$4 sm:$0xff]   ;;  %v13701_v11 = vld [vmem:[#allocation6 + $0x154] ss:$8 sps:$4 sm:$0xff]  }
 0x350   :  { %5389 = vmatprep.subr.bf16.mxu1 %v13689_v14  ;;  %v11935_v14 = vcombine.low %v16982_v20, %v16880_v7  ;;  %v12057_v7 = vrot.slane %v18290_v6, 10 }
 0x352   :  { %v4410_v24 = vpack.c.bf16 %v11935_v14, %v18293_v35 }
 0x353   :  { %5390 = vmatpush1.bf16.msra.mxu1 %v13687_v9  ;;  %v13699_v9 = vld [vmem:[#allocation6 + $0x150] ss:$8 sps:$4 sm:$0xff]  }
 0x354   :  { %5391 = vmatprep.subr.bf16.mxu1 %v13692_v12  ;;  %v13704_v12 = vld [vmem:[#allocation6 + $0x164] ss:$8 sps:$4 sm:$0xff]  }
 0x356   :  { %5357 = vmatmul.mubr.bf16.gmra.mrb[40].mxu1 %v4407_v63  ;;  %v4361_v63 = vcombine.low %v17048_v44, %v16807_v41  ;;  %v4364_v44 = vcombine.low %v16823_v30, %v17068_v8  ;;  %v13732_v41 = vld [vmem:[#allocation6 + $0x380] ss:$8 sps:$4 sm:$0xff]  }
 0x357   :  { %5366 = vmatprep.mubr.bf16.mxu1 %v4411_v17  ;;  %5392 = vmatpush1.bf16.msra.mxu1 %v13690_v18  ;;  %v13707_v18 = vld [vmem:[#allocation6 + $0x174] ss:$8 sps:$4 sm:$0xff]   ;;  %v4358_v17 = vcombine.low %v16815_v42, %v16997_v4  ;;  %v13714_v42 = vld [vmem:[#allocation6 + $0x320] ss:$8 sps:$4 sm:$0xff]  }
 0x358   :  { %5393 = vmatprep.subr.bf16.mxu1 %v13695_v54  ;;  %v13710_v54 = vld [vmem:[#allocation6 + $0x304] ss:$8 sps:$4 sm:$0xff]   ;;  %v4409_v35 = vpack.c.bf16 %v4367_v21, %v4364_v44  ;;  %v18297_v21 = vld [vmem:[#allocation30_spill] sm:$0xff]  ;;  %v12053_v44 = vrot.slane %v18283_v62, 10  ;;  %v13738_v4 = vld [vmem:[#allocation6 + $0x3a0] ss:$8 sps:$4 sm:$0xff]  }
 0x359   :  { %v4406_v14 = vpack.c.bf16 %v4361_v63, %v4358_v17 }
 0x35b   :  { %5394 = vmatpush1.bf16.msra.mxu1 %v13693_v32  ;;  %v13708_v32 = vld [vmem:[#allocation6 + $0x300] ss:$8 sps:$4 sm:$0xff]  }
 0x35c   :  { %5395 = vmatprep.subr.bf16.mxu1 %v13698_v46  ;;  %v13711_v46 = vld [vmem:[#allocation6 + $0x310] ss:$8 sps:$4 sm:$0xff]  }
 0x35e   :  { %5367 = vmatmul.mubr.bf16.gmra.mrb[44].mxu1 %v4410_v24  ;;  %v13719_v24 = vld [vmem:[#allocation6 + $0x334] ss:$8 sps:$4 sm:$0xff]  }
 0x35f   :  { %5376 = vmatprep.mubr.bf16.mxu1 %v4414_v48  ;;  %5396 = vmatpush1.bf16.msra.mxu1 %v13696_v5  ;;  %v13716_v5 = vld [vmem:[#allocation6 + $0x324] ss:$8 sps:$4 sm:$0xff]   ;;  %v13717_v48 = vld [vmem:[#allocation6 + $0x330] ss:$8 sps:$4 sm:$0xff]  }
 0x360   :  { %5397 = vmatprep.subr.bf16.mxu1 %v13701_v11  ;;  %v5479_v11 = vrot.slane %v16739_v25, 6 }
 0x363   :  { %5398 = vmatpush1.bf16.msra.mxu1 %v13699_v9  ;;  %v4373_v9 = vcombine.low %v17112_v33, %v16968_v26 }
 0x364   :  { %5399 = vmatprep.subr.bf16.mxu1 %v13704_v12  ;;  %v18294_v12 = vld [vmem:[#allocation22_spill] sm:$0xff] }
 0x366   :  { %5377 = vmatmul.mubr.bf16.gmra.mrb[48].mxu1 %v4413_v55  ;;  %v4370_v55 = vcombine.low %v16884_v39, %v17092_v52 }
 0x367   :  { %5400 = vmatpush1.bf16.msra.mxu1 %v13702_v45  ;;  %5419 = vmatprep.mubr.bf16.mxu1 %v18153_v40  ;;  %v5465_v45 = vrot.slane %v18294_v12, 6 }
 0x368   :  { %5401 = vmatprep.subr.bf16.mxu1 %v13707_v18  ;;  %v5485_v18 = vrot.slane %v5479_v11, 4  ;;  %v4412_v63 = vpack.c.bf16 %v4373_v9, %v4370_v55 }
 0x369   :  { %v5471_v17 = vrot.slane %v5465_v45, 4 }
 0x36b   :  { %5402 = vmatpush1.bf16.msra.mxu1 %v13705_v0  ;;  %v13720_v0 = vld [vmem:[#allocation6 + $0x340] ss:$8 sps:$4 sm:$0xff]  }
 0x36c   :  { %5924 = vmatprep.subr.bf16.mxu1 %v13710_v54  ;;  %v13725_v54 = vld [vmem:[#allocation6 + $0x354] ss:$8 sps:$4 sm:$0xff]  }
 0x36e   :  { %5420 = vmatmul.mubr.bf16.vlgmr.msra.gmra.mrb[36].mxu1 %v4406_v14 }
 0x36f   :  { %5925 = vmatpush1.bf16.msra.mxu1 %v13708_v32  ;;  %5429 = vmatprep.mubr.bf16.mxu1 %v18153_v40  ;;  %v18295_v32 = vld [vmem:[#allocation36_spill] sm:$0xff] }
 0x370   :  { %5926 = vmatprep.subr.bf16.mxu1 %v13713_v57  ;;  %v5472_v14 = vrot.slane %v18295_v32, 6  ;;  %v18296_v57 = vld [vmem:[#allocation41_spill] sm:$0xff] }
 0x372   :  { %v17252_v9 = vsel %vm17163_vm5, %v5471_v17, %v5472_v14  ;;  %v13731_v14 = vld [vmem:[#allocation6 + $0x374] ss:$8 sps:$4 sm:$0xff]  }
 0x373   :  { %5927 = vmatpush1.bf16.msra.mxu1 %v13711_v46  ;;  %v5486_v46 = vrot.slane %v18296_v57, 6 }
 0x374   :  { %5928 = vmatprep.subr.bf16.mxu1 %v13716_v5  ;;  %v12051_v5 = vrot.slane %v18297_v21, 10 }
 0x376   :  { %5430 = vmatmul.mubr.bf16.gmra.mrb[40].mxu1 %v4409_v35  ;;  %v13723_v35 = vld [vmem:[#allocation6 + $0x350] ss:$8 sps:$4 sm:$0xff]  }
 0x377   :  { %5929 = vmatpush1.bf16.msra.mxu1 %v13714_v42  ;;  %5439 = vmatprep.mubr.bf16.mxu1 %v18153_v40  ;;  %v17245_v42 = vsel %vm17163_vm5, %v5485_v18, %v5486_v46  ;;  %v4379_v18 = vcombine.low %v17139_v59, %v16976_v23  ;;  %v13729_v46 = vld [vmem:[#allocation6 + $0x370] ss:$8 sps:$4 sm:$0xff]  }
 0x378   :  { %5930 = vmatprep.subr.bf16.mxu1 %v13719_v24  ;;  %v4376_v24 = vcombine.low %v17014_v50, %v17116_v61 }
 0x37a   :  { %v4415_v17 = vpack.c.bf16 %v4379_v18, %v4376_v24  ;;  %v13743_v24 = vld [vmem:[#allocation6 + $0x3b4] ss:$8 sps:$4 sm:$0xff]   ;;  %v13744_v18 = vld [vmem:[#allocation6 + $0x3c0] ss:$8 sps:$4 sm:$0xff]  }
 0x37b   :  { %5931 = vmatpush1.bf16.msra.mxu1 %v13717_v48  ;;  %v13728_v48 = vld [vmem:[#allocation6 + $0x364] ss:$8 sps:$4 sm:$0xff]  }
 0x37c   :  { %5932 = vmatprep.subr.bf16.mxu1 %v13722_v16  ;;  %v17256_v16 = vsel %vm17163_vm5, %v12053_v44, %v5479_v11  ;;  %v13734_v44 = vld [vmem:[#allocation6 + $0x384] ss:$8 sps:$4 sm:$0xff]  }
 0x37d   :  { %v5579_v55 = vcombine.high %v17256_v16, %v17245_v42 }
 0x37e   :  { %5440 = vmatmul.mubr.bf16.gmra.mrb[44].mxu1 %v4412_v63  ;;  %v13726_v63 = vld [vmem:[#allocation6 + $0x360] ss:$8 sps:$4 sm:$0xff]  }
 0x37f   :  { %5933 = vmatpush1.bf16.msra.mxu1 %v13720_v0  ;;  %5449 = vmatprep.mubr.bf16.mxu1 %v18153_v40  ;;  %v17264_v0 = vsel %vm17163_vm5, %v12051_v5, %v5465_v45  ;;  %v13737_v45 = vld [vmem:[#allocation6 + $0x394] ss:$8 sps:$4 sm:$0xff]   ;;  %v13735_v5 = vld [vmem:[#allocation6 + $0x390] ss:$8 sps:$4 sm:$0xff]  }
 0x380   :  { %5934 = vmatprep.subr.bf16.mxu1 %v13725_v54  ;;  %v5576_v54 = vcombine.high %v17264_v0, %v17252_v9 }
 0x382   :  { %v5624_v11 = vpack.c.bf16 %v5579_v55, %v5576_v54  ;;  %v13746_v55 = vld [vmem:[#allocation6 + $0x3c4] ss:$8 sps:$4 sm:$0xff]   ;;  %v5507_v54 = vrot.slane %v18284_v56, 6 }
 0x383   :  { %5935 = vmatpush1.bf16.msra.mxu1 %v13723_v35  ;;  %v13740_v35 = vld [vmem:[#allocation6 + $0x3a4] ss:$8 sps:$4 sm:$0xff]  }
 0x384   :  { %5936 = vmatprep.subr.bf16.mxu1 %v13728_v48  ;;  %v13741_v48 = vld [vmem:[#allocation6 + $0x3b0] ss:$8 sps:$4 sm:$0xff]   ;;  %v5508_v19 = vsel %vm17163_vm5, %v12057_v7, %v5507_v54  ;;  %v5542_v7 = vrot.slane %v16986_v13, 6 }
 0x386   :  { %5450 = vmatmul.mubr.bf16.gmra.mrb[48].mxu1 %v4415_v17  ;;  %v13747_v17 = vld [vmem:[#allocation6 + $0x3d0] ss:$8 sps:$4 sm:$0xff]  }
 0x387   :  { %5937 = vmatpush1.bf16.msra.mxu1 %v13726_v63  ;;  %5956 = vmatprep.mubr.bf16.mxu1 %v5624_v11  ;;  %v13749_v63 = vld [vmem:[#allocation6 + $0x3d4] ss:$8 sps:$4 sm:$0xff]  }
 0x388   :  { %5938 = vmatprep.subr.bf16.mxu1 %v13731_v14  ;;  %v18298_v14 = vld [vmem:[#allocation44_spill] sm:$0xff] }
 0x389   :  { %v5493_v11 = vrot.slane %v18298_v14, 6 }
 0x38b   :  { %5939 = vmatpush1.bf16.msra.mxu1 %v13729_v46  ;;  %v5513_v46 = vrot.slane %v5507_v54, 4  ;;  %v5499_v10 = vrot.slane %v5493_v11, 4 }
 0x38c   :  { %5940 = vmatprep.subr.bf16.mxu1 %v13734_v44  ;;  %v13750_v44 = vld [vmem:[#allocation6 + $0x3e0] ss:$8 sps:$4 sm:$0xff]  }
 0x38f   :  { %5941 = vmatpush1.bf16.msra.mxu1 %v13732_v41  ;;  %v13752_v41 = vld [vmem:[#allocation6 + $0x3e4] ss:$8 sps:$4 sm:$0xff]  }
 0x390   :  { %5942 = vmatprep.subr.bf16.mxu1 %v13737_v45  ;;  %v18299_v45 = vld [vmem:[#allocation46_spill] sm:$0xff] }
 0x393   :  { %5943 = vmatpush1.bf16.msra.mxu1 %v13735_v5  ;;  %v5500_v5 = vrot.slane %v18299_v45, 6 }
 0x394   :  { %5944 = vmatprep.subr.bf16.mxu1 %v13740_v35  ;;  %v18300_v35 = vld [vmem:[#allocation51_spill] sm:$0xff] }
 0x395   :  { %v5501_v38 = vsel %vm17163_vm5, %v5499_v10, %v5500_v5  ;;  %v5527_v10 = vrot.slane %v5521_v53, 4  ;;  %v5528_v5 = vrot.slane %v16933_v1, 6 }
 0x397   :  { %5945 = vmatpush1.bf16.msra.mxu1 %v13738_v4  ;;  %v13755_v4 = vld [vmem:[#allocation6 + $0x3f4] ss:$8 sps:$4 sm:$0xff]  }
 0x398   :  { %5946 = vmatprep.subr.bf16.mxu1 %v13743_v24  ;;  %v5514_v24 = vrot.slane %v18300_v35, 6 }
 0x39b   :  { %5947 = vmatpush1.bf16.msra.mxu1 %v13741_v48  ;;  %v18301_v48 = vld [vmem:[#allocation43_spill] sm:$0xff] }
 0x39c   :  { %5948 = vmatprep.subr.bf16.mxu1 %v13746_v55  ;;  %v12055_v55 = vrot.slane %v18301_v48, 10 }
 0x39f   :  { %5949 = vmatpush1.bf16.msra.mxu1 %v13744_v18  ;;  %v5515_v18 = vsel %vm17163_vm5, %v5513_v46, %v5514_v24  ;;  %v5575_v46 = vcombine.low %v17264_v0, %v17252_v9  ;;  %v12061_v9 = vrot.slane %v16982_v20, 10 }
 0x3a0   :  { %5950 = vmatprep.subr.bf16.mxu1 %v13749_v63  ;;  %v5535_v63 = vrot.slane %v16937_v60, 6  ;;  %v5585_v3 = vcombine.high %v5508_v19, %v5515_v18  ;;  %v13761_v60 = vld [vmem:[#allocation6 + $0x414] ss:$8 sps:$4 sm:$0xff]  }
 0x3a2   :  { %v5541_v24 = vrot.slane %v5535_v63, 4 }
 0x3a3   :  { %5951 = vmatpush1.bf16.msra.mxu1 %v13747_v17  ;;  %v5578_v17 = vcombine.low %v17256_v16, %v17245_v42  ;;  %v13756_v42 = vld [vmem:[#allocation6 + $0x400] ss:$8 sps:$4 sm:$0xff]  }
 0x3a4   :  { %5952 = vmatprep.subr.bf16.mxu1 %v13752_v41  ;;  %v13758_v41 = vld [vmem:[#allocation6 + $0x404] ss:$8 sps:$4 sm:$0xff]   ;;  %v5543_v0 = vsel %vm17163_vm5, %v5541_v24, %v5542_v7  ;;  %v5549_v24 = vrot.slane %v16990_v58, 6 }
 0x3a7   :  { %5953 = vmatpush1.bf16.msra.mxu1 %v13750_v44  ;;  %v5494_v44 = vsel %vm17163_vm5, %v12055_v55, %v5493_v11  ;;  %v13759_v11 = vld [vmem:[#allocation6 + $0x410] ss:$8 sps:$4 sm:$0xff]   ;;  %v5584_v55 = vcombine.low %v5508_v19, %v5515_v18  ;;  %v13767_v19 = vld [vmem:[#allocation6 + $0x434] ss:$8 sps:$4 sm:$0xff]   ;;  %v5556_v18 = vrot.slane %v17001_v47, 6 }
 0x3a8   :  { %5954 = vmatprep.subr.bf16.mxu1 %v13755_v4  ;;  %v5582_v16 = vcombine.high %v5494_v44, %v5501_v38  ;;  %v5623_v4 = vpack.c.bf16 %v5578_v17, %v5575_v46  ;;  %v13764_v17 = vld [vmem:[#allocation6 + $0x424] ss:$8 sps:$4 sm:$0xff]  }
 0x3aa   :  { %v5627_v54 = vpack.c.bf16 %v5585_v3, %v5582_v16  ;;  %v5536_v3 = vsel %vm17163_vm5, %v12061_v9, %v5535_v63  ;;  %v5581_v16 = vcombine.low %v5494_v44, %v5501_v38  ;;  %v12063_v38 = vrot.slane %v17006_v22, 10  ;;  %v13765_v44 = vld [vmem:[#allocation6 + $0x430] ss:$8 sps:$4 sm:$0xff]  }
 0x3ab   :  { %5955 = vmatpush1.bf16.msra.mxu1 %v13753_v51  ;;  %v5563_v51 = vrot.slane %v17025_v29, 6  ;;  %v5591_v46 = vcombine.high %v5536_v3, %v5543_v0  ;;  %v5555_v63 = vrot.slane %v5549_v24, 4  ;;  %v5590_v9 = vcombine.low %v5536_v3, %v5543_v0  ;;  %v13771_v0 = vld [vmem:[#allocation6 + $0x450] ss:$8 sps:$4 sm:$0xff]  }
 0x3ac   :  { %5997 = vmatprep.subr.bf16.mxu1 %v13758_v41  ;;  %v5529_v41 = vsel %vm17163_vm5, %v5527_v10, %v5528_v5  ;;  %v5570_v10 = vrot.slane %v17033_v34, 6 }
 0x3ad   :  { %v5569_v7 = vrot.slane %v5563_v51, 4 }
 0x3ae   :  { %5957 = vmatmul.mubr.bf16.vlgmr.msra.gmra.mrb[36].mxu1 %v5623_v4  ;;  %v5522_v4 = vsel %vm17163_vm5, %v12059_v49, %v5521_v53  ;;  %v12065_v49 = vrot.slane %v17021_v43, 10 }
 0x3af   :  { %5966 = vmatprep.mubr.bf16.mxu1 %v5627_v54  ;;  %5998 = vmatpush1.bf16.msra.mxu1 %v13756_v42  ;;  %v13762_v42 = vld [vmem:[#allocation6 + $0x420] ss:$8 sps:$4 sm:$0xff]   ;;  %v5588_v54 = vcombine.high %v5522_v4, %v5529_v41  ;;  %v5571_v53 = vsel %vm17163_vm5, %v5569_v7, %v5570_v10 }
 0x3b0   :  { %5999 = vmatprep.subr.bf16.mxu1 %v13761_v60  ;;  %v5626_v60 = vpack.c.bf16 %v5584_v55, %v5581_v16  ;;  %v5557_v55 = vsel %vm17163_vm5, %v5555_v63, %v5556_v18  ;;  %v5587_v16 = vcombine.low %v5522_v4, %v5529_v41  ;;  %v13776_v18 = vld [vmem:[#allocation6 + $0x464] ss:$8 sps:$4 sm:$0xff]   ;;  %v13774_v41 = vld [vmem:[#allocation6 + $0x460] ss:$8 sps:$4 sm:$0xff]  }
 0x3b1   :  { %v5630_v5 = vpack.c.bf16 %v5591_v46, %v5588_v54  ;;  %v5550_v54 = vsel %vm17163_vm5, %v12063_v38, %v5549_v24  ;;  %v13779_v24 = vld [vmem:[#allocation6 + $0x474] ss:$8 sps:$4 sm:$0xff]   ;;  %v13777_v38 = vld [vmem:[#allocation6 + $0x470] ss:$8 sps:$4 sm:$0xff]   ;;  %v13782_v63 = vld [vmem:[#allocation6 + $0x484] ss:$8 sps:$4 sm:$0xff]  }
 0x3b2   :  { %v5594_v7 = vcombine.high %v5550_v54, %v5557_v55  ;;  %v5629_v10 = vpack.c.bf16 %v5590_v9, %v5587_v16  ;;  %v13780_v9 = vld [vmem:[#allocation6 + $0x480] ss:$8 sps:$4 sm:$0xff]  }
 0x3b3   :  { %6000 = vmatpush1.bf16.msra.mxu1 %v13759_v11  ;;  %v13770_v11 = vld [vmem:[#allocation6 + $0x444] ss:$8 sps:$4 sm:$0xff]  }
 0x3b4   :  { %6001 = vmatprep.subr.bf16.mxu1 %v13764_v17  ;;  %v5564_v17 = vsel %vm17163_vm5, %v12065_v49, %v5563_v51  ;;  %v5593_v51 = vcombine.low %v5550_v54, %v5557_v55  ;;  %v5497_v49 = vrot.slane %v17068_v8, 6  ;;  %v12058_v55 = vrot.slane %v17081_v36, 10 }
 0x3b5   :  { %v5597_v46 = vcombine.high %v5564_v17, %v5571_v53  ;;  %v5596_v3 = vcombine.low %v5564_v17, %v5571_v53  ;;  %v5517_v53 = vrot.slane %v17076_v28, 6  ;;  %v13785_v17 = vld [vmem:[#allocation6 + $0x494] ss:$8 sps:$4 sm:$0xff]   ;;  %v5539_v54 = vrot.slane %v16968_v26, 6 }
 0x3b6   :  { %5967 = vmatmul.mubr.bf16.gmra.mrb[40].mxu1 %v5626_v60  ;;  %v13768_v60 = vld [vmem:[#allocation6 + $0x440] ss:$8 sps:$4 sm:$0xff]  }
 0x3b7   :  { %5976 = vmatprep.mubr.bf16.mxu1 %v5630_v5  ;;  %6002 = vmatpush1.bf16.msra.mxu1 %v13762_v42  ;;  %v13773_v42 = vld [vmem:[#allocation6 + $0x454] ss:$8 sps:$4 sm:$0xff]   ;;  %v5632_v4 = vpack.c.bf16 %v5596_v3, %v5593_v51  ;;  %v5511_v5 = vrot.slane %v16917_v15, 6 }
 0x3b8   :  { %6003 = vmatprep.subr.bf16.mxu1 %v13767_v19  ;;  %v5633_v19 = vpack.c.bf16 %v5597_v46, %v5594_v7  ;;  %v5502_v46 = vrot.slane %v5497_v49, 4  ;;  %v13783_v7 = vld [vmem:[#allocation6 + $0x490] ss:$8 sps:$4 sm:$0xff]  }
 0x3bb   :  { %6004 = vmatpush1.bf16.msra.mxu1 %v13765_v44  ;;  %v5516_v44 = vrot.slane %v5511_v5, 4 }
 0x3bc   :  { %6005 = vmatprep.subr.bf16.mxu1 %v13770_v11  ;;  %v5503_v11 = vrot.slane %v16901_v27, 6 }
 0x3bd   :  { %v5518_v16 = vsel %vm17163_vm5, %v5516_v44, %v5517_v53 }
 0x3be   :  { %5977 = vmatmul.mubr.bf16.gmra.mrb[44].mxu1 %v5629_v10  ;;  %v12056_v10 = vrot.slane %v16823_v30, 10 }
 0x3bf   :  { %5986 = vmatprep.mubr.bf16.mxu1 %v5633_v19  ;;  %6006 = vmatpush1.bf16.msra.mxu1 %v13768_v60  ;;  %v18302_v60 = vld [vmem:[#allocation64_spill] sm:$0xff]  ;;  %v5512_v19 = vsel %vm17163_vm5, %v12058_v55, %v5511_v5  ;;  %v12062_v55 = vrot.slane %v17112_v33, 10 }
 0x3c0   :  { %6007 = vmatprep.subr.bf16.mxu1 %v13773_v42  ;;  %v5504_v42 = vsel %vm17163_vm5, %v5502_v46, %v5503_v11  ;;  %v5586_v3 = vcombine.low %v5512_v19, %v5518_v16  ;;  %v5498_v51 = vsel %vm17163_vm5, %v12056_v10, %v5497_v49  ;;  %v18304_v11 = vld [vmem:[#allocation52_spill] sm:$0xff]  ;;  %v5553_v46 = vrot.slane %v17116_v61, 6  ;;  %v13789_v16 = vld [vmem:[#allocation6 + $0x4b0] ss:$8 sps:$4 sm:$0xff]  }
 0x3c1   :  { %v5531_v5 = vrot.slane %v18304_v11, 6  ;;  %v6105_v49 = vrot.slane %v16739_v25, 7  ;;  %v5540_v10 = vsel %vm17163_vm5, %v12062_v55, %v5539_v54 }
 0x3c3   :  { %6008 = vmatpush1.bf16.msra.mxu1 %v13771_v0  ;;  %v5525_v0 = vrot.slane %v17092_v52, 6 }
 0x3c4   :  { %6009 = vmatprep.subr.bf16.mxu1 %v13776_v18  ;;  %v13788_v18 = vld [vmem:[#allocation6 + $0x4a4] ss:$8 sps:$4 sm:$0xff]  }
 0x3c5   :  { %v5530_v44 = vrot.slane %v5525_v0, 4 }
 0x3c6   :  { %5987 = vmatmul.mubr.bf16.gmra.mrb[48].mxu1 %v5632_v4  ;;  %v18303_v4 = vld [vmem:[#allocation62_spill] sm:$0xff] }
 0x3c7   :  { %6010 = vmatpush1.bf16.msra.mxu1 %v13774_v41  ;;  %6029 = vmatprep.mubr.bf16.mxu1 %v18153_v40  ;;  %v5544_v41 = vrot.slane %v5539_v54, 4 }
 0x3c8   :  { %6011 = vmatprep.subr.bf16.mxu1 %v13779_v24  ;;  %v5545_v24 = vrot.slane %v18303_v4, 6 }
 0x3cb   :  { %6012 = vmatpush1.bf16.msra.mxu1 %v13777_v38  ;;  %v5583_v38 = vcombine.low %v5498_v51, %v5504_v42  ;;  %v5567_v42 = vrot.slane %v16976_v23, 6  ;;  %v5558_v51 = vrot.slane %v5553_v46, 4 }
 0x3cc   :  { %6550 = vmatprep.subr.bf16.mxu1 %v13782_v63  ;;  %v13786_v63 = vld [vmem:[#allocation6 + $0x4a0] ss:$8 sps:$4 sm:$0xff]  }
 0x3cd   :  { %v5628_v53 = vpack.c.bf16 %v5586_v3, %v5583_v38  ;;  %v13794_v3 = vld [vmem:[#allocation6 + $0x4c4] ss:$8 sps:$4 sm:$0xff]   ;;  %v13792_v38 = vld [vmem:[#allocation6 + $0x4c0] ss:$8 sps:$4 sm:$0xff]  }
 0x3ce   :  { %6030 = vmatmul.mubr.bf16.vlgmr.msra.gmra.mrb[36].mxu1 %v18302_v60  ;;  %v12060_v60 = vrot.slane %v16884_v39, 10 }
 0x3cf   :  { %6551 = vmatpush1.bf16.msra.mxu1 %v13780_v9  ;;  %6039 = vmatprep.mubr.bf16.mxu1 %v18153_v40  ;;  %v13791_v9 = vld [vmem:[#allocation6 + $0x4b4] ss:$8 sps:$4 sm:$0xff]  }
 0x3d0   :  { %6552 = vmatprep.subr.bf16.mxu1 %v13785_v17  ;;  %v5546_v17 = vsel %vm17163_vm5, %v5544_v41, %v5545_v24  ;;  %v5526_v25 = vsel %vm17163_vm5, %v12060_v60, %v5525_v0  ;;  %v6111_v24 = vrot.slane %v6105_v49, 4  ;;  %v12064_v0 = vrot.slane %v17014_v50, 10 }
 0x3d1   :  { %v5592_v19 = vcombine.low %v5540_v10, %v5546_v17  ;;  %v6098_v10 = vrot.slane %v18295_v32, 7 }
 0x3d3   :  { %6553 = vmatpush1.bf16.msra.mxu1 %v13783_v7  ;;  %v5532_v7 = vsel %vm17163_vm5, %v5530_v44, %v5531_v5  ;;  %v18306_v5 = vld [vmem:[#allocation63_spill] sm:$0xff] }
 0x3d4   :  { %6554 = vmatprep.subr.bf16.mxu1 %v13788_v18  ;;  %v6091_v18 = vrot.slane %v18294_v12, 7  ;;  %v5589_v41 = vcombine.low %v5526_v25, %v5532_v7  ;;  %v5573_v54 = vrot.slane %v18306_v5, 6  ;;  %v6112_v12 = vrot.slane %v18296_v57, 7 }
 0x3d5   :  { %v12115_v7 = vrot.slane %v18297_v21, 11  ;;  %v12117_v25 = vrot.slane %v18283_v62, 11  ;;  %v5554_v57 = vsel %vm17163_vm5, %v12064_v0, %v5553_v46  ;;  %v13812_v0 = vld [vmem:[#allocation6 + $0x524] ss:$8 sps:$4 sm:$0xff]  }
 0x3d6   :  { %6040 = vmatmul.mubr.bf16.gmra.mrb[40].mxu1 %v5628_v53  ;;  %v5572_v53 = vrot.slane %v5567_v42, 4  ;;  %v5631_v55 = vpack.c.bf16 %v5592_v19, %v5589_v41  ;;  %v6097_v17 = vrot.slane %v6091_v18, 4  ;;  %v17362_v19 = vsel %vm17184_vm6, %v6111_v24, %v6112_v12  ;;  %v13807_v12 = vld [vmem:[#allocation6 + $0x510] ss:$8 sps:$4 sm:$0xff]  }
 0x3d7   :  { %6555 = vmatpush1.bf16.msra.mxu1 %v13786_v63  ;;  %6049 = vmatprep.mubr.bf16.mxu1 %v18153_v40  ;;  %v18305_v63 = vld [vmem:[#allocation57_spill] sm:$0xff]  ;;  %v17375_v21 = vsel %vm17184_vm6, %v12117_v25, %v6105_v49  ;;  %v13818_v25 = vld [vmem:[#allocation6 + $0x544] ss:$8 sps:$4 sm:$0xff]  }
 0x3d8   :  { %6556 = vmatprep.subr.bf16.mxu1 %v13791_v9  ;;  %v5559_v44 = vrot.slane %v18305_v63, 6  ;;  %v13797_v9 = vld [vmem:[#allocation6 + $0x4d4] ss:$8 sps:$4 sm:$0xff]   ;;  %v17371_v62 = vsel %vm17184_vm6, %v6097_v17, %v6098_v10  ;;  %v6205_v46 = vcombine.high %v17375_v21, %v17362_v19  ;;  %v13804_v10 = vld [vmem:[#allocation6 + $0x500] ss:$8 sps:$4 sm:$0xff]  }
 0x3d9   :  { %v13803_v49 = vld [vmem:[#allocation6 + $0x4f4] ss:$8 sps:$4 sm:$0xff]  }
 0x3da   :  { %v5560_v60 = vsel %vm17163_vm5, %v5558_v51, %v5559_v44  ;;  %v5574_v51 = vsel %vm17163_vm5, %v5572_v53, %v5573_v54  ;;  %v13800_v44 = vld [vmem:[#allocation6 + $0x4e4] ss:$8 sps:$4 sm:$0xff]   ;;  %v17383_v53 = vsel %vm17184_vm6, %v12115_v7, %v6091_v18  ;;  %v13798_v54 = vld [vmem:[#allocation6 + $0x4e0] ss:$8 sps:$4 sm:$0xff]   ;;  %v13809_v18 = vld [vmem:[#allocation6 + $0x514] ss:$8 sps:$4 sm:$0xff]  }
 0x3db   :  { %6557 = vmatpush1.bf16.msra.mxu1 %v13789_v16  ;;  %v12066_v16 = vrot.slane %v17139_v59, 10  ;;  %v5595_v41 = vcombine.low %v5554_v57, %v5560_v60  ;;  %v13810_v60 = vld [vmem:[#allocation6 + $0x520] ss:$8 sps:$4 sm:$0xff]   ;;  %v13813_v7 = vld [vmem:[#allocation6 + $0x530] ss:$8 sps:$4 sm:$0xff]  }
 0x3dc   :  { %6558 = vmatprep.subr.bf16.mxu1 %v13794_v3  ;;  %v13795_v3 = vld [vmem:[#allocation6 + $0x4d0] ss:$8 sps:$4 sm:$0xff]   ;;  %v13821_v57 = vld [vmem:[#allocation6 + $0x554] ss:$8 sps:$4 sm:$0xff]  }
 0x3dd   :  { %v5568_v24 = vsel %vm17163_vm5, %v12066_v16, %v5567_v42  ;;  %v13806_v42 = vld [vmem:[#allocation6 + $0x504] ss:$8 sps:$4 sm:$0xff]   ;;  %v13815_v16 = vld [vmem:[#allocation6 + $0x534] ss:$8 sps:$4 sm:$0xff]  }
 0x3de   :  { %6050 = vmatmul.mubr.bf16.gmra.mrb[44].mxu1 %v5631_v55  ;;  %v6202_v55 = vcombine.high %v17383_v53, %v17371_v62 }
 0x3df   :  { %6559 = vmatpush1.bf16.msra.mxu1 %v13792_v38  ;;  %6059 = vmatprep.mubr.bf16.mxu1 %v18153_v40  ;;  %v5598_v38 = vcombine.low %v5568_v24, %v5574_v51  ;;  %v6133_v51 = vrot.slane %v18284_v56, 7  ;;  %v6119_v24 = vrot.slane %v18298_v14, 7  ;;  %v12121_v56 = vrot.slane %v18290_v6, 11 }
 0x3e0   :  { %6560 = vmatprep.subr.bf16.mxu1 %v13797_v9  ;;  %v6250_v17 = vpack.c.bf16 %v6205_v46, %v6202_v55  ;;  %v6126_v55 = vrot.slane %v18299_v45, 7 }
 0x3e1   :  { %v5634_v9 = vpack.c.bf16 %v5598_v38, %v5595_v41  ;;  %v13819_v41 = vld [vmem:[#allocation6 + $0x550] ss:$8 sps:$4 sm:$0xff]   ;;  %v6139_v46 = vrot.slane %v6133_v51, 4  ;;  %v13822_v38 = vld [vmem:[#allocation6 + $0x560] ss:$8 sps:$4 sm:$0xff]  }
 0x3e3   :  { %6561 = vmatpush1.bf16.msra.mxu1 %v13795_v3  ;;  %v13816_v3 = vld [vmem:[#allocation6 + $0x540] ss:$8 sps:$4 sm:$0xff]  }
 0x3e4   :  { %6562 = vmatprep.subr.bf16.mxu1 %v13800_v44  ;;  %v13824_v44 = vld [vmem:[#allocation6 + $0x564] ss:$8 sps:$4 sm:$0xff]  }
 0x3e6   :  { %6060 = vmatmul.mubr.bf16.gmra.mrb[48].mxu1 %v5634_v9  ;;  %v6140_v9 = vrot.slane %v18300_v35, 7 }
 0x3e7   :  { %6563 = vmatpush1.bf16.msra.mxu1 %v13798_v54  ;;  %6582 = vmatprep.mubr.bf16.mxu1 %v6250_v17  ;;  %v13827_v54 = vld [vmem:[#allocation6 + $0x574] ss:$8 sps:$4 sm:$0xff]   ;;  %v6125_v17 = vrot.slane %v6119_v24, 4 }
 0x3e8   :  { %6564 = vmatprep.subr.bf16.mxu1 %v13803_v49  ;;  %v12119_v49 = vrot.slane %v18301_v48, 11  ;;  %v6134_v48 = vsel %vm17184_vm6, %v12121_v56, %v6133_v51  ;;  %v6168_v51 = vrot.slane %v16986_v13, 7 }
 0x3e9   :  { %v6127_v35 = vsel %vm17184_vm6, %v6125_v17, %v6126_v55  ;;  %v13831_v55 = vld [vmem:[#allocation6 + $0x590] ss:$8 sps:$4 sm:$0xff]  }
 0x3eb   :  { %6565 = vmatpush1.bf16.msra.mxu1 %v13801_v2  ;;  %v6141_v2 = vsel %vm17184_vm6, %v6139_v46, %v6140_v9  ;;  %v6154_v46 = vrot.slane %v16933_v1, 7 }
 0x3ec   :  { %6566 = vmatprep.subr.bf16.mxu1 %v13806_v42  ;;  %v18307_v42 = vld [vmem:[#allocation55_spill] sm:$0xff]  ;;  %v6210_v9 = vcombine.low %v6134_v48, %v6141_v2 }
 0x3ef   :  { %6567 = vmatpush1.bf16.msra.mxu1 %v13804_v10  ;;  %v6161_v10 = vrot.slane %v18307_v42, 7  ;;  %v6175_v42 = vrot.slane %v16990_v58, 7 }
 0x3f0   :  { %6568 = vmatprep.subr.bf16.mxu1 %v13809_v18  ;;  %v13825_v18 = vld [vmem:[#allocation6 + $0x570] ss:$8 sps:$4 sm:$0xff]  }
 0x3f3   :  { %6569 = vmatpush1.bf16.msra.mxu1 %v13807_v12  ;;  %v6204_v12 = vcombine.low %v17375_v21, %v17362_v19  ;;  %v13828_v19 = vld [vmem:[#allocation6 + $0x580] ss:$8 sps:$4 sm:$0xff]  }
 0x3f4   :  { %6570 = vmatprep.subr.bf16.mxu1 %v13812_v0  ;;  %v13830_v0 = vld [vmem:[#allocation6 + $0x584] ss:$8 sps:$4 sm:$0xff]  }
 0x3f7   :  { %6571 = vmatpush1.bf16.msra.mxu1 %v13810_v60  ;;  %v18308_v60 = vld [vmem:[#allocation54_spill] sm:$0xff] }
 0x3f8   :  { %6572 = vmatprep.subr.bf16.mxu1 %v13815_v16  ;;  %v6147_v6 = vrot.slane %v18308_v60, 7  ;;  %v6211_v16 = vcombine.high %v6134_v48, %v6141_v2  ;;  %v13839_v2 = vld [vmem:[#allocation6 + $0x5b4] ss:$8 sps:$4 sm:$0xff]   ;;  %v6182_v48 = vrot.slane %v17001_v47, 7 }
 0x3fb   :  { %6573 = vmatpush1.bf16.msra.mxu1 %v13813_v7  ;;  %v6201_v7 = vcombine.low %v17383_v53, %v17371_v62  ;;  %v12125_v62 = vrot.slane %v16982_v20, 11 }
 0x3fc   :  { %6574 = vmatprep.subr.bf16.mxu1 %v13818_v25  ;;  %v6120_v25 = vsel %vm17184_vm6, %v12119_v49, %v6119_v24  ;;  %v6189_v24 = vrot.slane %v17025_v29, 7  ;;  %v13836_v49 = vld [vmem:[#allocation6 + $0x5a4] ss:$8 sps:$4 sm:$0xff]  }
 0x3fd   :  { %v6208_v21 = vcombine.high %v6120_v25, %v6127_v35  ;;  %v6162_v17 = vsel %vm17184_vm6, %v12125_v62, %v6161_v10  ;;  %v6207_v56 = vcombine.low %v6120_v25, %v6127_v35  ;;  %v6181_v35 = vrot.slane %v6175_v42, 4  ;;  %v13843_v62 = vld [vmem:[#allocation6 + $0x5d0] ss:$8 sps:$4 sm:$0xff]  }
 0x3fe   :  { %v6195_v29 = vrot.slane %v6189_v24, 4 }
 0x3ff   :  { %6575 = vmatpush1.bf16.msra.mxu1 %v13816_v3  ;;  %v6167_v3 = vrot.slane %v6161_v10, 4  ;;  %v12127_v10 = vrot.slane %v17006_v22, 11 }
 0x400   :  { %6576 = vmatprep.subr.bf16.mxu1 %v13821_v57  ;;  %v6249_v57 = vpack.c.bf16 %v6204_v12, %v6201_v7 }
 0x401   :  { %v6169_v53 = vsel %vm17184_vm6, %v6167_v3, %v6168_v51  ;;  %v13837_v3 = vld [vmem:[#allocation6 + $0x5b0] ss:$8 sps:$4 sm:$0xff]  }
 0x403   :  { %6577 = vmatpush1.bf16.msra.mxu1 %v13819_v41  ;;  %v13833_v41 = vld [vmem:[#allocation6 + $0x594] ss:$8 sps:$4 sm:$0xff]  }
 0x404   :  { %6578 = vmatprep.subr.bf16.mxu1 %v13824_v44  ;;  %v6153_v44 = vrot.slane %v6147_v6, 4 }
 0x406   :  { %v6155_v13 = vsel %vm17184_vm6, %v6153_v44, %v6154_v46  ;;  %v13840_v44 = vld [vmem:[#allocation6 + $0x5c0] ss:$8 sps:$4 sm:$0xff]  }
 0x407   :  { %6579 = vmatpush1.bf16.msra.mxu1 %v13822_v38  ;;  %v6253_v38 = vpack.c.bf16 %v6211_v16, %v6208_v21  ;;  %v6196_v16 = vrot.slane %v17033_v34, 7  ;;  %v13842_v21 = vld [vmem:[#allocation6 + $0x5c4] ss:$8 sps:$4 sm:$0xff]  }
 0x408   :  { %6580 = vmatprep.subr.bf16.mxu1 %v13827_v54  ;;  %v12123_v54 = vrot.slane %v16922_v31, 11  ;;  %v6217_v31 = vcombine.high %v6162_v17, %v6169_v53 }
 0x409   :  { %v6197_v25 = vsel %vm17184_vm6, %v6195_v29, %v6196_v16  ;;  %v13854_v29 = vld [vmem:[#allocation6 + $0x604] ss:$8 sps:$4 sm:$0xff]   ;;  %v13852_v16 = vld [vmem:[#allocation6 + $0x600] ss:$8 sps:$4 sm:$0xff]  }
 0x40a   :  { %v6148_v20 = vsel %vm17184_vm6, %v12123_v54, %v6147_v6  ;;  %v12129_v6 = vrot.slane %v17021_v43, 11  ;;  %v6176_v43 = vsel %vm17184_vm6, %v12127_v10, %v6175_v42  ;;  %v13932_v42 = vld [vmem:[#allocation9 + $0x224] ss:$16 sps:$4 sm:$0xff]   ;;  %v12122_v10 = vrot.slane %v17081_v36, 11 }
 0x40b   :  { %6581 = vmatpush1.bf16.msra.mxu1 %v13825_v18  ;;  %v13834_v18 = vld [vmem:[#allocation6 + $0x5a0] ss:$8 sps:$4 sm:$0xff]   ;;  %v6214_v12 = vcombine.high %v6148_v20, %v6155_v13  ;;  %v6213_v22 = vcombine.low %v6148_v20, %v6155_v13  ;;  %v13851_v13 = vld [vmem:[#allocation6 + $0x5f4] ss:$8 sps:$4 sm:$0xff]   ;;  %v13849_v20 = vld [vmem:[#allocation6 + $0x5f0] ss:$8 sps:$4 sm:$0xff]  }
 0x40c   :  { %6623 = vmatprep.subr.bf16.mxu1 %v13830_v0  ;;  %v6252_v0 = vpack.c.bf16 %v6210_v9, %v6207_v56  ;;  %v6190_v34 = vsel %vm17184_vm6, %v12129_v6, %v6189_v24  ;;  %v13846_v9 = vld [vmem:[#allocation6 + $0x5e0] ss:$8 sps:$4 sm:$0xff]   ;;  %v12120_v36 = vrot.slane %v16823_v30, 11 }
 0x40d   :  { %v6256_v7 = vpack.c.bf16 %v6217_v31, %v6214_v12  ;;  %v13924_v31 = vld [vmem:[#allocation9 + $0x200] ss:$16 sps:$4 sm:$0xff]   ;;  %v13926_v56 = vld [vmem:[#allocation9 + $0x204] ss:$16 sps:$4 sm:$0xff]  }
 0x40e   :  { %6583 = vmatmul.mubr.bf16.vlgmr.msra.gmra.mrb[36].mxu1 %v6249_v57  ;;  %v6183_v57 = vsel %vm17184_vm6, %v6181_v35, %v6182_v48  ;;  %7802 = vmatprep.subr.bf16.mxu0 %v13926_v56  ;;  %v13938_v48 = vld [vmem:[#allocation9 + $0x244] ss:$16 sps:$4 sm:$0xff]   ;;  %v6179_v56 = vrot.slane %v17116_v61, 7 }
 0x40f   :  { %6592 = vmatprep.mubr.bf16.mxu1 %v6253_v38  ;;  %6624 = vmatpush1.bf16.msra.mxu1 %v13828_v19  ;;  %v6216_v19 = vcombine.low %v6162_v17, %v6169_v53  ;;  %v6220_v46 = vcombine.high %v6176_v43, %v6183_v57  ;;  %v13845_v38 = vld [vmem:[#allocation6 + $0x5d4] ss:$8 sps:$4 sm:$0xff]   ;;  %v6222_v53 = vcombine.low %v6190_v34, %v6197_v25  ;;  %v6137_v17 = vrot.slane %v16917_v15, 7 }
 0x410   :  { %6625 = vmatprep.subr.bf16.mxu1 %v13833_v41  ;;  %v6223_v41 = vcombine.high %v6190_v34, %v6197_v25  ;;  %v6219_v24 = vcombine.low %v6176_v43, %v6183_v57  ;;  %7803 = vmatpush1.bf16.msra.mxu0 %v13924_v31  ;;  %v13857_v35 = vld [vmem:[#allocation6 + $0x614] ss:$8 sps:$4 sm:$0xff]   ;;  %v13855_v34 = vld [vmem:[#allocation6 + $0x610] ss:$8 sps:$4 sm:$0xff]   ;;  %v6151_v43 = vrot.slane %v17092_v52, 7 }
 0x411   :  { %v6255_v51 = vpack.c.bf16 %v6216_v19, %v6213_v22  ;;  %v6142_v12 = vrot.slane %v6137_v17, 4  ;;  %7804 = vmatprep.subr.bf16.mxu0 %v13932_v42  ;;  %v13936_v19 = vld [vmem:[#allocation9 + $0x240] ss:$16 sps:$4 sm:$0xff]   ;;  %v13944_v57 = vld [vmem:[#allocation9 + $0x264] ss:$16 sps:$4 sm:$0xff]   ;;  %v6138_v22 = vsel %vm17184_vm6, %v12122_v10, %v6137_v17  ;;  %v12126_v17 = vrot.slane %v17112_v33, 11 }
 0x412   :  { %v6259_v54 = vpack.c.bf16 %v6223_v41, %v6220_v46  ;;  %v13860_v46 = vld [vmem:[#allocation6 + $0x624] ss:$8 sps:$4 sm:$0xff]  }
 0x413   :  { %6626 = vmatpush1.bf16.msra.mxu1 %v13831_v55  ;;  %v13848_v55 = vld [vmem:[#allocation6 + $0x5e4] ss:$8 sps:$4 sm:$0xff]  }
 0x414   :  { %6627 = vmatprep.subr.bf16.mxu1 %v13836_v49  ;;  %v6258_v49 = vpack.c.bf16 %v6222_v53, %v6219_v24  ;;  %v13950_v53 = vld [vmem:[#allocation9 + $0x284] ss:$16 sps:$4 sm:$0xff]   ;;  %v6156_v24 = vrot.slane %v6151_v43, 4  ;;  %v13954_v10 = vld [vmem:[#allocation9 + $0x2a0] ss:$16 sps:$4 sm:$0xff]  }
 0x415   :  { %v13956_v42 = vld [vmem:[#allocation9 + $0x2a4] ss:$16 sps:$4 sm:$0xff]  }
 0x416   :  { %6593 = vmatmul.mubr.bf16.gmra.mrb[40].mxu1 %v6252_v0  ;;  %v6143_v0 = vrot.slane %v17076_v28, 7 }
 0x417   :  { %6602 = vmatprep.mubr.bf16.mxu1 %v6256_v7  ;;  %6628 = vmatpush1.bf16.msra.mxu1 %v13834_v18  ;;  %v6123_v18 = vrot.slane %v17068_v8, 7  ;;  %v6129_v7 = vrot.slane %v16901_v27, 7 }
 0x418   :  { %6629 = vmatprep.subr.bf16.mxu1 %v13839_v2  ;;  %v13930_v2 = vld [vmem:[#allocation9 + $0x220] ss:$16 sps:$4 sm:$0xff]   ;;  %v6144_v25 = vsel %vm17184_vm6, %v6142_v12, %v6143_v0  ;;  %v6193_v0 = vrot.slane %v16976_v23, 7 }
 0x419   :  { %v6128_v6 = vrot.slane %v6123_v18, 4  ;;  %7805 = vmatpush1.bf16.msra.mxu0 %v13930_v2 }
 0x41a   :  { %7806 = vmatprep.subr.bf16.mxu0 %v13938_v48  ;;  %v13866_v48 = vld [vmem:[#allocation6 + $0x644] ss:$8 sps:$4 sm:$0xff]  }
 0x41b   :  { %6630 = vmatpush1.bf16.msra.mxu1 %v13837_v3  ;;  %v6165_v3 = vrot.slane %v16968_v26, 7  ;;  %v6130_v41 = vsel %vm17184_vm6, %v6128_v6, %v6129_v7  ;;  %v6184_v7 = vrot.slane %v6179_v56, 4  ;;  %v6185_v6 = vrot.slane %v18305_v63, 7 }
 0x41c   :  { %6631 = vmatprep.subr.bf16.mxu1 %v13842_v21  ;;  %v18309_v21 = vld [vmem:[#allocation38_spill] sm:$0xff] }
 0x41d   :  { %7807 = vmatpush1.bf16.msra.mxu0 %v13936_v19  ;;  %v6166_v33 = vsel %vm17184_vm6, %v12126_v17, %v6165_v3  ;;  %v13884_v17 = vld [vmem:[#allocation6 + $0x6a4] ss:$8 sps:$4 sm:$0xff]  }
 0x41e   :  { %6603 = vmatmul.mubr.bf16.gmra.mrb[44].mxu1 %v6255_v51  ;;  %v6124_v51 = vsel %vm17184_vm6, %v12120_v36, %v6123_v18  ;;  %7808 = vmatprep.subr.bf16.mxu0 %v13944_v57  ;;  %v12124_v18 = vrot.slane %v16884_v39, 11  ;;  %v13864_v39 = vld [vmem:[#allocation6 + $0x640] ss:$8 sps:$4 sm:$0xff]   ;;  %v12128_v57 = vrot.slane %v17014_v50, 11  ;;  %v12130_v36 = vrot.slane %v17139_v59, 11 }
 0x41f   :  { %6612 = vmatprep.mubr.bf16.mxu1 %v6259_v54  ;;  %6632 = vmatpush1.bf16.msra.mxu1 %v13840_v44  ;;  %v6212_v44 = vcombine.low %v6138_v22, %v6144_v25  ;;  %v6171_v54 = vrot.slane %v18303_v4, 7  ;;  %v6209_v30 = vcombine.low %v6124_v51, %v6130_v41  ;;  %v6198_v25 = vrot.slane %v6193_v0, 4  ;;  %v13867_v41 = vld [vmem:[#allocation6 + $0x650] ss:$8 sps:$4 sm:$0xff]   ;;  %v13872_v50 = vld [vmem:[#allocation6 + $0x664] ss:$8 sps:$4 sm:$0xff]  }
 0x420   :  { %6633 = vmatprep.subr.bf16.mxu1 %v13845_v38  ;;  %v6170_v38 = vrot.slane %v6165_v3, 4  ;;  %v6199_v3 = vrot.slane %v18306_v5, 7  ;;  %v6180_v22 = vsel %vm17184_vm6, %v12128_v57, %v6179_v56  ;;  %v13870_v59 = vld [vmem:[#allocation6 + $0x660] ss:$8 sps:$4 sm:$0xff]   ;;  %v13885_v56 = vld [vmem:[#allocation6 + $0x6b0] ss:$8 sps:$4 sm:$0xff]  }
 0x421   :  { %v13908_v57 = vld [vmem:[#allocation6 + $0x724] ss:$8 sps:$4 sm:$0xff]  }
 0x422   :  { %v6172_v31 = vsel %vm17184_vm6, %v6170_v38, %v6171_v54  ;;  %v18310_v38 = vld [vmem:[#allocation34_spill] sm:$0xff] }
 0x423   :  { %6634 = vmatpush1.bf16.msra.mxu1 %v13843_v62  ;;  %v13942_v62 = vld [vmem:[#allocation9 + $0x260] ss:$16 sps:$4 sm:$0xff]   ;;  %v6218_v2 = vcombine.low %v6166_v33, %v6172_v31  ;;  %v12180_v54 = vcombine.high %v18310_v38, %v18295_v32  ;;  %v18320_v38 = vld [vmem:[#allocation28_spill] sm:$0xff] }
 0x424   :  { %6635 = vmatprep.subr.bf16.mxu1 %v13848_v55  ;;  %v13858_v55 = vld [vmem:[#allocation6 + $0x620] ss:$8 sps:$4 sm:$0xff]   ;;  %7809 = vmatpush1.bf16.msra.mxu0 %v13942_v62  ;;  %v13887_v31 = vld [vmem:[#allocation6 + $0x6b4] ss:$8 sps:$4 sm:$0xff]  }
 0x425   :  { %7810 = vmatprep.subr.bf16.mxu0 %v13950_v53  ;;  %v18311_v53 = vld [vmem:[#allocation42_spill] sm:$0xff]  ;;  %v13882_v32 = vld [vmem:[#allocation6 + $0x6a0] ss:$8 sps:$4 sm:$0xff]  }
 0x426   :  { %6613 = vmatmul.mubr.bf16.gmra.mrb[48].mxu1 %v6258_v49  ;;  %v13863_v49 = vld [vmem:[#allocation6 + $0x634] ss:$8 sps:$4 sm:$0xff]   ;;  %v13894_v33 = vld [vmem:[#allocation6 + $0x6e0] ss:$8 sps:$4 sm:$0xff]  }
 0x427   :  { %6636 = vmatpush1.bf16.msra.mxu1 %v13846_v9  ;;  %6655 = vmatprep.mubr.bf16.mxu1 %v18153_v40  ;;  %v6254_v9 = vpack.c.bf16 %v6212_v44, %v6209_v30  ;;  %v13875_v30 = vld [vmem:[#allocation6 + $0x674] ss:$8 sps:$4 sm:$0xff]  }
 0x428   :  { %6637 = vmatprep.subr.bf16.mxu1 %v13851_v13  ;;  %v6157_v13 = vrot.slane %v18304_v11, 7 }
 0x42a   :  { %v6158_v12 = vsel %vm17184_vm6, %v6156_v24, %v6157_v13  ;;  %v13873_v24 = vld [vmem:[#allocation6 + $0x670] ss:$8 sps:$4 sm:$0xff]  }
 0x42b   :  { %6638 = vmatpush1.bf16.msra.mxu1 %v13849_v20  ;;  %v13948_v20 = vld [vmem:[#allocation9 + $0x280] ss:$16 sps:$4 sm:$0xff]  }
 0x42c   :  { %7061 = vmatprep.subr.bf16.mxu1 %v13854_v29  ;;  %v13861_v29 = vld [vmem:[#allocation6 + $0x630] ss:$8 sps:$4 sm:$0xff]   ;;  %7811 = vmatpush1.bf16.msra.mxu0 %v13948_v20  ;;  %v13890_v20 = vld [vmem:[#allocation6 + $0x6c4] ss:$8 sps:$4 sm:$0xff]  }
 0x42d   :  { %7812 = vmatprep.subr.bf16.mxu0 %v13956_v42  ;;  %v13879_v13 = vld [vmem:[#allocation6 + $0x690] ss:$8 sps:$4 sm:$0xff]   ;;  %v13888_v42 = vld [vmem:[#allocation6 + $0x6c0] ss:$8 sps:$4 sm:$0xff]  }
 0x42e   :  { %6656 = vmatmul.mubr.bf16.vlgmr.msra.gmra.mrb[36].mxu1 %v18309_v21  ;;  %v13869_v21 = vld [vmem:[#allocation6 + $0x654] ss:$8 sps:$4 sm:$0xff]  }
 0x42f   :  { %7062 = vmatpush1.bf16.msra.mxu1 %v13852_v16  ;;  %6665 = vmatprep.mubr.bf16.mxu1 %v18153_v40  ;;  %v6152_v16 = vsel %vm17184_vm6, %v12124_v18, %v6151_v43  ;;  %v6200_v43 = vsel %vm17184_vm6, %v6198_v25, %v6199_v3  ;;  %v13891_v18 = vld [vmem:[#allocation6 + $0x6d0] ss:$8 sps:$4 sm:$0xff]   ;;  %v18314_v25 = vld [vmem:[#allocation39_spill] sm:$0xff] }
 0x430   :  { %7063 = vmatprep.subr.bf16.mxu1 %v13857_v35  ;;  %v6215_v35 = vcombine.low %v6152_v16, %v6158_v12  ;;  %7813 = vmatpush1.bf16.msra.mxu0 %v13954_v10  ;;  %v13896_v12 = vld [vmem:[#allocation6 + $0x6e4] ss:$8 sps:$4 sm:$0xff]   ;;  %v13900_v10 = vld [vmem:[#allocation6 + $0x700] ss:$8 sps:$4 sm:$0xff]   ;;  %v13903_v3 = vld [vmem:[#allocation6 + $0x710] ss:$8 sps:$4 sm:$0xff]  }
 0x431   :  { %v18312_v16 = vld [vmem:[#allocation35_spill] sm:$0xff] }
 0x432   :  { %v6257_v19 = vpack.c.bf16 %v6218_v2, %v6215_v35  ;;  %v13897_v2 = vld [vmem:[#allocation6 + $0x6f0] ss:$8 sps:$4 sm:$0xff]   ;;  %v13905_v35 = vld [vmem:[#allocation6 + $0x714] ss:$8 sps:$4 sm:$0xff]  }
 0x433   :  { %7064 = vmatpush1.bf16.msra.mxu1 %v13855_v34  ;;  %v6186_v34 = vsel %vm17184_vm6, %v6184_v7, %v6185_v6  ;;  %v12182_v7 = vcombine.high %v18312_v16, %v18299_v45  ;;  %v18316_v45 = vld [vmem:[#allocation29_spill] sm:$0xff]  ;;  %v6723_v16 = vcombine.low %v16917_v15, %v17076_v28  ;;  %v6726_v28 = vcombine.low %v17092_v52, %v18304_v11 }
 0x434   :  { %7065 = vmatprep.subr.bf16.mxu1 %v13860_v46  ;;  %v6221_v44 = vcombine.low %v6180_v22, %v6186_v34  ;;  %v6194_v46 = vsel %vm17184_vm6, %v12130_v36, %v6193_v0  ;;  %v13899_v0 = vld [vmem:[#allocation6 + $0x6f4] ss:$8 sps:$4 sm:$0xff]   ;;  %v13906_v34 = vld [vmem:[#allocation6 + $0x720] ss:$8 sps:$4 sm:$0xff]   ;;  %v12184_v36 = vcombine.high %v18316_v45, %v16933_v1 }
 0x435   :  { %v6224_v51 = vcombine.low %v6194_v46, %v6200_v43  ;;  %v13911_v43 = vld [vmem:[#allocation6 + $0x734] ss:$8 sps:$4 sm:$0xff]   ;;  %v13909_v46 = vld [vmem:[#allocation6 + $0x730] ss:$8 sps:$4 sm:$0xff]   ;;  %v13912_v1 = vld [vmem:[#allocation6 + $0x740] ss:$8 sps:$4 sm:$0xff]  }
 0x436   :  { %6666 = vmatmul.mubr.bf16.gmra.mrb[40].mxu1 %v6254_v9  ;;  %v13878_v9 = vld [vmem:[#allocation6 + $0x684] ss:$8 sps:$4 sm:$0xff]  }
 0x437   :  { %7066 = vmatpush1.bf16.msra.mxu1 %v13858_v55  ;;  %6675 = vmatprep.mubr.bf16.mxu1 %v18153_v40  ;;  %v6260_v62 = vpack.c.bf16 %v6224_v51, %v6221_v44  ;;  %v6761_v55 = vpack.c.bf16 %v18311_v53, %v12180_v54  ;;  %v18318_v44 = vld [vmem:[#allocation50_spill] sm:$0xff]  ;;  %v13914_v51 = vld [vmem:[#allocation6 + $0x744] ss:$8 sps:$4 sm:$0xff]   ;;  %v12183_v54 = vcombine.low %v18308_v60, %v18320_v38 }
 0x438   :  { %7067 = vmatprep.subr.bf16.mxu1 %v13863_v49  ;;  %v13881_v49 = vld [vmem:[#allocation6 + $0x694] ss:$8 sps:$4 sm:$0xff]  }
 0x439   :  { %v13917_v53 = vld [vmem:[#allocation6 + $0x754] ss:$8 sps:$4 sm:$0xff]  }
 0x43a   :  { %v18324_v60 = vld [vmem:[#allocation58_spill] sm:$0xff]  ;;  %v13960_v52 = vld [vmem:[#allocation9 + $0x2c0] ss:$16 sps:$4 sm:$0xff]  }
 0x43b   :  { %7068 = vmatpush1.bf16.msra.mxu1 %v13861_v29  ;;  %v13893_v29 = vld [vmem:[#allocation6 + $0x6d4] ss:$8 sps:$4 sm:$0xff]  }
 0x43c   :  { %7069 = vmatprep.subr.bf16.mxu1 %v13866_v48  ;;  %v13902_v48 = vld [vmem:[#allocation6 + $0x704] ss:$8 sps:$4 sm:$0xff]  }
 0x43d   :  { %v13953_v15 = vld [vmem:[#allocation9 + $0x884] ss:$16 sps:$4 sm:$0xff]  }
 0x43e   :  { %6676 = vmatmul.mubr.bf16.gmra.mrb[44].mxu1 %v6257_v19  ;;  %v18315_v19 = vld [vmem:[#allocation40_spill] sm:$0xff] }
 0x43f   :  { %7070 = vmatpush1.bf16.msra.mxu1 %v13864_v39  ;;  %6685 = vmatprep.mubr.bf16.mxu1 %v18153_v40  ;;  %v18313_v39 = vld [vmem:[#allocation23_spill] sm:$0xff] }
 0x440   :  { %7071 = vmatprep.subr.bf16.mxu1 %v13869_v21  ;;  %v6764_v6 = vpack.c.bf16 %v18313_v39, %v12182_v7  ;;  %v12181_v21 = vcombine.low %v18298_v14, %v18315_v19  ;;  %v18319_v14 = vld [vmem:[#allocation53_spill] sm:$0xff] }
 0x441   :  { %v13941_v7 = vld [vmem:[#allocation9 + $0x844] ss:$16 sps:$4 sm:$0xff]  }
 0x442   :  { %v13959_v19 = vld [vmem:[#allocation9 + $0x8a4] ss:$16 sps:$4 sm:$0xff]  }
 0x443   :  { %7072 = vmatpush1.bf16.msra.mxu1 %v13867_v41  ;;  %v18317_v41 = vld [vmem:[#allocation26_spill] sm:$0xff] }
 0x444   :  { %7073 = vmatprep.subr.bf16.mxu1 %v13872_v50  ;;  %v6763_v22 = vpack.c.bf16 %v18317_v41, %v12181_v21  ;;  %v6767_v50 = vpack.c.bf16 %v18318_v44, %v12184_v36  ;;  %v13957_v21 = vld [vmem:[#allocation9 + $0x8a0] ss:$16 sps:$4 sm:$0xff]   ;;  %v13962_v11 = vld [vmem:[#allocation9 + $0x2c4] ss:$16 sps:$4 sm:$0xff]  }
 0x445   :  { %v13965_v45 = vld [vmem:[#allocation9 + $0x8c4] ss:$16 sps:$4 sm:$0xff]   ;;  %7814 = vmatprep.subr.bf16.mxu0 %v13962_v11  ;;  %v13978_v44 = vld [vmem:[#allocation9 + $0x320] ss:$16 sps:$4 sm:$0xff]  }
 0x446   :  { %6686 = vmatmul.mubr.bf16.gmra.mrb[48].mxu1 %v6260_v62  ;;  %v18321_v62 = vld [vmem:[#allocation49_spill] sm:$0xff]  ;;  %7815 = vmatpush1.bf16.msra.mxu0 %v13960_v52 }
 0x447   :  { %7074 = vmatpush1.bf16.msra.mxu1 %v13870_v59  ;;  %7093 = vmatprep.mubr.bf16.mxu1 %v6761_v55  ;;  %v12186_v59 = vcombine.high %v18319_v14, %v17001_v47  ;;  %v18322_v55 = vld [vmem:[#allocation60_spill] sm:$0xff] }
 0x448   :  { %7075 = vmatprep.subr.bf16.mxu1 %v13875_v30  ;;  %v6766_v30 = vpack.c.bf16 %v18321_v62, %v12183_v54  ;;  %v13920_v47 = vld [vmem:[#allocation6 + $0x764] ss:$8 sps:$4 sm:$0xff]  }
 0x449   :  { %v13968_v36 = vld [vmem:[#allocation9 + $0x2e4] ss:$16 sps:$4 sm:$0xff]  }
 0x44a   :  { %v13971_v41 = vld [vmem:[#allocation9 + $0x8e4] ss:$16 sps:$4 sm:$0xff]   ;;  %7816 = vmatprep.subr.bf16.mxu0 %v13968_v36 }
 0x44b   :  { %7076 = vmatpush1.bf16.msra.mxu1 %v13873_v24  ;;  %v6770_v24 = vpack.c.bf16 %v18322_v55, %v12186_v59  ;;  %v13986_v14 = vld [vmem:[#allocation9 + $0x344] ss:$16 sps:$4 sm:$0xff]   ;;  %v13987_v59 = vld [vmem:[#allocation9 + $0x940] ss:$16 sps:$4 sm:$0xff]  }
 0x44c   :  { %7077 = vmatprep.subr.bf16.mxu1 %v13878_v9  ;;  %v13915_v9 = vld [vmem:[#allocation6 + $0x750] ss:$8 sps:$4 sm:$0xff]  }
 0x44d   :  { %v13989_v38 = vld [vmem:[#allocation9 + $0x944] ss:$16 sps:$4 sm:$0xff]  }
 0x44e   :  { %v13992_v54 = vld [vmem:[#allocation9 + $0x364] ss:$16 sps:$4 sm:$0xff]  }
 0x44f   :  { %7078 = vmatpush1.bf16.msra.mxu1 %v13876_v37  ;;  %v18323_v37 = vld [vmem:[#allocation56_spill] sm:$0xff] }
 0x450   :  { %7079 = vmatprep.subr.bf16.mxu1 %v13881_v49  ;;  %v12185_v49 = vcombine.low %v16990_v58, %v18323_v37  ;;  %v13929_v58 = vld [vmem:[#allocation9 + $0x804] ss:$16 sps:$4 sm:$0xff]  }
 0x451   :  { %v13995_v62 = vld [vmem:[#allocation9 + $0x964] ss:$16 sps:$4 sm:$0xff]  }
 0x452   :  { %v13998_v55 = vld [vmem:[#allocation9 + $0x384] ss:$16 sps:$4 sm:$0xff]  }
 0x453   :  { %7080 = vmatpush1.bf16.msra.mxu1 %v13879_v13  ;;  %v13918_v13 = vld [vmem:[#allocation6 + $0x760] ss:$8 sps:$4 sm:$0xff]  }
 0x454   :  { %7081 = vmatprep.subr.bf16.mxu1 %v13884_v17  ;;  %v6769_v17 = vpack.c.bf16 %v18324_v60, %v12185_v49  ;;  %v14004_v37 = vld [vmem:[#allocation9 + $0x3a4] ss:$16 sps:$4 sm:$0xff]   ;;  %v14002_v49 = vld [vmem:[#allocation9 + $0x3a0] ss:$16 sps:$4 sm:$0xff]  }
 0x455   :  { %v14010_v60 = vld [vmem:[#allocation9 + $0x3c4] ss:$16 sps:$4 sm:$0xff]  }
 0x457   :  { %7082 = vmatpush1.bf16.msra.mxu1 %v13882_v32  ;;  %v13923_v32 = vld [vmem:[#allocation6 + $0x774] ss:$8 sps:$4 sm:$0xff]  }
 0x458   :  { %7083 = vmatprep.subr.bf16.mxu1 %v13887_v31  ;;  %v13921_v31 = vld [vmem:[#allocation6 + $0x770] ss:$8 sps:$4 sm:$0xff]  }
 0x45b   :  { %7084 = vmatpush1.bf16.msra.mxu1 %v13885_v56  ;;  %v18325_v56 = vld [vmem:[#allocation45_spill] sm:$0xff] }
 0x45c   :  { %7085 = vmatprep.subr.bf16.mxu1 %v13890_v20  ;;  %v18326_v20 = vld [vmem:[#allocation59_spill] sm:$0xff] }
 0x45f   :  { %7086 = vmatpush1.bf16.msra.mxu1 %v13888_v42  ;;  %v6714_v42 = vcombine.low %v18326_v20, %v18325_v56  ;;  %v14016_v56 = vld [vmem:[#allocation9 + $0x3e4] ss:$16 sps:$4 sm:$0xff]  }
 0x460   :  { %7087 = vmatprep.subr.bf16.mxu1 %v13893_v29  ;;  %v18327_v29 = vld [vmem:[#allocation61_spill] sm:$0xff] }
 0x461   :  { %v14019_v20 = vld [vmem:[#allocation9 + $0x9e4] ss:$16 sps:$4 sm:$0xff]  }
 0x463   :  { %7088 = vmatpush1.bf16.msra.mxu1 %v13891_v18  ;;  %v18328_v18 = vld [vmem:[#allocation27_spill] sm:$0xff] }
 0x464   :  { %7089 = vmatprep.subr.bf16.mxu1 %v13896_v12  ;;  %v6717_v12 = vcombine.low %v18328_v18, %v18327_v29  ;;  %v14017_v29 = vld [vmem:[#allocation9 + $0x9e0] ss:$16 sps:$4 sm:$0xff]   ;;  %v14022_v18 = vld [vmem:[#allocation9 + $0x20c] ss:$16 sps:$4 sm:$0xff]  }
 0x467   :  { %7090 = vmatpush1.bf16.msra.mxu1 %v13894_v33  ;;  %v13927_v33 = vld [vmem:[#allocation9 + $0x800] ss:$16 sps:$4 sm:$0xff]  }
 0x468   :  { %7091 = vmatprep.subr.bf16.mxu1 %v13899_v0  ;;  %v6762_v0 = vpack.c.bf16 %v6717_v12, %v6714_v42  ;;  %v14014_v42 = vld [vmem:[#allocation9 + $0x3e0] ss:$16 sps:$4 sm:$0xff]   ;;  %v14025_v12 = vld [vmem:[#allocation9 + $0xa04] ss:$16 sps:$4 sm:$0xff]  }
 0x46b   :  { %7092 = vmatpush1.bf16.msra.mxu1 %v13897_v2  ;;  %v13935_v2 = vld [vmem:[#allocation9 + $0x824] ss:$16 sps:$4 sm:$0xff]  }
 0x46c   :  { %7134 = vmatprep.subr.bf16.mxu1 %v13902_v48  ;;  %v13933_v48 = vld [vmem:[#allocation9 + $0x820] ss:$16 sps:$4 sm:$0xff]  }
 0x46e   :  { %7094 = vmatmul.mubr.bf16.vlgmr.msra.gmra.mrb[36].mxu1 %v18314_v25  ;;  %v13945_v25 = vld [vmem:[#allocation9 + $0x860] ss:$16 sps:$4 sm:$0xff]  }
 0x46f   :  { %7103 = vmatprep.mubr.bf16.mxu1 %v6764_v6  ;;  %7135 = vmatpush1.bf16.msra.mxu1 %v13900_v10  ;;  %v6720_v10 = vcombine.low %v17068_v8, %v16901_v27  ;;  %v13947_v6 = vld [vmem:[#allocation9 + $0x864] ss:$16 sps:$4 sm:$0xff]   ;;  %v13951_v27 = vld [vmem:[#allocation9 + $0x880] ss:$16 sps:$4 sm:$0xff]  }
 0x470   :  { %7136 = vmatprep.subr.bf16.mxu1 %v13905_v35  ;;  %v13939_v35 = vld [vmem:[#allocation9 + $0x840] ss:$16 sps:$4 sm:$0xff]  }
 0x471   :  { %v6765_v39 = vpack.c.bf16 %v6723_v16, %v6720_v10 }
 0x473   :  { %7137 = vmatpush1.bf16.msra.mxu1 %v13903_v3  ;;  %v6729_v3 = vcombine.low %v16968_v26, %v18303_v4  ;;  %v6735_v26 = vcombine.low %v16976_v23, %v18306_v5  ;;  %v13972_v23 = vld [vmem:[#allocation9 + $0x300] ss:$16 sps:$4 sm:$0xff]  }
 0x474   :  { %7138 = vmatprep.subr.bf16.mxu1 %v13908_v57  ;;  %v6732_v57 = vcombine.low %v17116_v61, %v18305_v63  ;;  %v13969_v61 = vld [vmem:[#allocation9 + $0x8e0] ss:$16 sps:$4 sm:$0xff]   ;;  %v13974_v63 = vld [vmem:[#allocation9 + $0x304] ss:$16 sps:$4 sm:$0xff]  }
 0x475   :  { %v6768_v8 = vpack.c.bf16 %v6729_v3, %v6726_v28  ;;  %v13975_v5 = vld [vmem:[#allocation9 + $0x900] ss:$16 sps:$4 sm:$0xff]  }
 0x476   :  { %7104 = vmatmul.mubr.bf16.gmra.mrb[40].mxu1 %v6763_v22  ;;  %v6771_v4 = vpack.c.bf16 %v6735_v26, %v6732_v57  ;;  %v13977_v22 = vld [vmem:[#allocation9 + $0x904] ss:$16 sps:$4 sm:$0xff]  }
 0x477   :  { %7113 = vmatprep.mubr.bf16.mxu1 %v6767_v50  ;;  %7139 = vmatpush1.bf16.msra.mxu1 %v13906_v34  ;;  %v13963_v34 = vld [vmem:[#allocation9 + $0x8c0] ss:$16 sps:$4 sm:$0xff]   ;;  %v13983_v50 = vld [vmem:[#allocation9 + $0x924] ss:$16 sps:$4 sm:$0xff]  }
 0x478   :  { %7140 = vmatprep.subr.bf16.mxu1 %v13911_v43  ;;  %v13980_v43 = vld [vmem:[#allocation9 + $0x324] ss:$16 sps:$4 sm:$0xff]  }
 0x47b   :  { %7141 = vmatpush1.bf16.msra.mxu1 %v13909_v46  ;;  %v13981_v46 = vld [vmem:[#allocation9 + $0x920] ss:$16 sps:$4 sm:$0xff]  }
 0x47c   :  { %7142 = vmatprep.subr.bf16.mxu1 %v13914_v51  ;;  %v13984_v51 = vld [vmem:[#allocation9 + $0x340] ss:$16 sps:$4 sm:$0xff]  }
 0x47e   :  { %7114 = vmatmul.mubr.bf16.gmra.mrb[44].mxu1 %v6766_v30  ;;  %v13993_v30 = vld [vmem:[#allocation9 + $0x960] ss:$16 sps:$4 sm:$0xff]  }
 0x47f   :  { %7123 = vmatprep.mubr.bf16.mxu1 %v6770_v24  ;;  %7143 = vmatpush1.bf16.msra.mxu1 %v13912_v1  ;;  %v13990_v1 = vld [vmem:[#allocation9 + $0x360] ss:$16 sps:$4 sm:$0xff]  }
 0x480   :  { %7144 = vmatprep.subr.bf16.mxu1 %v13917_v53  ;;  %v13996_v53 = vld [vmem:[#allocation9 + $0x380] ss:$16 sps:$4 sm:$0xff]  }
 0x481   :  { %v13999_v24 = vld [vmem:[#allocation9 + $0x980] ss:$16 sps:$4 sm:$0xff]  }
 0x483   :  { %7145 = vmatpush1.bf16.msra.mxu1 %v13915_v9  ;;  %v14001_v9 = vld [vmem:[#allocation9 + $0x984] ss:$16 sps:$4 sm:$0xff]  }
 0x484   :  { %7146 = vmatprep.subr.bf16.mxu1 %v13920_v47  ;;  %v14007_v47 = vld [vmem:[#allocation9 + $0x9a4] ss:$16 sps:$4 sm:$0xff]  }
 0x486   :  { %7124 = vmatmul.mubr.bf16.gmra.mrb[48].mxu1 %v6769_v17  ;;  %v14013_v17 = vld [vmem:[#allocation9 + $0x9c4] ss:$16 sps:$4 sm:$0xff]  }
 0x487   :  { %7147 = vmatpush1.bf16.msra.mxu1 %v13918_v13  ;;  %7166 = vmatprep.mubr.bf16.mxu1 %v18153_v40  ;;  %v14005_v13 = vld [vmem:[#allocation9 + $0x9a0] ss:$16 sps:$4 sm:$0xff]  }
 0x488   :  { %7148 = vmatprep.subr.bf16.mxu1 %v13923_v32  ;;  %v14008_v32 = vld [vmem:[#allocation9 + $0x3c0] ss:$16 sps:$4 sm:$0xff]  }
 0x48b   :  { %7149 = vmatpush1.bf16.msra.mxu1 %v13921_v31  ;;  %v14011_v31 = vld [vmem:[#allocation9 + $0x9c0] ss:$16 sps:$4 sm:$0xff]  }
 0x48c   :  { %9741 = vmatprep.subr.bf16.mxu1 %v13929_v58  ;;  %v7223_v58 = vld [vmem:[#allocation7] sm:$0x3] }
 0x48e   :  { %7167 = vmatmul.mubr.bf16.vlgmr.msra.gmra.mrb[36].mxu1 %v6762_v0 }
 0x48f   :  { %7176 = vmatprep.mubr.bf16.mxu1 %v18153_v40  ;;  %9742 = vmatpush1.bf16.msra.mxu1 %v13927_v33  ;;  %v18329_v33 = vld [vmem:[#allocation31_spill] sm:$0xff] }
 0x490   :  { %9743 = vmatprep.subr.bf16.mxu1 %v13935_v2  ;;  %v17523_v0 = vrot.slane %v7223_v58, %v18329_v33  ;;  %v18330_v2 = vld [vmem:[#allocation21_spill] sm:$0xff] }
 0x493   :  { %9744 = vmatpush1.bf16.msra.mxu1 %v13933_v48  ;;  %v17526_v48 = vrot.slane %v7223_v58, %v18330_v2 }
 0x494   :  { %9745 = vmatprep.subr.bf16.mxu1 %v13941_v7 }
 0x496   :  { %7177 = vmatmul.mubr.bf16.gmra.mrb[40].mxu1 %v6765_v39 }
 0x497   :  { %7186 = vmatprep.mubr.bf16.mxu1 %v18153_v40  ;;  %9746 = vmatpush1.bf16.msra.mxu1 %v13939_v35 }
 0x498   :  { %9747 = vmatprep.subr.bf16.mxu1 %v13947_v6 }
 0x49b   :  { %9748 = vmatpush1.bf16.msra.mxu1 %v13945_v25 }
 0x49c   :  { %9749 = vmatprep.subr.bf16.mxu1 %v13953_v15 }
 0x49e   :  { %7187 = vmatmul.mubr.bf16.gmra.mrb[44].mxu1 %v6768_v8 }
 0x49f   :  { %7196 = vmatprep.mubr.bf16.mxu1 %v18153_v40  ;;  %9750 = vmatpush1.bf16.msra.mxu1 %v13951_v27  ;;  %v13966_v40 = vld [vmem:[#allocation9 + $0x2e0] ss:$16 sps:$4 sm:$0xff]  }
 0x4a0   :  { %9751 = vmatprep.subr.bf16.mxu1 %v13959_v19  ;;  %7817 = vmatpush1.bf16.msra.mxu0 %v13966_v40 }
 0x4a1   :  { %7818 = vmatprep.subr.bf16.mxu0 %v13974_v63 }
 0x4a3   :  { %9752 = vmatpush1.bf16.msra.mxu1 %v13957_v21 }
 0x4a4   :  { %9753 = vmatprep.subr.bf16.mxu1 %v13965_v45  ;;  %7819 = vmatpush1.bf16.msra.mxu0 %v13972_v23 }
 0x4a5   :  { %7820 = vmatprep.subr.bf16.mxu0 %v13980_v43 }
 0x4a6   :  { %7197 = vmatmul.mubr.bf16.gmra.mrb[48].mxu1 %v6771_v4 }
 0x4a7   :  { %9754 = vmatpush1.bf16.msra.mxu1 %v13963_v34 }
 0x4a8   :  { %9755 = vmatprep.subr.bf16.mxu1 %v13971_v41  ;;  %7821 = vmatpush1.bf16.msra.mxu0 %v13978_v44 }
 0x4a9   :  { %7822 = vmatprep.subr.bf16.mxu0 %v13986_v14 }
 0x4ab   :  { %9756 = vmatpush1.bf16.msra.mxu1 %v13969_v61 }
 0x4ac   :  { %9757 = vmatprep.subr.bf16.mxu1 %v13977_v22  ;;  %7823 = vmatpush1.bf16.msra.mxu0 %v13984_v51 }
 0x4ad   :  { %7824 = vmatprep.subr.bf16.mxu0 %v13992_v54 }
 0x4af   :  { %9758 = vmatpush1.bf16.msra.mxu1 %v13975_v5 }
 0x4b0   :  { %9759 = vmatprep.subr.bf16.mxu1 %v13983_v50  ;;  %7825 = vmatpush1.bf16.msra.mxu0 %v13990_v1 }
 0x4b1   :  { %7826 = vmatprep.subr.bf16.mxu0 %v13998_v55 }
 0x4b3   :  { %9760 = vmatpush1.bf16.msra.mxu1 %v13981_v46 }
 0x4b4   :  { %9761 = vmatprep.subr.bf16.mxu1 %v13989_v38  ;;  %7827 = vmatpush1.bf16.msra.mxu0 %v13996_v53 }
 0x4b5   :  { %7828 = vmatprep.subr.bf16.mxu0 %v14004_v37 }
 0x4b7   :  { %9762 = vmatpush1.bf16.msra.mxu1 %v13987_v59 }
 0x4b8   :  { %9763 = vmatprep.subr.bf16.mxu1 %v13995_v62  ;;  %7829 = vmatpush1.bf16.msra.mxu0 %v14002_v49 }
 0x4b9   :  { %7830 = vmatprep.subr.bf16.mxu0 %v14010_v60 }
 0x4bb   :  { %9764 = vmatpush1.bf16.msra.mxu1 %v13993_v30 }
 0x4bc   :  { %9765 = vmatprep.subr.bf16.mxu1 %v14001_v9  ;;  %7831 = vmatpush1.bf16.msra.mxu0 %v14008_v32 }
 0x4bd   :  { %7832 = vmatprep.subr.bf16.mxu0 %v14016_v56 }
 0x4bf   :  { %9766 = vmatpush1.bf16.msra.mxu1 %v13999_v24 }
 0x4c0   :  { %9767 = vmatprep.subr.bf16.mxu1 %v14007_v47  ;;  %7833 = vmatpush1.bf16.msra.mxu0 %v14014_v42 }
 0x4c1   :  { %7843 = vmatprep.subr.bf16.mxu0 %v14022_v18 }
 0x4c3   :  { %9768 = vmatpush1.bf16.msra.mxu1 %v14005_v13 }
 0x4c4   :  { %9769 = vmatprep.subr.bf16.mxu1 %v14013_v17 }
 0x4c7   :  { %9770 = vmatpush1.bf16.msra.mxu1 %v14011_v31 }
 0x4c8   :  { %9771 = vmatprep.subr.bf16.mxu1 %v14019_v20 }
 0x4cb   :  { %9772 = vmatpush1.bf16.msra.mxu1 %v14017_v29 }
 0x4cc   :  { %10244 = vmatprep.subr.bf16.mxu1 %v14025_v12 }
 0x561   :  { %v7168_v16 = vpop.f32.mrb[36].mxu1 }
 0x562   :  { %v7235_v7 = vadd.f32 %v17523_v0, %v7168_v16  ;;  %v7170_v10 = vpop.f32.mrb[37].mxu1 }
 0x563   :  { %v7236_v35 = vadd.f32 %v17526_v48, %v7170_v10  ;;  %v7172_v39 = vpop.f32.mrb[38].mxu1 }
 0x564   :  { %v7251_v6 = vmax.f32 %v7235_v7, 0.0  ;;  %v7237_v25 = vadd.f32 %v17523_v0, %v7172_v39  ;;  %v7174_v3 = vpop.f32.mrb[39].mxu1 }
 0x565   :  { %v7252_v15 = vmax.f32 %v7236_v35, 0.0  ;;  %v7238_v28 = vadd.f32 %v17526_v48, %v7174_v3 }
 0x566   :  { %v7267_v27 = vpack.c.bf16 %v7251_v6, %v7251_v6  ;;  %v7253_v8 = vmax.f32 %v7237_v25, 0.0 }
 0x567   :  { %v7268_v19 = vpack.c.bf16 %v7252_v15, %v7252_v15  ;;  %v7254_v21 = vmax.f32 %v7238_v28, 0.0 }
 0x568   :  { %v17532_v57 = vunpack.c.l.b16 %v7267_v27  ;;  %v7269_v26 = vpack.c.bf16 %v7253_v8, %v7253_v8 }
 0x569   :  { %v17534_v4 = vunpack.c.l.b16 %v7268_v19  ;;  %v7270_v52 = vpack.c.bf16 %v7254_v21, %v7254_v21  ;;  %v7178_v11 = vpop.f32.mrb[40].mxu1 }
 0x56a   :  { %v17536_v34 = vunpack.c.l.b16 %v7269_v26  ;;  %v7239_v45 = vadd.f32 %v17523_v0, %v7178_v11  ;;  %v7180_v36 = vpop.f32.mrb[41].mxu1  ;;  %v7444_v40 = vrot.slane %v17532_v57, 1  ;;  %v9389_v41 = vrot.slane %v17532_v57, 4 }
 0x56b   :  { %v17541_v61 = vunpack.c.l.b16 %v7270_v52  ;;  %v7240_v23 = vadd.f32 %v17526_v48, %v7180_v36  ;;  %v7182_v63 = vpop.f32.mrb[42].mxu1  ;;  %v7464_v5 = vrot.slane %v17534_v4, 1  ;;  %v9403_v22 = vrot.slane %v17534_v4, 4 }
 0x56c   :  { %v7255_v43 = vmax.f32 %v7239_v45, 0.0  ;;  %v7241_v44 = vadd.f32 %v17523_v0, %v7182_v63  ;;  %v7184_v50 = vpop.f32.mrb[43].mxu1  ;;  %v7446_v46 = vsel %vm7445_vm7, %v17536_v34, %v7444_v40  ;;  %v9390_v51 = vrot.slane %v17536_v34, 3 }
 0x56d   :  { %v7256_v14 = vmax.f32 %v7240_v23, 0.0  ;;  %v7242_v59 = vadd.f32 %v17526_v48, %v7184_v50  ;;  %v7465_v38 = vsel %vm7445_vm7, %v17541_v61, %v7464_v5  ;;  %v9404_v54 = vrot.slane %v17541_v61, 3 }
 0x56e   :  { %v7271_v1 = vpack.c.bf16 %v7255_v43, %v7255_v43  ;;  %v7257_v62 = vmax.f32 %v7241_v44, 0.0  ;;  %v9391_v30 = vsel %vm7445_vm7, %v9390_v51, %v9389_v41  ;;  %v9906_v53 = vrot.slane %v17534_v4, 5 }
 0x56f   :  { %v7272_v55 = vpack.c.bf16 %v7256_v14, %v7256_v14  ;;  %v7258_v24 = vmax.f32 %v7242_v59, 0.0  ;;  %v9405_v9 = vsel %vm7445_vm7, %v9404_v54, %v9403_v22  ;;  %v9907_v37 = vrot.slane %v17541_v61, 4 }
 0x570   :  { %v17558_v49 = vunpack.c.l.b16 %v7271_v1  ;;  %v7273_v47 = vpack.c.bf16 %v7257_v62, %v7257_v62  ;;  %v9892_v13 = vrot.slane %v17532_v57, 5  ;;  %v9893_v60 = vrot.slane %v17536_v34, 4 }
 0x571   :  { %v17562_v17 = vunpack.c.l.b16 %v7272_v55  ;;  %v7274_v32 = vpack.c.bf16 %v7258_v24, %v7258_v24  ;;  %v7188_v31 = vpop.f32.mrb[44].mxu1  ;;  %v17565_v56 = vsel %vm7445_vm7, %v9907_v37, %v9906_v53  ;;  %v7898_v20 = vrot.slane %v17541_v61, 7 }
 0x572   :  { %v17568_v42 = vunpack.c.l.b16 %v7273_v47  ;;  %v7243_v29 = vadd.f32 %v17523_v0, %v7188_v31  ;;  %v7190_v18 = vpop.f32.mrb[45].mxu1  ;;  %v7447_v12 = vrot.slane %v17558_v49, 7  ;;  %v9392_v58 = vrot.slane %v17558_v49, 2 }
 0x573   :  { %v17573_v16 = vunpack.c.l.b16 %v7274_v32  ;;  %v7244_v7 = vadd.f32 %v17526_v48, %v7190_v18  ;;  %v7192_v10 = vpop.f32.mrb[46].mxu1  ;;  %v7466_v35 = vrot.slane %v17562_v17, 7  ;;  %v9406_v39 = vrot.slane %v17562_v17, 2 }
 0x574   :  { %v7259_v6 = vmax.f32 %v7243_v29, 0.0  ;;  %v7245_v25 = vadd.f32 %v17523_v0, %v7192_v10  ;;  %v7194_v3 = vpop.f32.mrb[47].mxu1  ;;  %v7449_v15 = vsel %vm1009_vm10, %v7447_v12, %v7446_v46  ;;  %v7450_v28 = vrot.slane %v17568_v42, 6 }
 0x575   :  { %v7260_v27 = vmax.f32 %v7244_v7, 0.0  ;;  %v7246_v8 = vadd.f32 %v17526_v48, %v7194_v3  ;;  %v7467_v19 = vsel %vm1009_vm10, %v7466_v35, %v7465_v38  ;;  %v7468_v21 = vrot.slane %v17573_v16, 6 }
 0x576   :  { %v7275_v26 = vpack.c.bf16 %v7259_v6, %v7259_v6  ;;  %v7261_v52 = vmax.f32 %v7245_v25, 0.0  ;;  %v9407_v11 = vsel %vm1009_vm10, %v9406_v39, %v9405_v9  ;;  %v9408_v45 = vrot.slane %v17573_v16, 1 }
 0x577   :  { %v7276_v36 = vpack.c.bf16 %v7260_v27, %v7260_v27  ;;  %v7262_v40 = vmax.f32 %v7246_v8, 0.0  ;;  %v7469_v41 = vsel %vm7451_vm8, %v7468_v21, %v7467_v19  ;;  %v7452_v23 = vsel %vm7451_vm8, %v7450_v28, %v7449_v15 }
 0x578   :  { %v17588_v63 = vunpack.c.l.b16 %v7275_v26  ;;  %v7277_v5 = vpack.c.bf16 %v7261_v52, %v7261_v52  ;;  %v9409_v22 = vsel %vm7451_vm8, %v9408_v45, %v9407_v11  ;;  %v9393_v43 = vsel %vm1009_vm10, %v9392_v58, %v9391_v30 }
 0x579   :  { %v17592_v44 = vunpack.c.l.b16 %v7276_v36  ;;  %v7278_v50 = vpack.c.bf16 %v7262_v40, %v7262_v40  ;;  %v7198_v46 = vpop.f32.mrb[48].mxu1  ;;  %v9394_v51 = vrot.slane %v17568_v42, 1  ;;  %v9909_v14 = vrot.slane %v17562_v17, 3 }
 0x57a   :  { %v17596_v59 = vunpack.c.l.b16 %v7277_v5  ;;  %v7247_v38 = vadd.f32 %v17523_v0, %v7198_v46  ;;  %v7200_v54 = vpop.f32.mrb[49].mxu1  ;;  %v7453_v1 = vrot.slane %v17588_v63, 5  ;;  %v9911_v62 = vrot.slane %v17573_v16, 2 }
 0x57b   :  { %v17601_v53 = vunpack.c.l.b16 %v7278_v50  ;;  %v7248_v30 = vadd.f32 %v17526_v48, %v7200_v54  ;;  %v7202_v55 = vpop.f32.mrb[50].mxu1  ;;  %v7470_v24 = vrot.slane %v17592_v44, 5  ;;  %v9410_v9 = vsel %vm1011_vm12, %v17592_v44, %v9409_v22 }
 0x57c   :  { %v7263_v37 = vmax.f32 %v7247_v38, 0.0  ;;  %v7249_v47 = vadd.f32 %v17523_v0, %v7202_v55  ;;  %v7204_v32 = vpop.f32.mrb[51].mxu1  ;;  %v7454_v31 = vsel %vm1011_vm12, %v7453_v1, %v7452_v23  ;;  %v7455_v29 = vrot.slane %v17596_v59, 4 }
 0x57d   :  { %v7264_v18 = vmax.f32 %v7248_v30, 0.0  ;;  %v7250_v12 = vadd.f32 %v17526_v48, %v7204_v32  ;;  %v7471_v58 = vsel %vm1011_vm12, %v7470_v24, %v7469_v41  ;;  %v7472_v7 = vrot.slane %v17601_v53, 4 }
 0x57e   :  { %v7279_v10 = vpack.c.bf16 %v7263_v37, %v7263_v37  ;;  %v7265_v35 = vmax.f32 %v7249_v47, 0.0  ;;  %v9411_v39 = vrot.slane %v17601_v53, 7  ;;  %v7457_v6 = vsel %vm7456_vm9, %v7455_v29, %v7454_v31  ;;  %v14020_v31 = vld [vmem:[#allocation9 + $0x208] ss:$16 sps:$4 sm:$0xff]  }
 0x57f   :  { %v7280_v25 = vpack.c.bf16 %v7264_v18, %v7264_v18  ;;  %v7266_v0 = vmax.f32 %v7250_v12, 0.0  ;;  %v7473_v3 = vsel %vm7456_vm9, %v7472_v7, %v7471_v58  ;;  %v9395_v15 = vsel %vm7451_vm8, %v9394_v51, %v9393_v43  ;;  %v14023_v18 = vld [vmem:[#allocation9 + $0xa00] ss:$16 sps:$4 sm:$0xff]  }
 0x580   :  { %v17617_v28 = vunpack.c.l.b16 %v7279_v10  ;;  %v7281_v27 = vpack.c.bf16 %v7265_v35, %v7265_v35  ;;  %v9412_v48 = vsel %vm7456_vm9, %v9411_v39, %v9410_v9  ;;  %v9396_v8 = vsel %vm1011_vm12, %v17588_v63, %v9395_v15  ;;  %v14028_v10 = vld [vmem:[#allocation9 + $0x22c] ss:$16 sps:$4 sm:$0xff]  }
 0x581   :  { %v17622_v19 = vunpack.c.l.b16 %v7280_v25  ;;  %v7282_v21 = vpack.c.bf16 %v7266_v0, %v7266_v0  ;;  %v9397_v26 = vrot.slane %v17596_v59, 7  ;;  %v9910_v52 = vsel %vm1009_vm10, %v9909_v14, %v17565_v56  ;;  %v14031_v0 = vld [vmem:[#allocation9 + $0xa24] ss:$16 sps:$4 sm:$0xff]  }
 0x582   :  { %v17627_v11 = vunpack.c.l.b16 %v7281_v27  ;;  %v7458_v45 = vrot.slane %v17617_v28, 3  ;;  %v9399_v36 = vrot.slane %v17617_v28, 6  ;;  %v9912_v40 = vsel %vm7451_vm8, %v9911_v62, %v9910_v52  ;;  %v14029_v52 = vld [vmem:[#allocation9 + $0xa20] ss:$16 sps:$4 sm:$0xff]  }
 0x583   :  { %v17632_v41 = vunpack.c.l.b16 %v7282_v21  ;;  %v7474_v23 = vrot.slane %v17622_v19, 3  ;;  %v9413_v5 = vrot.slane %v17622_v19, 6  ;;  %v9398_v22 = vsel %vm7456_vm9, %v9397_v26, %v9396_v8  ;;  %v14026_v26 = vld [vmem:[#allocation9 + $0x228] ss:$16 sps:$4 sm:$0xff]  }
 0x584   :  { %v7460_v43 = vsel %vm1013_vm14, %v7458_v45, %v7457_v6  ;;  %v7461_v56 = vrot.slane %v17627_v11, 2  ;;  %v9400_v50 = vsel %vm1013_vm14, %v9399_v36, %v9398_v22  ;;  %v9401_v46 = vrot.slane %v17627_v11, 5 }
 0x585   :  { %v7475_v51 = vsel %vm1013_vm14, %v7474_v23, %v7473_v3  ;;  %v7476_v14 = vrot.slane %v17632_v41, 2  ;;  %v9414_v38 = vsel %vm1013_vm14, %v9413_v5, %v9412_v48  ;;  %v9415_v54 = vrot.slane %v17632_v41, 5  ;;  %v14034_v23 = vld [vmem:[#allocation9 + $0x24c] ss:$16 sps:$4 sm:$0xff]   ;;  %v14037_v5 = vld [vmem:[#allocation9 + $0xa44] ss:$16 sps:$4 sm:$0xff]  }
 0x586   :  { %v7463_v1 = vsel %vm7462_vm11, %v7461_v56, %v7460_v43  ;;  %v9402_v62 = vsel %vm7462_vm11, %v9401_v46, %v9400_v50  ;;  %v9913_v30 = vrot.slane %v17592_v44, 1  ;;  %v9916_v55 = vrot.slane %v17622_v19, 7 }
 0x587   :  { %v7477_v24 = vsel %vm7462_vm11, %v7476_v14, %v7475_v51  ;;  %v9416_v9 = vsel %vm7462_vm11, %v9415_v54, %v9414_v38  ;;  %v17651_v37 = vpack.c.b16 %v7463_v1, %v7463_v1  ;;  %v17653_v47 = vpack.c.b16 %v9402_v62, %v9402_v62 }
 0x588   :  { %v7479_v32 = vpack.c.b16 %v7477_v24, %v7477_v24  ;;  %v17655_v29 = vpack.c.b16 %v9416_v9, %v9416_v9  ;;  %v9914_v12 = vsel %vm1011_vm12, %v9913_v30, %v9912_v40  ;;  %v9918_v58 = vrot.slane %v17632_v41, 6  ;;  %v14032_v30 = vld [vmem:[#allocation9 + $0x248] ss:$16 sps:$4 sm:$0xff]  }
 0x589   :  { %v9915_v7 = vsel %vm7456_vm9, %v17601_v53, %v9914_v12  ;;  %v9894_v35 = vsel %vm7445_vm7, %v9893_v60, %v9892_v13  ;;  %v9895_v39 = vrot.slane %v17558_v49, 3  ;;  %v9897_v6 = vrot.slane %v17568_v42, 2  ;;  %v14043_v12 = vld [vmem:[#allocation9 + $0xa64] ss:$16 sps:$4 sm:$0xff]  }
 0x58a   :  { %7834 = vmatprep.mubr.bf16.mxu0 %v7479_v32  ;;  %9773 = vmatprep.mubr.bf16.mxu1 %v17655_v29  ;;  %v9917_v25 = vsel %vm1013_vm14, %v9916_v55, %v9915_v7  ;;  %v9899_v3 = vrot.slane %v17588_v63, 1  ;;  %v9902_v15 = vrot.slane %v17617_v28, 7  ;;  %v9904_v27 = vrot.slane %v17627_v11, 6  ;;  %v14035_v55 = vld [vmem:[#allocation9 + $0xa40] ss:$16 sps:$4 sm:$0xff]  }
 0x58b   :  { %7835 = vmatmul.mubr.bf16.vlgmr.msra.gmra.mrb[36].mxu0 %v17651_v37  ;;  %9774 = vmatmul.mubr.bf16.vlgmr.msra.gmra.mrb[52].mxu1 %v17653_v47  ;;  %v9919_v13 = vsel %vm7462_vm11, %v9918_v58, %v9917_v25  ;;  %v9896_v60 = vsel %vm1009_vm10, %v9895_v39, %v9894_v35  ;;  %v7899_v48 = vsel %vm7445_vm7, %v7898_v20, %v17534_v4  ;;  %v7900_v8 = vrot.slane %v17562_v17, 6 }
 0x58c   :  { %7844 = vmatpush1.bf16.msra.mxu0 %v14020_v31  ;;  %10245 = vmatpush1.bf16.msra.mxu1 %v14023_v18  ;;  %v17682_v21 = vpack.c.b16 %v9919_v13, %v9919_v13  ;;  %v9898_v45 = vsel %vm7451_vm8, %v9897_v6, %v9896_v60  ;;  %v7902_v36 = vrot.slane %v17573_v16, 5  ;;  %v7904_v40 = vrot.slane %v17592_v44, 4  ;;  %v14040_v18 = vld [vmem:[#allocation9 + $0x26c] ss:$16 sps:$4 sm:$0xff]   ;;  %v14041_v13 = vld [vmem:[#allocation9 + $0xa60] ss:$16 sps:$4 sm:$0xff]  }
 0x58d   :  { %7875 = vmatprep.mubr.bf16.mxu0 %v7479_v32  ;;  %7845 = vmatprep.subr.bf16.mxu0 %v14028_v10  ;;  %v9900_v20 = vsel %vm1011_vm12, %v9899_v3, %v9898_v45  ;;  %v7901_v22 = vsel %vm1009_vm10, %v7900_v8, %v7899_v48  ;;  %v7906_v43 = vrot.slane %v17601_v53, 3  ;;  %v7908_v56 = vrot.slane %v17622_v19, 2  ;;  %v14049_v45 = vld [vmem:[#allocation9 + $0xa84] ss:$16 sps:$4 sm:$0xff]  }
 0x58e   :  { %10276 = vmatprep.mubr.bf16.mxu1 %v17682_v21  ;;  %10246 = vmatprep.subr.bf16.mxu1 %v14031_v0  ;;  %v9901_v50 = vsel %vm7456_vm9, %v17596_v59, %v9900_v20  ;;  %v7903_v46 = vsel %vm7451_vm8, %v7902_v36, %v7901_v22  ;;  %v7910_v51 = vrot.slane %v17632_v41, 1  ;;  %v10409_v14 = vrot.slane %v17534_v4, 6 }
 0x58f   :  { %v9903_v38 = vsel %vm1013_vm14, %v9902_v15, %v9901_v50  ;;  %v7905_v54 = vsel %vm1011_vm12, %v7904_v40, %v7903_v46  ;;  %v10410_v1 = vrot.slane %v17541_v61, 5  ;;  %v10412_v62 = vrot.slane %v17562_v17, 4 }
 0x590   :  { %7846 = vmatpush1.bf16.msra.mxu0 %v14026_v26  ;;  %10247 = vmatpush1.bf16.msra.mxu1 %v14029_v52  ;;  %v17702_v24 = vsel %vm7462_vm11, %v9904_v27, %v9903_v38  ;;  %v7907_v9 = vsel %vm7456_vm9, %v7906_v43, %v7905_v54  ;;  %v10414_v32 = vrot.slane %v17573_v16, 3  ;;  %v10416_v31 = vrot.slane %v17592_v44, 2  ;;  %v14038_v27 = vld [vmem:[#allocation9 + $0x268] ss:$16 sps:$4 sm:$0xff]   ;;  %v14046_v52 = vld [vmem:[#allocation9 + $0x28c] ss:$16 sps:$4 sm:$0xff]  }
 0x591   :  { %7847 = vmatprep.subr.bf16.mxu0 %v14034_v23  ;;  %10248 = vmatprep.subr.bf16.mxu1 %v14037_v5  ;;  %v7909_v58 = vsel %vm1013_vm14, %v7908_v56, %v7907_v9  ;;  %v10411_v7 = vsel %vm7445_vm7, %v10410_v1, %v10409_v14  ;;  %v10418_v10 = vrot.slane %v17601_v53, 1  ;;  %v7884_v6 = vrot.slane %v17536_v34, 7  ;;  %v14044_v38 = vld [vmem:[#allocation9 + $0x288] ss:$16 sps:$4 sm:$0xff]   ;;  %v14047_v54 = vld [vmem:[#allocation9 + $0xa80] ss:$16 sps:$4 sm:$0xff]  }
 0x592   :  { %v17711_v35 = vsel %vm7462_vm11, %v7910_v51, %v7909_v58  ;;  %v10413_v39 = vsel %vm1009_vm10, %v10412_v62, %v10411_v7  ;;  %v10421_v0 = vrot.slane %v17632_v41, 7  ;;  %v7886_v3 = vrot.slane %v17558_v49, 6  ;;  %v14055_v9 = vld [vmem:[#allocation9 + $0xaa4] ss:$16 sps:$4 sm:$0xff]  }
 0x593   :  { %v10415_v25 = vsel %vm7451_vm8, %v10414_v32, %v10413_v39  ;;  %v7888_v15 = vrot.slane %v17568_v42, 5  ;;  %v7885_v48 = vsel %vm7445_vm7, %v7884_v6, %v17532_v57  ;;  %v7890_v8 = vrot.slane %v17588_v63, 4 }
 0x594   :  { %7848 = vmatpush1.bf16.msra.mxu0 %v14032_v30  ;;  %10249 = vmatpush1.bf16.msra.mxu1 %v14035_v55  ;;  %v10417_v60 = vsel %vm1011_vm12, %v10416_v31, %v10415_v25  ;;  %v7892_v26 = vrot.slane %v17596_v59, 3  ;;  %v7887_v40 = vsel %vm1009_vm10, %v7886_v3, %v7885_v48  ;;  %v7894_v23 = vrot.slane %v17617_v28, 2  ;;  %v14052_v55 = vld [vmem:[#allocation9 + $0x2ac] ss:$16 sps:$4 sm:$0xff]   ;;  %v14050_v3 = vld [vmem:[#allocation9 + $0x2a8] ss:$16 sps:$4 sm:$0xff]  }
 0x595   :  { %7849 = vmatprep.subr.bf16.mxu0 %v14040_v18  ;;  %10250 = vmatprep.subr.bf16.mxu1 %v14043_v12  ;;  %v10419_v36 = vsel %vm7456_vm9, %v10418_v10, %v10417_v60  ;;  %v7896_v5 = vrot.slane %v17627_v11, 1  ;;  %v7889_v22 = vsel %vm7451_vm8, %v7888_v15, %v7887_v40  ;;  %v10395_v43 = vrot.slane %v17532_v57, 6  ;;  %v14053_v15 = vld [vmem:[#allocation9 + $0xaa0] ss:$16 sps:$4 sm:$0xff]  }
 0x596   :  { %v10420_v20 = vsel %vm1013_vm14, %v17622_v19, %v10419_v36  ;;  %v10396_v56 = vrot.slane %v17536_v34, 5  ;;  %v7891_v46 = vsel %vm1011_vm12, %v7890_v8, %v7889_v22  ;;  %v10398_v51 = vrot.slane %v17558_v49, 4  ;;  %v14058_v8 = vld [vmem:[#allocation9 + $0x2cc] ss:$16 sps:$4 sm:$0xff]  }
 0x597   :  { %v17734_v50 = vsel %vm7462_vm11, %v10421_v0, %v10420_v20  ;;  %v10400_v14 = vrot.slane %v17568_v42, 3  ;;  %v7893_v1 = vsel %vm7456_vm9, %v7892_v26, %v7891_v46  ;;  %v10402_v30 = vrot.slane %v17588_v63, 2  ;;  %v14061_v26 = vld [vmem:[#allocation9 + $0xac4] ss:$16 sps:$4 sm:$0xff]  }
 0x598   :  { %7850 = vmatpush1.bf16.msra.mxu0 %v14038_v27  ;;  %10251 = vmatpush1.bf16.msra.mxu1 %v14041_v13  ;;  %v10397_v62 = vsel %vm7445_vm7, %v10396_v56, %v10395_v43  ;;  %v7895_v32 = vsel %vm1013_vm14, %v7894_v23, %v7893_v1  ;;  %v10404_v18 = vrot.slane %v17596_v59, 1  ;;  %v10407_v12 = vrot.slane %v17627_v11, 7 }
 0x599   :  { %7851 = vmatprep.subr.bf16.mxu0 %v14046_v52  ;;  %10252 = vmatprep.subr.bf16.mxu1 %v14049_v45  ;;  %v10399_v31 = vsel %vm1009_vm10, %v10398_v51, %v10397_v62  ;;  %v17747_v58 = vsel %vm7462_vm11, %v7896_v5, %v7895_v32  ;;  %v10912_v10 = vrot.slane %v17534_v4, 7  ;;  %v10913_v39 = vrot.slane %v17541_v61, 6  ;;  %v14056_v51 = vld [vmem:[#allocation9 + $0x2c8] ss:$16 sps:$4 sm:$0xff]   ;;  %v14064_v62 = vld [vmem:[#allocation9 + $0x2ec] ss:$16 sps:$4 sm:$0xff]  }
 0x59a   :  { %v10401_v7 = vsel %vm7451_vm8, %v10400_v14, %v10399_v31  ;;  %v10915_v25 = vrot.slane %v17562_v17, 5  ;;  %v10917_v0 = vrot.slane %v17573_v16, 4  ;;  %v10919_v60 = vrot.slane %v17592_v44, 3  ;;  %v14059_v14 = vld [vmem:[#allocation9 + $0xac0] ss:$16 sps:$4 sm:$0xff]  }
 0x59b   :  { %v10403_v6 = vsel %vm1011_vm12, %v10402_v30, %v10401_v7  ;;  %v10914_v13 = vsel %vm7445_vm7, %v10913_v39, %v10912_v10  ;;  %v10921_v48 = vrot.slane %v17601_v53, 2  ;;  %v10923_v36 = vrot.slane %v17622_v19, 1  ;;  %v14067_v30 = vld [vmem:[#allocation9 + $0xae4] ss:$16 sps:$4 sm:$0xff]  }
 0x59c   :  { %7852 = vmatpush1.bf16.msra.mxu0 %v14044_v38  ;;  %10253 = vmatpush1.bf16.msra.mxu1 %v14047_v54  ;;  %v10405_v27 = vsel %vm7456_vm9, %v10404_v18, %v10403_v6  ;;  %v10916_v45 = vsel %vm1009_vm10, %v10915_v25, %v10914_v13  ;;  %v10898_v40 = vrot.slane %v17532_v57, 7  ;;  %v10899_v20 = vrot.slane %v17536_v34, 6  ;;  %v14062_v25 = vld [vmem:[#allocation9 + $0x2e8] ss:$16 sps:$4 sm:$0xff]   ;;  %v14070_v13 = vld [vmem:[#allocation9 + $0x30c] ss:$16 sps:$4 sm:$0xff]  }
 0x59d   :  { %7853 = vmatprep.subr.bf16.mxu0 %v14052_v55  ;;  %10254 = vmatprep.subr.bf16.mxu1 %v14055_v9  ;;  %v10406_v52 = vsel %vm1013_vm14, %v17617_v28, %v10405_v27  ;;  %v10918_v5 = vsel %vm7451_vm8, %v10917_v0, %v10916_v45  ;;  %v10901_v22 = vrot.slane %v17558_v49, 5  ;;  %v10903_v56 = vrot.slane %v17568_v42, 4  ;;  %v14065_v0 = vld [vmem:[#allocation9 + $0xae0] ss:$16 sps:$4 sm:$0xff]  }
 0x59e   :  { %v17765_v23 = vsel %vm7462_vm11, %v10407_v12, %v10406_v52  ;;  %v10920_v43 = vsel %vm1011_vm12, %v10919_v60, %v10918_v5  ;;  %v10905_v46 = vrot.slane %v17588_v63, 3  ;;  %v10900_v54 = vsel %vm7445_vm7, %v10899_v20, %v10898_v40  ;;  %v14073_v60 = vld [vmem:[#allocation9 + $0xb04] ss:$16 sps:$4 sm:$0xff]  }
 0x59f   :  { %v10922_v38 = vsel %vm7456_vm9, %v10921_v48, %v10920_v43  ;;  %v10907_v1 = vrot.slane %v17596_v59, 2  ;;  %v10902_v9 = vsel %vm1009_vm10, %v10901_v22, %v10900_v54  ;;  %v10909_v32 = vrot.slane %v17617_v28, 1  ;;  %v14068_v43 = vld [vmem:[#allocation9 + $0x308] ss:$16 sps:$4 sm:$0xff]  }
 0x5a0   :  { %7854 = vmatpush1.bf16.msra.mxu0 %v14050_v3  ;;  %10255 = vmatpush1.bf16.msra.mxu1 %v14053_v15  ;;  %v10924_v55 = vsel %vm1013_vm14, %v10923_v36, %v10922_v38  ;;  %v10904_v18 = vsel %vm7451_vm8, %v10903_v56, %v10902_v9  ;;  %v8397_v12 = vrot.slane %v17534_v4, 2  ;;  %v8398_v7 = vrot.slane %v17541_v61, 1  ;;  %v14071_v56 = vld [vmem:[#allocation9 + $0xb00] ss:$16 sps:$4 sm:$0xff]   ;;  %v14079_v38 = vld [vmem:[#allocation9 + $0xb24] ss:$16 sps:$4 sm:$0xff]  }
 0x5a1   :  { %7855 = vmatprep.subr.bf16.mxu0 %v14058_v8  ;;  %10256 = vmatprep.subr.bf16.mxu1 %v14061_v26  ;;  %v17781_v31 = vsel %vm7462_vm11, %v17632_v41, %v10924_v55  ;;  %v10906_v10 = vsel %vm1011_vm12, %v10905_v46, %v10904_v18  ;;  %v8401_v39 = vrot.slane %v17573_v16, 7  ;;  %v8403_v6 = vrot.slane %v17592_v44, 6 }
 0x5a2   :  { %v10908_v3 = vsel %vm7456_vm9, %v10907_v1, %v10906_v10  ;;  %v8399_v15 = vsel %vm7445_vm7, %v8398_v7, %v8397_v12  ;;  %v8405_v27 = vrot.slane %v17601_v53, 5  ;;  %v8407_v26 = vrot.slane %v17622_v19, 4 }
 0x5a3   :  { %v10910_v48 = vsel %vm1013_vm14, %v10909_v32, %v10908_v3  ;;  %v8400_v8 = vsel %vm1009_vm10, %v17562_v17, %v8399_v15  ;;  %v8409_v36 = vrot.slane %v17632_v41, 3  ;;  %v8383_v5 = vrot.slane %v17532_v57, 2  ;;  %v14082_v3 = vld [vmem:[#allocation9 + $0x34c] ss:$16 sps:$4 sm:$0xff]   ;;  %v14085_v15 = vld [vmem:[#allocation9 + $0xb44] ss:$16 sps:$4 sm:$0xff]  }
 0x5a4   :  { %7856 = vmatpush1.bf16.msra.mxu0 %v14056_v51  ;;  %10257 = vmatpush1.bf16.msra.mxu1 %v14059_v14  ;;  %v17798_v52 = vsel %vm7462_vm11, %v17627_v11, %v10910_v48  ;;  %v8402_v45 = vsel %vm7451_vm8, %v8401_v39, %v8400_v8  ;;  %v8384_v20 = vrot.slane %v17536_v34, 1  ;;  %v8387_v22 = vrot.slane %v17568_v42, 7  ;;  %v14076_v14 = vld [vmem:[#allocation9 + $0x32c] ss:$16 sps:$4 sm:$0xff]   ;;  %v14074_v39 = vld [vmem:[#allocation9 + $0x328] ss:$16 sps:$4 sm:$0xff]  }
 0x5a5   :  { %7857 = vmatprep.subr.bf16.mxu0 %v14064_v62  ;;  %10258 = vmatprep.subr.bf16.mxu1 %v14067_v30  ;;  %v8404_v40 = vsel %vm1011_vm12, %v8403_v6, %v8402_v45  ;;  %v8389_v51 = vrot.slane %v17588_v63, 6  ;;  %v8391_v62 = vrot.slane %v17596_v59, 5  ;;  %v8393_v9 = vrot.slane %v17617_v28, 4  ;;  %v14077_v6 = vld [vmem:[#allocation9 + $0xb20] ss:$16 sps:$4 sm:$0xff]  }
 0x5a6   :  { %v8406_v46 = vsel %vm7456_vm9, %v8405_v27, %v8404_v40  ;;  %v8385_v1 = vsel %vm7445_vm7, %v8384_v20, %v8383_v5  ;;  %v8395_v32 = vrot.slane %v17627_v11, 3  ;;  %v8900_v12 = vrot.slane %v17534_v4, 3  ;;  %v14091_v5 = vld [vmem:[#allocation9 + $0xb64] ss:$16 sps:$4 sm:$0xff]  }
 0x5a7   :  { %v8408_v54 = vsel %vm1013_vm14, %v8407_v26, %v8406_v46  ;;  %v8386_v55 = vsel %vm1009_vm10, %v17558_v49, %v8385_v1  ;;  %v8901_v7 = vrot.slane %v17541_v61, 2  ;;  %v8903_v10 = vrot.slane %v17562_v17, 1 }
 0x5a8   :  { %7858 = vmatpush1.bf16.msra.mxu0 %v14062_v25  ;;  %10259 = vmatpush1.bf16.msra.mxu1 %v14065_v0  ;;  %v17812_v30 = vsel %vm7462_vm11, %v8409_v36, %v8408_v54  ;;  %v8388_v18 = vsel %vm7451_vm8, %v8387_v22, %v8386_v55  ;;  %v8906_v0 = vrot.slane %v17592_v44, 7  ;;  %v8908_v61 = vrot.slane %v17601_v53, 6  ;;  %v14083_v36 = vld [vmem:[#allocation9 + $0xb40] ss:$16 sps:$4 sm:$0xff]   ;;  %v14097_v54 = vld [vmem:[#allocation9 + $0xb84] ss:$16 sps:$4 sm:$0xff]  }
 0x5a9   :  { %7859 = vmatprep.subr.bf16.mxu0 %v14070_v13  ;;  %10260 = vmatprep.subr.bf16.mxu1 %v14073_v60  ;;  %v8390_v25 = vsel %vm1011_vm12, %v8389_v51, %v8388_v18  ;;  %v8902_v4 = vsel %vm7445_vm7, %v8901_v7, %v8900_v12  ;;  %v8910_v17 = vrot.slane %v17622_v19, 5  ;;  %v8912_v48 = vrot.slane %v17632_v41, 4  ;;  %v14080_v19 = vld [vmem:[#allocation9 + $0x348] ss:$16 sps:$4 sm:$0xff]   ;;  %v14100_v55 = vld [vmem:[#allocation9 + $0x3ac] ss:$16 sps:$4 sm:$0xff]  }
 0x5aa   :  { %v8392_v27 = vsel %vm7456_vm9, %v8391_v62, %v8390_v25  ;;  %v8904_v60 = vsel %vm1009_vm10, %v8903_v10, %v8902_v4  ;;  %v8886_v44 = vrot.slane %v17532_v57, 3  ;;  %v8887_v45 = vrot.slane %v17536_v34, 2  ;;  %v14088_v57 = vld [vmem:[#allocation9 + $0x36c] ss:$16 sps:$4 sm:$0xff]   ;;  %v14086_v51 = vld [vmem:[#allocation9 + $0x368] ss:$16 sps:$4 sm:$0xff]  }
 0x5ab   :  { %v8394_v13 = vsel %vm1013_vm14, %v8393_v9, %v8392_v27  ;;  %v8905_v26 = vsel %vm7451_vm8, %v17573_v16, %v8904_v60  ;;  %v8889_v53 = vrot.slane %v17558_v49, 1  ;;  %v8892_v41 = vrot.slane %v17588_v63, 7  ;;  %v14103_v9 = vld [vmem:[#allocation9 + $0xba4] ss:$16 sps:$4 sm:$0xff]   ;;  %v14101_v18 = vld [vmem:[#allocation9 + $0xba0] ss:$16 sps:$4 sm:$0xff]  }
 0x5ac   :  { %7860 = vmatpush1.bf16.msra.mxu0 %v14068_v43  ;;  %10261 = vmatpush1.bf16.msra.mxu1 %v14071_v56  ;;  %v17833_v8 = vsel %vm7462_vm11, %v8395_v32, %v8394_v13  ;;  %v8907_v40 = vsel %vm1011_vm12, %v8906_v0, %v8905_v26  ;;  %v8888_v16 = vsel %vm7445_vm7, %v8887_v45, %v8886_v44  ;;  %v8894_v34 = vrot.slane %v17596_v59, 6  ;;  %v14098_v32 = vld [vmem:[#allocation9 + $0x3a8] ss:$16 sps:$4 sm:$0xff]   ;;  %v14106_v12 = vld [vmem:[#allocation9 + $0x3cc] ss:$16 sps:$4 sm:$0xff]  }
 0x5ad   :  { %7861 = vmatprep.subr.bf16.mxu0 %v14076_v14  ;;  %10262 = vmatprep.subr.bf16.mxu1 %v14079_v38  ;;  %v8909_v20 = vsel %vm7456_vm9, %v8908_v61, %v8907_v40  ;;  %v8890_v22 = vsel %vm1009_vm10, %v8889_v53, %v8888_v16  ;;  %v8896_v43 = vrot.slane %v17617_v28, 5  ;;  %v8898_v46 = vrot.slane %v17627_v11, 4  ;;  %v14089_v14 = vld [vmem:[#allocation9 + $0xb60] ss:$16 sps:$4 sm:$0xff]   ;;  %v14094_v38 = vld [vmem:[#allocation9 + $0x38c] ss:$16 sps:$4 sm:$0xff]  }
 0x5ae   :  { %v8911_v49 = vsel %vm1013_vm14, %v8910_v17, %v8909_v20  ;;  %v8891_v63 = vsel %vm7451_vm8, %v17568_v42, %v8890_v22  ;;  %v14092_v42 = vld [vmem:[#allocation9 + $0x388] ss:$16 sps:$4 sm:$0xff]   ;;  %v14095_v11 = vld [vmem:[#allocation9 + $0xb80] ss:$16 sps:$4 sm:$0xff]   ;;  %v14109_v7 = vld [vmem:[#allocation9 + $0xbc4] ss:$16 sps:$4 sm:$0xff]   ;;  %v17861_v61 = vpack.c.b16 %v17702_v24, %v17702_v24  ;;  %v17865_v13 = vpack.c.b16 %v17711_v35, %v17711_v35 }
 0x5af   :  { %v17848_v56 = vsel %vm7462_vm11, %v8912_v48, %v8911_v49  ;;  %v8893_v59 = vsel %vm1011_vm12, %v8892_v41, %v8891_v63  ;;  %v14104_v10 = vld [vmem:[#allocation9 + $0x3c8] ss:$16 sps:$4 sm:$0xff]   ;;  %v14115_v25 = vld [vmem:[#allocation9 + $0xbe4] ss:$16 sps:$4 sm:$0xff]   ;;  %v14116_v4 = vld [vmem:[#allocation9] ss:$16 sps:$4 sm:$0xff]   ;;  %v17871_v44 = vpack.c.b16 %v17734_v50, %v17734_v50 }
 0x5b0   :  { %7862 = vmatpush1.bf16.msra.mxu0 %v14074_v39  ;;  %10263 = vmatpush1.bf16.msra.mxu1 %v14077_v6  ;;  %v8895_v28 = vsel %vm7456_vm9, %v8894_v34, %v8893_v59  ;;  %v14107_v39 = vld [vmem:[#allocation9 + $0xbc0] ss:$16 sps:$4 sm:$0xff]   ;;  %v14112_v6 = vld [vmem:[#allocation9 + $0x3ec] ss:$16 sps:$4 sm:$0xff]   ;;  %v14110_v0 = vld [vmem:[#allocation9 + $0x3e8] ss:$16 sps:$4 sm:$0xff]  }
 0x5b1   :  { %7863 = vmatprep.subr.bf16.mxu0 %v14082_v3  ;;  %10264 = vmatprep.subr.bf16.mxu1 %v14085_v15  ;;  %v8897_v1 = vsel %vm1013_vm14, %v8896_v43, %v8895_v28  ;;  %v14113_v3 = vld [vmem:[#allocation9 + $0xbe0] ss:$16 sps:$4 sm:$0xff]   ;;  %v14118_v15 = vld [vmem:[#allocation9 + $0x4] ss:$16 sps:$4 sm:$0xff]  }
 0x5b2   :  { %v17857_v62 = vsel %vm7462_vm11, %v8898_v46, %v8897_v1  ;;  %v14121_v27 = vld [vmem:[#allocation9 + $0xc04] ss:$16 sps:$4 sm:$0xff]   ;;  %v14119_v17 = vld [vmem:[#allocation9 + $0xc00] ss:$16 sps:$4 sm:$0xff]  }
 0x5b3   :  { %v14124_v60 = vld [vmem:[#allocation9 + $0x24] ss:$16 sps:$4 sm:$0xff]   ;;  %v14122_v24 = vld [vmem:[#allocation9 + $0x20] ss:$16 sps:$4 sm:$0xff]  }
 0x5b4   :  { %7864 = vmatpush1.bf16.msra.mxu0 %v14080_v19  ;;  %10265 = vmatpush1.bf16.msra.mxu1 %v14083_v36  ;;  %v14127_v48 = vld [vmem:[#allocation9 + $0xc24] ss:$16 sps:$4 sm:$0xff]   ;;  %v14125_v26 = vld [vmem:[#allocation9 + $0xc20] ss:$16 sps:$4 sm:$0xff]  }
 0x5b5   :  { %7865 = vmatprep.subr.bf16.mxu0 %v14088_v57  ;;  %10266 = vmatprep.subr.bf16.mxu1 %v14091_v5  ;;  %v14130_v35 = vld [vmem:[#allocation9 + $0x44] ss:$16 sps:$4 sm:$0xff]   ;;  %v14131_v53 = vld [vmem:[#allocation9 + $0xc40] ss:$16 sps:$4 sm:$0xff]  }
 0x5b6   :  { %v14133_v45 = vld [vmem:[#allocation9 + $0xc44] ss:$16 sps:$4 sm:$0xff]   ;;  %v14134_v36 = vld [vmem:[#allocation9 + $0x60] ss:$16 sps:$4 sm:$0xff]  }
 0x5b7   :  { %v14136_v19 = vld [vmem:[#allocation9 + $0x64] ss:$16 sps:$4 sm:$0xff]   ;;  %v14137_v40 = vld [vmem:[#allocation9 + $0xc60] ss:$16 sps:$4 sm:$0xff]  }
 0x5b8   :  { %7866 = vmatpush1.bf16.msra.mxu0 %v14086_v51  ;;  %10267 = vmatpush1.bf16.msra.mxu1 %v14089_v14  ;;  %v14139_v50 = vld [vmem:[#allocation9 + $0xc64] ss:$16 sps:$4 sm:$0xff]   ;;  %v14140_v5 = vld [vmem:[#allocation9 + $0x80] ss:$16 sps:$4 sm:$0xff]  }
 0x5b9   :  { %7867 = vmatprep.subr.bf16.mxu0 %v14094_v38  ;;  %10268 = vmatprep.subr.bf16.mxu1 %v14097_v54  ;;  %v14142_v41 = vld [vmem:[#allocation9 + $0x84] ss:$16 sps:$4 sm:$0xff]   ;;  %v14143_v20 = vld [vmem:[#allocation9 + $0xc80] ss:$16 sps:$4 sm:$0xff]  }
 0x5ba   :  { %v14145_v57 = vld [vmem:[#allocation9 + $0xc84] ss:$16 sps:$4 sm:$0xff]   ;;  %v14146_v49 = vld [vmem:[#allocation9 + $0xa0] ss:$16 sps:$4 sm:$0xff]  }
 0x5bb   :  { %v14148_v16 = vld [vmem:[#allocation9 + $0xa4] ss:$16 sps:$4 sm:$0xff]   ;;  %v14149_v22 = vld [vmem:[#allocation9 + $0xca0] ss:$16 sps:$4 sm:$0xff]  }
 0x5bc   :  { %7868 = vmatpush1.bf16.msra.mxu0 %v14092_v42  ;;  %10269 = vmatpush1.bf16.msra.mxu1 %v14095_v11  ;;  %v14151_v34 = vld [vmem:[#allocation9 + $0xca4] ss:$16 sps:$4 sm:$0xff]   ;;  %v14152_v46 = vld [vmem:[#allocation9 + $0xc0] ss:$16 sps:$4 sm:$0xff]  }
 0x5bd   :  { %7869 = vmatprep.subr.bf16.mxu0 %v14100_v55  ;;  %10270 = vmatprep.subr.bf16.mxu1 %v14103_v9  ;;  %v14154_v43 = vld [vmem:[#allocation9 + $0xc4] ss:$16 sps:$4 sm:$0xff]   ;;  %v14155_v51 = vld [vmem:[#allocation9 + $0xcc0] ss:$16 sps:$4 sm:$0xff]  }
 0x5be   :  { %v14157_v63 = vld [vmem:[#allocation9 + $0xcc4] ss:$16 sps:$4 sm:$0xff]   ;;  %v14158_v38 = vld [vmem:[#allocation9 + $0xe0] ss:$16 sps:$4 sm:$0xff]  }
 0x5bf   :  { %v14160_v14 = vld [vmem:[#allocation9 + $0xe4] ss:$16 sps:$4 sm:$0xff]   ;;  %v14161_v54 = vld [vmem:[#allocation9 + $0xce0] ss:$16 sps:$4 sm:$0xff]  }
 0x5c0   :  { %7870 = vmatpush1.bf16.msra.mxu0 %v14098_v32  ;;  %10271 = vmatpush1.bf16.msra.mxu1 %v14101_v18  ;;  %v14163_v59 = vld [vmem:[#allocation9 + $0xce4] ss:$16 sps:$4 sm:$0xff]   ;;  %v14164_v42 = vld [vmem:[#allocation9 + $0x100] ss:$16 sps:$4 sm:$0xff]  }
 0x5c1   :  { %7871 = vmatprep.subr.bf16.mxu0 %v14106_v12  ;;  %10272 = vmatprep.subr.bf16.mxu1 %v14109_v7  ;;  %v14166_v28 = vld [vmem:[#allocation9 + $0x104] ss:$16 sps:$4 sm:$0xff]   ;;  %v14167_v11 = vld [vmem:[#allocation9 + $0xd00] ss:$16 sps:$4 sm:$0xff]  }
 0x5c2   :  { %v14169_v1 = vld [vmem:[#allocation9 + $0xd04] ss:$16 sps:$4 sm:$0xff]   ;;  %v14170_v32 = vld [vmem:[#allocation9 + $0x120] ss:$16 sps:$4 sm:$0xff]  }
 0x5c3   :  { %v14172_v55 = vld [vmem:[#allocation9 + $0x124] ss:$16 sps:$4 sm:$0xff]   ;;  %v14173_v18 = vld [vmem:[#allocation9 + $0xd20] ss:$16 sps:$4 sm:$0xff]  }
 0x5c4   :  { %7872 = vmatpush1.bf16.msra.mxu0 %v14104_v10  ;;  %10273 = vmatpush1.bf16.msra.mxu1 %v14107_v39  ;;  %v14175_v9 = vld [vmem:[#allocation9 + $0xd24] ss:$16 sps:$4 sm:$0xff]   ;;  %v14176_v10 = vld [vmem:[#allocation9 + $0x140] ss:$16 sps:$4 sm:$0xff]  }
 0x5c5   :  { %7873 = vmatprep.subr.bf16.mxu0 %v14112_v6  ;;  %10274 = vmatprep.subr.bf16.mxu1 %v14115_v25  ;;  %v14178_v12 = vld [vmem:[#allocation9 + $0x144] ss:$16 sps:$4 sm:$0xff]   ;;  %v14179_v39 = vld [vmem:[#allocation9 + $0xd40] ss:$16 sps:$4 sm:$0xff]  }
 0x5c6   :  { %v14181_v7 = vld [vmem:[#allocation9 + $0xd44] ss:$16 sps:$4 sm:$0xff]  }
 0x5c7   :  { %v14184_v6 = vld [vmem:[#allocation9 + $0x164] ss:$16 sps:$4 sm:$0xff]  }
 0x5c8   :  { %7874 = vmatpush1.bf16.msra.mxu0 %v14110_v0  ;;  %10275 = vmatpush1.bf16.msra.mxu1 %v14113_v3  ;;  %v14187_v25 = vld [vmem:[#allocation9 + $0xd64] ss:$16 sps:$4 sm:$0xff]   ;;  %v14182_v0 = vld [vmem:[#allocation9 + $0x160] ss:$16 sps:$4 sm:$0xff]  }
 0x5c9   :  { %8236 = vmatprep.subr.bf16.mxu0 %v14118_v15  ;;  %10747 = vmatprep.subr.bf16.mxu1 %v14121_v27  ;;  %v14185_v3 = vld [vmem:[#allocation9 + $0xd60] ss:$16 sps:$4 sm:$0xff]   ;;  %v14190_v15 = vld [vmem:[#allocation9 + $0x184] ss:$16 sps:$4 sm:$0xff]  }
 0x5ca   :  { %v14193_v27 = vld [vmem:[#allocation9 + $0xd84] ss:$16 sps:$4 sm:$0xff]  }
 0x5cb   :  { %7876 = vmatmul.mubr.bf16.vlgmr.msra.gmra.mrb[40].mxu0 %v17651_v37  ;;  %10277 = vmatmul.mubr.bf16.vlgmr.msra.gmra.mrb[56].mxu1 %v17861_v61  ;;  %v14128_v37 = vld [vmem:[#allocation9 + $0x40] ss:$16 sps:$4 sm:$0xff]  }
 0x5cc   :  { %8237 = vmatpush1.bf16.msra.mxu0 %v14116_v4  ;;  %8268 = vmatprep.mubr.bf16.mxu0 %v17865_v13  ;;  %v14188_v4 = vld [vmem:[#allocation9 + $0x180] ss:$16 sps:$4 sm:$0xff]  }
 0x5cd   :  { %10748 = vmatpush1.bf16.msra.mxu1 %v14119_v17  ;;  %10779 = vmatprep.mubr.bf16.mxu1 %v17871_v44  ;;  %v14191_v17 = vld [vmem:[#allocation9 + $0xd80] ss:$16 sps:$4 sm:$0xff]  }
 0x5ce   :  { %8238 = vmatprep.subr.bf16.mxu0 %v14124_v60  ;;  %10749 = vmatprep.subr.bf16.mxu1 %v14127_v48  ;;  %v14196_v60 = vld [vmem:[#allocation9 + $0x1a4] ss:$16 sps:$4 sm:$0xff]  }
 0x5cf   :  { %v14199_v48 = vld [vmem:[#allocation9 + $0xda4] ss:$16 sps:$4 sm:$0xff]  }
 0x5d0   :  { %8239 = vmatpush1.bf16.msra.mxu0 %v14122_v24  ;;  %v14194_v24 = vld [vmem:[#allocation9 + $0x1a0] ss:$16 sps:$4 sm:$0xff]  }
 0x5d1   :  { %10750 = vmatpush1.bf16.msra.mxu1 %v14125_v26  ;;  %8240 = vmatprep.subr.bf16.mxu0 %v14130_v35  ;;  %v14197_v26 = vld [vmem:[#allocation9 + $0xda0] ss:$16 sps:$4 sm:$0xff]   ;;  %v14202_v35 = vld [vmem:[#allocation9 + $0x1c4] ss:$16 sps:$4 sm:$0xff]  }
 0x5d2   :  { %10751 = vmatprep.subr.bf16.mxu1 %v14133_v45  ;;  %v14205_v45 = vld [vmem:[#allocation9 + $0xdc4] ss:$16 sps:$4 sm:$0xff]  }
 0x5d4   :  { %8241 = vmatpush1.bf16.msra.mxu0 %v14128_v37  ;;  %v14200_v37 = vld [vmem:[#allocation9 + $0x1c0] ss:$16 sps:$4 sm:$0xff]  }
 0x5d5   :  { %10752 = vmatpush1.bf16.msra.mxu1 %v14131_v53  ;;  %8242 = vmatprep.subr.bf16.mxu0 %v14136_v19  ;;  %v14203_v53 = vld [vmem:[#allocation9 + $0xdc0] ss:$16 sps:$4 sm:$0xff]   ;;  %v14208_v19 = vld [vmem:[#allocation9 + $0x1e4] ss:$16 sps:$4 sm:$0xff]  }
 0x5d6   :  { %10753 = vmatprep.subr.bf16.mxu1 %v14139_v50  ;;  %v14211_v50 = vld [vmem:[#allocation9 + $0xde4] ss:$16 sps:$4 sm:$0xff]  }
 0x5d8   :  { %8243 = vmatpush1.bf16.msra.mxu0 %v14134_v36  ;;  %v14206_v36 = vld [vmem:[#allocation9 + $0x1e0] ss:$16 sps:$4 sm:$0xff]  }
 0x5d9   :  { %10754 = vmatpush1.bf16.msra.mxu1 %v14137_v40  ;;  %8244 = vmatprep.subr.bf16.mxu0 %v14142_v41  ;;  %v14209_v40 = vld [vmem:[#allocation9 + $0xde0] ss:$16 sps:$4 sm:$0xff]   ;;  %v14214_v41 = vld [vmem:[#allocation9 + $0xc] ss:$16 sps:$4 sm:$0xff]  }
 0x5da   :  { %10755 = vmatprep.subr.bf16.mxu1 %v14145_v57  ;;  %v14217_v57 = vld [vmem:[#allocation9 + $0xe04] ss:$16 sps:$4 sm:$0xff]  }
 0x5dc   :  { %8245 = vmatpush1.bf16.msra.mxu0 %v14140_v5  ;;  %v14212_v5 = vld [vmem:[#allocation9 + $0x8] ss:$16 sps:$4 sm:$0xff]  }
 0x5dd   :  { %10756 = vmatpush1.bf16.msra.mxu1 %v14143_v20  ;;  %8246 = vmatprep.subr.bf16.mxu0 %v14148_v16  ;;  %v17877_v20 = vpack.c.b16 %v17747_v58, %v17747_v58  ;;  %v14215_v16 = vld [vmem:[#allocation9 + $0xe00] ss:$16 sps:$4 sm:$0xff]   ;;  %v14218_v58 = vld [vmem:[#allocation9 + $0x28] ss:$16 sps:$4 sm:$0xff]  }
 0x5de   :  { %10757 = vmatprep.subr.bf16.mxu1 %v14151_v34  ;;  %v17881_v34 = vpack.c.b16 %v17765_v23, %v17765_v23  ;;  %v14229_v23 = vld [vmem:[#allocation9 + $0xe44] ss:$16 sps:$4 sm:$0xff]  }
 0x5e0   :  { %8247 = vmatpush1.bf16.msra.mxu0 %v14146_v49  ;;  %v14220_v49 = vld [vmem:[#allocation9 + $0x2c] ss:$16 sps:$4 sm:$0xff]  }
 0x5e1   :  { %10758 = vmatpush1.bf16.msra.mxu1 %v14149_v22  ;;  %8248 = vmatprep.subr.bf16.mxu0 %v14154_v43  ;;  %v14223_v22 = vld [vmem:[#allocation9 + $0xe24] ss:$16 sps:$4 sm:$0xff]   ;;  %v17887_v43 = vpack.c.b16 %v17781_v31, %v17781_v31 }
 0x5e2   :  { %10759 = vmatprep.subr.bf16.mxu1 %v14157_v63  ;;  %v14221_v63 = vld [vmem:[#allocation9 + $0xe20] ss:$16 sps:$4 sm:$0xff]   ;;  %v14235_v31 = vld [vmem:[#allocation9 + $0xe64] ss:$16 sps:$4 sm:$0xff]  }
 0x5e4   :  { %8249 = vmatpush1.bf16.msra.mxu0 %v14152_v46  ;;  %v14226_v46 = vld [vmem:[#allocation9 + $0x4c] ss:$16 sps:$4 sm:$0xff]  }
 0x5e5   :  { %10760 = vmatpush1.bf16.msra.mxu1 %v14155_v51  ;;  %8250 = vmatprep.subr.bf16.mxu0 %v14160_v14  ;;  %v14224_v51 = vld [vmem:[#allocation9 + $0x48] ss:$16 sps:$4 sm:$0xff]   ;;  %v14227_v14 = vld [vmem:[#allocation9 + $0xe40] ss:$16 sps:$4 sm:$0xff]  }
 0x5e6   :  { %10761 = vmatprep.subr.bf16.mxu1 %v14163_v59  ;;  %v14232_v59 = vld [vmem:[#allocation9 + $0x6c] ss:$16 sps:$4 sm:$0xff]  }
 0x5e8   :  { %8251 = vmatpush1.bf16.msra.mxu0 %v14158_v38  ;;  %v14230_v38 = vld [vmem:[#allocation9 + $0x68] ss:$16 sps:$4 sm:$0xff]  }
 0x5e9   :  { %10762 = vmatpush1.bf16.msra.mxu1 %v14161_v54  ;;  %8252 = vmatprep.subr.bf16.mxu0 %v14166_v28  ;;  %v14238_v54 = vld [vmem:[#allocation9 + $0x8c] ss:$16 sps:$4 sm:$0xff]   ;;  %v14241_v28 = vld [vmem:[#allocation9 + $0xe84] ss:$16 sps:$4 sm:$0xff]  }
 0x5ea   :  { %10763 = vmatprep.subr.bf16.mxu1 %v14169_v1  ;;  %v14236_v1 = vld [vmem:[#allocation9 + $0x88] ss:$16 sps:$4 sm:$0xff]  }
 0x5ec   :  { %8253 = vmatpush1.bf16.msra.mxu0 %v14164_v42  ;;  %v14239_v42 = vld [vmem:[#allocation9 + $0xe80] ss:$16 sps:$4 sm:$0xff]  }
 0x5ed   :  { %10764 = vmatpush1.bf16.msra.mxu1 %v14167_v11  ;;  %8254 = vmatprep.subr.bf16.mxu0 %v14172_v55  ;;  %v14244_v11 = vld [vmem:[#allocation9 + $0xac] ss:$16 sps:$4 sm:$0xff]   ;;  %v14247_v55 = vld [vmem:[#allocation9 + $0xea4] ss:$16 sps:$4 sm:$0xff]  }
 0x5ee   :  { %10765 = vmatprep.subr.bf16.mxu1 %v14175_v9  ;;  %v14242_v9 = vld [vmem:[#allocation9 + $0xa8] ss:$16 sps:$4 sm:$0xff]  }
 0x5f0   :  { %8255 = vmatpush1.bf16.msra.mxu0 %v14170_v32  ;;  %v14245_v32 = vld [vmem:[#allocation9 + $0xea0] ss:$16 sps:$4 sm:$0xff]  }
 0x5f1   :  { %10766 = vmatpush1.bf16.msra.mxu1 %v14173_v18  ;;  %8256 = vmatprep.subr.bf16.mxu0 %v14178_v12  ;;  %v14250_v18 = vld [vmem:[#allocation9 + $0xcc] ss:$16 sps:$4 sm:$0xff]   ;;  %v14253_v12 = vld [vmem:[#allocation9 + $0xec4] ss:$16 sps:$4 sm:$0xff]  }
 0x5f2   :  { %10767 = vmatprep.subr.bf16.mxu1 %v14181_v7  ;;  %v14248_v7 = vld [vmem:[#allocation9 + $0xc8] ss:$16 sps:$4 sm:$0xff]  }
 0x5f4   :  { %8257 = vmatpush1.bf16.msra.mxu0 %v14176_v10  ;;  %v14251_v10 = vld [vmem:[#allocation9 + $0xec0] ss:$16 sps:$4 sm:$0xff]  }
 0x5f5   :  { %10768 = vmatpush1.bf16.msra.mxu1 %v14179_v39  ;;  %8258 = vmatprep.subr.bf16.mxu0 %v14184_v6  ;;  %v14256_v39 = vld [vmem:[#allocation9 + $0xec] ss:$16 sps:$4 sm:$0xff]   ;;  %v14259_v6 = vld [vmem:[#allocation9 + $0xee4] ss:$16 sps:$4 sm:$0xff]  }
 0x5f6   :  { %10769 = vmatprep.subr.bf16.mxu1 %v14187_v25  ;;  %v14254_v25 = vld [vmem:[#allocation9 + $0xe8] ss:$16 sps:$4 sm:$0xff]  }
 0x5f8   :  { %8259 = vmatpush1.bf16.msra.mxu0 %v14182_v0  ;;  %v14257_v0 = vld [vmem:[#allocation9 + $0xee0] ss:$16 sps:$4 sm:$0xff]  }
 0x5f9   :  { %10770 = vmatpush1.bf16.msra.mxu1 %v14185_v3  ;;  %8260 = vmatprep.subr.bf16.mxu0 %v14190_v15  ;;  %v14262_v3 = vld [vmem:[#allocation9 + $0x10c] ss:$16 sps:$4 sm:$0xff]   ;;  %v14265_v15 = vld [vmem:[#allocation9 + $0xf04] ss:$16 sps:$4 sm:$0xff]  }
 0x5fa   :  { %10771 = vmatprep.subr.bf16.mxu1 %v14193_v27  ;;  %v14260_v27 = vld [vmem:[#allocation9 + $0x108] ss:$16 sps:$4 sm:$0xff]  }
 0x5fc   :  { %8261 = vmatpush1.bf16.msra.mxu0 %v14188_v4  ;;  %v14263_v4 = vld [vmem:[#allocation9 + $0xf00] ss:$16 sps:$4 sm:$0xff]  }
 0x5fd   :  { %10772 = vmatpush1.bf16.msra.mxu1 %v14191_v17  ;;  %8262 = vmatprep.subr.bf16.mxu0 %v14196_v60  ;;  %v14268_v17 = vld [vmem:[#allocation9 + $0x12c] ss:$16 sps:$4 sm:$0xff]   ;;  %v14271_v60 = vld [vmem:[#allocation9 + $0xf24] ss:$16 sps:$4 sm:$0xff]  }
 0x5fe   :  { %10773 = vmatprep.subr.bf16.mxu1 %v14199_v48  ;;  %v14266_v48 = vld [vmem:[#allocation9 + $0x128] ss:$16 sps:$4 sm:$0xff]  }
 0x600   :  { %8263 = vmatpush1.bf16.msra.mxu0 %v14194_v24  ;;  %v14269_v24 = vld [vmem:[#allocation9 + $0xf20] ss:$16 sps:$4 sm:$0xff]  }
 0x601   :  { %10774 = vmatpush1.bf16.msra.mxu1 %v14197_v26  ;;  %8264 = vmatprep.subr.bf16.mxu0 %v14202_v35  ;;  %v14274_v26 = vld [vmem:[#allocation9 + $0x14c] ss:$16 sps:$4 sm:$0xff]   ;;  %v14277_v35 = vld [vmem:[#allocation9 + $0xf44] ss:$16 sps:$4 sm:$0xff]  }
 0x602   :  { %10775 = vmatprep.subr.bf16.mxu1 %v14205_v45  ;;  %v14272_v45 = vld [vmem:[#allocation9 + $0x148] ss:$16 sps:$4 sm:$0xff]  }
 0x604   :  { %8265 = vmatpush1.bf16.msra.mxu0 %v14200_v37  ;;  %v14275_v37 = vld [vmem:[#allocation9 + $0xf40] ss:$16 sps:$4 sm:$0xff]  }
 0x605   :  { %10776 = vmatpush1.bf16.msra.mxu1 %v14203_v53  ;;  %8266 = vmatprep.subr.bf16.mxu0 %v14208_v19  ;;  %v14280_v53 = vld [vmem:[#allocation9 + $0x16c] ss:$16 sps:$4 sm:$0xff]   ;;  %v14283_v19 = vld [vmem:[#allocation9 + $0xf64] ss:$16 sps:$4 sm:$0xff]  }
 0x606   :  { %10777 = vmatprep.subr.bf16.mxu1 %v14211_v50  ;;  %v14278_v50 = vld [vmem:[#allocation9 + $0x168] ss:$16 sps:$4 sm:$0xff]  }
 0x608   :  { %8267 = vmatpush1.bf16.msra.mxu0 %v14206_v36  ;;  %v14281_v36 = vld [vmem:[#allocation9 + $0xf60] ss:$16 sps:$4 sm:$0xff]  }
 0x609   :  { %10778 = vmatpush1.bf16.msra.mxu1 %v14209_v40  ;;  %8277 = vmatprep.subr.bf16.mxu0 %v14214_v41  ;;  %v14286_v40 = vld [vmem:[#allocation9 + $0x18c] ss:$16 sps:$4 sm:$0xff]   ;;  %v14289_v41 = vld [vmem:[#allocation9 + $0xf84] ss:$16 sps:$4 sm:$0xff]  }
 0x60a   :  { %11250 = vmatprep.subr.bf16.mxu1 %v14217_v57  ;;  %v14284_v57 = vld [vmem:[#allocation9 + $0x188] ss:$16 sps:$4 sm:$0xff]  }
 0x60b   :  { %8269 = vmatmul.mubr.bf16.vlgmr.msra.gmra.mrb[44].mxu0 %v17877_v20 }
 0x60c   :  { %10780 = vmatmul.mubr.bf16.vlgmr.msra.gmra.mrb[60].mxu1 %v17881_v34  ;;  %8278 = vmatpush1.bf16.msra.mxu0 %v14212_v5  ;;  %v14287_v5 = vld [vmem:[#allocation9 + $0xf80] ss:$16 sps:$4 sm:$0xff]  }
 0x60d   :  { %8309 = vmatprep.mubr.bf16.mxu0 %v17865_v13  ;;  %11251 = vmatpush1.bf16.msra.mxu1 %v14215_v16  ;;  %v14233_v13 = vld [vmem:[#allocation9 + $0xe60] ss:$16 sps:$4 sm:$0xff]   ;;  %v14292_v16 = vld [vmem:[#allocation9 + $0x1ac] ss:$16 sps:$4 sm:$0xff]  }
 0x60e   :  { %11282 = vmatprep.mubr.bf16.mxu1 %v17887_v43  ;;  %8279 = vmatprep.subr.bf16.mxu0 %v14220_v49  ;;  %v14295_v49 = vld [vmem:[#allocation9 + $0xfa4] ss:$16 sps:$4 sm:$0xff]  }
 0x60f   :  { %11252 = vmatprep.subr.bf16.mxu1 %v14223_v22  ;;  %v14290_v22 = vld [vmem:[#allocation9 + $0x1a8] ss:$16 sps:$4 sm:$0xff]  }
 0x610   :  { %8280 = vmatpush1.bf16.msra.mxu0 %v14218_v58  ;;  %v14293_v58 = vld [vmem:[#allocation9 + $0xfa0] ss:$16 sps:$4 sm:$0xff]  }
 0x611   :  { %11253 = vmatpush1.bf16.msra.mxu1 %v14221_v63  ;;  %8281 = vmatprep.subr.bf16.mxu0 %v14226_v46  ;;  %v14298_v63 = vld [vmem:[#allocation9 + $0x1cc] ss:$16 sps:$4 sm:$0xff]   ;;  %v14301_v46 = vld [vmem:[#allocation9 + $0xfc4] ss:$16 sps:$4 sm:$0xff]  }
 0x612   :  { %11254 = vmatprep.subr.bf16.mxu1 %v14229_v23  ;;  %v14296_v23 = vld [vmem:[#allocation9 + $0x1c8] ss:$16 sps:$4 sm:$0xff]  }
 0x614   :  { %8282 = vmatpush1.bf16.msra.mxu0 %v14224_v51  ;;  %v14299_v51 = vld [vmem:[#allocation9 + $0xfc0] ss:$16 sps:$4 sm:$0xff]  }
 0x615   :  { %11255 = vmatpush1.bf16.msra.mxu1 %v14227_v14  ;;  %8283 = vmatprep.subr.bf16.mxu0 %v14232_v59  ;;  %v14304_v14 = vld [vmem:[#allocation9 + $0x1ec] ss:$16 sps:$4 sm:$0xff]   ;;  %v14307_v59 = vld [vmem:[#allocation9 + $0xfe4] ss:$16 sps:$4 sm:$0xff]  }
 0x616   :  { %11256 = vmatprep.subr.bf16.mxu1 %v14235_v31  ;;  %v14302_v31 = vld [vmem:[#allocation9 + $0x1e8] ss:$16 sps:$4 sm:$0xff]  }
 0x618   :  { %8284 = vmatpush1.bf16.msra.mxu0 %v14230_v38  ;;  %v14305_v38 = vld [vmem:[#allocation9 + $0xfe0] ss:$16 sps:$4 sm:$0xff]  }
 0x619   :  { %11257 = vmatpush1.bf16.msra.mxu1 %v14233_v13  ;;  %8285 = vmatprep.subr.bf16.mxu0 %v14238_v54  ;;  %v14310_v13 = vld [vmem:[#allocation9 + $0x404] ss:$16 sps:$4 sm:$0xff]   ;;  %v14308_v54 = vld [vmem:[#allocation9 + $0x400] ss:$16 sps:$4 sm:$0xff]  }
 0x61a   :  { %11258 = vmatprep.subr.bf16.mxu1 %v14241_v28  ;;  %v14313_v28 = vld [vmem:[#allocation9 + $0x424] ss:$16 sps:$4 sm:$0xff]  }
 0x61c   :  { %8286 = vmatpush1.bf16.msra.mxu0 %v14236_v1  ;;  %v17893_v1 = vpack.c.b16 %v17798_v52, %v17798_v52  ;;  %v14317_v52 = vld [vmem:[#allocation9 + $0x460] ss:$16 sps:$4 sm:$0xff]  }
 0x61d   :  { %11259 = vmatpush1.bf16.msra.mxu1 %v14239_v42  ;;  %8287 = vmatprep.subr.bf16.mxu0 %v14244_v11  ;;  %v17898_v42 = vpack.c.b16 %v17812_v30, %v17812_v30  ;;  %v14311_v11 = vld [vmem:[#allocation9 + $0x420] ss:$16 sps:$4 sm:$0xff]   ;;  %v14325_v30 = vld [vmem:[#allocation9 + $0x4a4] ss:$16 sps:$4 sm:$0xff]  }
 0x61e   :  { %11260 = vmatprep.subr.bf16.mxu1 %v14247_v55  ;;  %v14316_v55 = vld [vmem:[#allocation9 + $0x444] ss:$16 sps:$4 sm:$0xff]  }
 0x620   :  { %8288 = vmatpush1.bf16.msra.mxu0 %v14242_v9  ;;  %v14314_v9 = vld [vmem:[#allocation9 + $0x440] ss:$16 sps:$4 sm:$0xff]  }
 0x621   :  { %11261 = vmatpush1.bf16.msra.mxu1 %v14245_v32  ;;  %8289 = vmatprep.subr.bf16.mxu0 %v14250_v18  ;;  %v14319_v32 = vld [vmem:[#allocation9 + $0x464] ss:$16 sps:$4 sm:$0xff]   ;;  %v14320_v18 = vld [vmem:[#allocation9 + $0x480] ss:$16 sps:$4 sm:$0xff]  }
 0x622   :  { %11262 = vmatprep.subr.bf16.mxu1 %v14253_v12  ;;  %v14323_v12 = vld [vmem:[#allocation9 + $0x4a0] ss:$16 sps:$4 sm:$0xff]  }
 0x624   :  { %8290 = vmatpush1.bf16.msra.mxu0 %v14248_v7  ;;  %v14328_v7 = vld [vmem:[#allocation9 + $0x4c4] ss:$16 sps:$4 sm:$0xff]  }
 0x625   :  { %11263 = vmatpush1.bf16.msra.mxu1 %v14251_v10  ;;  %8291 = vmatprep.subr.bf16.mxu0 %v14256_v39 }
 0x626   :  { %11264 = vmatprep.subr.bf16.mxu1 %v14259_v6 }
 0x628   :  { %8292 = vmatpush1.bf16.msra.mxu0 %v14254_v25 }
 0x629   :  { %11265 = vmatpush1.bf16.msra.mxu1 %v14257_v0  ;;  %8293 = vmatprep.subr.bf16.mxu0 %v14262_v3 }
 0x62a   :  { %11266 = vmatprep.subr.bf16.mxu1 %v14265_v15  ;;  %v14326_v15 = vld [vmem:[#allocation9 + $0x4c0] ss:$16 sps:$4 sm:$0xff]  }
 0x62c   :  { %8294 = vmatpush1.bf16.msra.mxu0 %v14260_v27 }
 0x62d   :  { %11267 = vmatpush1.bf16.msra.mxu1 %v14263_v4  ;;  %8295 = vmatprep.subr.bf16.mxu0 %v14268_v17  ;;  %v14331_v17 = vld [vmem:[#allocation9 + $0x4e4] ss:$16 sps:$4 sm:$0xff]  }
 0x62e   :  { %11268 = vmatprep.subr.bf16.mxu1 %v14271_v60  ;;  %v14329_v60 = vld [vmem:[#allocation9 + $0x4e0] ss:$16 sps:$4 sm:$0xff]  }
 0x630   :  { %8296 = vmatpush1.bf16.msra.mxu0 %v14266_v48  ;;  %v14334_v48 = vld [vmem:[#allocation9 + $0x504] ss:$16 sps:$4 sm:$0xff]  }
 0x631   :  { %11269 = vmatpush1.bf16.msra.mxu1 %v14269_v24  ;;  %8297 = vmatprep.subr.bf16.mxu0 %v14274_v26  ;;  %v14332_v24 = vld [vmem:[#allocation9 + $0x500] ss:$16 sps:$4 sm:$0xff]   ;;  %v14337_v26 = vld [vmem:[#allocation9 + $0x524] ss:$16 sps:$4 sm:$0xff]  }
 0x632   :  { %11270 = vmatprep.subr.bf16.mxu1 %v14277_v35  ;;  %v14335_v35 = vld [vmem:[#allocation9 + $0x520] ss:$16 sps:$4 sm:$0xff]  }
 0x634   :  { %8298 = vmatpush1.bf16.msra.mxu0 %v14272_v45  ;;  %v14340_v45 = vld [vmem:[#allocation9 + $0x544] ss:$16 sps:$4 sm:$0xff]  }
 0x635   :  { %11271 = vmatpush1.bf16.msra.mxu1 %v14275_v37  ;;  %8299 = vmatprep.subr.bf16.mxu0 %v14280_v53  ;;  %v14338_v37 = vld [vmem:[#allocation9 + $0x540] ss:$16 sps:$4 sm:$0xff]   ;;  %v14343_v53 = vld [vmem:[#allocation9 + $0x564] ss:$16 sps:$4 sm:$0xff]  }
 0x636   :  { %11272 = vmatprep.subr.bf16.mxu1 %v14283_v19  ;;  %v14341_v19 = vld [vmem:[#allocation9 + $0x560] ss:$16 sps:$4 sm:$0xff]  }
 0x638   :  { %8300 = vmatpush1.bf16.msra.mxu0 %v14278_v50  ;;  %v14346_v50 = vld [vmem:[#allocation9 + $0x584] ss:$16 sps:$4 sm:$0xff]  }
 0x639   :  { %11273 = vmatpush1.bf16.msra.mxu1 %v14281_v36  ;;  %8301 = vmatprep.subr.bf16.mxu0 %v14286_v40  ;;  %v14344_v36 = vld [vmem:[#allocation9 + $0x580] ss:$16 sps:$4 sm:$0xff]   ;;  %v14349_v40 = vld [vmem:[#allocation9 + $0x5a4] ss:$16 sps:$4 sm:$0xff]  }
 0x63a   :  { %11274 = vmatprep.subr.bf16.mxu1 %v14289_v41  ;;  %v14347_v41 = vld [vmem:[#allocation9 + $0x5a0] ss:$16 sps:$4 sm:$0xff]  }
 0x63c   :  { %8302 = vmatpush1.bf16.msra.mxu0 %v14284_v57  ;;  %v14352_v57 = vld [vmem:[#allocation9 + $0x5c4] ss:$16 sps:$4 sm:$0xff]  }
 0x63d   :  { %11275 = vmatpush1.bf16.msra.mxu1 %v14287_v5  ;;  %8303 = vmatprep.subr.bf16.mxu0 %v14292_v16  ;;  %v14350_v5 = vld [vmem:[#allocation9 + $0x5c0] ss:$16 sps:$4 sm:$0xff]   ;;  %v14355_v16 = vld [vmem:[#allocation9 + $0x5e4] ss:$16 sps:$4 sm:$0xff]  }
 0x63e   :  { %11276 = vmatprep.subr.bf16.mxu1 %v14295_v49  ;;  %v14353_v49 = vld [vmem:[#allocation9 + $0x5e0] ss:$16 sps:$4 sm:$0xff]  }
 0x640   :  { %8304 = vmatpush1.bf16.msra.mxu0 %v14290_v22  ;;  %v14358_v22 = vld [vmem:[#allocation9 + $0x40c] ss:$16 sps:$4 sm:$0xff]  }
 0x641   :  { %11277 = vmatpush1.bf16.msra.mxu1 %v14293_v58  ;;  %8305 = vmatprep.subr.bf16.mxu0 %v14298_v63  ;;  %v14356_v58 = vld [vmem:[#allocation9 + $0x408] ss:$16 sps:$4 sm:$0xff]   ;;  %v17912_v63 = vpack.c.b16 %v17833_v8, %v17833_v8 }
 0x642   :  { %11278 = vmatprep.subr.bf16.mxu1 %v14301_v46  ;;  %v14361_v46 = vld [vmem:[#allocation9 + $0x42c] ss:$16 sps:$4 sm:$0xff]   ;;  %v14368_v8 = vld [vmem:[#allocation9 + $0x488] ss:$16 sps:$4 sm:$0xff]  }
 0x644   :  { %8306 = vmatpush1.bf16.msra.mxu0 %v14296_v23  ;;  %v14359_v23 = vld [vmem:[#allocation9 + $0x428] ss:$16 sps:$4 sm:$0xff]  }
 0x645   :  { %11279 = vmatpush1.bf16.msra.mxu1 %v14299_v51  ;;  %8307 = vmatprep.subr.bf16.mxu0 %v14304_v14  ;;  %v14364_v51 = vld [vmem:[#allocation9 + $0x44c] ss:$16 sps:$4 sm:$0xff]   ;;  %v14362_v14 = vld [vmem:[#allocation9 + $0x448] ss:$16 sps:$4 sm:$0xff]  }
 0x646   :  { %11280 = vmatprep.subr.bf16.mxu1 %v14307_v59  ;;  %v14367_v59 = vld [vmem:[#allocation9 + $0x46c] ss:$16 sps:$4 sm:$0xff]  }
 0x648   :  { %8308 = vmatpush1.bf16.msra.mxu0 %v14302_v31  ;;  %v14365_v31 = vld [vmem:[#allocation9 + $0x468] ss:$16 sps:$4 sm:$0xff]  }
 0x649   :  { %11281 = vmatpush1.bf16.msra.mxu1 %v14305_v38  ;;  %8735 = vmatprep.subr.bf16.mxu0 %v14310_v13  ;;  %v14370_v38 = vld [vmem:[#allocation9 + $0x48c] ss:$16 sps:$4 sm:$0xff]  }
 0x64a   :  { %v14373_v13 = vld [vmem:[#allocation9 + $0x4ac] ss:$16 sps:$4 sm:$0xff]  }
 0x64b   :  { %8310 = vmatmul.mubr.bf16.vlgmr.msra.gmra.mrb[48].mxu0 %v17877_v20  ;;  %v14322_v20 = vld [vmem:[#allocation9 + $0x484] ss:$16 sps:$4 sm:$0xff]  }
 0x64c   :  { %11283 = vmatmul.mubr.bf16.vlgmr.msra.gmra.mrb[64].mxu1 %v17893_v1  ;;  %8736 = vmatpush1.bf16.msra.mxu0 %v14308_v54  ;;  %v14371_v54 = vld [vmem:[#allocation9 + $0x4a8] ss:$16 sps:$4 sm:$0xff]  }
 0x64d   :  { %8767 = vmatprep.mubr.bf16.mxu0 %v17898_v42  ;;  %8737 = vmatprep.subr.bf16.mxu0 %v14313_v28  ;;  %v14376_v28 = vld [vmem:[#allocation9 + $0x4cc] ss:$16 sps:$4 sm:$0xff]  }
 0x650   :  { %8738 = vmatpush1.bf16.msra.mxu0 %v14311_v11 }
 0x651   :  { %8739 = vmatprep.subr.bf16.mxu0 %v14316_v55 }
 0x654   :  { %8740 = vmatpush1.bf16.msra.mxu0 %v14314_v9 }
 0x655   :  { %8741 = vmatprep.subr.bf16.mxu0 %v14319_v32 }
 0x658   :  { %8742 = vmatpush1.bf16.msra.mxu0 %v14317_v52 }
 0x659   :  { %8743 = vmatprep.subr.bf16.mxu0 %v14322_v20  ;;  %v14374_v20 = vld [vmem:[#allocation9 + $0x4c8] ss:$16 sps:$4 sm:$0xff]  }
 0x65c   :  { %8744 = vmatpush1.bf16.msra.mxu0 %v14320_v18 }
 0x65d   :  { %8745 = vmatprep.subr.bf16.mxu0 %v14325_v30 }
 0x65e   :  { %v17902_v10 = vpop.f32.mrb[36].mxu0  ;;  %v17904_v39 = vpop.f32.mrb[52].mxu1 }
 0x65f   :  { %v17906_v6 = vpop.f32.mrb[37].mxu0  ;;  %v17908_v25 = vpop.f32.mrb[53].mxu1 }
 0x660   :  { %8746 = vmatpush1.bf16.msra.mxu0 %v14323_v12  ;;  %v7840_v0 = vpop.f32.mrb[38].mxu0  ;;  %v9779_v3 = vpop.f32.mrb[54].mxu1  ;;  %v14379_v12 = vld [vmem:[#allocation9 + $0x4ec] ss:$16 sps:$4 sm:$0xff]  }
 0x661   :  { %v7841_v27 = vpop.f32.mrb[39].mxu0  ;;  %v9780_v4 = vpop.f32.mrb[55].mxu1  ;;  %8747 = vmatprep.subr.bf16.mxu0 %v14328_v7  ;;  %v14377_v7 = vld [vmem:[#allocation9 + $0x4e8] ss:$16 sps:$4 sm:$0xff]   ;;  %v14382_v0 = vld [vmem:[#allocation9 + $0x50c] ss:$16 sps:$4 sm:$0xff]  }
 0x662   :  { %v14380_v3 = vld [vmem:[#allocation9 + $0x508] ss:$16 sps:$4 sm:$0xff]   ;;  %v14388_v4 = vld [vmem:[#allocation9 + $0x54c] ss:$16 sps:$4 sm:$0xff]  }
 0x663   :  { %v14383_v27 = vld [vmem:[#allocation9 + $0x528] ss:$16 sps:$4 sm:$0xff]  }
 0x664   :  { %8748 = vmatpush1.bf16.msra.mxu0 %v14326_v15  ;;  %v14385_v15 = vld [vmem:[#allocation9 + $0x52c] ss:$16 sps:$4 sm:$0xff]  }
 0x665   :  { %8749 = vmatprep.subr.bf16.mxu0 %v14331_v17  ;;  %v14386_v17 = vld [vmem:[#allocation9 + $0x548] ss:$16 sps:$4 sm:$0xff]  }
 0x668   :  { %8750 = vmatpush1.bf16.msra.mxu0 %v14329_v60  ;;  %v14391_v60 = vld [vmem:[#allocation9 + $0x56c] ss:$16 sps:$4 sm:$0xff]  }
 0x669   :  { %8751 = vmatprep.subr.bf16.mxu0 %v14334_v48  ;;  %v14389_v48 = vld [vmem:[#allocation9 + $0x568] ss:$16 sps:$4 sm:$0xff]  }
 0x66c   :  { %8752 = vmatpush1.bf16.msra.mxu0 %v14332_v24  ;;  %v14394_v24 = vld [vmem:[#allocation9 + $0x58c] ss:$16 sps:$4 sm:$0xff]  }
 0x66d   :  { %8753 = vmatprep.subr.bf16.mxu0 %v14337_v26  ;;  %v14392_v26 = vld [vmem:[#allocation9 + $0x588] ss:$16 sps:$4 sm:$0xff]  }
 0x670   :  { %8754 = vmatpush1.bf16.msra.mxu0 %v14335_v35  ;;  %v14397_v35 = vld [vmem:[#allocation9 + $0x5ac] ss:$16 sps:$4 sm:$0xff]  }
 0x671   :  { %8755 = vmatprep.subr.bf16.mxu0 %v14340_v45  ;;  %v14395_v45 = vld [vmem:[#allocation9 + $0x5a8] ss:$16 sps:$4 sm:$0xff]  }
 0x674   :  { %8756 = vmatpush1.bf16.msra.mxu0 %v14338_v37  ;;  %v14400_v37 = vld [vmem:[#allocation9 + $0x5cc] ss:$16 sps:$4 sm:$0xff]  }
 0x675   :  { %8757 = vmatprep.subr.bf16.mxu0 %v14343_v53  ;;  %v14398_v53 = vld [vmem:[#allocation9 + $0x5c8] ss:$16 sps:$4 sm:$0xff]  }
 0x678   :  { %8758 = vmatpush1.bf16.msra.mxu0 %v14341_v19  ;;  %v14403_v19 = vld [vmem:[#allocation9 + $0x5ec] ss:$16 sps:$4 sm:$0xff]  }
 0x679   :  { %8759 = vmatprep.subr.bf16.mxu0 %v14346_v50  ;;  %v14401_v50 = vld [vmem:[#allocation9 + $0x5e8] ss:$16 sps:$4 sm:$0xff]  }
 0x67c   :  { %8760 = vmatpush1.bf16.msra.mxu0 %v14344_v36  ;;  %v14406_v36 = vld [vmem:[#allocation9 + $0x604] ss:$16 sps:$4 sm:$0xff]  }
 0x67d   :  { %8761 = vmatprep.subr.bf16.mxu0 %v14349_v40  ;;  %v14404_v40 = vld [vmem:[#allocation9 + $0x600] ss:$16 sps:$4 sm:$0xff]  }
 0x680   :  { %8762 = vmatpush1.bf16.msra.mxu0 %v14347_v41  ;;  %v14409_v41 = vld [vmem:[#allocation9 + $0x624] ss:$16 sps:$4 sm:$0xff]  }
 0x681   :  { %8763 = vmatprep.subr.bf16.mxu0 %v14352_v57  ;;  %v17926_v57 = vpack.c.b16 %v17848_v56, %v17848_v56  ;;  %v14421_v56 = vld [vmem:[#allocation9 + $0x6a4] ss:$16 sps:$4 sm:$0xff]  }
 0x684   :  { %8764 = vmatpush1.bf16.msra.mxu0 %v14350_v5  ;;  %v14407_v5 = vld [vmem:[#allocation9 + $0x620] ss:$16 sps:$4 sm:$0xff]  }
 0x685   :  { %8765 = vmatprep.subr.bf16.mxu0 %v14355_v16  ;;  %v14412_v16 = vld [vmem:[#allocation9 + $0x644] ss:$16 sps:$4 sm:$0xff]  }
 0x688   :  { %8766 = vmatpush1.bf16.msra.mxu0 %v14353_v49  ;;  %v14410_v49 = vld [vmem:[#allocation9 + $0x640] ss:$16 sps:$4 sm:$0xff]  }
 0x689   :  { %8776 = vmatprep.subr.bf16.mxu0 %v14358_v22  ;;  %v14415_v22 = vld [vmem:[#allocation9 + $0x664] ss:$16 sps:$4 sm:$0xff]  }
 0x68b   :  { %8768 = vmatmul.mubr.bf16.vlgmr.msra.gmra.mrb[52].mxu0 %v17912_v63 }
 0x68c   :  { %8777 = vmatpush1.bf16.msra.mxu0 %v14356_v58  ;;  %8808 = vmatprep.mubr.bf16.mxu0 %v17898_v42  ;;  %v14413_v58 = vld [vmem:[#allocation9 + $0x660] ss:$16 sps:$4 sm:$0xff]  }
 0x68d   :  { %8778 = vmatprep.subr.bf16.mxu0 %v14361_v46  ;;  %v14418_v46 = vld [vmem:[#allocation9 + $0x684] ss:$16 sps:$4 sm:$0xff]  }
 0x690   :  { %8779 = vmatpush1.bf16.msra.mxu0 %v14359_v23  ;;  %v14416_v23 = vld [vmem:[#allocation9 + $0x680] ss:$16 sps:$4 sm:$0xff]  }
 0x691   :  { %8780 = vmatprep.subr.bf16.mxu0 %v14364_v51  ;;  %v14424_v51 = vld [vmem:[#allocation9 + $0x6c4] ss:$16 sps:$4 sm:$0xff]  }
 0x694   :  { %8781 = vmatpush1.bf16.msra.mxu0 %v14362_v14 }
 0x695   :  { %8782 = vmatprep.subr.bf16.mxu0 %v14367_v59 }
 0x698   :  { %8783 = vmatpush1.bf16.msra.mxu0 %v14365_v31 }
 0x699   :  { %8784 = vmatprep.subr.bf16.mxu0 %v14370_v38 }
 0x69c   :  { %8785 = vmatpush1.bf16.msra.mxu0 %v14368_v8 }
 0x69d   :  { %8786 = vmatprep.subr.bf16.mxu0 %v14373_v13 }
 0x69e   :  { %v17916_v42 = vpop.f32.mrb[40].mxu0  ;;  %v17918_v11 = vpop.f32.mrb[56].mxu1 }
 0x69f   :  { %v17920_v55 = vpop.f32.mrb[41].mxu0  ;;  %v17922_v9 = vpop.f32.mrb[57].mxu1 }
 0x6a0   :  { %v7881_v32 = vpop.f32.mrb[42].mxu0  ;;  %8787 = vmatpush1.bf16.msra.mxu0 %v14371_v54  ;;  %v10282_v52 = vpop.f32.mrb[58].mxu1 }
 0x6a1   :  { %v7882_v18 = vpop.f32.mrb[43].mxu0  ;;  %v10283_v30 = vpop.f32.mrb[59].mxu1  ;;  %8788 = vmatprep.subr.bf16.mxu0 %v14376_v28  ;;  %v14422_v28 = vld [vmem:[#allocation9 + $0x6c0] ss:$16 sps:$4 sm:$0xff]  }
 0x6a2   :  { %v14425_v30 = vld [vmem:[#allocation9 + $0x6e0] ss:$16 sps:$4 sm:$0xff]  }
 0x6a4   :  { %8789 = vmatpush1.bf16.msra.mxu0 %v14374_v20  ;;  %v14427_v20 = vld [vmem:[#allocation9 + $0x6e4] ss:$16 sps:$4 sm:$0xff]  }
 0x6a5   :  { %8790 = vmatprep.subr.bf16.mxu0 %v14379_v12  ;;  %v14428_v12 = vld [vmem:[#allocation9 + $0x700] ss:$16 sps:$4 sm:$0xff]  }
 0x6a8   :  { %8791 = vmatpush1.bf16.msra.mxu0 %v14377_v7  ;;  %v14433_v7 = vld [vmem:[#allocation9 + $0x724] ss:$16 sps:$4 sm:$0xff]  }
 0x6a9   :  { %8792 = vmatprep.subr.bf16.mxu0 %v14382_v0  ;;  %v14436_v0 = vld [vmem:[#allocation9 + $0x744] ss:$16 sps:$4 sm:$0xff]  }
 0x6ac   :  { %8793 = vmatpush1.bf16.msra.mxu0 %v14380_v3  ;;  %v14434_v3 = vld [vmem:[#allocation9 + $0x740] ss:$16 sps:$4 sm:$0xff]  }
 0x6ad   :  { %8794 = vmatprep.subr.bf16.mxu0 %v14385_v15  ;;  %v14439_v15 = vld [vmem:[#allocation9 + $0x764] ss:$16 sps:$4 sm:$0xff]  }
 0x6b0   :  { %8795 = vmatpush1.bf16.msra.mxu0 %v14383_v27  ;;  %v14437_v27 = vld [vmem:[#allocation9 + $0x760] ss:$16 sps:$4 sm:$0xff]  }
 0x6b1   :  { %8796 = vmatprep.subr.bf16.mxu0 %v14388_v4  ;;  %v14442_v4 = vld [vmem:[#allocation9 + $0x784] ss:$16 sps:$4 sm:$0xff]  }
 0x6b4   :  { %8797 = vmatpush1.bf16.msra.mxu0 %v14386_v17  ;;  %v14440_v17 = vld [vmem:[#allocation9 + $0x780] ss:$16 sps:$4 sm:$0xff]  }
 0x6b5   :  { %8798 = vmatprep.subr.bf16.mxu0 %v14391_v60  ;;  %v14445_v60 = vld [vmem:[#allocation9 + $0x7a4] ss:$16 sps:$4 sm:$0xff]  }
 0x6b8   :  { %8799 = vmatpush1.bf16.msra.mxu0 %v14389_v48  ;;  %v14443_v48 = vld [vmem:[#allocation9 + $0x7a0] ss:$16 sps:$4 sm:$0xff]  }
 0x6b9   :  { %8800 = vmatprep.subr.bf16.mxu0 %v14394_v24  ;;  %v14448_v24 = vld [vmem:[#allocation9 + $0x7c4] ss:$16 sps:$4 sm:$0xff]  }
 0x6bc   :  { %8801 = vmatpush1.bf16.msra.mxu0 %v14392_v26  ;;  %v14446_v26 = vld [vmem:[#allocation9 + $0x7c0] ss:$16 sps:$4 sm:$0xff]  }
 0x6bd   :  { %8802 = vmatprep.subr.bf16.mxu0 %v14397_v35  ;;  %v14451_v35 = vld [vmem:[#allocation9 + $0x7e4] ss:$16 sps:$4 sm:$0xff]  }
 0x6c0   :  { %8803 = vmatpush1.bf16.msra.mxu0 %v14395_v45  ;;  %v14449_v45 = vld [vmem:[#allocation9 + $0x7e0] ss:$16 sps:$4 sm:$0xff]  }
 0x6c1   :  { %8804 = vmatprep.subr.bf16.mxu0 %v14400_v37  ;;  %v14454_v37 = vld [vmem:[#allocation9 + $0x60c] ss:$16 sps:$4 sm:$0xff]  }
 0x6c4   :  { %8805 = vmatpush1.bf16.msra.mxu0 %v14398_v53  ;;  %v14452_v53 = vld [vmem:[#allocation9 + $0x608] ss:$16 sps:$4 sm:$0xff]  }
 0x6c5   :  { %8806 = vmatprep.subr.bf16.mxu0 %v14403_v19  ;;  %v17942_v19 = vpack.c.b16 %v17857_v62, %v17857_v62  ;;  %v14464_v62 = vld [vmem:[#allocation9 + $0x688] ss:$16 sps:$4 sm:$0xff]  }
 0x6c8   :  { %8807 = vmatpush1.bf16.msra.mxu0 %v14401_v50  ;;  %v14457_v50 = vld [vmem:[#allocation9 + $0x62c] ss:$16 sps:$4 sm:$0xff]  }
 0x6c9   :  { %9238 = vmatprep.subr.bf16.mxu0 %v14406_v36  ;;  %v14455_v36 = vld [vmem:[#allocation9 + $0x628] ss:$16 sps:$4 sm:$0xff]  }
 0x6cb   :  { %8809 = vmatmul.mubr.bf16.vlgmr.msra.gmra.mrb[56].mxu0 %v17912_v63  ;;  %v14419_v63 = vld [vmem:[#allocation9 + $0x6a0] ss:$16 sps:$4 sm:$0xff]  }
 0x6cc   :  { %9239 = vmatpush1.bf16.msra.mxu0 %v14404_v40  ;;  %9270 = vmatprep.mubr.bf16.mxu0 %v17926_v57  ;;  %v14460_v40 = vld [vmem:[#allocation9 + $0x64c] ss:$16 sps:$4 sm:$0xff]  }
 0x6cd   :  { %9240 = vmatprep.subr.bf16.mxu0 %v14409_v41  ;;  %v14458_v41 = vld [vmem:[#allocation9 + $0x648] ss:$16 sps:$4 sm:$0xff]  }
 0x6d0   :  { %9241 = vmatpush1.bf16.msra.mxu0 %v14407_v5  ;;  %v14463_v5 = vld [vmem:[#allocation9 + $0x66c] ss:$16 sps:$4 sm:$0xff]  }
 0x6d1   :  { %9242 = vmatprep.subr.bf16.mxu0 %v14412_v16  ;;  %v14461_v16 = vld [vmem:[#allocation9 + $0x668] ss:$16 sps:$4 sm:$0xff]  }
 0x6d4   :  { %9243 = vmatpush1.bf16.msra.mxu0 %v14410_v49  ;;  %v14466_v49 = vld [vmem:[#allocation9 + $0x68c] ss:$16 sps:$4 sm:$0xff]  }
 0x6d5   :  { %9244 = vmatprep.subr.bf16.mxu0 %v14415_v22  ;;  %v14469_v22 = vld [vmem:[#allocation9 + $0x6ac] ss:$16 sps:$4 sm:$0xff]  }
 0x6d8   :  { %9245 = vmatpush1.bf16.msra.mxu0 %v14413_v58  ;;  %v14467_v58 = vld [vmem:[#allocation9 + $0x6a8] ss:$16 sps:$4 sm:$0xff]  }
 0x6d9   :  { %9246 = vmatprep.subr.bf16.mxu0 %v14418_v46  ;;  %v14472_v46 = vld [vmem:[#allocation9 + $0x6cc] ss:$16 sps:$4 sm:$0xff]  }
 0x6dc   :  { %9247 = vmatpush1.bf16.msra.mxu0 %v14416_v23 }
 0x6dd   :  { %9248 = vmatprep.subr.bf16.mxu0 %v14421_v56 }
 0x6de   :  { %v8270_v14 = vpop.f32.mrb[44].mxu0 }
 0x6df   :  { %v17931_v59 = vadd.f32 %v8270_v14, %v17902_v10  ;;  %v17933_v31 = vpop.f32.mrb[60].mxu1  ;;  %v8272_v38 = vpop.f32.mrb[45].mxu0  ;;  %v14430_v10 = vld [vmem:[#allocation9 + $0x704] ss:$16 sps:$4 sm:$0xff]  }
 0x6e0   :  { %v17936_v8 = vadd.f32 %v8272_v38, %v17906_v6  ;;  %v17938_v13 = vpop.f32.mrb[61].mxu1  ;;  %v8274_v54 = vpop.f32.mrb[46].mxu0  ;;  %9249 = vmatpush1.bf16.msra.mxu0 %v14419_v63  ;;  %v14431_v6 = vld [vmem:[#allocation9 + $0x720] ss:$16 sps:$4 sm:$0xff]  }
 0x6e1   :  { %v10785_v32 = vpop.f32.mrb[62].mxu1  ;;  %v8275_v52 = vpop.f32.mrb[47].mxu0  ;;  %9250 = vmatprep.subr.bf16.mxu0 %v14424_v51  ;;  %v14470_v54 = vld [vmem:[#allocation9 + $0x6c8] ss:$16 sps:$4 sm:$0xff]  }
 0x6e2   :  { %v10786_v18 = vpop.f32.mrb[63].mxu1  ;;  %v14475_v52 = vld [vmem:[#allocation9 + $0x6ec] ss:$16 sps:$4 sm:$0xff]  }
 0x6e3   :  { %v14473_v18 = vld [vmem:[#allocation9 + $0x6e8] ss:$16 sps:$4 sm:$0xff]  }
 0x6e4   :  { %9251 = vmatpush1.bf16.msra.mxu0 %v14422_v28 }
 0x6e5   :  { %9252 = vmatprep.subr.bf16.mxu0 %v14427_v20 }
 0x6e8   :  { %9253 = vmatpush1.bf16.msra.mxu0 %v14425_v30  ;;  %v14476_v30 = vld [vmem:[#allocation9 + $0x708] ss:$16 sps:$4 sm:$0xff]  }
 0x6e9   :  { %9254 = vmatprep.subr.bf16.mxu0 %v14430_v10  ;;  %v14481_v10 = vld [vmem:[#allocation9 + $0x72c] ss:$16 sps:$4 sm:$0xff]  }
 0x6ec   :  { %9255 = vmatpush1.bf16.msra.mxu0 %v14428_v12  ;;  %v14484_v12 = vld [vmem:[#allocation9 + $0x74c] ss:$16 sps:$4 sm:$0xff]  }
 0x6ed   :  { %9256 = vmatprep.subr.bf16.mxu0 %v14433_v7  ;;  %v14482_v7 = vld [vmem:[#allocation9 + $0x748] ss:$16 sps:$4 sm:$0xff]  }
 0x6f0   :  { %9257 = vmatpush1.bf16.msra.mxu0 %v14431_v6  ;;  %v14487_v6 = vld [vmem:[#allocation9 + $0x76c] ss:$16 sps:$4 sm:$0xff]  }
 0x6f1   :  { %9258 = vmatprep.subr.bf16.mxu0 %v14436_v0  ;;  %v14485_v0 = vld [vmem:[#allocation9 + $0x768] ss:$16 sps:$4 sm:$0xff]  }
 0x6f4   :  { %9259 = vmatpush1.bf16.msra.mxu0 %v14434_v3  ;;  %v14490_v3 = vld [vmem:[#allocation9 + $0x78c] ss:$16 sps:$4 sm:$0xff]  }
 0x6f5   :  { %9260 = vmatprep.subr.bf16.mxu0 %v14439_v15  ;;  %v14488_v15 = vld [vmem:[#allocation9 + $0x788] ss:$16 sps:$4 sm:$0xff]  }
 0x6f8   :  { %9261 = vmatpush1.bf16.msra.mxu0 %v14437_v27  ;;  %v14493_v27 = vld [vmem:[#allocation9 + $0x7ac] ss:$16 sps:$4 sm:$0xff]  }
 0x6f9   :  { %9262 = vmatprep.subr.bf16.mxu0 %v14442_v4  ;;  %v14491_v4 = vld [vmem:[#allocation9 + $0x7a8] ss:$16 sps:$4 sm:$0xff]  }
 0x6fc   :  { %9263 = vmatpush1.bf16.msra.mxu0 %v14440_v17  ;;  %v14496_v17 = vld [vmem:[#allocation9 + $0x7cc] ss:$16 sps:$4 sm:$0xff]  }
 0x6fd   :  { %9264 = vmatprep.subr.bf16.mxu0 %v14445_v60  ;;  %v14494_v60 = vld [vmem:[#allocation9 + $0x7c8] ss:$16 sps:$4 sm:$0xff]  }
 0x700   :  { %9265 = vmatpush1.bf16.msra.mxu0 %v14443_v48  ;;  %v14499_v48 = vld [vmem:[#allocation9 + $0x7ec] ss:$16 sps:$4 sm:$0xff]  }
 0x701   :  { %9266 = vmatprep.subr.bf16.mxu0 %v14448_v24  ;;  %v14497_v24 = vld [vmem:[#allocation9 + $0x7e8] ss:$16 sps:$4 sm:$0xff]  }
 0x704   :  { %9267 = vmatpush1.bf16.msra.mxu0 %v14446_v26  ;;  %v14502_v26 = vld [vmem:[#allocation9 + $0x80c] ss:$16 sps:$4 sm:$0xff]  }
 0x705   :  { %9268 = vmatprep.subr.bf16.mxu0 %v14451_v35  ;;  %v14500_v35 = vld [vmem:[#allocation9 + $0x808] ss:$16 sps:$4 sm:$0xff]  }
 0x708   :  { %9269 = vmatpush1.bf16.msra.mxu0 %v14449_v45  ;;  %v14505_v45 = vld [vmem:[#allocation9 + $0x82c] ss:$16 sps:$4 sm:$0xff]  }
 0x709   :  { %9279 = vmatprep.subr.bf16.mxu0 %v14454_v37  ;;  %v14503_v37 = vld [vmem:[#allocation9 + $0x828] ss:$16 sps:$4 sm:$0xff]  }
 0x70b   :  { %9271 = vmatmul.mubr.bf16.vlgmr.msra.gmra.mrb[60].mxu0 %v17942_v19 }
 0x70c   :  { %9280 = vmatpush1.bf16.msra.mxu0 %v14452_v53  ;;  %9311 = vmatprep.mubr.bf16.mxu0 %v17926_v57  ;;  %v14508_v53 = vld [vmem:[#allocation9 + $0x84c] ss:$16 sps:$4 sm:$0xff]  }
 0x70d   :  { %9281 = vmatprep.subr.bf16.mxu0 %v14457_v50  ;;  %v14506_v50 = vld [vmem:[#allocation9 + $0x848] ss:$16 sps:$4 sm:$0xff]  }
 0x710   :  { %9282 = vmatpush1.bf16.msra.mxu0 %v14455_v36  ;;  %v14602_v36 = vld [vmem:[#allocation12 + $0x40] sm:$0xff]  }
 0x711   :  { %9283 = vmatprep.subr.bf16.mxu0 %v14460_v40  ;;  %v14603_v40 = vld [vmem:[#allocation12] sm:$0xff]   ;;  %12860 = vmatprep.subr.bf16.mxu1 %v14602_v36 }
 0x712   :  { %12861 = vmatpush3.bf16.msra.mxu1 %v14603_v40  ;;  %v14542_v36 = vld [vmem:[#allocation9 + $0x9c8] ss:$16 sps:$4 sm:$0xff]   ;;  %v14547_v40 = vld [vmem:[#allocation9 + $0x9ec] ss:$16 sps:$4 sm:$0xff]  }
 0x714   :  { %9284 = vmatpush1.bf16.msra.mxu0 %v14458_v41  ;;  %v14511_v41 = vld [vmem:[#allocation9 + $0x86c] ss:$16 sps:$4 sm:$0xff]  }
 0x715   :  { %9285 = vmatprep.subr.bf16.mxu0 %v14463_v5  ;;  %v14509_v5 = vld [vmem:[#allocation9 + $0x868] ss:$16 sps:$4 sm:$0xff]  }
 0x718   :  { %9286 = vmatpush1.bf16.msra.mxu0 %v14461_v16  ;;  %v14607_v16 = vld [vmem:[#allocation12 + $0x48] sm:$0xff]  }
 0x719   :  { %9287 = vmatprep.subr.bf16.mxu0 %v14466_v49  ;;  %v14608_v49 = vld [vmem:[#allocation12 + $0x8] sm:$0xff]   ;;  %12862 = vmatprep.subr.bf16.mxu1 %v14607_v16  ;;  %v14548_v16 = vld [vmem:[#allocation9 + $0xa08] ss:$16 sps:$4 sm:$0xff]  }
 0x71a   :  { %12863 = vmatpush3.bf16.msra.mxu1 %v14608_v49  ;;  %v14553_v49 = vld [vmem:[#allocation9 + $0xa2c] ss:$16 sps:$4 sm:$0xff]  }
 0x71c   :  { %9288 = vmatpush1.bf16.msra.mxu0 %v14464_v62  ;;  %v14612_v62 = vld [vmem:[#allocation12 + $0x50] sm:$0xff]  }
 0x71d   :  { %9289 = vmatprep.subr.bf16.mxu0 %v14469_v22  ;;  %v14613_v22 = vld [vmem:[#allocation12 + $0x10] sm:$0xff]   ;;  %12864 = vmatprep.subr.bf16.mxu1 %v14612_v62 }
 0x71e   :  { %v8311_v57 = vpop.f32.mrb[48].mxu0  ;;  %12865 = vmatpush3.bf16.msra.mxu1 %v14613_v22  ;;  %v14554_v62 = vld [vmem:[#allocation9 + $0xa48] ss:$16 sps:$4 sm:$0xff]   ;;  %v14559_v22 = vld [vmem:[#allocation9 + $0xa6c] ss:$16 sps:$4 sm:$0xff]  }
 0x71f   :  { %v17947_v23 = vadd.f32 %v8311_v57, %v17916_v42  ;;  %v17949_v56 = vpop.f32.mrb[64].mxu1  ;;  %v8313_v63 = vpop.f32.mrb[49].mxu0  ;;  %v14478_v42 = vld [vmem:[#allocation9 + $0x70c] ss:$16 sps:$4 sm:$0xff]  }
 0x720   :  { %v17952_v51 = vadd.f32 %v8313_v63, %v17920_v55  ;;  %v17954_v14 = vpop.f32.mrb[65].mxu1  ;;  %v8315_v38 = vpop.f32.mrb[50].mxu0  ;;  %9290 = vmatpush1.bf16.msra.mxu0 %v14467_v58  ;;  %v14479_v55 = vld [vmem:[#allocation9 + $0x728] ss:$16 sps:$4 sm:$0xff]   ;;  %v14517_v58 = vld [vmem:[#allocation9 + $0x8ac] ss:$16 sps:$4 sm:$0xff]  }
 0x721   :  { %v11288_v28 = vpop.f32.mrb[66].mxu1  ;;  %v8316_v32 = vpop.f32.mrb[51].mxu0  ;;  %9291 = vmatprep.subr.bf16.mxu0 %v14472_v46  ;;  %v14515_v46 = vld [vmem:[#allocation9 + $0x8a8] ss:$16 sps:$4 sm:$0xff]   ;;  %v14617_v57 = vld [vmem:[#allocation12 + $0x58] sm:$0xff]  }
 0x722   :  { %v11289_v20 = vpop.f32.mrb[67].mxu1  ;;  %v14520_v63 = vld [vmem:[#allocation9 + $0x8cc] ss:$16 sps:$4 sm:$0xff]   ;;  %12866 = vmatprep.subr.bf16.mxu1 %v14617_v57  ;;  %v14560_v57 = vld [vmem:[#allocation9 + $0xa88] ss:$16 sps:$4 sm:$0xff]  }
 0x723   :  { %v14518_v20 = vld [vmem:[#allocation9 + $0x8c8] ss:$16 sps:$4 sm:$0xff]  }
 0x724   :  { %9292 = vmatpush1.bf16.msra.mxu0 %v14470_v54 }
 0x725   :  { %9293 = vmatprep.subr.bf16.mxu0 %v14475_v52 }
 0x728   :  { %9294 = vmatpush1.bf16.msra.mxu0 %v14473_v18 }
 0x729   :  { %9295 = vmatprep.subr.bf16.mxu0 %v14478_v42  ;;  %v14523_v42 = vld [vmem:[#allocation9 + $0x8ec] ss:$16 sps:$4 sm:$0xff]  }
 0x72c   :  { %9296 = vmatpush1.bf16.msra.mxu0 %v14476_v30  ;;  %v14521_v30 = vld [vmem:[#allocation9 + $0x8e8] ss:$16 sps:$4 sm:$0xff]  }
 0x72d   :  { %9297 = vmatprep.subr.bf16.mxu0 %v14481_v10  ;;  %v14526_v10 = vld [vmem:[#allocation9 + $0x90c] ss:$16 sps:$4 sm:$0xff]  }
 0x730   :  { %9298 = vmatpush1.bf16.msra.mxu0 %v14479_v55  ;;  %v14618_v55 = vld [vmem:[#allocation12 + $0x18] sm:$0xff]  }
 0x731   :  { %9299 = vmatprep.subr.bf16.mxu0 %v14484_v12  ;;  %v14524_v12 = vld [vmem:[#allocation9 + $0x908] ss:$16 sps:$4 sm:$0xff]   ;;  %12867 = vmatpush3.bf16.msra.mxu1 %v14618_v55 }
 0x732   :  { %v14569_v55 = vld [vmem:[#allocation9 + $0xae8] ss:$16 sps:$4 sm:$0xff]  }
 0x734   :  { %9300 = vmatpush1.bf16.msra.mxu0 %v14482_v7  ;;  %v14622_v7 = vld [vmem:[#allocation12 + $0x60] sm:$0xff]  }
 0x735   :  { %9301 = vmatprep.subr.bf16.mxu0 %v14487_v6  ;;  %v14623_v6 = vld [vmem:[#allocation12 + $0x20] sm:$0xff]   ;;  %12868 = vmatprep.subr.bf16.mxu1 %v14622_v7 }
 0x736   :  { %12869 = vmatpush3.bf16.msra.mxu1 %v14623_v6  ;;  %v14572_v7 = vld [vmem:[#allocation9 + $0xb08] ss:$16 sps:$4 sm:$0xff]   ;;  %v14580_v6 = vld [vmem:[#allocation9 + $0xb4c] ss:$16 sps:$4 sm:$0xff]  }
 0x738   :  { %9302 = vmatpush1.bf16.msra.mxu0 %v14485_v0  ;;  %v14527_v0 = vld [vmem:[#allocation9 + $0x928] ss:$16 sps:$4 sm:$0xff]  }
 0x739   :  { %9303 = vmatprep.subr.bf16.mxu0 %v14490_v3  ;;  %v14532_v3 = vld [vmem:[#allocation9 + $0x94c] ss:$16 sps:$4 sm:$0xff]  }
 0x73c   :  { %9304 = vmatpush1.bf16.msra.mxu0 %v14488_v15  ;;  %v14628_v15 = vld [vmem:[#allocation12 + $0x28] sm:$0xff]  }
 0x73d   :  { %9305 = vmatprep.subr.bf16.mxu0 %v14493_v27  ;;  %v14632_v27 = vld [vmem:[#allocation12 + $0x70] sm:$0xff]  }
 0x740   :  { %9306 = vmatpush1.bf16.msra.mxu0 %v14491_v4  ;;  %v14530_v4 = vld [vmem:[#allocation9 + $0x948] ss:$16 sps:$4 sm:$0xff]  }
 0x741   :  { %9307 = vmatprep.subr.bf16.mxu0 %v14496_v17  ;;  %v14535_v17 = vld [vmem:[#allocation9 + $0x96c] ss:$16 sps:$4 sm:$0xff]  }
 0x744   :  { %9308 = vmatpush1.bf16.msra.mxu0 %v14494_v60  ;;  %v14633_v60 = vld [vmem:[#allocation12 + $0x30] sm:$0xff]  }
 0x745   :  { %9309 = vmatprep.subr.bf16.mxu0 %v14499_v48  ;;  %v14637_v48 = vld [vmem:[#allocation12 + $0x78] sm:$0xff]  }
 0x748   :  { %9310 = vmatpush1.bf16.msra.mxu0 %v14497_v24  ;;  %v14533_v24 = vld [vmem:[#allocation9 + $0x968] ss:$16 sps:$4 sm:$0xff]  }
 0x749   :  { %9782 = vmatprep.subr.bf16.mxu0 %v14502_v26  ;;  %v14538_v26 = vld [vmem:[#allocation9 + $0x98c] ss:$16 sps:$4 sm:$0xff]  }
 0x74b   :  { %9312 = vmatmul.mubr.bf16.vlgmr.msra.gmra.mrb[64].mxu0 %v17942_v19  ;;  %v14514_v19 = vld [vmem:[#allocation9 + $0x88c] ss:$16 sps:$4 sm:$0xff]  }
 0x74c   :  { %9783 = vmatpush1.bf16.msra.mxu0 %v14500_v35  ;;  %9814 = vmatprep.mubr.bf16.mxu0 %v17655_v29  ;;  %v14512_v29 = vld [vmem:[#allocation9 + $0x888] ss:$16 sps:$4 sm:$0xff]   ;;  %v14638_v35 = vld [vmem:[#allocation12 + $0x38] sm:$0xff]  }
 0x74d   :  { %9784 = vmatprep.subr.bf16.mxu0 %v14505_v45  ;;  %v14536_v45 = vld [vmem:[#allocation9 + $0x988] ss:$16 sps:$4 sm:$0xff]  }
 0x750   :  { %9785 = vmatpush1.bf16.msra.mxu0 %v14503_v37  ;;  %v14541_v37 = vld [vmem:[#allocation9 + $0x9ac] ss:$16 sps:$4 sm:$0xff]  }
 0x751   :  { %9786 = vmatprep.subr.bf16.mxu0 %v14508_v53  ;;  %v14539_v53 = vld [vmem:[#allocation9 + $0x9a8] ss:$16 sps:$4 sm:$0xff]  }
 0x754   :  { %9787 = vmatpush1.bf16.msra.mxu0 %v14506_v50  ;;  %v14544_v50 = vld [vmem:[#allocation9 + $0x9cc] ss:$16 sps:$4 sm:$0xff]  }
 0x755   :  { %9788 = vmatprep.subr.bf16.mxu0 %v14511_v41  ;;  %v14545_v41 = vld [vmem:[#allocation9 + $0x9e8] ss:$16 sps:$4 sm:$0xff]  }
 0x758   :  { %9789 = vmatpush1.bf16.msra.mxu0 %v14509_v5  ;;  %v14550_v5 = vld [vmem:[#allocation9 + $0xa0c] ss:$16 sps:$4 sm:$0xff]  }
 0x759   :  { %9790 = vmatprep.subr.bf16.mxu0 %v14514_v19  ;;  %v14551_v19 = vld [vmem:[#allocation9 + $0xa28] ss:$16 sps:$4 sm:$0xff]  }
 0x75c   :  { %9791 = vmatpush1.bf16.msra.mxu0 %v14512_v29  ;;  %v14556_v29 = vld [vmem:[#allocation9 + $0xa4c] ss:$16 sps:$4 sm:$0xff]  }
 0x75d   :  { %9792 = vmatprep.subr.bf16.mxu0 %v14517_v58  ;;  %v14557_v58 = vld [vmem:[#allocation9 + $0xa68] ss:$16 sps:$4 sm:$0xff]  }
 0x75e   :  { %v8769_v38 = vpop.f32.mrb[52].mxu0 }
 0x75f   :  { %v17959_v54 = vadd.f32 %v8769_v38, %v17931_v59  ;;  %v8771_v28 = vpop.f32.mrb[53].mxu0  ;;  %v14529_v59 = vld [vmem:[#allocation9 + $0x92c] ss:$16 sps:$4 sm:$0xff]  }
 0x760   :  { %v17962_v32 = vadd.f32 %v8771_v28, %v17936_v8  ;;  %v8773_v52 = vpop.f32.mrb[54].mxu0  ;;  %9793 = vmatpush1.bf16.msra.mxu0 %v14515_v46  ;;  %v14627_v8 = vld [vmem:[#allocation12 + $0x68] sm:$0xff]  }
 0x761   :  { %v8774_v18 = vpop.f32.mrb[55].mxu0  ;;  %9794 = vmatprep.subr.bf16.mxu0 %v14520_v63  ;;  %12870 = vmatprep.subr.bf16.mxu1 %v14627_v8  ;;  %v14562_v46 = vld [vmem:[#allocation9 + $0xa8c] ss:$16 sps:$4 sm:$0xff]  }
 0x762   :  { %12871 = vmatpush3.bf16.msra.mxu1 %v14628_v15  ;;  %v14565_v63 = vld [vmem:[#allocation9 + $0xaac] ss:$16 sps:$4 sm:$0xff]   ;;  %v14584_v15 = vld [vmem:[#allocation9 + $0xb88] ss:$16 sps:$4 sm:$0xff]  }
 0x763   :  { %12872 = vmatprep.subr.bf16.mxu1 %v14632_v27  ;;  %v14568_v38 = vld [vmem:[#allocation9 + $0xacc] ss:$16 sps:$4 sm:$0xff]  }
 0x764   :  { %9795 = vmatpush1.bf16.msra.mxu0 %v14518_v20  ;;  %v14583_v8 = vld [vmem:[#allocation9 + $0xb6c] ss:$16 sps:$4 sm:$0xff]  }
 0x765   :  { %9796 = vmatprep.subr.bf16.mxu0 %v14523_v42  ;;  %v14566_v42 = vld [vmem:[#allocation9 + $0xac8] ss:$16 sps:$4 sm:$0xff]   ;;  %v14589_v27 = vld [vmem:[#allocation9 + $0xbac] ss:$16 sps:$4 sm:$0xff]  }
 0x766   :  { %12873 = vmatpush3.bf16.msra.mxu1 %v14633_v60  ;;  %v14590_v60 = vld [vmem:[#allocation9 + $0xbc8] ss:$16 sps:$4 sm:$0xff]  }
 0x767   :  { %12874 = vmatprep.subr.bf16.mxu1 %v14637_v48  ;;  %v14595_v48 = vld [vmem:[#allocation9 + $0xbec] ss:$16 sps:$4 sm:$0xff]  }
 0x768   :  { %9797 = vmatpush1.bf16.msra.mxu0 %v14521_v30 }
 0x769   :  { %9798 = vmatprep.subr.bf16.mxu0 %v14526_v10  ;;  %v14571_v10 = vld [vmem:[#allocation9 + $0xaec] ss:$16 sps:$4 sm:$0xff]  }
 0x76a   :  { %12875 = vmatpush3.bf16.msra.mxu1 %v14638_v35  ;;  %v14596_v35 = vld [vmem:[#allocation9 + $0xc08] ss:$16 sps:$4 sm:$0xff]  }
 0x76c   :  { %9799 = vmatpush1.bf16.msra.mxu0 %v14524_v12  ;;  %v14574_v12 = vld [vmem:[#allocation9 + $0xb0c] ss:$16 sps:$4 sm:$0xff]  }
 0x76d   :  { %9800 = vmatprep.subr.bf16.mxu0 %v14529_v59  ;;  %v14577_v59 = vld [vmem:[#allocation9 + $0xb2c] ss:$16 sps:$4 sm:$0xff]  }
 0x770   :  { %9801 = vmatpush1.bf16.msra.mxu0 %v14527_v0  ;;  %v14581_v0 = vld [vmem:[#allocation9 + $0xb68] ss:$16 sps:$4 sm:$0xff]  }
 0x771   :  { %9802 = vmatprep.subr.bf16.mxu0 %v14532_v3  ;;  %v14586_v3 = vld [vmem:[#allocation9 + $0xb8c] ss:$16 sps:$4 sm:$0xff]  }
 0x774   :  { %9803 = vmatpush1.bf16.msra.mxu0 %v14530_v4  ;;  %v14587_v4 = vld [vmem:[#allocation9 + $0xba8] ss:$16 sps:$4 sm:$0xff]  }
 0x775   :  { %9804 = vmatprep.subr.bf16.mxu0 %v14535_v17  ;;  %v14592_v17 = vld [vmem:[#allocation9 + $0xbcc] ss:$16 sps:$4 sm:$0xff]  }
 0x778   :  { %9805 = vmatpush1.bf16.msra.mxu0 %v14533_v24  ;;  %v14593_v24 = vld [vmem:[#allocation9 + $0xbe8] ss:$16 sps:$4 sm:$0xff]  }
 0x779   :  { %9806 = vmatprep.subr.bf16.mxu0 %v14538_v26  ;;  %v14598_v26 = vld [vmem:[#allocation9 + $0xc0c] ss:$16 sps:$4 sm:$0xff]  }
 0x77c   :  { %9807 = vmatpush1.bf16.msra.mxu0 %v14536_v45  ;;  %v14601_v45 = vld [vmem:[#allocation9 + $0xc2c] ss:$16 sps:$4 sm:$0xff]  }
 0x77d   :  { %9808 = vmatprep.subr.bf16.mxu0 %v14541_v37  ;;  %v14599_v37 = vld [vmem:[#allocation9 + $0xc28] ss:$16 sps:$4 sm:$0xff]  }
 0x780   :  { %9809 = vmatpush1.bf16.msra.mxu0 %v14539_v53  ;;  %v14606_v53 = vld [vmem:[#allocation9 + $0xc4c] ss:$16 sps:$4 sm:$0xff]  }
 0x781   :  { %9810 = vmatprep.subr.bf16.mxu0 %v14544_v50  ;;  %v14604_v50 = vld [vmem:[#allocation9 + $0xc48] ss:$16 sps:$4 sm:$0xff]  }
 0x784   :  { %9811 = vmatpush1.bf16.msra.mxu0 %v14542_v36  ;;  %v14611_v36 = vld [vmem:[#allocation9 + $0xc6c] ss:$16 sps:$4 sm:$0xff]  }
 0x785   :  { %9812 = vmatprep.subr.bf16.mxu0 %v14547_v40  ;;  %v14609_v40 = vld [vmem:[#allocation9 + $0xc68] ss:$16 sps:$4 sm:$0xff]  }
 0x788   :  { %9813 = vmatpush1.bf16.msra.mxu0 %v14545_v41  ;;  %v14616_v41 = vld [vmem:[#allocation9 + $0xc8c] ss:$16 sps:$4 sm:$0xff]  }
 0x789   :  { %10285 = vmatprep.subr.bf16.mxu0 %v14550_v5  ;;  %v14614_v5 = vld [vmem:[#allocation9 + $0xc88] ss:$16 sps:$4 sm:$0xff]  }
 0x78b   :  { %9815 = vmatmul.mubr.bf16.vlgmr.msra.gmra.mrb[68].mxu0 %v17653_v47  ;;  %v14563_v47 = vld [vmem:[#allocation9 + $0xaa8] ss:$16 sps:$4 sm:$0xff]  }
 0x78c   :  { %10286 = vmatpush1.bf16.msra.mxu0 %v14548_v16  ;;  %10317 = vmatprep.mubr.bf16.mxu0 %v17682_v21  ;;  %v14621_v16 = vld [vmem:[#allocation9 + $0xcac] ss:$16 sps:$4 sm:$0xff]  }
 0x78d   :  { %10287 = vmatprep.subr.bf16.mxu0 %v14553_v49  ;;  %v14626_v49 = vld [vmem:[#allocation9 + $0xccc] ss:$16 sps:$4 sm:$0xff]  }
 0x790   :  { %10288 = vmatpush1.bf16.msra.mxu0 %v14551_v19 }
 0x791   :  { %10289 = vmatprep.subr.bf16.mxu0 %v14556_v29 }
 0x794   :  { %10290 = vmatpush1.bf16.msra.mxu0 %v14554_v62 }
 0x795   :  { %10291 = vmatprep.subr.bf16.mxu0 %v14559_v22 }
 0x798   :  { %10292 = vmatpush1.bf16.msra.mxu0 %v14557_v58  ;;  %v14624_v58 = vld [vmem:[#allocation9 + $0xcc8] ss:$16 sps:$4 sm:$0xff]  }
 0x799   :  { %10293 = vmatprep.subr.bf16.mxu0 %v14562_v46 }
 0x79c   :  { %10294 = vmatpush1.bf16.msra.mxu0 %v14560_v57 }
 0x79d   :  { %10295 = vmatprep.subr.bf16.mxu0 %v14565_v63  ;;  %v14631_v63 = vld [vmem:[#allocation9 + $0xcec] ss:$16 sps:$4 sm:$0xff]  }
 0x79e   :  { %v8810_v21 = vpop.f32.mrb[56].mxu0 }
 0x79f   :  { %v17967_v28 = vadd.f32 %v8810_v21, %v17947_v23  ;;  %v8812_v52 = vpop.f32.mrb[57].mxu0  ;;  %v14575_v23 = vld [vmem:[#allocation9 + $0xb28] ss:$16 sps:$4 sm:$0xff]  }
 0x7a0   :  { %v17970_v20 = vadd.f32 %v8812_v52, %v17952_v51  ;;  %v8814_v18 = vpop.f32.mrb[58].mxu0  ;;  %10296 = vmatpush1.bf16.msra.mxu0 %v14563_v47  ;;  %v14578_v51 = vld [vmem:[#allocation9 + $0xb48] ss:$16 sps:$4 sm:$0xff]  }
 0x7a1   :  { %v8815_v30 = vpop.f32.mrb[59].mxu0  ;;  %10297 = vmatprep.subr.bf16.mxu0 %v14568_v38  ;;  %v17978_v38 = vld [vmem:[#allocation10] sm:$0xf]  ;;  %v14636_v18 = vld [vmem:[#allocation9 + $0xd0c] ss:$16 sps:$4 sm:$0xff]  }
 0x7a4   :  { %10298 = vmatpush1.bf16.msra.mxu0 %v14566_v42 }
 0x7a5   :  { %10299 = vmatprep.subr.bf16.mxu0 %v14571_v10  ;;  %v14641_v10 = vld [vmem:[#allocation9 + $0xd2c] ss:$16 sps:$4 sm:$0xff]  }
 0x7a8   :  { %10300 = vmatpush1.bf16.msra.mxu0 %v14569_v55 }
 0x7a9   :  { %10301 = vmatprep.subr.bf16.mxu0 %v14574_v12 }
 0x7ac   :  { %10302 = vmatpush1.bf16.msra.mxu0 %v14572_v7  ;;  %v14639_v7 = vld [vmem:[#allocation9 + $0xd28] ss:$16 sps:$4 sm:$0xff]  }
 0x7ad   :  { %10303 = vmatprep.subr.bf16.mxu0 %v14577_v59 }
 0x7b0   :  { %10304 = vmatpush1.bf16.msra.mxu0 %v14575_v23 }
 0x7b1   :  { %10305 = vmatprep.subr.bf16.mxu0 %v14580_v6  ;;  %v14650_v6 = vld [vmem:[#allocation9 + $0xd8c] ss:$16 sps:$4 sm:$0xff]  }
 0x7b4   :  { %10306 = vmatpush1.bf16.msra.mxu0 %v14578_v51  ;;  %v14648_v51 = vld [vmem:[#allocation9 + $0xd88] ss:$16 sps:$4 sm:$0xff]  }
 0x7b5   :  { %10307 = vmatprep.subr.bf16.mxu0 %v14583_v8  ;;  %v14653_v8 = vld [vmem:[#allocation9 + $0xdac] ss:$16 sps:$4 sm:$0xff]  }
 0x7b8   :  { %10308 = vmatpush1.bf16.msra.mxu0 %v14581_v0  ;;  %v14651_v0 = vld [vmem:[#allocation9 + $0xda8] ss:$16 sps:$4 sm:$0xff]  }
 0x7b9   :  { %10309 = vmatprep.subr.bf16.mxu0 %v14586_v3  ;;  %v14656_v3 = vld [vmem:[#allocation9 + $0xdcc] ss:$16 sps:$4 sm:$0xff]  }
 0x7bc   :  { %10310 = vmatpush1.bf16.msra.mxu0 %v14584_v15  ;;  %v14654_v15 = vld [vmem:[#allocation9 + $0xdc8] ss:$16 sps:$4 sm:$0xff]  }
 0x7bd   :  { %10311 = vmatprep.subr.bf16.mxu0 %v14589_v27  ;;  %v14659_v27 = vld [vmem:[#allocation9 + $0xdec] ss:$16 sps:$4 sm:$0xff]  }
 0x7c0   :  { %10312 = vmatpush1.bf16.msra.mxu0 %v14587_v4  ;;  %v14657_v4 = vld [vmem:[#allocation9 + $0xde8] ss:$16 sps:$4 sm:$0xff]  }
 0x7c1   :  { %10313 = vmatprep.subr.bf16.mxu0 %v14592_v17  ;;  %v14662_v17 = vld [vmem:[#allocation9 + $0xe0c] ss:$16 sps:$4 sm:$0xff]  }
 0x7c4   :  { %10314 = vmatpush1.bf16.msra.mxu0 %v14590_v60  ;;  %v14660_v60 = vld [vmem:[#allocation9 + $0xe08] ss:$16 sps:$4 sm:$0xff]  }
 0x7c5   :  { %10315 = vmatprep.subr.bf16.mxu0 %v14595_v48  ;;  %v14665_v48 = vld [vmem:[#allocation9 + $0xe2c] ss:$16 sps:$4 sm:$0xff]  }
 0x7c8   :  { %10316 = vmatpush1.bf16.msra.mxu0 %v14593_v24  ;;  %v14663_v24 = vld [vmem:[#allocation9 + $0xe28] ss:$16 sps:$4 sm:$0xff]  }
 0x7c9   :  { %10788 = vmatprep.subr.bf16.mxu0 %v14598_v26  ;;  %v14668_v26 = vld [vmem:[#allocation9 + $0xe4c] ss:$16 sps:$4 sm:$0xff]  }
 0x7cb   :  { %10318 = vmatmul.mubr.bf16.vlgmr.msra.gmra.mrb[72].mxu0 %v17861_v61  ;;  %v14619_v61 = vld [vmem:[#allocation9 + $0xca8] ss:$16 sps:$4 sm:$0xff]  }
 0x7cc   :  { %10789 = vmatpush1.bf16.msra.mxu0 %v14596_v35  ;;  %10820 = vmatprep.mubr.bf16.mxu0 %v17871_v44  ;;  %v14666_v35 = vld [vmem:[#allocation9 + $0xe48] ss:$16 sps:$4 sm:$0xff]  }
 0x7cd   :  { %10790 = vmatprep.subr.bf16.mxu0 %v14601_v45  ;;  %v14671_v45 = vld [vmem:[#allocation9 + $0xe6c] ss:$16 sps:$4 sm:$0xff]  }
 0x7d0   :  { %10791 = vmatpush1.bf16.msra.mxu0 %v14599_v37  ;;  %v14669_v37 = vld [vmem:[#allocation9 + $0xe68] ss:$16 sps:$4 sm:$0xff]  }
 0x7d1   :  { %10792 = vmatprep.subr.bf16.mxu0 %v14606_v53  ;;  %v14674_v53 = vld [vmem:[#allocation9 + $0xe8c] ss:$16 sps:$4 sm:$0xff]  }
 0x7d4   :  { %10793 = vmatpush1.bf16.msra.mxu0 %v14604_v50  ;;  %v14672_v50 = vld [vmem:[#allocation9 + $0xe88] ss:$16 sps:$4 sm:$0xff]  }
 0x7d5   :  { %10794 = vmatprep.subr.bf16.mxu0 %v14611_v36  ;;  %v14677_v36 = vld [vmem:[#allocation9 + $0xeac] ss:$16 sps:$4 sm:$0xff]  }
 0x7d8   :  { %10795 = vmatpush1.bf16.msra.mxu0 %v14609_v40  ;;  %v14680_v40 = vld [vmem:[#allocation9 + $0xecc] ss:$16 sps:$4 sm:$0xff]  }
 0x7d9   :  { %10796 = vmatprep.subr.bf16.mxu0 %v14616_v41 }
 0x7dc   :  { %10797 = vmatpush1.bf16.msra.mxu0 %v14614_v5 }
 0x7dd   :  { %10798 = vmatprep.subr.bf16.mxu0 %v14621_v16 }
 0x7de   :  { %v9272_v44 = vpop.f32.mrb[60].mxu0 }
 0x7df   :  { %v9320_v19 = vadd.f32 %v9272_v44, %v17959_v54  ;;  %v9274_v29 = vpop.f32.mrb[61].mxu0  ;;  %v14629_v54 = vld [vmem:[#allocation9 + $0xce8] ss:$16 sps:$4 sm:$0xff]  }
 0x7e0   :  { %v9321_v62 = vadd.f32 %v9274_v29, %v17962_v32  ;;  %v9276_v22 = vpop.f32.mrb[62].mxu0  ;;  %10799 = vmatpush1.bf16.msra.mxu0 %v14619_v61  ;;  %v14681_v29 = vld [vmem:[#allocation9 + $0xee8] ss:$16 sps:$4 sm:$0xff]  }
 0x7e1   :  { %v9823_v46 = vadd.f32 %v17904_v39, %v9320_v19  ;;  %v9277_v57 = vpop.f32.mrb[63].mxu0  ;;  %10800 = vmatprep.subr.bf16.mxu0 %v14626_v49  ;;  %v11341_v39 = vrot.slane %v17978_v38, %v18329_v33  ;;  %v14644_v33 = vld [vmem:[#allocation9 + $0xd4c] ss:$16 sps:$4 sm:$0xff]   ;;  %v14678_v49 = vld [vmem:[#allocation9 + $0xec8] ss:$16 sps:$4 sm:$0xff]  }
 0x7e2   :  { %v9824_v47 = vadd.f32 %v17908_v25, %v9321_v62  ;;  %v11345_v25 = vrot.slane %v17978_v38, %v18330_v2  ;;  %v14642_v2 = vld [vmem:[#allocation9 + $0xd48] ss:$16 sps:$4 sm:$0xff]   ;;  %v14683_v19 = vld [vmem:[#allocation9 + $0xeec] ss:$16 sps:$4 sm:$0xff]  }
 0x7e3   :  { %v10326_v21 = vadd.f32 %v17918_v11, %v9823_v46  ;;  %v14634_v11 = vld [vmem:[#allocation9 + $0xd08] ss:$16 sps:$4 sm:$0xff]   ;;  %v14686_v62 = vld [vmem:[#allocation9 + $0xf0c] ss:$16 sps:$4 sm:$0xff]  }
 0x7e4   :  { %v10327_v52 = vadd.f32 %v17922_v9, %v9824_v47  ;;  %10801 = vmatpush1.bf16.msra.mxu0 %v14624_v58  ;;  %v14684_v22 = vld [vmem:[#allocation9 + $0xf08] ss:$16 sps:$4 sm:$0xff]   ;;  %v14689_v58 = vld [vmem:[#allocation9 + $0xf2c] ss:$16 sps:$4 sm:$0xff]  }
 0x7e5   :  { %v10829_v32 = vadd.f32 %v17933_v31, %v10326_v21  ;;  %10802 = vmatprep.subr.bf16.mxu0 %v14631_v63  ;;  %v14687_v46 = vld [vmem:[#allocation9 + $0xf28] ss:$16 sps:$4 sm:$0xff]   ;;  %v14695_v57 = vld [vmem:[#allocation9 + $0xf6c] ss:$16 sps:$4 sm:$0xff]  }
 0x7e6   :  { %v10830_v42 = vadd.f32 %v17938_v13, %v10327_v52  ;;  %v14693_v63 = vld [vmem:[#allocation9 + $0xf68] ss:$16 sps:$4 sm:$0xff]   ;;  %v14698_v47 = vld [vmem:[#allocation9 + $0xf8c] ss:$16 sps:$4 sm:$0xff]  }
 0x7e7   :  { %v11332_v30 = vadd.f32 %v17949_v56, %v10829_v32  ;;  %v14647_v56 = vld [vmem:[#allocation9 + $0xd6c] ss:$16 sps:$4 sm:$0xff]   ;;  %v14696_v21 = vld [vmem:[#allocation9 + $0xf88] ss:$16 sps:$4 sm:$0xff]  }
 0x7e8   :  { %10803 = vmatpush1.bf16.msra.mxu0 %v14629_v54  ;;  %v11333_v9 = vadd.f32 %v17954_v14, %v10830_v42  ;;  %v14645_v14 = vld [vmem:[#allocation9 + $0xd68] ss:$16 sps:$4 sm:$0xff]   ;;  %v14701_v52 = vld [vmem:[#allocation9 + $0xfac] ss:$16 sps:$4 sm:$0xff]  }
 0x7e9   :  { %10804 = vmatprep.subr.bf16.mxu0 %v14636_v18  ;;  %v11358_v55 = vadd.f32 %v11341_v39, %v11332_v30  ;;  %v14699_v54 = vld [vmem:[#allocation9 + $0xfa8] ss:$16 sps:$4 sm:$0xff]   ;;  %v14704_v32 = vld [vmem:[#allocation9 + $0xfcc] ss:$16 sps:$4 sm:$0xff]  }
 0x7ea   :  { %v11359_v31 = vadd.f32 %v11345_v25, %v11333_v9  ;;  %v14702_v18 = vld [vmem:[#allocation9 + $0xfc8] ss:$16 sps:$4 sm:$0xff]   ;;  %v14707_v39 = vld [vmem:[#allocation9 + $0xfec] ss:$16 sps:$4 sm:$0xff]  }
 0x7eb   :  { %v11362_v12 = vmax.f32 %v11358_v55, 0.0  ;;  %v14705_v42 = vld [vmem:[#allocation9 + $0xfe8] ss:$16 sps:$4 sm:$0xff]  }
 0x7ec   :  { %10805 = vmatpush1.bf16.msra.mxu0 %v14634_v11  ;;  %v11363_v59 = vmax.f32 %v11359_v31, 0.0  ;;  %v14708_v31 = vld [vmem:[#allocation12 + $0xc0] sm:$0xff]  }
 0x7ed   :  { %10806 = vmatprep.subr.bf16.mxu0 %v14641_v10  ;;  %v11366_v23 = vpack.c.bf16 %v11362_v12, %v11362_v12  ;;  %v14709_v12 = vld [vmem:[#allocation12 + $0x80] sm:$0xff]   ;;  %12882 = vmatprep.subr.bf16.mxu1 %v14708_v31 }
 0x7ee   :  { %v11367_v13 = vpack.c.bf16 %v11363_v59, %v11363_v59  ;;  %v14711_v59 = vld [vmem:[#allocation12 + $0x88] sm:$0xff]  }
 0x7f0   :  { %10807 = vmatpush1.bf16.msra.mxu0 %v14639_v7  ;;  %11665 = vmatprep.mubr.bf16.mxu1 %v11367_v13  ;;  %v14710_v7 = vld [vmem:[#allocation12 + $0xc8] sm:$0xff]   ;;  %v14713_v13 = vld [vmem:[#allocation12 + $0x90] sm:$0xff]  }
 0x7f1   :  { %11666 = vmatmul.mubr.bf16.vlgmr.msra.gmra.mrb[68].mxu1 %v11366_v23  ;;  %10808 = vmatprep.subr.bf16.mxu0 %v14644_v33  ;;  %v14712_v33 = vld [vmem:[#allocation12 + $0xd0] sm:$0xff]   ;;  %v14714_v23 = vld [vmem:[#allocation12 + $0xd8] sm:$0xff]  }
 0x7f2   :  { %12883 = vmatpush3.bf16.msra.mxu1 %v14709_v12 }
 0x7f3   :  { %12884 = vmatprep.subr.bf16.mxu1 %v14710_v7 }
 0x7f4   :  { %10809 = vmatpush1.bf16.msra.mxu0 %v14642_v2  ;;  %v14716_v2 = vld [vmem:[#allocation12 + $0xe0] sm:$0xff]  }
 0x7f5   :  { %10810 = vmatprep.subr.bf16.mxu0 %v14647_v56  ;;  %v14717_v56 = vld [vmem:[#allocation12 + $0xa0] sm:$0xff]  }
 0x7f6   :  { %12885 = vmatpush3.bf16.msra.mxu1 %v14711_v59 }
 0x7f7   :  { %12886 = vmatprep.subr.bf16.mxu1 %v14712_v33 }
 0x7f8   :  { %10811 = vmatpush1.bf16.msra.mxu0 %v14645_v14  ;;  %v14718_v14 = vld [vmem:[#allocation12 + $0xe8] sm:$0xff]  }
 0x7f9   :  { %10812 = vmatprep.subr.bf16.mxu0 %v14650_v6 }
 0x7fa   :  { %12887 = vmatpush3.bf16.msra.mxu1 %v14713_v13 }
 0x7fb   :  { %12888 = vmatprep.subr.bf16.mxu1 %v14714_v23 }
 0x7fc   :  { %10813 = vmatpush1.bf16.msra.mxu0 %v14648_v51 }
 0x7fd   :  { %10814 = vmatprep.subr.bf16.mxu0 %v14653_v8 }
 0x800   :  { %10815 = vmatpush1.bf16.msra.mxu0 %v14651_v0 }
 0x801   :  { %10816 = vmatprep.subr.bf16.mxu0 %v14656_v3 }
 0x804   :  { %10817 = vmatpush1.bf16.msra.mxu0 %v14654_v15 }
 0x805   :  { %10818 = vmatprep.subr.bf16.mxu0 %v14659_v27  ;;  %v14719_v27 = vld [vmem:[#allocation12 + $0xa8] sm:$0xff]  }
 0x808   :  { %10819 = vmatpush1.bf16.msra.mxu0 %v14657_v4  ;;  %v14720_v4 = vld [vmem:[#allocation12 + $0xf0] sm:$0xff]  }
 0x809   :  { %11291 = vmatprep.subr.bf16.mxu0 %v14662_v17  ;;  %v14721_v17 = vld [vmem:[#allocation12 + $0xb0] sm:$0xff]  }
 0x80b   :  { %10821 = vmatmul.mubr.bf16.vlgmr.msra.gmra.mrb[76].mxu0 %v17881_v34  ;;  %v14675_v34 = vld [vmem:[#allocation9 + $0xea8] ss:$16 sps:$4 sm:$0xff]  }
 0x80c   :  { %11292 = vmatpush1.bf16.msra.mxu0 %v14660_v60  ;;  %11323 = vmatprep.mubr.bf16.mxu0 %v17887_v43  ;;  %v14722_v60 = vld [vmem:[#allocation12 + $0xf8] sm:$0xff]  }
 0x80d   :  { %11293 = vmatprep.subr.bf16.mxu0 %v14665_v48  ;;  %v14723_v48 = vld [vmem:[#allocation12 + $0xb8] sm:$0xff]  }
 0x810   :  { %11294 = vmatpush1.bf16.msra.mxu0 %v14663_v24 }
 0x811   :  { %11295 = vmatprep.subr.bf16.mxu0 %v14668_v26 }
 0x814   :  { %11296 = vmatpush1.bf16.msra.mxu0 %v14666_v35 }
 0x815   :  { %11297 = vmatprep.subr.bf16.mxu0 %v14671_v45 }
 0x818   :  { %11298 = vmatpush1.bf16.msra.mxu0 %v14669_v37 }
 0x819   :  { %11299 = vmatprep.subr.bf16.mxu0 %v14674_v53 }
 0x81c   :  { %11300 = vmatpush1.bf16.msra.mxu0 %v14672_v50 }
 0x81d   :  { %11301 = vmatprep.subr.bf16.mxu0 %v14677_v36 }
 0x81e   :  { %v9313_v43 = vpop.f32.mrb[64].mxu0 }
 0x81f   :  { %v9322_v41 = vadd.f32 %v9313_v43, %v17967_v28  ;;  %v9315_v5 = vpop.f32.mrb[65].mxu0  ;;  %v14692_v28 = vld [vmem:[#allocation9 + $0xf4c] ss:$16 sps:$4 sm:$0xff]  }
 0x820   :  { %v9323_v16 = vadd.f32 %v9315_v5, %v17970_v20  ;;  %v9317_v61 = vpop.f32.mrb[66].mxu0  ;;  %11302 = vmatpush1.bf16.msra.mxu0 %v14675_v34  ;;  %v14690_v20 = vld [vmem:[#allocation9 + $0xf48] ss:$16 sps:$4 sm:$0xff]  }
 0x821   :  { %v9318_v44 = vpop.f32.mrb[67].mxu0  ;;  %11303 = vmatprep.subr.bf16.mxu0 %v14680_v40 }
 0x824   :  { %11304 = vmatpush1.bf16.msra.mxu0 %v14678_v49 }
 0x825   :  { %11305 = vmatprep.subr.bf16.mxu0 %v14683_v19 }
 0x828   :  { %11306 = vmatpush1.bf16.msra.mxu0 %v14681_v29 }
 0x829   :  { %11307 = vmatprep.subr.bf16.mxu0 %v14686_v62 }
 0x82c   :  { %11308 = vmatpush1.bf16.msra.mxu0 %v14684_v22 }
 0x82d   :  { %11309 = vmatprep.subr.bf16.mxu0 %v14689_v58 }
 0x830   :  { %11310 = vmatpush1.bf16.msra.mxu0 %v14687_v46 }
 0x831   :  { %11311 = vmatprep.subr.bf16.mxu0 %v14692_v28 }
 0x834   :  { %11312 = vmatpush1.bf16.msra.mxu0 %v14690_v20 }
 0x835   :  { %11313 = vmatprep.subr.bf16.mxu0 %v14695_v57 }
 0x838   :  { %11314 = vmatpush1.bf16.msra.mxu0 %v14693_v63 }
 0x839   :  { %11315 = vmatprep.subr.bf16.mxu0 %v14698_v47 }
 0x83c   :  { %11316 = vmatpush1.bf16.msra.mxu0 %v14696_v21  ;;  %v12747_v21 = vld [vmem:[#allocation13] ss:$0 sm:$0xff] }
 0x83d   :  { %11317 = vmatprep.subr.bf16.mxu0 %v14701_v52 }
 0x840   :  { %11318 = vmatpush1.bf16.msra.mxu0 %v14699_v54 }
 0x841   :  { %11319 = vmatprep.subr.bf16.mxu0 %v14704_v32 }
 0x844   :  { %11320 = vmatpush1.bf16.msra.mxu0 %v14702_v18 }
 0x845   :  { %11321 = vmatprep.subr.bf16.mxu0 %v14707_v39 }
 0x848   :  { %11322 = vmatpush1.bf16.msra.mxu0 %v14705_v42 }
 0x84b   :  { %11324 = vmatmul.mubr.bf16.vlgmr.msra.gmra.mrb[80].mxu0 %v17893_v1  ;;  %v14715_v1 = vld [vmem:[#allocation12 + $0x98] sm:$0xff]  }
 0x84c   :  { %12889 = vmatpush3.bf16.msra.mxu1 %v14715_v1 }
 0x84d   :  { %12890 = vmatprep.subr.bf16.mxu1 %v14716_v2 }
 0x850   :  { %12891 = vmatpush3.bf16.msra.mxu1 %v14717_v56 }
 0x851   :  { %12892 = vmatprep.subr.bf16.mxu1 %v14718_v14 }
 0x854   :  { %12893 = vmatpush3.bf16.msra.mxu1 %v14719_v27 }
 0x855   :  { %12894 = vmatprep.subr.bf16.mxu1 %v14720_v4 }
 0x858   :  { %12895 = vmatpush3.bf16.msra.mxu1 %v14721_v17 }
 0x859   :  { %12896 = vmatprep.subr.bf16.mxu1 %v14722_v60 }
 0x85c   :  { %12897 = vmatpush3.bf16.msra.mxu1 %v14723_v48 }
 0x85e   :  { %v9816_v25 = vpop.f32.mrb[68].mxu0 }
 0x85f   :  { %v9825_v30 = vadd.f32 %v9816_v25, %v9322_v41  ;;  %v9818_v11 = vpop.f32.mrb[69].mxu0  ;;  %v18331_v41 = vld [vmem:[#allocation20_spill] sm:$0xff] }
 0x860   :  { %v9826_v9 = vadd.f32 %v9818_v11, %v9323_v16  ;;  %v9820_v10 = vpop.f32.mrb[70].mxu0  ;;  %v11352_v5 = vsub.s32 3, %v18331_v41  ;;  %v18332_v16 = vsub.s32 2, %v18331_v41 }
 0x861   :  { %v9821_v55 = vpop.f32.mrb[71].mxu0 }
 0x862   :  { %v11349_v61 = vrot.slane %v17978_v38, %v18332_v16  ;;  %v11353_v44 = vrot.slane %v17978_v38, %v11352_v5 }
 0x89e   :  { %v10319_v6 = vpop.f32.mrb[72].mxu0 }
 0x89f   :  { %v10328_v51 = vadd.f32 %v10319_v6, %v9825_v30  ;;  %v10321_v8 = vpop.f32.mrb[73].mxu0 }
 0x8a0   :  { %v10329_v0 = vadd.f32 %v10321_v8, %v9826_v9  ;;  %v10323_v3 = vpop.f32.mrb[74].mxu0 }
 0x8a1   :  { %v10324_v15 = vpop.f32.mrb[75].mxu0 }
 0x8c4   :  { %v12876_v24 = vpop.f32.mrb[68].mxu1 }
 0x8c5   :  { %v12877_v26 = vpop.f32.mrb[69].mxu1 }
 0x8c6   :  { %v12878_v35 = vadd.f32 %v12877_v26, %v12876_v24  ;;  %v12879_v45 = vpop.f32.mrb[70].mxu1 }
 0x8c7   :  { %v12880_v37 = vpop.f32.mrb[71].mxu1 }
 0x8c8   :  { %v11668_v32 = vadd.f32 %v12878_v35, %v12747_v21 }
 0x8de   :  { %v10822_v53 = vpop.f32.mrb[76].mxu0 }
 0x8df   :  { %v10831_v50 = vadd.f32 %v10822_v53, %v10328_v51  ;;  %v10824_v36 = vpop.f32.mrb[77].mxu0 }
 0x8e0   :  { %v10832_v34 = vadd.f32 %v10824_v36, %v10329_v0  ;;  %v10826_v40 = vpop.f32.mrb[78].mxu0 }
 0x8e1   :  { %v10827_v43 = vpop.f32.mrb[79].mxu0 }
 0x91e   :  { %v11325_v49 = vpop.f32.mrb[80].mxu0 }
 0x91f   :  { %v11334_v19 = vadd.f32 %v11325_v49, %v10831_v50  ;;  %v11327_v29 = vpop.f32.mrb[81].mxu0 }
 0x920   :  { %v11335_v62 = vadd.f32 %v11327_v29, %v10832_v34  ;;  %v11329_v22 = vpop.f32.mrb[82].mxu0 }
 0x921   :  { %v11360_v58 = vadd.f32 %v11349_v61, %v11334_v19  ;;  %v11330_v46 = vpop.f32.mrb[83].mxu0 }
 0x922   :  { %v11361_v28 = vadd.f32 %v11353_v44, %v11335_v62 }
 0x923   :  { %v11364_v20 = vmax.f32 %v11360_v58, 0.0 }
 0x924   :  { %v11365_v57 = vmax.f32 %v11361_v28, 0.0 }
 0x925   :  { %v11368_v47 = vpack.c.bf16 %v11364_v20, %v11364_v20 }
 0x926   :  { %v11369_v63 = vpack.c.bf16 %v11365_v57, %v11365_v57 }
 0x928   :  { %11705 = vmatprep.mubr.bf16.mxu1 %v11369_v63 }
 0x929   :  { %11706 = vmatmul.mubr.bf16.vlgmr.msra.gmra.mrb[72].mxu1 %v11368_v47 }
 0x9fc   :  { %v12898_v52 = vpop.f32.mrb[72].mxu1 }
 0x9fd   :  { %v12899_v54 = vpop.f32.mrb[73].mxu1 }
 0x9fe   :  { %v12900_v18 = vadd.f32 %v12899_v54, %v12898_v52  ;;  %v12901_v39 = vpop.f32.mrb[74].mxu1 }
 0x9ff   :  { %v12902_v38 = vpop.f32.mrb[75].mxu1 }
 0xa00   :  { %v11708_v42 = vadd.f32 %v12900_v18, %v11668_v32 }
 0xa02   :  { %11713 = vst [vmem:[%s18013_s10] sm:$0xff] %v11708_v42 }
 0xa03   :  { %11718 = vsyncpa [#allocation3], 1 }
 0xa04   :  { %11719 = vsyncpa [#allocation5], 1 }
 0xa05   :  { %11720 = vsyncpa [#allocation8], 1 }
 0xa06   :  { %11721 = vsyncpa [#allocation11], 1 }
 0xa07   :  { %11722 = vsyncpa [#allocation14], 1 }

</bundles_post_ra>
